<compile_context>
chip_gen: v5e
topology: v5e:2x2
jax: 0.10.0
libtpu: 0.0.40
codegen_flags: <defaults>
</compile_context>

<pallas_src>
import functools

import jax
import jax.numpy as jnp
from jax.experimental import pallas as pl
from jax.experimental.pallas import tpu as pltpu

EPS = 1e-5                      # nn.BatchNorm2d default eps
LANE = 128                      # lane width: channel dims padded to this


def _round_up(x, m):
    return (x + m - 1) // m * m


@functools.lru_cache(maxsize=None)
def _vmem_limit():
    """Generation-aware scoped-VMEM budget: ~3/4 of physical VMEM, capped at
    100 MiB (v5e/v6e -> 96 MiB of 128; v7x -> 48 MiB of 64)."""
    phys = 128 * 1024 * 1024
    try:
        phys = int(getattr(pltpu.get_tpu_info(), "vmem_capacity_bytes", phys))
    except Exception:
        pass
    return min(phys * 3 // 4, 100 * 1024 * 1024)


def _compiler_params(semantics, limit):
    return pltpu.CompilerParams(dimension_semantics=semantics,
                                vmem_limit_bytes=limit)


def _pick_tile(m, row_bytes, fixed_bytes, limit):
    """Largest VMEM-fitting row tile that divides m exactly (exact
    divisibility keeps BN statistics exact: no padded rows enter the sums)."""
    budget = max(limit // 2 - fixed_bytes, 256 * 1024)
    for t in (1024, 512, 256, 128, 64, 32, 16, 8):
        if m % t == 0 and 2 * t * row_bytes <= budget:
            return t
    # TODO(synk): masked (non-dividing) tiles for awkward m instead of a
    # single whole-array block.
    return m


def _split_grid(m, tm):
    """(P, T): leading 'parallel' partial-stats axis (v7x megacore) and inner
    'arbitrary' accumulation axis, with P * T == m // tm."""
    tiles = m // tm
    p = 2 if tiles % 2 == 0 else 1
    return p, tiles // p


def _channel_stats(acc):
    """[2, C] per-channel (sum, sum-of-squares) of an f32 [M, C] tile."""
    return jnp.concatenate(
        [jnp.sum(acc, axis=0, keepdims=True),
         jnp.sum(acc * acc, axis=0, keepdims=True)], axis=0)


# ---------------------------------------------------------------------------
# Kernels
# ---------------------------------------------------------------------------
def _k_conv1x1_stats(x_ref, w_ref, y_ref, st_ref):
    """1x1 conv (bf16 MXU, f32 accumulate) + BN batch-stats accumulation."""
    @pl.when(pl.program_id(1) == 0)
    def _():
        st_ref[...] = jnp.zeros_like(st_ref)

    acc = jnp.dot(x_ref[...], w_ref[...], preferred_element_type=jnp.float32)
    y_ref[...] = acc.astype(y_ref.dtype)
    st_ref[...] += _channel_stats(acc)[None]


def _k_dual_conv1x1_stats(x_ref, w1_ref, wsc_ref, y1_ref, ysc_ref,
                          st1_ref, stsc_ref):
    """conv1 (1x1) and projection-shortcut (1x1, stride 1) fused: x is read
    once, both weight blocks stay resident, both BN stats accumulated."""
    @pl.when(pl.program_id(1) == 0)
    def _():
        st1_ref[...] = jnp.zeros_like(st1_ref)
        stsc_ref[...] = jnp.zeros_like(stsc_ref)

    xv = x_ref[...]
    a1 = jnp.dot(xv, w1_ref[...], preferred_element_type=jnp.float32)
    asc = jnp.dot(xv, wsc_ref[...], preferred_element_type=jnp.float32)
    y1_ref[...] = a1.astype(y1_ref.dtype)
    ysc_ref[...] = asc.astype(ysc_ref.dtype)
    st1_ref[...] += _channel_stats(a1)[None]
    stsc_ref[...] += _channel_stats(asc)[None]


def _k_bnrelu_conv1x1_stats(y_in_ref, sc_ref, sh_ref, w_ref, y_ref, st_ref):
    """Producer's BN+ReLU (folded scale/shift) fused into a 1x1 conv + stats."""
    @pl.when(pl.program_id(1) == 0)
    def _():
        st_ref[...] = jnp.zeros_like(st_ref)

    h = jnp.maximum(y_in_ref[...] * sc_ref[...] + sh_ref[...], 0.0)  # -> f32
    acc = jnp.dot(h.astype(jnp.bfloat16), w_ref[...],
                  preferred_element_type=jnp.float32)
    y_ref[...] = acc.astype(y_ref.dtype)
    st_ref[...] += _channel_stats(acc)[None]


def _k_bnrelu_conv3x3_stats(y1_ref, sc_ref, sh_ref, w_ref, y2_ref, st_ref,
                            pad_ref, *, H, W, Ho, Wo, stride):
    """bn1+relu -> 3x3 conv (pad 1, stride s) + bn2 stats.

    Grid is (partial, image).  pad_ref is a persistent bf16, sublane-aligned
    VMEM halo buffer: fully zeroed at the first image of each partial (so the
    border stays zero under megacore sharding); only the interior is rewritten
    afterwards, so spatial padding never touches HBM.  The conv is 9
    accumulated K=C matmuls straight from the halo (no im2col patch matrix).
    """
    C = pad_ref.shape[-1]
    cout = w_ref.shape[-1]

    @pl.when(pl.program_id(1) == 0)
    def _():
        st_ref[...] = jnp.zeros_like(st_ref)
        pad_ref[...] = jnp.zeros_like(pad_ref)

    # Normalize the raw conv1 output and write it into the halo interior.
    h = jnp.maximum(y1_ref[0] * sc_ref[...] + sh_ref[...], 0.0)   # f32 [H,W,C]
    pad_ref[1:H + 1, 1:W + 1, :] = h.astype(pad_ref.dtype)

    # 9 accumulated taps (K = C each), f32 accumulation on the MXU.
    # TODO(synk): for 56x56 stages, tile over row blocks instead of whole
    # images to shrink the per-step working set under v7x's 64 MiB VMEM.
    acc = jnp.zeros((Ho * Wo, cout), jnp.float32)
    for dy in range(3):
        for dx in range(3):
            if stride == 1:
                win = pad_ref[dy:dy + Ho, dx:dx + Wo, :]
            else:
                win = pad_ref[pl.ds(dy, Ho, stride=stride),
                              pl.ds(dx, Wo, stride=stride), :]
            acc = acc + jnp.dot(win.reshape(Ho * Wo, C), w_ref[dy * 3 + dx],
                                preferred_element_type=jnp.float32)

    y2_ref[0] = acc.reshape(Ho, Wo, cout).astype(y2_ref.dtype)
    st_ref[...] += _channel_stats(acc)[None]


def _k_bn_relu_add_relu(y3_ref, sc3_ref, sh3_ref, ysc_ref, scs_ref, shs_ref,
                        o_ref):
    """Final epilogue: relu(bn3(conv3)) + bn_sc(shortcut), then final relu
    (the reference module applies ReLU before AND after the residual add)."""
    h = jnp.maximum(y3_ref[...] * sc3_ref[...] + sh3_ref[...], 0.0)
    s = ysc_ref[...] * scs_ref[...] + shs_ref[...]
    o_ref[...] = jnp.maximum(h + s, 0.0)


# ---------------------------------------------------------------------------
# pallas_call wrappers
# ---------------------------------------------------------------------------
def _conv1x1_stats(x2d, w, limit):
    m, cin_p = x2d.shape
    cout_p = w.shape[1]
    tm = _pick_tile(m, 2 * (cin_p + cout_p), 4 * cin_p * cout_p, limit)
    p, t = _split_grid(m, tm)
    return pl.pallas_call(
        _k_conv1x1_stats,
        grid=(p, t),
        in_specs=[pl.BlockSpec((tm, cin_p), lambda pi, i: (pi * t + i, 0)),
                  pl.BlockSpec((cin_p, cout_p), lambda pi, i: (0, 0))],
        out_specs=[pl.BlockSpec((tm, cout_p), lambda pi, i: (pi * t + i, 0)),
                   pl.BlockSpec((1, 2, cout_p), lambda pi, i: (pi, 0, 0))],
        out_shape=[jax.ShapeDtypeStruct((m, cout_p), jnp.bfloat16),
                   jax.ShapeDtypeStruct((p, 2, cout_p), jnp.float32)],
        compiler_params=_compiler_params(("parallel", "arbitrary"), limit),
    )(x2d, w)


def _dual_conv1x1_stats(x2d, w1, wsc, limit):
    m, cin_p = x2d.shape
    cmid_p = w1.shape[1]
    cout_p = wsc.shape[1]
    tm = _pick_tile(m, 2 * (cin_p + cmid_p + cout_p),
                    4 * cin_p * (cmid_p + cout_p), limit)
    p, t = _split_grid(m, tm)
    return pl.pallas_call(
        _k_dual_conv1x1_stats,
        grid=(p, t),
        in_specs=[pl.BlockSpec((tm, cin_p), lambda pi, i: (pi * t + i, 0)),
                  pl.BlockSpec((cin_p, cmid_p), lambda pi, i: (0, 0)),
                  pl.BlockSpec((cin_p, cout_p), lambda pi, i: (0, 0))],
        out_specs=[pl.BlockSpec((tm, cmid_p), lambda pi, i: (pi * t + i, 0)),
                   pl.BlockSpec((tm, cout_p), lambda pi, i: (pi * t + i, 0)),
                   pl.BlockSpec((1, 2, cmid_p), lambda pi, i: (pi, 0, 0)),
                   pl.BlockSpec((1, 2, cout_p), lambda pi, i: (pi, 0, 0))],
        out_shape=[jax.ShapeDtypeStruct((m, cmid_p), jnp.bfloat16),
                   jax.ShapeDtypeStruct((m, cout_p), jnp.bfloat16),
                   jax.ShapeDtypeStruct((p, 2, cmid_p), jnp.float32),
                   jax.ShapeDtypeStruct((p, 2, cout_p), jnp.float32)],
        compiler_params=_compiler_params(("parallel", "arbitrary"), limit),
    )(x2d, w1, wsc)


def _bnrelu_conv1x1_stats(y_in, scale, shift, w, limit):
    m, cin_p = y_in.shape
    cout_p = w.shape[1]
    tm = _pick_tile(m, 2 * (cin_p + cout_p), 4 * cin_p * cout_p, limit)
    p, t = _split_grid(m, tm)
    return pl.pallas_call(
        _k_bnrelu_conv1x1_stats,
        grid=(p, t),
        in_specs=[pl.BlockSpec((tm, cin_p), lambda pi, i: (pi * t + i, 0)),
                  pl.BlockSpec((1, cin_p), lambda pi, i: (0, 0)),
                  pl.BlockSpec((1, cin_p), lambda pi, i: (0, 0)),
                  pl.BlockSpec((cin_p, cout_p), lambda pi, i: (0, 0))],
        out_specs=[pl.BlockSpec((tm, cout_p), lambda pi, i: (pi * t + i, 0)),
                   pl.BlockSpec((1, 2, cout_p), lambda pi, i: (pi, 0, 0))],
        out_shape=[jax.ShapeDtypeStruct((m, cout_p), jnp.bfloat16),
                   jax.ShapeDtypeStruct((p, 2, cout_p), jnp.float32)],
        compiler_params=_compiler_params(("parallel", "arbitrary"), limit),
    )(y_in, scale, shift, w)


def _bnrelu_conv3x3_stats(y1_4d, scale, shift, w2, *, stride, limit):
    n, h, w, c = y1_4d.shape
    cout = w2.shape[-1]
    ho = (h - 1) // stride + 1      # == (H + 2 - 3)//stride + 1 with pad=1
    wo = (w - 1) // stride + 1
    p = 2 if n % 2 == 0 else 1
    ipp = n // p
    wp = _round_up(w + 2, 8)        # sublane-aligned halo width
    kern = functools.partial(_k_bnrelu_conv3x3_stats,
                             H=h, W=w, Ho=ho, Wo=wo, stride=stride)
    return pl.pallas_call(
        kern,
        grid=(p, ipp),
        in_specs=[pl.BlockSpec((1, h, w, c),
                               lambda pi, i: (pi * ipp + i, 0, 0, 0)),
                  pl.BlockSpec((1, c), lambda pi, i: (0, 0)),
                  pl.BlockSpec((1, c), lambda pi, i: (0, 0)),
                  pl.BlockSpec((9, c, cout), lambda pi, i: (0, 0, 0))],
        out_specs=[pl.BlockSpec((1, ho, wo, cout),
                                lambda pi, i: (pi * ipp + i, 0, 0, 0)),
                   pl.BlockSpec((1, 2, cout), lambda pi, i: (pi, 0, 0))],
        out_shape=[jax.ShapeDtypeStruct((n, ho, wo, cout), jnp.bfloat16),
                   jax.ShapeDtypeStruct((p, 2, cout), jnp.float32)],
        scratch_shapes=[pltpu.VMEM((h + 2, wp, c), jnp.bfloat16)],
        compiler_params=_compiler_params(("parallel", "arbitrary"), limit),
    )(y1_4d, scale, shift, w2)


def _bn_relu_add_relu(y3, sc3, sh3, ysc, scs, shs, limit):
    m, cout_p = y3.shape
    tm = _pick_tile(m, 2 * cout_p + 2 * cout_p + 4 * cout_p, 0, limit)
    return pl.pallas_call(
        _k_bn_relu_add_relu,
        grid=(m // tm,),
        in_specs=[pl.BlockSpec((tm, cout_p), lambda i: (i, 0)),
                  pl.BlockSpec((1, cout_p), lambda i: (0, 0)),
                  pl.BlockSpec((1, cout_p), lambda i: (0, 0)),
                  pl.BlockSpec((tm, cout_p), lambda i: (i, 0)),
                  pl.BlockSpec((1, cout_p), lambda i: (0, 0)),
                  pl.BlockSpec((1, cout_p), lambda i: (0, 0))],
        out_specs=pl.BlockSpec((tm, cout_p), lambda i: (i, 0)),
        out_shape=jax.ShapeDtypeStruct((m, cout_p), jnp.float32),
        compiler_params=_compiler_params(("parallel",), limit),
    )(y3, sc3, sh3, ysc, scs, shs)


# ---------------------------------------------------------------------------
# Module forward
# ---------------------------------------------------------------------------
def _bn_scale_shift(stats, count, gamma, beta):
    """Fold train-mode BN (batch mean, biased batch var) into per-channel
    scale/shift, summing partial (P, 2, C) accumulators first."""
    s = jnp.sum(stats, axis=0)                       # (2, C)
    mean = s[0:1, :] / count
    # TODO(synk): Welford/shifted accumulation to avoid E[x^2]-E[x]^2
    # cancellation with strongly non-zero-mean activations.
    var = jnp.maximum(s[1:2, :] / count - mean * mean, 0.0)
    scale = gamma * jax.lax.rsqrt(var + EPS)
    shift = beta - mean * scale
    return scale, shift


def res_bottleneck_block(x_nchw, params, *, out_channels, downsample):
    n, cin, h, w = x_nchw.shape
    stride = 2 if downsample else 1
    ho = (h - 1) // stride + 1
    wo = (w - 1) // stride + 1
    cin_p, cmid_p = params["w1"].shape
    cout_p = params["w3"].shape[1]
    limit = _vmem_limit()

    # NCHW -> NHWC, channels padded to the lane width, bf16 for the MXU.
    x = jnp.transpose(x_nchw, (0, 2, 3, 1))
    x = jnp.pad(x, ((0, 0), (0, 0), (0, 0), (0, cin_p - cin)))
    x = x.astype(jnp.bfloat16)
    x2d = x.reshape(n * h * w, cin_p)

    projection = downsample or cin != out_channels

    # conv1 (1x1) + bn1 stats; when the projection shortcut is active with
    # stride 1, the shortcut 1x1 conv is fused (x read once from HBM).
    if projection and stride == 1:
        y1, ysc, st1, stsc = _dual_conv1x1_stats(x2d, params["w1"],
                                                 params["wsc"], limit)
    else:
        y1, st1 = _conv1x1_stats(x2d, params["w1"], limit)
        if projection:
            # TODO(synk): fold the stride-2 subsample into the shortcut
            # kernel's index_map instead of this XLA strided-slice pass.
            xs = x[:, ::stride, ::stride, :]
            ysc, stsc = _conv1x1_stats(xs.reshape(n * ho * wo, cin_p),
                                       params["wsc"], limit)
        else:
            ysc = x2d                               # identity: cin_p == cout_p
    sc1, sh1 = _bn_scale_shift(st1, n * h * w, params["g1"], params["beta1"])

    # conv2 (3x3, pad 1, stride s): bn1+relu on the fly, halo-buffered taps.
    y2, st2 = _bnrelu_conv3x3_stats(y1.reshape(n, h, w, cmid_p), sc1, sh1,
                                    params["w2"], stride=stride, limit=limit)
    sc2, sh2 = _bn_scale_shift(st2, n * ho * wo, params["g2"], params["beta2"])

    # conv3 (1x1): bn2+relu fused on the input side, bn3 stats accumulated.
    y3, st3 = _bnrelu_conv1x1_stats(y2.reshape(n * ho * wo, cmid_p), sc2, sh2,
                                    params["w3"], limit)
    sc3, sh3 = _bn_scale_shift(st3, n * ho * wo, params["g3"], params["beta3"])

    if projection:
        scs, shs = _bn_scale_shift(stsc, n * ho * wo,
                                   params["gsc"], params["betasc"])
    else:
        scs = jnp.ones((1, cout_p), jnp.float32)
        shs = jnp.zeros((1, cout_p), jnp.float32)

    out = _bn_relu_add_relu(y3, sc3, sh3, ysc, scs, shs, limit)
    out = out.reshape(n, ho, wo, cout_p)[..., :out_channels]
    return jnp.transpose(out, (0, 3, 1, 2))         # NHWC -> NCHW


def init_params(key, in_channels, out_channels):
    """Conv weights in [Cin, Cout] / per-tap [9, Cin, Cout] layout, channel
    dims zero-padded to the lane width, bf16.  gamma/beta are [1, C] f32.
    Conv biases are omitted: they cancel exactly under training-mode BN."""
    cmid = out_channels // 4
    cin_p = _round_up(in_channels, LANE)
    cmid_p = _round_up(cmid, LANE)
    cout_p = _round_up(out_channels, LANE)
    ks = jax.random.split(key, 4)

    def pad2(wm, rows, cols):
        return jnp.zeros((rows, cols), jnp.float32).at[
            :wm.shape[0], :wm.shape[1]].set(wm)

    w1 = jax.random.normal(ks[0], (in_channels, cmid), jnp.float32)
    w1 = w1 / jnp.sqrt(float(in_channels))
    w2 = jax.random.normal(ks[1], (3, 3, cmid, cmid), jnp.float32)
    w2 = w2 / jnp.sqrt(float(9 * cmid))
    w3 = jax.random.normal(ks[2], (cmid, out_channels), jnp.float32)
    w3 = w3 / jnp.sqrt(float(cmid))
    wsc = jax.random.normal(ks[3], (in_channels, out_channels), jnp.float32)
    wsc = wsc / jnp.sqrt(float(in_channels))

    w2p = jnp.zeros((3, 3, cmid_p, cmid_p), jnp.float32)
    w2p = w2p.at[:, :, :cmid, :cmid].set(w2).reshape(9, cmid_p, cmid_p)

    def gamma(c_valid, c_pad):
        return jnp.zeros((1, c_pad), jnp.float32).at[:, :c_valid].set(1.0)

    def beta(c_pad):
        return jnp.zeros((1, c_pad), jnp.float32)

    return dict(
        w1=pad2(w1, cin_p, cmid_p).astype(jnp.bfloat16),
        g1=gamma(cmid, cmid_p), beta1=beta(cmid_p),
        w2=w2p.astype(jnp.bfloat16),
        g2=gamma(cmid, cmid_p), beta2=beta(cmid_p),
        w3=pad2(w3, cmid_p, cout_p).astype(jnp.bfloat16),
        g3=gamma(out_channels, cout_p), beta3=beta(cout_p),
        wsc=pad2(wsc, cin_p, cout_p).astype(jnp.bfloat16),
        gsc=gamma(out_channels, cout_p), betasc=beta(cout_p),
    )


if __name__ == "__main__":
    key = jax.random.PRNGKey(0)
    k_x, k_p = jax.random.split(key)

    N, Cin, H, W = 2, 4, 16, 16
    Cout = 8
    downsample = False   # shortcut conv is still active since Cin != Cout

    x = jax.random.normal(k_x, (N, Cin, H, W), jnp.float32)
    params = init_params(k_p, Cin, Cout)

    fwd = jax.jit(functools.partial(res_bottleneck_block,
                                    out_channels=Cout, downsample=downsample))
    y = jax.block_until_ready(fwd(x, params))

    s = 2 if downsample else 1
    assert y.shape == (N, Cout, H // s, W // s), y.shape
    assert bool(jnp.all(jnp.isfinite(y)))
    assert bool(jnp.all(y >= 0.0))       # final ReLU
    print("KERNEL_OK")
</pallas_src>

<mosaic_0001>
module attributes {stable_mosaic.version = 11 : i64} {
  func.func @_k_dual_conv1x1_stats(%arg0: i32, %arg1: i32, %arg2: memref<512x128xbf16, #tpu.memory_space<vmem>>, %arg3: memref<128x128xbf16, #tpu.memory_space<vmem>>, %arg4: memref<128x128xbf16, #tpu.memory_space<vmem>>, %arg5: memref<512x128xbf16, #tpu.memory_space<vmem>>, %arg6: memref<512x128xbf16, #tpu.memory_space<vmem>>, %arg7: memref<1x2x128xf32, #tpu.memory_space<vmem>>, %arg8: memref<1x2x128xf32, #tpu.memory_space<vmem>>) attributes {dimension_semantics = [#tpu.dimension_semantics<parallel>, #tpu.dimension_semantics<arbitrary>], iteration_bounds = array<i64: 1, 1>, scalar_prefetch = 0 : i64, scratch_operands = 0 : i64, tpu.core_type = #tpu.core_type<tc>, window_params = [{transform_indices = @transform_0, window_bounds = array<i64: 512, 128>}, {pipeline_mode = #tpu.pipeline_mode<synchronous>, transform_indices = @transform_1, window_bounds = array<i64: 128, 128>}, {pipeline_mode = #tpu.pipeline_mode<synchronous>, transform_indices = @transform_2, window_bounds = array<i64: 128, 128>}, {transform_indices = @transform_3, window_bounds = array<i64: 512, 128>}, {transform_indices = @transform_4, window_bounds = array<i64: 512, 128>}, {transform_indices = @transform_5, window_bounds = array<i64: 1, 2, 128>}, {transform_indices = @transform_6, window_bounds = array<i64: 1, 2, 128>}]} {
    %c0_i32 = arith.constant 0 : i32
    %0 = arith.cmpi eq, %arg1, %c0_i32 : i32
    %1 = arith.extui %0 : i1 to i32
    %c0_i32_0 = arith.constant 0 : i32
    %2 = arith.cmpi ne, %1, %c0_i32_0 : i32
    scf.if %2 {
      %cst_27 = arith.constant 0.000000e+00 : f32
      %32 = vector.broadcast %cst_27 : f32 to vector<1x2x128xf32>
      %c0_28 = arith.constant 0 : index
      %c0_29 = arith.constant 0 : index
      %c0_30 = arith.constant 0 : index
      %33 = vector.load %arg7[%c0_28, %c0_29, %c0_30] : memref<1x2x128xf32, #tpu.memory_space<vmem>>, vector<1x2x128xf32>
      tpu.vector_store %arg7[%c0_28, %c0_29, %c0_30], %32 {strides = array<i32>} : memref<1x2x128xf32, #tpu.memory_space<vmem>>, vector<1x2x128xf32>,
      %cst_31 = arith.constant 0.000000e+00 : f32
      %34 = vector.broadcast %cst_31 : f32 to vector<1x2x128xf32>
      %c0_32 = arith.constant 0 : index
      %c0_33 = arith.constant 0 : index
      %c0_34 = arith.constant 0 : index
      %35 = vector.load %arg8[%c0_32, %c0_33, %c0_34] : memref<1x2x128xf32, #tpu.memory_space<vmem>>, vector<1x2x128xf32>
      tpu.vector_store %arg8[%c0_32, %c0_33, %c0_34], %34 {strides = array<i32>} : memref<1x2x128xf32, #tpu.memory_space<vmem>>, vector<1x2x128xf32>,
    } else {
    }
    %c0 = arith.constant 0 : index
    %c0_1 = arith.constant 0 : index
    %3 = vector.load %arg2[%c0, %c0_1] : memref<512x128xbf16, #tpu.memory_space<vmem>>, vector<512x128xbf16>
    %c0_2 = arith.constant 0 : index
    %c0_3 = arith.constant 0 : index
    %4 = vector.load %arg3[%c0_2, %c0_3] : memref<128x128xbf16, #tpu.memory_space<vmem>>, vector<128x128xbf16>
    %cst = arith.constant dense<0.000000e+00> : vector<512x128xf32>
    %5 = tpu.matmul %3, %4, %cst {dimension_numbers = #tpu.dot_dimension_numbers<[1], [0], [0], [1], [0, 0, 1, 1], [], []>} : vector<512x128xbf16>, vector<128x128xbf16>, vector<512x128xf32> -> vector<512x128xf32>
    %c0_4 = arith.constant 0 : index
    %c0_5 = arith.constant 0 : index
    %6 = vector.load %arg4[%c0_4, %c0_5] : memref<128x128xbf16, #tpu.memory_space<vmem>>, vector<128x128xbf16>
    %cst_6 = arith.constant dense<0.000000e+00> : vector<512x128xf32>
    %7 = tpu.matmul %3, %6, %cst_6 {dimension_numbers = #tpu.dot_dimension_numbers<[1], [0], [0], [1], [0, 0, 1, 1], [], []>} : vector<512x128xbf16>, vector<128x128xbf16>, vector<512x128xf32> -> vector<512x128xf32>
    %8 = arith.truncf %5 : vector<512x128xf32> to vector<512x128xbf16>
    %c0_7 = arith.constant 0 : index
    %c0_8 = arith.constant 0 : index
    %9 = vector.load %arg5[%c0_7, %c0_8] : memref<512x128xbf16, #tpu.memory_space<vmem>>, vector<512x128xbf16>
    tpu.vector_store %arg5[%c0_7, %c0_8], %8 {strides = array<i32>} : memref<512x128xbf16, #tpu.memory_space<vmem>>, vector<512x128xbf16>,
    %10 = arith.truncf %7 : vector<512x128xf32> to vector<512x128xbf16>
    %c0_9 = arith.constant 0 : index
    %c0_10 = arith.constant 0 : index
    %11 = vector.load %arg6[%c0_9, %c0_10] : memref<512x128xbf16, #tpu.memory_space<vmem>>, vector<512x128xbf16>
    tpu.vector_store %arg6[%c0_9, %c0_10], %10 {strides = array<i32>} : memref<512x128xbf16, #tpu.memory_space<vmem>>, vector<512x128xbf16>,
    %c0_11 = arith.constant 0 : index
    %c0_12 = arith.constant 0 : index
    %c0_13 = arith.constant 0 : index
    %12 = vector.load %arg7[%c0_11, %c0_12, %c0_13] : memref<1x2x128xf32, #tpu.memory_space<vmem>>, vector<1x2x128xf32>
    %cst_14 = arith.constant dense<0.000000e+00> : vector<128xf32>
    %13 = vector.multi_reduction <add>, %5, %cst_14 [0] : vector<512x128xf32> to vector<128xf32>
    %14 = vector.shape_cast %13 : vector<128xf32> to vector<1x128xf32>
    %15 = arith.mulf %5, %5 : vector<512x128xf32>
    %cst_15 = arith.constant dense<0.000000e+00> : vector<128xf32>
    %16 = vector.multi_reduction <add>, %15, %cst_15 [0] : vector<512x128xf32> to vector<128xf32>
    %17 = vector.shape_cast %16 : vector<128xf32> to vector<1x128xf32>
    %18 = tpu.concatenate %14, %17 in 0 : vector<1x128xf32>, vector<1x128xf32> -> vector<2x128xf32>
    %19 = vector.shape_cast %18 : vector<2x128xf32> to vector<1x2x128xf32>
    %20 = arith.addf %12, %19 : vector<1x2x128xf32>
    %c0_16 = arith.constant 0 : index
    %c0_17 = arith.constant 0 : index
    %c0_18 = arith.constant 0 : index
    %21 = vector.load %arg7[%c0_16, %c0_17, %c0_18] : memref<1x2x128xf32, #tpu.memory_space<vmem>>, vector<1x2x128xf32>
    tpu.vector_store %arg7[%c0_16, %c0_17, %c0_18], %20 {strides = array<i32>} : memref<1x2x128xf32, #tpu.memory_space<vmem>>, vector<1x2x128xf32>,
    %c0_19 = arith.constant 0 : index
    %c0_20 = arith.constant 0 : index
    %c0_21 = arith.constant 0 : index
    %22 = vector.load %arg8[%c0_19, %c0_20, %c0_21] : memref<1x2x128xf32, #tpu.memory_space<vmem>>, vector<1x2x128xf32>
    %cst_22 = arith.constant dense<0.000000e+00> : vector<128xf32>
    %23 = vector.multi_reduction <add>, %7, %cst_22 [0] : vector<512x128xf32> to vector<128xf32>
    %24 = vector.shape_cast %23 : vector<128xf32> to vector<1x128xf32>
    %25 = arith.mulf %7, %7 : vector<512x128xf32>
    %cst_23 = arith.constant dense<0.000000e+00> : vector<128xf32>
    %26 = vector.multi_reduction <add>, %25, %cst_23 [0] : vector<512x128xf32> to vector<128xf32>
    %27 = vector.shape_cast %26 : vector<128xf32> to vector<1x128xf32>
    %28 = tpu.concatenate %24, %27 in 0 : vector<1x128xf32>, vector<1x128xf32> -> vector<2x128xf32>
    %29 = vector.shape_cast %28 : vector<2x128xf32> to vector<1x2x128xf32>
    %30 = arith.addf %22, %29 : vector<1x2x128xf32>
    %c0_24 = arith.constant 0 : index
    %c0_25 = arith.constant 0 : index
    %c0_26 = arith.constant 0 : index
    %31 = vector.load %arg8[%c0_24, %c0_25, %c0_26] : memref<1x2x128xf32, #tpu.memory_space<vmem>>, vector<1x2x128xf32>
    tpu.vector_store %arg8[%c0_24, %c0_25, %c0_26], %30 {strides = array<i32>} : memref<1x2x128xf32, #tpu.memory_space<vmem>>, vector<1x2x128xf32>,
    return
  }
  func.func @transform_0(%arg0: i32, %arg1: i32) -> (i32, i32) {
    %c1_i32 = arith.constant 1 : i32
    %0 = arith.muli %arg0, %c1_i32 : i32
    %1 = arith.addi %0, %arg1 : i32
    %c0_i32 = arith.constant 0 : i32
    %c0_i32_0 = arith.constant 0 : i32
    return %1, %c0_i32 : i32, i32
  }
  func.func @transform_1(%arg0: i32, %arg1: i32) -> (i32, i32) {
    %c0_i32 = arith.constant 0 : i32
    %c0_i32_0 = arith.constant 0 : i32
    %c0_i32_1 = arith.constant 0 : i32
    return %c0_i32, %c0_i32_0 : i32, i32
  }
  func.func @transform_2(%arg0: i32, %arg1: i32) -> (i32, i32) {
    %c0_i32 = arith.constant 0 : i32
    %c0_i32_0 = arith.constant 0 : i32
    %c0_i32_1 = arith.constant 0 : i32
    return %c0_i32, %c0_i32_0 : i32, i32
  }
  func.func @transform_3(%arg0: i32, %arg1: i32) -> (i32, i32) {
    %c1_i32 = arith.constant 1 : i32
    %0 = arith.muli %arg0, %c1_i32 : i32
    %1 = arith.addi %0, %arg1 : i32
    %c0_i32 = arith.constant 0 : i32
    %c0_i32_0 = arith.constant 0 : i32
    return %1, %c0_i32 : i32, i32
  }
  func.func @transform_4(%arg0: i32, %arg1: i32) -> (i32, i32) {
    %c1_i32 = arith.constant 1 : i32
    %0 = arith.muli %arg0, %c1_i32 : i32
    %1 = arith.addi %0, %arg1 : i32
    %c0_i32 = arith.constant 0 : i32
    %c0_i32_0 = arith.constant 0 : i32
    return %1, %c0_i32 : i32, i32
  }
  func.func @transform_5(%arg0: i32, %arg1: i32) -> (i32, i32, i32) {
    %c0_i32 = arith.constant 0 : i32
    %c0_i32_0 = arith.constant 0 : i32
    %c0_i32_1 = arith.constant 0 : i32
    return %arg0, %c0_i32, %c0_i32_0 : i32, i32, i32
  }
  func.func @transform_6(%arg0: i32, %arg1: i32) -> (i32, i32, i32) {
    %c0_i32 = arith.constant 0 : i32
    %c0_i32_0 = arith.constant 0 : i32
    %c0_i32_1 = arith.constant 0 : i32
    return %arg0, %c0_i32, %c0_i32_0 : i32, i32, i32
  }
}

module attributes {stable_mosaic.version = 11 : i64} {
  func.func @_k_bnrelu_conv3x3_stats(%arg0: i32, %arg1: i32, %arg2: memref<1x16x16x128xbf16, #tpu.memory_space<vmem>>, %arg3: memref<1x128xf32, #tpu.memory_space<vmem>>, %arg4: memref<1x128xf32, #tpu.memory_space<vmem>>, %arg5: memref<9x128x128xbf16, #tpu.memory_space<vmem>>, %arg6: memref<1x16x16x128xbf16, #tpu.memory_space<vmem>>, %arg7: memref<1x2x128xf32, #tpu.memory_space<vmem>>, %arg8: memref<18x24x128xbf16, #tpu.memory_space<vmem>>) attributes {dimension_semantics = [#tpu.dimension_semantics<parallel>, #tpu.dimension_semantics<arbitrary>], iteration_bounds = array<i64: 2, 1>, scalar_prefetch = 0 : i64, scratch_operands = 1 : i64, tpu.core_type = #tpu.core_type<tc>, window_params = [{transform_indices = @transform_0, window_bounds = array<i64: 1, 16, 16, 128>}, {pipeline_mode = #tpu.pipeline_mode<synchronous>, transform_indices = @transform_1, window_bounds = array<i64: 1, 128>}, {pipeline_mode = #tpu.pipeline_mode<synchronous>, transform_indices = @transform_2, window_bounds = array<i64: 1, 128>}, {pipeline_mode = #tpu.pipeline_mode<synchronous>, transform_indices = @transform_3, window_bounds = array<i64: 9, 128, 128>}, {transform_indices = @transform_4, window_bounds = array<i64: 1, 16, 16, 128>}, {transform_indices = @transform_5, window_bounds = array<i64: 1, 2, 128>}]} {
    %c0_i32 = arith.constant 0 : i32
    %0 = arith.cmpi eq, %arg1, %c0_i32 : i32
    %1 = arith.extui %0 : i1 to i32
    %c0_i32_0 = arith.constant 0 : i32
    %2 = arith.cmpi ne, %1, %c0_i32_0 : i32
    scf.if %2 {
      %cst_79 = arith.constant 0.000000e+00 : f32
      %88 = vector.broadcast %cst_79 : f32 to vector<1x2x128xf32>
      %c0_80 = arith.constant 0 : index
      %c0_81 = arith.constant 0 : index
      %c0_82 = arith.constant 0 : index
      %89 = vector.load %arg7[%c0_80, %c0_81, %c0_82] : memref<1x2x128xf32, #tpu.memory_space<vmem>>, vector<1x2x128xf32>
      tpu.vector_store %arg7[%c0_80, %c0_81, %c0_82], %88 {strides = array<i32>} : memref<1x2x128xf32, #tpu.memory_space<vmem>>, vector<1x2x128xf32>,
      %cst_83 = arith.constant 0.000000e+00 : bf16
      %90 = vector.broadcast %cst_83 : bf16 to vector<18x24x128xbf16>
      %c0_84 = arith.constant 0 : index
      %c0_85 = arith.constant 0 : index
      %c0_86 = arith.constant 0 : index
      %91 = vector.load %arg8[%c0_84, %c0_85, %c0_86] : memref<18x24x128xbf16, #tpu.memory_space<vmem>>, vector<18x24x128xbf16>
      tpu.vector_store %arg8[%c0_84, %c0_85, %c0_86], %90 {strides = array<i32>} : memref<18x24x128xbf16, #tpu.memory_space<vmem>>, vector<18x24x128xbf16>,
    } else {
    }
    %c0 = arith.constant 0 : index
    %c0_1 = arith.constant 0 : index
    %c0_2 = arith.constant 0 : index
    %c0_3 = arith.constant 0 : index
    %3 = vector.load %arg2[%c0, %c0_1, %c0_2, %c0_3] : memref<1x16x16x128xbf16, #tpu.memory_space<vmem>>, vector<1x16x16x128xbf16>
    %4 = vector.shape_cast %3 : vector<1x16x16x128xbf16> to vector<16x16x128xbf16>
    %c0_4 = arith.constant 0 : index
    %c0_5 = arith.constant 0 : index
    %5 = vector.load %arg3[%c0_4, %c0_5] : memref<1x128xf32, #tpu.memory_space<vmem>>, vector<1x128xf32>
    %6 = arith.extf %4 : vector<16x16x128xbf16> to vector<16x16x128xf32>
    %7 = vector.shape_cast %5 : vector<1x128xf32> to vector<1x1x128xf32>
    %8 = vector.broadcast %7 : vector<1x1x128xf32> to vector<16x16x128xf32>
    %9 = arith.mulf %6, %8 : vector<16x16x128xf32>
    %c0_6 = arith.constant 0 : index
    %c0_7 = arith.constant 0 : index
    %10 = vector.load %arg4[%c0_6, %c0_7] : memref<1x128xf32, #tpu.memory_space<vmem>>, vector<1x128xf32>
    %11 = vector.shape_cast %10 : vector<1x128xf32> to vector<1x1x128xf32>
    %12 = vector.broadcast %11 : vector<1x1x128xf32> to vector<16x16x128xf32>
    %13 = arith.addf %9, %12 : vector<16x16x128xf32>
    %cst = arith.constant 0.000000e+00 : f32
    %14 = vector.broadcast %cst : f32 to vector<16x16x128xf32>
    %15 = arith.maximumf %13, %14 : vector<16x16x128xf32>
    %16 = arith.truncf %15 : vector<16x16x128xf32> to vector<16x16x128xbf16>
    %c1 = arith.constant 1 : index
    %c1_8 = arith.constant 1 : index
    %c0_9 = arith.constant 0 : index
    %17 = vector.load %arg8[%c1, %c1_8, %c0_9] : memref<18x24x128xbf16, #tpu.memory_space<vmem>>, vector<16x16x128xbf16>
    tpu.vector_store %arg8[%c1, %c1_8, %c0_9], %16 {strides = array<i32>} : memref<18x24x128xbf16, #tpu.memory_space<vmem>>, vector<16x16x128xbf16>,
    %cst_10 = arith.constant 0.000000e+00 : f32
    %18 = vector.broadcast %cst_10 : f32 to vector<256x128xf32>
    %c0_11 = arith.constant 0 : index
    %c0_12 = arith.constant 0 : index
    %c0_13 = arith.constant 0 : index
    %19 = vector.load %arg8[%c0_11, %c0_12, %c0_13] : memref<18x24x128xbf16, #tpu.memory_space<vmem>>, vector<16x16x128xbf16>
    %20 = vector.shape_cast %19 : vector<16x16x128xbf16> to vector<256x128xbf16>
    %c0_14 = arith.constant 0 : index
    %c0_15 = arith.constant 0 : index
    %c0_16 = arith.constant 0 : index
    %21 = vector.load %arg5[%c0_14, %c0_15, %c0_16] : memref<9x128x128xbf16, #tpu.memory_space<vmem>>, vector<1x128x128xbf16>
    %22 = vector.shape_cast %21 : vector<1x128x128xbf16> to vector<128x128xbf16>
    %cst_17 = arith.constant dense<0.000000e+00> : vector<256x128xf32>
    %23 = tpu.matmul %20, %22, %cst_17 {dimension_numbers = #tpu.dot_dimension_numbers<[1], [0], [0], [1], [0, 0, 1, 1], [], []>} : vector<256x128xbf16>, vector<128x128xbf16>, vector<256x128xf32> -> vector<256x128xf32>
    %24 = arith.addf %18, %23 : vector<256x128xf32>
    %c0_18 = arith.constant 0 : index
    %c1_19 = arith.constant 1 : index
    %c0_20 = arith.constant 0 : index
    %25 = vector.load %arg8[%c0_18, %c1_19, %c0_20] : memref<18x24x128xbf16, #tpu.memory_space<vmem>>, vector<16x16x128xbf16>
    %26 = vector.shape_cast %25 : vector<16x16x128xbf16> to vector<256x128xbf16>
    %c1_21 = arith.constant 1 : index
    %c0_22 = arith.constant 0 : index
    %c0_23 = arith.constant 0 : index
    %27 = vector.load %arg5[%c1_21, %c0_22, %c0_23] : memref<9x128x128xbf16, #tpu.memory_space<vmem>>, vector<1x128x128xbf16>
    %28 = vector.shape_cast %27 : vector<1x128x128xbf16> to vector<128x128xbf16>
    %cst_24 = arith.constant dense<0.000000e+00> : vector<256x128xf32>
    %29 = tpu.matmul %26, %28, %cst_24 {dimension_numbers = #tpu.dot_dimension_numbers<[1], [0], [0], [1], [0, 0, 1, 1], [], []>} : vector<256x128xbf16>, vector<128x128xbf16>, vector<256x128xf32> -> vector<256x128xf32>
    %30 = arith.addf %24, %29 : vector<256x128xf32>
    %c0_25 = arith.constant 0 : index
    %c2 = arith.constant 2 : index
    %c0_26 = arith.constant 0 : index
    %31 = vector.load %arg8[%c0_25, %c2, %c0_26] : memref<18x24x128xbf16, #tpu.memory_space<vmem>>, vector<16x16x128xbf16>
    %32 = vector.shape_cast %31 : vector<16x16x128xbf16> to vector<256x128xbf16>
    %c2_27 = arith.constant 2 : index
    %c0_28 = arith.constant 0 : index
    %c0_29 = arith.constant 0 : index
    %33 = vector.load %arg5[%c2_27, %c0_28, %c0_29] : memref<9x128x128xbf16, #tpu.memory_space<vmem>>, vector<1x128x128xbf16>
    %34 = vector.shape_cast %33 : vector<1x128x128xbf16> to vector<128x128xbf16>
    %cst_30 = arith.constant dense<0.000000e+00> : vector<256x128xf32>
    %35 = tpu.matmul %32, %34, %cst_30 {dimension_numbers = #tpu.dot_dimension_numbers<[1], [0], [0], [1], [0, 0, 1, 1], [], []>} : vector<256x128xbf16>, vector<128x128xbf16>, vector<256x128xf32> -> vector<256x128xf32>
    %36 = arith.addf %30, %35 : vector<256x128xf32>
    %c1_31 = arith.constant 1 : index
    %c0_32 = arith.constant 0 : index
    %c0_33 = arith.constant 0 : index
    %37 = vector.load %arg8[%c1_31, %c0_32, %c0_33] : memref<18x24x128xbf16, #tpu.memory_space<vmem>>, vector<16x16x128xbf16>
    %38 = vector.shape_cast %37 : vector<16x16x128xbf16> to vector<256x128xbf16>
    %c3 = arith.constant 3 : index
    %c0_34 = arith.constant 0 : index
    %c0_35 = arith.constant 0 : index
    %39 = vector.load %arg5[%c3, %c0_34, %c0_35] : memref<9x128x128xbf16, #tpu.memory_space<vmem>>, vector<1x128x128xbf16>
    %40 = vector.shape_cast %39 : vector<1x128x128xbf16> to vector<128x128xbf16>
    %cst_36 = arith.constant dense<0.000000e+00> : vector<256x128xf32>
    %41 = tpu.matmul %38, %40, %cst_36 {dimension_numbers = #tpu.dot_dimension_numbers<[1], [0], [0], [1], [0, 0, 1, 1], [], []>} : vector<256x128xbf16>, vector<128x128xbf16>, vector<256x128xf32> -> vector<256x128xf32>
    %42 = arith.addf %36, %41 : vector<256x128xf32>
    %c1_37 = arith.constant 1 : index
    %c1_38 = arith.constant 1 : index
    %c0_39 = arith.constant 0 : index
    %43 = vector.load %arg8[%c1_37, %c1_38, %c0_39] : memref<18x24x128xbf16, #tpu.memory_space<vmem>>, vector<16x16x128xbf16>
    %44 = vector.shape_cast %43 : vector<16x16x128xbf16> to vector<256x128xbf16>
    %c4 = arith.constant 4 : index
    %c0_40 = arith.constant 0 : index
    %c0_41 = arith.constant 0 : index
    %45 = vector.load %arg5[%c4, %c0_40, %c0_41] : memref<9x128x128xbf16, #tpu.memory_space<vmem>>, vector<1x128x128xbf16>
    %46 = vector.shape_cast %45 : vector<1x128x128xbf16> to vector<128x128xbf16>
    %cst_42 = arith.constant dense<0.000000e+00> : vector<256x128xf32>
    %47 = tpu.matmul %44, %46, %cst_42 {dimension_numbers = #tpu.dot_dimension_numbers<[1], [0], [0], [1], [0, 0, 1, 1], [], []>} : vector<256x128xbf16>, vector<128x128xbf16>, vector<256x128xf32> -> vector<256x128xf32>
    %48 = arith.addf %42, %47 : vector<256x128xf32>
    %c1_43 = arith.constant 1 : index
    %c2_44 = arith.constant 2 : index
    %c0_45 = arith.constant 0 : index
    %49 = vector.load %arg8[%c1_43, %c2_44, %c0_45] : memref<18x24x128xbf16, #tpu.memory_space<vmem>>, vector<16x16x128xbf16>
    %50 = vector.shape_cast %49 : vector<16x16x128xbf16> to vector<256x128xbf16>
    %c5 = arith.constant 5 : index
    %c0_46 = arith.constant 0 : index
    %c0_47 = arith.constant 0 : index
    %51 = vector.load %arg5[%c5, %c0_46, %c0_47] : memref<9x128x128xbf16, #tpu.memory_space<vmem>>, vector<1x128x128xbf16>
    %52 = vector.shape_cast %51 : vector<1x128x128xbf16> to vector<128x128xbf16>
    %cst_48 = arith.constant dense<0.000000e+00> : vector<256x128xf32>
    %53 = tpu.matmul %50, %52, %cst_48 {dimension_numbers = #tpu.dot_dimension_numbers<[1], [0], [0], [1], [0, 0, 1, 1], [], []>} : vector<256x128xbf16>, vector<128x128xbf16>, vector<256x128xf32> -> vector<256x128xf32>
    %54 = arith.addf %48, %53 : vector<256x128xf32>
    %c2_49 = arith.constant 2 : index
    %c0_50 = arith.constant 0 : index
    %c0_51 = arith.constant 0 : index
    %55 = vector.load %arg8[%c2_49, %c0_50, %c0_51] : memref<18x24x128xbf16, #tpu.memory_space<vmem>>, vector<16x16x128xbf16>
    %56 = vector.shape_cast %55 : vector<16x16x128xbf16> to vector<256x128xbf16>
    %c6 = arith.constant 6 : index
    %c0_52 = arith.constant 0 : index
    %c0_53 = arith.constant 0 : index
    %57 = vector.load %arg5[%c6, %c0_52, %c0_53] : memref<9x128x128xbf16, #tpu.memory_space<vmem>>, vector<1x128x128xbf16>
    %58 = vector.shape_cast %57 : vector<1x128x128xbf16> to vector<128x128xbf16>
    %cst_54 = arith.constant dense<0.000000e+00> : vector<256x128xf32>
    %59 = tpu.matmul %56, %58, %cst_54 {dimension_numbers = #tpu.dot_dimension_numbers<[1], [0], [0], [1], [0, 0, 1, 1], [], []>} : vector<256x128xbf16>, vector<128x128xbf16>, vector<256x128xf32> -> vector<256x128xf32>
    %60 = arith.addf %54, %59 : vector<256x128xf32>
    %c2_55 = arith.constant 2 : index
    %c1_56 = arith.constant 1 : index
    %c0_57 = arith.constant 0 : index
    %61 = vector.load %arg8[%c2_55, %c1_56, %c0_57] : memref<18x24x128xbf16, #tpu.memory_space<vmem>>, vector<16x16x128xbf16>
    %62 = vector.shape_cast %61 : vector<16x16x128xbf16> to vector<256x128xbf16>
    %c7 = arith.constant 7 : index
    %c0_58 = arith.constant 0 : index
    %c0_59 = arith.constant 0 : index
    %63 = vector.load %arg5[%c7, %c0_58, %c0_59] : memref<9x128x128xbf16, #tpu.memory_space<vmem>>, vector<1x128x128xbf16>
    %64 = vector.shape_cast %63 : vector<1x128x128xbf16> to vector<128x128xbf16>
    %cst_60 = arith.constant dense<0.000000e+00> : vector<256x128xf32>
    %65 = tpu.matmul %62, %64, %cst_60 {dimension_numbers = #tpu.dot_dimension_numbers<[1], [0], [0], [1], [0, 0, 1, 1], [], []>} : vector<256x128xbf16>, vector<128x128xbf16>, vector<256x128xf32> -> vector<256x128xf32>
    %66 = arith.addf %60, %65 : vector<256x128xf32>
    %c2_61 = arith.constant 2 : index
    %c2_62 = arith.constant 2 : index
    %c0_63 = arith.constant 0 : index
    %67 = vector.load %arg8[%c2_61, %c2_62, %c0_63] : memref<18x24x128xbf16, #tpu.memory_space<vmem>>, vector<16x16x128xbf16>
    %68 = vector.shape_cast %67 : vector<16x16x128xbf16> to vector<256x128xbf16>
    %c8 = arith.constant 8 : index
    %c0_64 = arith.constant 0 : index
    %c0_65 = arith.constant 0 : index
    %69 = vector.load %arg5[%c8, %c0_64, %c0_65] : memref<9x128x128xbf16, #tpu.memory_space<vmem>>, vector<1x128x128xbf16>
    %70 = vector.shape_cast %69 : vector<1x128x128xbf16> to vector<128x128xbf16>
    %cst_66 = arith.constant dense<0.000000e+00> : vector<256x128xf32>
    %71 = tpu.matmul %68, %70, %cst_66 {dimension_numbers = #tpu.dot_dimension_numbers<[1], [0], [0], [1], [0, 0, 1, 1], [], []>} : vector<256x128xbf16>, vector<128x128xbf16>, vector<256x128xf32> -> vector<256x128xf32>
    %72 = arith.addf %66, %71 : vector<256x128xf32>
    %73 = vector.shape_cast %72 : vector<256x128xf32> to vector<16x16x128xf32>
    %74 = arith.truncf %73 : vector<16x16x128xf32> to vector<16x16x128xbf16>
    %c0_67 = arith.constant 0 : index
    %c0_68 = arith.constant 0 : index
    %c0_69 = arith.constant 0 : index
    %c0_70 = arith.constant 0 : index
    %75 = vector.load %arg6[%c0_67, %c0_68, %c0_69, %c0_70] : memref<1x16x16x128xbf16, #tpu.memory_space<vmem>>, vector<1x16x16x128xbf16>
    %76 = vector.shape_cast %75 : vector<1x16x16x128xbf16> to vector<16x16x128xbf16>
    %77 = vector.shape_cast %74 : vector<16x16x128xbf16> to vector<1x16x16x128xbf16>
    tpu.vector_store %arg6[%c0_67, %c0_68, %c0_69, %c0_70], %77 {strides = array<i32>} : memref<1x16x16x128xbf16, #tpu.memory_space<vmem>>, vector<1x16x16x128xbf16>,
    %c0_71 = arith.constant 0 : index
    %c0_72 = arith.constant 0 : index
    %c0_73 = arith.constant 0 : index
    %78 = vector.load %arg7[%c0_71, %c0_72, %c0_73] : memref<1x2x128xf32, #tpu.memory_space<vmem>>, vector<1x2x128xf32>
    %cst_74 = arith.constant dense<0.000000e+00> : vector<128xf32>
    %79 = vector.multi_reduction <add>, %72, %cst_74 [0] : vector<256x128xf32> to vector<128xf32>
    %80 = vector.shape_cast %79 : vector<128xf32> to vector<1x128xf32>
    %81 = arith.mulf %72, %72 : vector<256x128xf32>
    %cst_75 = arith.constant dense<0.000000e+00> : vector<128xf32>
    %82 = vector.multi_reduction <add>, %81, %cst_75 [0] : vector<256x128xf32> to vector<128xf32>
    %83 = vector.shape_cast %82 : vector<128xf32> to vector<1x128xf32>
    %84 = tpu.concatenate %80, %83 in 0 : vector<1x128xf32>, vector<1x128xf32> -> vector<2x128xf32>
    %85 = vector.shape_cast %84 : vector<2x128xf32> to vector<1x2x128xf32>
    %86 = arith.addf %78, %85 : vector<1x2x128xf32>
    %c0_76 = arith.constant 0 : index
    %c0_77 = arith.constant 0 : index
    %c0_78 = arith.constant 0 : index
    %87 = vector.load %arg7[%c0_76, %c0_77, %c0_78] : memref<1x2x128xf32, #tpu.memory_space<vmem>>, vector<1x2x128xf32>
    tpu.vector_store %arg7[%c0_76, %c0_77, %c0_78], %86 {strides = array<i32>} : memref<1x2x128xf32, #tpu.memory_space<vmem>>, vector<1x2x128xf32>,
    return
  }
  func.func @transform_0(%arg0: i32, %arg1: i32) -> (i32, i32, i32, i32) {
    %c1_i32 = arith.constant 1 : i32
    %0 = arith.muli %arg0, %c1_i32 : i32
    %1 = arith.addi %0, %arg1 : i32
    %c0_i32 = arith.constant 0 : i32
    %c0_i32_0 = arith.constant 0 : i32
    %c0_i32_1 = arith.constant 0 : i32
    %c0_i32_2 = arith.constant 0 : i32
    return %1, %c0_i32, %c0_i32_0, %c0_i32_1 : i32, i32, i32, i32
  }
  func.func @transform_1(%arg0: i32, %arg1: i32) -> (i32, i32) {
    %c0_i32 = arith.constant 0 : i32
    %c0_i32_0 = arith.constant 0 : i32
    %c0_i32_1 = arith.constant 0 : i32
    return %c0_i32, %c0_i32_0 : i32, i32
  }
  func.func @transform_2(%arg0: i32, %arg1: i32) -> (i32, i32) {
    %c0_i32 = arith.constant 0 : i32
    %c0_i32_0 = arith.constant 0 : i32
    %c0_i32_1 = arith.constant 0 : i32
    return %c0_i32, %c0_i32_0 : i32, i32
  }
  func.func @transform_3(%arg0: i32, %arg1: i32) -> (i32, i32, i32) {
    %c0_i32 = arith.constant 0 : i32
    %c0_i32_0 = arith.constant 0 : i32
    %c0_i32_1 = arith.constant 0 : i32
    %c0_i32_2 = arith.constant 0 : i32
    return %c0_i32, %c0_i32_0, %c0_i32_1 : i32, i32, i32
  }
  func.func @transform_4(%arg0: i32, %arg1: i32) -> (i32, i32, i32, i32) {
    %c1_i32 = arith.constant 1 : i32
    %0 = arith.muli %arg0, %c1_i32 : i32
    %1 = arith.addi %0, %arg1 : i32
    %c0_i32 = arith.constant 0 : i32
    %c0_i32_0 = arith.constant 0 : i32
    %c0_i32_1 = arith.constant 0 : i32
    %c0_i32_2 = arith.constant 0 : i32
    return %1, %c0_i32, %c0_i32_0, %c0_i32_1 : i32, i32, i32, i32
  }
  func.func @transform_5(%arg0: i32, %arg1: i32) -> (i32, i32, i32) {
    %c0_i32 = arith.constant 0 : i32
    %c0_i32_0 = arith.constant 0 : i32
    %c0_i32_1 = arith.constant 0 : i32
    return %arg0, %c0_i32, %c0_i32_0 : i32, i32, i32
  }
}

module attributes {stable_mosaic.version = 11 : i64} {
  func.func @_k_bnrelu_conv1x1_stats(%arg0: i32, %arg1: i32, %arg2: memref<512x128xbf16, #tpu.memory_space<vmem>>, %arg3: memref<1x128xf32, #tpu.memory_space<vmem>>, %arg4: memref<1x128xf32, #tpu.memory_space<vmem>>, %arg5: memref<128x128xbf16, #tpu.memory_space<vmem>>, %arg6: memref<512x128xbf16, #tpu.memory_space<vmem>>, %arg7: memref<1x2x128xf32, #tpu.memory_space<vmem>>) attributes {dimension_semantics = [#tpu.dimension_semantics<parallel>, #tpu.dimension_semantics<arbitrary>], iteration_bounds = array<i64: 1, 1>, scalar_prefetch = 0 : i64, scratch_operands = 0 : i64, tpu.core_type = #tpu.core_type<tc>, window_params = [{transform_indices = @transform_0, window_bounds = array<i64: 512, 128>}, {pipeline_mode = #tpu.pipeline_mode<synchronous>, transform_indices = @transform_1, window_bounds = array<i64: 1, 128>}, {pipeline_mode = #tpu.pipeline_mode<synchronous>, transform_indices = @transform_2, window_bounds = array<i64: 1, 128>}, {pipeline_mode = #tpu.pipeline_mode<synchronous>, transform_indices = @transform_3, window_bounds = array<i64: 128, 128>}, {transform_indices = @transform_4, window_bounds = array<i64: 512, 128>}, {transform_indices = @transform_5, window_bounds = array<i64: 1, 2, 128>}]} {
    %c0_i32 = arith.constant 0 : i32
    %0 = arith.cmpi eq, %arg1, %c0_i32 : i32
    %1 = arith.extui %0 : i1 to i32
    %c0_i32_0 = arith.constant 0 : i32
    %2 = arith.cmpi ne, %1, %c0_i32_0 : i32
    scf.if %2 {
      %cst_19 = arith.constant 0.000000e+00 : f32
      %28 = vector.broadcast %cst_19 : f32 to vector<1x2x128xf32>
      %c0_20 = arith.constant 0 : index
      %c0_21 = arith.constant 0 : index
      %c0_22 = arith.constant 0 : index
      %29 = vector.load %arg7[%c0_20, %c0_21, %c0_22] : memref<1x2x128xf32, #tpu.memory_space<vmem>>, vector<1x2x128xf32>
      tpu.vector_store %arg7[%c0_20, %c0_21, %c0_22], %28 {strides = array<i32>} : memref<1x2x128xf32, #tpu.memory_space<vmem>>, vector<1x2x128xf32>,
    } else {
    }
    %c0 = arith.constant 0 : index
    %c0_1 = arith.constant 0 : index
    %3 = vector.load %arg2[%c0, %c0_1] : memref<512x128xbf16, #tpu.memory_space<vmem>>, vector<512x128xbf16>
    %c0_2 = arith.constant 0 : index
    %c0_3 = arith.constant 0 : index
    %4 = vector.load %arg3[%c0_2, %c0_3] : memref<1x128xf32, #tpu.memory_space<vmem>>, vector<1x128xf32>
    %5 = arith.extf %3 : vector<512x128xbf16> to vector<512x128xf32>
    %6 = vector.broadcast %4 : vector<1x128xf32> to vector<512x128xf32>
    %7 = arith.mulf %5, %6 : vector<512x128xf32>
    %c0_4 = arith.constant 0 : index
    %c0_5 = arith.constant 0 : index
    %8 = vector.load %arg4[%c0_4, %c0_5] : memref<1x128xf32, #tpu.memory_space<vmem>>, vector<1x128xf32>
    %9 = vector.broadcast %8 : vector<1x128xf32> to vector<512x128xf32>
    %10 = arith.addf %7, %9 : vector<512x128xf32>
    %cst = arith.constant 0.000000e+00 : f32
    %11 = vector.broadcast %cst : f32 to vector<512x128xf32>
    %12 = arith.maximumf %10, %11 : vector<512x128xf32>
    %13 = arith.truncf %12 : vector<512x128xf32> to vector<512x128xbf16>
    %c0_6 = arith.constant 0 : index
    %c0_7 = arith.constant 0 : index
    %14 = vector.load %arg5[%c0_6, %c0_7] : memref<128x128xbf16, #tpu.memory_space<vmem>>, vector<128x128xbf16>
    %cst_8 = arith.constant dense<0.000000e+00> : vector<512x128xf32>
    %15 = tpu.matmul %13, %14, %cst_8 {dimension_numbers = #tpu.dot_dimension_numbers<[1], [0], [0], [1], [0, 0, 1, 1], [], []>} : vector<512x128xbf16>, vector<128x128xbf16>, vector<512x128xf32> -> vector<512x128xf32>
    %16 = arith.truncf %15 : vector<512x128xf32> to vector<512x128xbf16>
    %c0_9 = arith.constant 0 : index
    %c0_10 = arith.constant 0 : index
    %17 = vector.load %arg6[%c0_9, %c0_10] : memref<512x128xbf16, #tpu.memory_space<vmem>>, vector<512x128xbf16>
    tpu.vector_store %arg6[%c0_9, %c0_10], %16 {strides = array<i32>} : memref<512x128xbf16, #tpu.memory_space<vmem>>, vector<512x128xbf16>,
    %c0_11 = arith.constant 0 : index
    %c0_12 = arith.constant 0 : index
    %c0_13 = arith.constant 0 : index
    %18 = vector.load %arg7[%c0_11, %c0_12, %c0_13] : memref<1x2x128xf32, #tpu.memory_space<vmem>>, vector<1x2x128xf32>
    %cst_14 = arith.constant dense<0.000000e+00> : vector<128xf32>
    %19 = vector.multi_reduction <add>, %15, %cst_14 [0] : vector<512x128xf32> to vector<128xf32>
    %20 = vector.shape_cast %19 : vector<128xf32> to vector<1x128xf32>
    %21 = arith.mulf %15, %15 : vector<512x128xf32>
    %cst_15 = arith.constant dense<0.000000e+00> : vector<128xf32>
    %22 = vector.multi_reduction <add>, %21, %cst_15 [0] : vector<512x128xf32> to vector<128xf32>
    %23 = vector.shape_cast %22 : vector<128xf32> to vector<1x128xf32>
    %24 = tpu.concatenate %20, %23 in 0 : vector<1x128xf32>, vector<1x128xf32> -> vector<2x128xf32>
    %25 = vector.shape_cast %24 : vector<2x128xf32> to vector<1x2x128xf32>
    %26 = arith.addf %18, %25 : vector<1x2x128xf32>
    %c0_16 = arith.constant 0 : index
    %c0_17 = arith.constant 0 : index
    %c0_18 = arith.constant 0 : index
    %27 = vector.load %arg7[%c0_16, %c0_17, %c0_18] : memref<1x2x128xf32, #tpu.memory_space<vmem>>, vector<1x2x128xf32>
    tpu.vector_store %arg7[%c0_16, %c0_17, %c0_18], %26 {strides = array<i32>} : memref<1x2x128xf32, #tpu.memory_space<vmem>>, vector<1x2x128xf32>,
    return
  }
  func.func @transform_0(%arg0: i32, %arg1: i32) -> (i32, i32) {
    %c1_i32 = arith.constant 1 : i32
    %0 = arith.muli %arg0, %c1_i32 : i32
    %1 = arith.addi %0, %arg1 : i32
    %c0_i32 = arith.constant 0 : i32
    %c0_i32_0 = arith.constant 0 : i32
    return %1, %c0_i32 : i32, i32
  }
  func.func @transform_1(%arg0: i32, %arg1: i32) -> (i32, i32) {
    %c0_i32 = arith.constant 0 : i32
    %c0_i32_0 = arith.constant 0 : i32
    %c0_i32_1 = arith.constant 0 : i32
    return %c0_i32, %c0_i32_0 : i32, i32
  }
  func.func @transform_2(%arg0: i32, %arg1: i32) -> (i32, i32) {
    %c0_i32 = arith.constant 0 : i32
    %c0_i32_0 = arith.constant 0 : i32
    %c0_i32_1 = arith.constant 0 : i32
    return %c0_i32, %c0_i32_0 : i32, i32
  }
  func.func @transform_3(%arg0: i32, %arg1: i32) -> (i32, i32) {
    %c0_i32 = arith.constant 0 : i32
    %c0_i32_0 = arith.constant 0 : i32
    %c0_i32_1 = arith.constant 0 : i32
    return %c0_i32, %c0_i32_0 : i32, i32
  }
  func.func @transform_4(%arg0: i32, %arg1: i32) -> (i32, i32) {
    %c1_i32 = arith.constant 1 : i32
    %0 = arith.muli %arg0, %c1_i32 : i32
    %1 = arith.addi %0, %arg1 : i32
    %c0_i32 = arith.constant 0 : i32
    %c0_i32_0 = arith.constant 0 : i32
    return %1, %c0_i32 : i32, i32
  }
  func.func @transform_5(%arg0: i32, %arg1: i32) -> (i32, i32, i32) {
    %c0_i32 = arith.constant 0 : i32
    %c0_i32_0 = arith.constant 0 : i32
    %c0_i32_1 = arith.constant 0 : i32
    return %arg0, %c0_i32, %c0_i32_0 : i32, i32, i32
  }
}

module attributes {stable_mosaic.version = 11 : i64} {
  func.func @_k_bn_relu_add_relu(%arg0: i32, %arg1: memref<512x128xbf16, #tpu.memory_space<vmem>>, %arg2: memref<1x128xf32, #tpu.memory_space<vmem>>, %arg3: memref<1x128xf32, #tpu.memory_space<vmem>>, %arg4: memref<512x128xbf16, #tpu.memory_space<vmem>>, %arg5: memref<1x128xf32, #tpu.memory_space<vmem>>, %arg6: memref<1x128xf32, #tpu.memory_space<vmem>>, %arg7: memref<512x128xf32, #tpu.memory_space<vmem>>) attributes {dimension_semantics = [#tpu.dimension_semantics<parallel>], iteration_bounds = array<i64: 1>, scalar_prefetch = 0 : i64, scratch_operands = 0 : i64, tpu.core_type = #tpu.core_type<tc>, window_params = [{transform_indices = @transform_0, window_bounds = array<i64: 512, 128>}, {pipeline_mode = #tpu.pipeline_mode<synchronous>, transform_indices = @transform_1, window_bounds = array<i64: 1, 128>}, {pipeline_mode = #tpu.pipeline_mode<synchronous>, transform_indices = @transform_2, window_bounds = array<i64: 1, 128>}, {transform_indices = @transform_3, window_bounds = array<i64: 512, 128>}, {pipeline_mode = #tpu.pipeline_mode<synchronous>, transform_indices = @transform_4, window_bounds = array<i64: 1, 128>}, {pipeline_mode = #tpu.pipeline_mode<synchronous>, transform_indices = @transform_5, window_bounds = array<i64: 1, 128>}, {transform_indices = @transform_6, window_bounds = array<i64: 512, 128>}]} {
    %c0 = arith.constant 0 : index
    %c0_0 = arith.constant 0 : index
    %0 = vector.load %arg1[%c0, %c0_0] : memref<512x128xbf16, #tpu.memory_space<vmem>>, vector<512x128xbf16>
    %c0_1 = arith.constant 0 : index
    %c0_2 = arith.constant 0 : index
    %1 = vector.load %arg2[%c0_1, %c0_2] : memref<1x128xf32, #tpu.memory_space<vmem>>, vector<1x128xf32>
    %2 = arith.extf %0 : vector<512x128xbf16> to vector<512x128xf32>
    %3 = vector.broadcast %1 : vector<1x128xf32> to vector<512x128xf32>
    %4 = arith.mulf %2, %3 : vector<512x128xf32>
    %c0_3 = arith.constant 0 : index
    %c0_4 = arith.constant 0 : index
    %5 = vector.load %arg3[%c0_3, %c0_4] : memref<1x128xf32, #tpu.memory_space<vmem>>, vector<1x128xf32>
    %6 = vector.broadcast %5 : vector<1x128xf32> to vector<512x128xf32>
    %7 = arith.addf %4, %6 : vector<512x128xf32>
    %cst = arith.constant 0.000000e+00 : f32
    %8 = vector.broadcast %cst : f32 to vector<512x128xf32>
    %9 = arith.maximumf %7, %8 : vector<512x128xf32>
    %c0_5 = arith.constant 0 : index
    %c0_6 = arith.constant 0 : index
    %10 = vector.load %arg4[%c0_5, %c0_6] : memref<512x128xbf16, #tpu.memory_space<vmem>>, vector<512x128xbf16>
    %c0_7 = arith.constant 0 : index
    %c0_8 = arith.constant 0 : index
    %11 = vector.load %arg5[%c0_7, %c0_8] : memref<1x128xf32, #tpu.memory_space<vmem>>, vector<1x128xf32>
    %12 = arith.extf %10 : vector<512x128xbf16> to vector<512x128xf32>
    %13 = vector.broadcast %11 : vector<1x128xf32> to vector<512x128xf32>
    %14 = arith.mulf %12, %13 : vector<512x128xf32>
    %c0_9 = arith.constant 0 : index
    %c0_10 = arith.constant 0 : index
    %15 = vector.load %arg6[%c0_9, %c0_10] : memref<1x128xf32, #tpu.memory_space<vmem>>, vector<1x128xf32>
    %16 = vector.broadcast %15 : vector<1x128xf32> to vector<512x128xf32>
    %17 = arith.addf %14, %16 : vector<512x128xf32>
    %18 = arith.addf %9, %17 : vector<512x128xf32>
    %cst_11 = arith.constant 0.000000e+00 : f32
    %19 = vector.broadcast %cst_11 : f32 to vector<512x128xf32>
    %20 = arith.maximumf %18, %19 : vector<512x128xf32>
    %c0_12 = arith.constant 0 : index
    %c0_13 = arith.constant 0 : index
    %21 = vector.load %arg7[%c0_12, %c0_13] : memref<512x128xf32, #tpu.memory_space<vmem>>, vector<512x128xf32>
    tpu.vector_store %arg7[%c0_12, %c0_13], %20 {strides = array<i32>} : memref<512x128xf32, #tpu.memory_space<vmem>>, vector<512x128xf32>,
    return
  }
  func.func @transform_0(%arg0: i32) -> (i32, i32) {
    %c0_i32 = arith.constant 0 : i32
    %c0_i32_0 = arith.constant 0 : i32
    return %arg0, %c0_i32 : i32, i32
  }
  func.func @transform_1(%arg0: i32) -> (i32, i32) {
    %c0_i32 = arith.constant 0 : i32
    %c0_i32_0 = arith.constant 0 : i32
    %c0_i32_1 = arith.constant 0 : i32
    return %c0_i32, %c0_i32_0 : i32, i32
  }
  func.func @transform_2(%arg0: i32) -> (i32, i32) {
    %c0_i32 = arith.constant 0 : i32
    %c0_i32_0 = arith.constant 0 : i32
    %c0_i32_1 = arith.constant 0 : i32
    return %c0_i32, %c0_i32_0 : i32, i32
  }
  func.func @transform_3(%arg0: i32) -> (i32, i32) {
    %c0_i32 = arith.constant 0 : i32
    %c0_i32_0 = arith.constant 0 : i32
    return %arg0, %c0_i32 : i32, i32
  }
  func.func @transform_4(%arg0: i32) -> (i32, i32) {
    %c0_i32 = arith.constant 0 : i32
    %c0_i32_0 = arith.constant 0 : i32
    %c0_i32_1 = arith.constant 0 : i32
    return %c0_i32, %c0_i32_0 : i32, i32
  }
  func.func @transform_5(%arg0: i32) -> (i32, i32) {
    %c0_i32 = arith.constant 0 : i32
    %c0_i32_0 = arith.constant 0 : i32
    %c0_i32_1 = arith.constant 0 : i32
    return %c0_i32, %c0_i32_0 : i32, i32
  }
  func.func @transform_6(%arg0: i32) -> (i32, i32) {
    %c0_i32 = arith.constant 0 : i32
    %c0_i32_0 = arith.constant 0 : i32
    return %arg0, %c0_i32 : i32, i32
  }
}

</mosaic_0001>

<bundles_post_ra>
// kernel: res_bottleneck_block.4
= control target key start
LH: loop header
LB: loop body
LE: loop exit
PB: predicated region body
PF: predicated region fallthrough
CT: control target
= control target key end

     0   :  { %vm1255_vm0 = vcmask 1040384   ;;  %s3046_s1 = inlined_call_operand.vmem [shape: bf16[128,128], index: 1, kind: input, shape index: {}]   ;;  %s3047_s2 = inlined_call_operand.vmem [shape: bf16[128,128], index: 2, kind: input, shape index: {}]   ;;  %s3048_s0 = inlined_call_operand.vmem [shape: bf16[512,128], index: 0, kind: input, shape index: {}]   ;;  %s3049_s3 = inlined_call_operand.vmem [shape: bf16[512,128], index: 3, kind: output, shape index: {0}]   ;;  %s3050_s4 = inlined_call_operand.vmem [shape: bf16[512,128], index: 4, kind: output, shape index: {1}]   ;;  %s3051_s5 = inlined_call_operand.vmem [shape: f32[1,2,128], index: 5, kind: output, shape index: {2}]   ;;  %s3052_s6 = inlined_call_operand.vmem [shape: f32[1,2,128], index: 6, kind: output, shape index: {3}]  }
   0x1   :  { %v1762_v0 = vld [vmem:[%s3046_s1 + $0x38] sm:$0xff]  ;;  %v1761_v2 = vld [vmem:[%s3046_s1 + $0x30] sm:$0xff]  ;;  %v1760_v4 = vld [vmem:[%s3046_s1 + $0x28] sm:$0xff] }
   0x2   :  { %v1770_v1 = vld [vmem:[%s3047_s2 + $0x38] sm:$0xff]  ;;  %394 = vmatpush.bf16.msra.mxu0 %v1762_v0  ;;  %v1769_v3 = vld [vmem:[%s3047_s2 + $0x30] sm:$0xff]  ;;  %2153 = vmatpush.bf16.msra.mxu2 %v1762_v0  ;;  %v1768_v5 = vld [vmem:[%s3047_s2 + $0x28] sm:$0xff] }
   0x3   :  { %627 = vmatpush.bf16.msra.mxu1 %v1770_v1  ;;  %2161 = vmatpush.bf16.msra.mxu3 %v1770_v1  ;;  %v1759_v6 = vld [vmem:[%s3046_s1 + $0x20] sm:$0xff]  ;;  %v1758_v8 = vld [vmem:[%s3046_s1 + $0x18] sm:$0xff]  ;;  %v1757_v10 = vld [vmem:[%s3046_s1 + $0x10] sm:$0xff] }
   0x4   :  { %v1767_v7 = vld [vmem:[%s3047_s2 + $0x20] sm:$0xff]  ;;  %v1766_v9 = vld [vmem:[%s3047_s2 + $0x18] sm:$0xff]  ;;  %v1765_v11 = vld [vmem:[%s3047_s2 + $0x10] sm:$0xff] }
   0x5   :  { %v1756_v12 = vld [vmem:[%s3046_s1 + $0x8] sm:$0xff]  ;;  %v1755_v14 = vld [vmem:[%s3046_s1] sm:$0xff]  ;;  %v1725_v19 = vld [vmem:[%s3048_s0 + $0x10] sm:$0xff] }
   0x6   :  { %395 = vmatpush.bf16.msra.mxu0 %v1761_v2  ;;  %2154 = vmatpush.bf16.msra.mxu2 %v1761_v2  ;;  %v1764_v13 = vld [vmem:[%s3047_s2 + $0x8] sm:$0xff]  ;;  %v1763_v15 = vld [vmem:[%s3047_s2] sm:$0xff]  ;;  %v1726_v21 = vld [vmem:[%s3048_s0 + $0x18] sm:$0xff] }
   0x7   :  { %628 = vmatpush.bf16.msra.mxu1 %v1769_v3  ;;  %2162 = vmatpush.bf16.msra.mxu3 %v1769_v3  ;;  %v1723_v16 = vld [vmem:[%s3048_s0] sm:$0xff]  ;;  %v1724_v17 = vld [vmem:[%s3048_s0 + $0x8] sm:$0xff]  ;;  %v1741_v22 = vld [vmem:[%s3048_s0 + $0x90] sm:$0xff] }
   0x8   :  { %v1739_v18 = vld [vmem:[%s3048_s0 + $0x80] sm:$0xff]  ;;  %v1740_v20 = vld [vmem:[%s3048_s0 + $0x88] sm:$0xff]  ;;  %v1742_v24 = vld [vmem:[%s3048_s0 + $0x98] sm:$0xff] }
   0x9   :  { %v1727_v23 = vld [vmem:[%s3048_s0 + $0x20] sm:$0xff]  ;;  %v1728_v25 = vld [vmem:[%s3048_s0 + $0x28] sm:$0xff]  ;;  %v1729_v27 = vld [vmem:[%s3048_s0 + $0x30] sm:$0xff] }
   0xa   :  { %396 = vmatpush.bf16.msra.mxu0 %v1760_v4  ;;  %2155 = vmatpush.bf16.msra.mxu2 %v1760_v4  ;;  %v1743_v26 = vld [vmem:[%s3048_s0 + $0xa0] sm:$0xff]  ;;  %v1744_v28 = vld [vmem:[%s3048_s0 + $0xa8] sm:$0xff]  ;;  %v1730_v29 = vld [vmem:[%s3048_s0 + $0x38] sm:$0xff] }
   0xb   :  { %629 = vmatpush.bf16.msra.mxu1 %v1768_v5  ;;  %2163 = vmatpush.bf16.msra.mxu3 %v1768_v5  ;;  %v1745_v30 = vld [vmem:[%s3048_s0 + $0xb0] sm:$0xff]  ;;  %v1731_v31 = vld [vmem:[%s3048_s0 + $0x40] sm:$0xff]  ;;  %v1746_v34 = vld [vmem:[%s3048_s0 + $0xb8] sm:$0xff] }
   0xc   :  { %v1732_v47 = vld [vmem:[%s3048_s0 + $0x48] sm:$0xff]  ;;  %v1747_v56 = vld [vmem:[%s3048_s0 + $0xc0] sm:$0xff]  ;;  %v1733_v5 = vld [vmem:[%s3048_s0 + $0x50] sm:$0xff] }
   0xe   :  { %397 = vmatpush.bf16.msra.mxu0 %v1759_v6  ;;  %2156 = vmatpush.bf16.msra.mxu2 %v1759_v6 }
   0xf   :  { %630 = vmatpush.bf16.msra.mxu1 %v1767_v7  ;;  %2164 = vmatpush.bf16.msra.mxu3 %v1767_v7 }
  0x12   :  { %398 = vmatpush.bf16.msra.mxu0 %v1758_v8  ;;  %2157 = vmatpush.bf16.msra.mxu2 %v1758_v8 }
  0x13   :  { %631 = vmatpush.bf16.msra.mxu1 %v1766_v9  ;;  %2165 = vmatpush.bf16.msra.mxu3 %v1766_v9 }
  0x16   :  { %399 = vmatpush.bf16.msra.mxu0 %v1757_v10  ;;  %2158 = vmatpush.bf16.msra.mxu2 %v1757_v10 }
  0x17   :  { %632 = vmatpush.bf16.msra.mxu1 %v1765_v11  ;;  %2166 = vmatpush.bf16.msra.mxu3 %v1765_v11 }
  0x1a   :  { %400 = vmatpush.bf16.msra.mxu0 %v1756_v12  ;;  %2159 = vmatpush.bf16.msra.mxu2 %v1756_v12 }
  0x1b   :  { %633 = vmatpush.bf16.msra.mxu1 %v1764_v13  ;;  %2167 = vmatpush.bf16.msra.mxu3 %v1764_v13 }
  0x1e   :  { %401 = vmatpush.bf16.msra.mxu0 %v1755_v14  ;;  %2160 = vmatpush.bf16.msra.mxu2 %v1755_v14 }
  0x1f   :  { %634 = vmatpush.bf16.msra.mxu1 %v1763_v15  ;;  %2168 = vmatpush.bf16.msra.mxu3 %v1763_v15 }
  0x21   :  { %402 = vmatmul.bf16.vlgmr.msra.gmra.mxu0 %v1723_v16  ;;  %482 = vmatmul.bf16.vlgmr.msra.gmra.mxu2 %v1739_v18 }
  0x22   :  { %635 = vmatmul.bf16.vlgmr.msra.gmra.mxu1 %v1723_v16  ;;  %715 = vmatmul.bf16.vlgmr.msra.gmra.mxu3 %v1739_v18  ;;  %v1748_v18 = vld [vmem:[%s3048_s0 + $0xc8] sm:$0xff] }
  0x31   :  { %407 = vmatmul.bf16.gmra.mxu0 %v1724_v17  ;;  %487 = vmatmul.bf16.gmra.mxu2 %v1740_v20 }
  0x32   :  { %640 = vmatmul.bf16.gmra.mxu1 %v1724_v17  ;;  %720 = vmatmul.bf16.gmra.mxu3 %v1740_v20 }
  0x41   :  { %412 = vmatmul.bf16.gmra.mxu0 %v1725_v19  ;;  %492 = vmatmul.bf16.gmra.mxu2 %v1741_v22 }
  0x42   :  { %645 = vmatmul.bf16.gmra.mxu1 %v1725_v19  ;;  %725 = vmatmul.bf16.gmra.mxu3 %v1741_v22 }
  0x51   :  { %417 = vmatmul.bf16.gmra.mxu0 %v1726_v21  ;;  %497 = vmatmul.bf16.gmra.mxu2 %v1742_v24 }
  0x52   :  { %650 = vmatmul.bf16.gmra.mxu1 %v1726_v21  ;;  %730 = vmatmul.bf16.gmra.mxu3 %v1742_v24 }
  0x61   :  { %422 = vmatmul.bf16.gmra.mxu0 %v1727_v23  ;;  %502 = vmatmul.bf16.gmra.mxu2 %v1743_v26 }
  0x62   :  { %655 = vmatmul.bf16.gmra.mxu1 %v1727_v23  ;;  %735 = vmatmul.bf16.gmra.mxu3 %v1743_v26 }
  0x71   :  { %427 = vmatmul.bf16.gmra.mxu0 %v1728_v25  ;;  %507 = vmatmul.bf16.gmra.mxu2 %v1744_v28 }
  0x72   :  { %660 = vmatmul.bf16.gmra.mxu1 %v1728_v25  ;;  %740 = vmatmul.bf16.gmra.mxu3 %v1744_v28 }
  0x81   :  { %432 = vmatmul.bf16.gmra.mxu0 %v1729_v27  ;;  %512 = vmatmul.bf16.gmra.mxu2 %v1745_v30 }
  0x82   :  { %665 = vmatmul.bf16.gmra.mxu1 %v1729_v27  ;;  %745 = vmatmul.bf16.gmra.mxu3 %v1745_v30 }
  0x91   :  { %437 = vmatmul.bf16.gmra.mxu0 %v1730_v29  ;;  %517 = vmatmul.bf16.gmra.mxu2 %v1746_v34 }
  0x92   :  { %670 = vmatmul.bf16.gmra.mxu1 %v1730_v29  ;;  %750 = vmatmul.bf16.gmra.mxu3 %v1746_v34 }
  0x9e   :  { %v403_v32 = vpop.f32.mrf.mxu0 }
  0x9f   :  { %v636_v33 = vpop.f32.mrf.mxu1  ;;  %v1122_v35 = vmul.f32 %v403_v32, %v403_v32 }
  0xa0   :  { %v1329_v36 = vmul.f32 %v636_v33, %v636_v33 }
  0xa1   :  { %442 = vmatmul.bf16.gmra.mxu0 %v1731_v31  ;;  %522 = vmatmul.bf16.gmra.mxu2 %v1747_v56 }
  0xa2   :  { %675 = vmatmul.bf16.gmra.mxu1 %v1731_v31  ;;  %755 = vmatmul.bf16.gmra.mxu3 %v1747_v56  ;;  %v1734_v31 = vld [vmem:[%s3048_s0 + $0x58] sm:$0xff] }
  0xa4   :  { %v2317_v63 = vpop.f32.mrf.mxu2 }
  0xa5   :  { %v2319_v0 = vpop.f32.mrf.mxu3 }
  0xa6   :  { %v405_v37 = vpop.f32.mrf.mxu0 }
  0xa7   :  { %v638_v38 = vpop.f32.mrf.mxu1  ;;  %v1774_v39 = vpack.c.bf16 %v405_v37, %v403_v32  ;;  %v1123_v40 = vmul.f32 %v405_v37, %v405_v37  ;;  %v1053_v43 = vadd.f32 %v405_v37, %v403_v32 }
  0xa8   :  { %v1934_v41 = vpack.c.bf16 %v638_v38, %v636_v33  ;;  %v1330_v42 = vmul.f32 %v638_v38, %v638_v38  ;;  %v1260_v44 = vadd.f32 %v638_v38, %v636_v33 }
  0xa9   :  { %1775 = vst [vmem:[%s3049_s3] sm:$0xff] %v1774_v39   ;;  %v1186_v45 = vadd.f32 %v1123_v40, %v1122_v35 }
  0xaa   :  { %v1393_v46 = vadd.f32 %v1330_v42, %v1329_v36  ;;  %1935 = vst [vmem:[%s3050_s4] sm:$0xff] %v1934_v41  }
  0xac   :  { %v2330_v12 = vpop.f32.mrf.mxu2 }
  0xad   :  { %v2332_v13 = vpop.f32.mrf.mxu3  ;;  %v1854_v14 = vpack.c.bf16 %v2330_v12, %v2317_v63 }
  0xae   :  { %v408_v48 = vpop.f32.mrf.mxu0  ;;  %v2014_v15 = vpack.c.bf16 %v2332_v13, %v2319_v0 }
  0xaf   :  { %v641_v49 = vpop.f32.mrf.mxu1  ;;  %v1054_v50 = vadd.f32 %v1053_v43, %v408_v48  ;;  %v1124_v51 = vmul.f32 %v408_v48, %v408_v48  ;;  %2106 = vst [vmem:[%s3049_s3 + $0x80] sm:$0xff] %v1854_v14  }
  0xb0   :  { %v1261_v52 = vadd.f32 %v1260_v44, %v641_v49  ;;  %v1331_v53 = vmul.f32 %v641_v49, %v641_v49  ;;  %2137 = vst [vmem:[%s3050_s4 + $0x80] sm:$0xff] %v2014_v15   ;;  %v1749_v44 = vld [vmem:[%s3048_s0 + $0xd0] sm:$0xff] }
  0xb1   :  { %v1187_v54 = vadd.f32 %v1186_v45, %v1124_v51  ;;  %447 = vmatmul.bf16.gmra.mxu0 %v1732_v47  ;;  %527 = vmatmul.bf16.gmra.mxu2 %v1748_v18 }
  0xb2   :  { %v1394_v55 = vadd.f32 %v1393_v46, %v1331_v53  ;;  %680 = vmatmul.bf16.gmra.mxu1 %v1732_v47  ;;  %760 = vmatmul.bf16.gmra.mxu3 %v1748_v18 }
  0xb4   :  { %v2347_v25 = vpop.f32.mrf.mxu2 }
  0xb5   :  { %v2349_v26 = vpop.f32.mrf.mxu3 }
  0xb6   :  { %v410_v57 = vpop.f32.mrf.mxu0 }
  0xb7   :  { %v643_v58 = vpop.f32.mrf.mxu1  ;;  %v1779_v59 = vpack.c.bf16 %v410_v57, %v408_v48  ;;  %v1125_v60 = vmul.f32 %v410_v57, %v410_v57  ;;  %v1055_v1 = vadd.f32 %v1054_v50, %v410_v57  ;;  %v1735_v57 = vld [vmem:[%s3048_s0 + $0x60] sm:$0xff] }
  0xb8   :  { %v1939_v61 = vpack.c.bf16 %v643_v58, %v641_v49  ;;  %v1332_v62 = vmul.f32 %v643_v58, %v643_v58  ;;  %v1262_v2 = vadd.f32 %v1261_v52, %v643_v58 }
  0xb9   :  { %2091 = vst [vmem:[%s3049_s3 + $0x8] sm:$0xff] %v1779_v59   ;;  %v1188_v3 = vadd.f32 %v1187_v54, %v1125_v60 }
  0xba   :  { %v1395_v4 = vadd.f32 %v1394_v55, %v1332_v62  ;;  %2122 = vst [vmem:[%s3050_s4 + $0x8] sm:$0xff] %v1939_v61  }
  0xbc   :  { %v2360_v38 = vpop.f32.mrf.mxu2 }
  0xbd   :  { %v2362_v39 = vpop.f32.mrf.mxu3  ;;  %v1859_v40 = vpack.c.bf16 %v2360_v38, %v2347_v25 }
  0xbe   :  { %v413_v6 = vpop.f32.mrf.mxu0  ;;  %v2019_v41 = vpack.c.bf16 %v2362_v39, %v2349_v26 }
  0xbf   :  { %v646_v7 = vpop.f32.mrf.mxu1  ;;  %v1056_v8 = vadd.f32 %v1055_v1, %v413_v6  ;;  %v1126_v9 = vmul.f32 %v413_v6, %v413_v6  ;;  %2107 = vst [vmem:[%s3049_s3 + $0x88] sm:$0xff] %v1859_v40   ;;  %v1751_v40 = vld [vmem:[%s3048_s0 + $0xe0] sm:$0xff] }
  0xc0   :  { %v1263_v10 = vadd.f32 %v1262_v2, %v646_v7  ;;  %v1333_v11 = vmul.f32 %v646_v7, %v646_v7  ;;  %2138 = vst [vmem:[%s3050_s4 + $0x88] sm:$0xff] %v2019_v41  }
  0xc1   :  { %v1189_v16 = vadd.f32 %v1188_v3, %v1126_v9  ;;  %452 = vmatmul.bf16.gmra.mxu0 %v1733_v5  ;;  %532 = vmatmul.bf16.gmra.mxu2 %v1749_v44 }
  0xc2   :  { %v1396_v17 = vadd.f32 %v1395_v4, %v1333_v11  ;;  %685 = vmatmul.bf16.gmra.mxu1 %v1733_v5  ;;  %765 = vmatmul.bf16.gmra.mxu3 %v1749_v44 }
  0xc4   :  { %v2377_v51 = vpop.f32.mrf.mxu2 }
  0xc5   :  { %v2379_v52 = vpop.f32.mrf.mxu3 }
  0xc6   :  { %v415_v19 = vpop.f32.mrf.mxu0 }
  0xc7   :  { %v648_v20 = vpop.f32.mrf.mxu1  ;;  %v1784_v21 = vpack.c.bf16 %v415_v19, %v413_v6  ;;  %v1127_v22 = vmul.f32 %v415_v19, %v415_v19  ;;  %v1057_v27 = vadd.f32 %v1056_v8, %v415_v19  ;;  %v1750_v8 = vld [vmem:[%s3048_s0 + $0xd8] sm:$0xff] }
  0xc8   :  { %v1944_v23 = vpack.c.bf16 %v648_v20, %v646_v7  ;;  %v1334_v24 = vmul.f32 %v648_v20, %v648_v20  ;;  %v1264_v28 = vadd.f32 %v1263_v10, %v648_v20 }
  0xc9   :  { %2092 = vst [vmem:[%s3049_s3 + $0x10] sm:$0xff] %v1784_v21   ;;  %v1190_v29 = vadd.f32 %v1189_v16, %v1127_v22 }
  0xca   :  { %v1397_v30 = vadd.f32 %v1396_v17, %v1334_v24  ;;  %2123 = vst [vmem:[%s3050_s4 + $0x10] sm:$0xff] %v1944_v23   ;;  %v1736_v23 = vld [vmem:[%s3048_s0 + $0x68] sm:$0xff] }
  0xcc   :  { %v2390_v2 = vpop.f32.mrf.mxu2 }
  0xcd   :  { %v2392_v3 = vpop.f32.mrf.mxu3  ;;  %v1864_v4 = vpack.c.bf16 %v2390_v2, %v2377_v51 }
  0xce   :  { %v418_v32 = vpop.f32.mrf.mxu0  ;;  %v2024_v5 = vpack.c.bf16 %v2392_v3, %v2379_v52 }
  0xcf   :  { %v651_v33 = vpop.f32.mrf.mxu1  ;;  %v1058_v34 = vadd.f32 %v1057_v27, %v418_v32  ;;  %v1128_v35 = vmul.f32 %v418_v32, %v418_v32  ;;  %2108 = vst [vmem:[%s3049_s3 + $0x90] sm:$0xff] %v1864_v4  }
  0xd0   :  { %v1265_v36 = vadd.f32 %v1264_v28, %v651_v33  ;;  %v1335_v37 = vmul.f32 %v651_v33, %v651_v33  ;;  %2139 = vst [vmem:[%s3050_s4 + $0x90] sm:$0xff] %v2024_v5  }
  0xd1   :  { %v1191_v42 = vadd.f32 %v1190_v29, %v1128_v35  ;;  %457 = vmatmul.bf16.gmra.mxu0 %v1734_v31  ;;  %537 = vmatmul.bf16.gmra.mxu2 %v1750_v8 }
  0xd2   :  { %v1398_v43 = vadd.f32 %v1397_v30, %v1335_v37  ;;  %690 = vmatmul.bf16.gmra.mxu1 %v1734_v31  ;;  %770 = vmatmul.bf16.gmra.mxu3 %v1750_v8  ;;  %v1752_v8 = vld [vmem:[%s3048_s0 + $0xe8] sm:$0xff] }
  0xd4   :  { %v2407_v17 = vpop.f32.mrf.mxu2 }
  0xd5   :  { %v2409_v18 = vpop.f32.mrf.mxu3 }
  0xd6   :  { %v420_v45 = vpop.f32.mrf.mxu0 }
  0xd7   :  { %v653_v46 = vpop.f32.mrf.mxu1  ;;  %v1789_v47 = vpack.c.bf16 %v420_v45, %v418_v32  ;;  %v1129_v48 = vmul.f32 %v420_v45, %v420_v45  ;;  %v1059_v53 = vadd.f32 %v1058_v34, %v420_v45 }
  0xd8   :  { %v1949_v49 = vpack.c.bf16 %v653_v46, %v651_v33  ;;  %v1336_v50 = vmul.f32 %v653_v46, %v653_v46  ;;  %v1266_v54 = vadd.f32 %v1265_v36, %v653_v46 }
  0xd9   :  { %2093 = vst [vmem:[%s3049_s3 + $0x18] sm:$0xff] %v1789_v47   ;;  %v1192_v55 = vadd.f32 %v1191_v42, %v1129_v48 }
  0xda   :  { %v1399_v56 = vadd.f32 %v1398_v43, %v1336_v50  ;;  %2124 = vst [vmem:[%s3050_s4 + $0x18] sm:$0xff] %v1949_v49  }
  0xdc   :  { %v2420_v32 = vpop.f32.mrf.mxu2 }
  0xdd   :  { %v2422_v33 = vpop.f32.mrf.mxu3  ;;  %v1869_v34 = vpack.c.bf16 %v2420_v32, %v2407_v17 }
  0xde   :  { %v423_v58 = vpop.f32.mrf.mxu0  ;;  %v2029_v35 = vpack.c.bf16 %v2422_v33, %v2409_v18 }
  0xdf   :  { %v656_v59 = vpop.f32.mrf.mxu1  ;;  %v1060_v60 = vadd.f32 %v1059_v53, %v423_v58  ;;  %v1130_v61 = vmul.f32 %v423_v58, %v423_v58  ;;  %2109 = vst [vmem:[%s3049_s3 + $0x98] sm:$0xff] %v1869_v34  }
  0xe0   :  { %v1267_v62 = vadd.f32 %v1266_v54, %v656_v59  ;;  %v1337_v1 = vmul.f32 %v656_v59, %v656_v59  ;;  %2140 = vst [vmem:[%s3050_s4 + $0x98] sm:$0xff] %v2029_v35  }
  0xe1   :  { %v1193_v6 = vadd.f32 %v1192_v55, %v1130_v61  ;;  %462 = vmatmul.bf16.gmra.mxu0 %v1735_v57  ;;  %542 = vmatmul.bf16.gmra.mxu2 %v1751_v40  ;;  %v1737_v55 = vld [vmem:[%s3048_s0 + $0x70] sm:$0xff] }
  0xe2   :  { %v1400_v7 = vadd.f32 %v1399_v56, %v1337_v1  ;;  %695 = vmatmul.bf16.gmra.mxu1 %v1735_v57  ;;  %775 = vmatmul.bf16.gmra.mxu3 %v1751_v40 }
  0xe4   :  { %v2437_v47 = vpop.f32.mrf.mxu2 }
  0xe5   :  { %v2439_v48 = vpop.f32.mrf.mxu3 }
  0xe6   :  { %v425_v9 = vpop.f32.mrf.mxu0 }
  0xe7   :  { %v658_v10 = vpop.f32.mrf.mxu1  ;;  %v1794_v11 = vpack.c.bf16 %v425_v9, %v423_v58  ;;  %v1061_v14 = vadd.f32 %v1060_v60, %v425_v9  ;;  %v1131_v15 = vmul.f32 %v425_v9, %v425_v9 }
  0xe8   :  { %v1954_v16 = vpack.c.bf16 %v658_v10, %v656_v59  ;;  %v1268_v19 = vadd.f32 %v1267_v62, %v658_v10  ;;  %v1338_v20 = vmul.f32 %v658_v10, %v658_v10 }
  0xe9   :  { %2094 = vst [vmem:[%s3049_s3 + $0x20] sm:$0xff] %v1794_v11   ;;  %v1194_v21 = vadd.f32 %v1193_v6, %v1131_v15 }
  0xea   :  { %2125 = vst [vmem:[%s3050_s4 + $0x20] sm:$0xff] %v1954_v16   ;;  %v1401_v22 = vadd.f32 %v1400_v7, %v1338_v20 }
  0xec   :  { %v2450_v62 = vpop.f32.mrf.mxu2 }
  0xed   :  { %v2452_v1 = vpop.f32.mrf.mxu3  ;;  %v1874_v4 = vpack.c.bf16 %v2450_v62, %v2437_v47 }
  0xee   :  { %v428_v24 = vpop.f32.mrf.mxu0  ;;  %v2034_v5 = vpack.c.bf16 %v2452_v1, %v2439_v48 }
  0xef   :  { %v661_v27 = vpop.f32.mrf.mxu1  ;;  %v1062_v28 = vadd.f32 %v1061_v14, %v428_v24  ;;  %v1132_v29 = vmul.f32 %v428_v24, %v428_v24  ;;  %2110 = vst [vmem:[%s3049_s3 + $0xa0] sm:$0xff] %v1874_v4  }
  0xf0   :  { %v1269_v30 = vadd.f32 %v1268_v19, %v661_v27  ;;  %v1339_v31 = vmul.f32 %v661_v27, %v661_v27  ;;  %2141 = vst [vmem:[%s3050_s4 + $0xa0] sm:$0xff] %v2034_v5  }
  0xf1   :  { %v1195_v36 = vadd.f32 %v1194_v21, %v1132_v29  ;;  %467 = vmatmul.bf16.gmra.mxu0 %v1736_v23  ;;  %547 = vmatmul.bf16.gmra.mxu2 %v1752_v8 }
  0xf2   :  { %v1402_v37 = vadd.f32 %v1401_v22, %v1339_v31  ;;  %700 = vmatmul.bf16.gmra.mxu1 %v1736_v23  ;;  %780 = vmatmul.bf16.gmra.mxu3 %v1752_v8 }
  0xf4   :  { %v2467_v19 = vpop.f32.mrf.mxu2 }
  0xf5   :  { %v2469_v20 = vpop.f32.mrf.mxu3 }
  0xf6   :  { %v430_v41 = vpop.f32.mrf.mxu0 }
  0xf7   :  { %v663_v42 = vpop.f32.mrf.mxu1  ;;  %v1799_v43 = vpack.c.bf16 %v430_v41, %v428_v24  ;;  %v1063_v44 = vadd.f32 %v1062_v28, %v430_v41  ;;  %v1133_v45 = vmul.f32 %v430_v41, %v430_v41 }
  0xf8   :  { %v1959_v46 = vpack.c.bf16 %v663_v42, %v661_v27  ;;  %v1270_v49 = vadd.f32 %v1269_v30, %v663_v42  ;;  %v1340_v50 = vmul.f32 %v663_v42, %v663_v42  ;;  %v1738_v27 = vld [vmem:[%s3048_s0 + $0x78] sm:$0xff] }
  0xf9   :  { %2095 = vst [vmem:[%s3049_s3 + $0x28] sm:$0xff] %v1799_v43   ;;  %v1196_v53 = vadd.f32 %v1195_v36, %v1133_v45 }
  0xfa   :  { %2126 = vst [vmem:[%s3050_s4 + $0x28] sm:$0xff] %v1959_v46   ;;  %v1403_v54 = vadd.f32 %v1402_v37, %v1340_v50 }
  0xfc   :  { %v2480_v36 = vpop.f32.mrf.mxu2 }
  0xfd   :  { %v2482_v37 = vpop.f32.mrf.mxu3  ;;  %v1879_v40 = vpack.c.bf16 %v2480_v36, %v2467_v19 }
  0xfe   :  { %v433_v56 = vpop.f32.mrf.mxu0  ;;  %v2039_v41 = vpack.c.bf16 %v2482_v37, %v2469_v20 }
  0xff   :  { %v666_v57 = vpop.f32.mrf.mxu1  ;;  %v1064_v58 = vadd.f32 %v1063_v44, %v433_v56  ;;  %v1134_v59 = vmul.f32 %v433_v56, %v433_v56  ;;  %v1753_v44 = vld [vmem:[%s3048_s0 + $0xf0] sm:$0xff]  ;;  %2111 = vst [vmem:[%s3049_s3 + $0xa8] sm:$0xff] %v1879_v40  }
 0x100   :  { %v1271_v60 = vadd.f32 %v1270_v49, %v666_v57  ;;  %v1341_v61 = vmul.f32 %v666_v57, %v666_v57  ;;  %2142 = vst [vmem:[%s3050_s4 + $0xa8] sm:$0xff] %v2039_v41  }
 0x101   :  { %v1197_v6 = vadd.f32 %v1196_v53, %v1134_v59  ;;  %472 = vmatmul.bf16.gmra.mxu0 %v1737_v55  ;;  %552 = vmatmul.bf16.gmra.mxu2 %v1753_v44 }
 0x102   :  { %v1404_v7 = vadd.f32 %v1403_v54, %v1341_v61  ;;  %705 = vmatmul.bf16.gmra.mxu1 %v1737_v55  ;;  %785 = vmatmul.bf16.gmra.mxu3 %v1753_v44 }
 0x104   :  { %v2497_v55 = vpop.f32.mrf.mxu2 }
 0x106   :  { %v435_v9 = vpop.f32.mrf.mxu0 }
 0x107   :  { %v668_v10 = vpop.f32.mrf.mxu1  ;;  %v1804_v11 = vpack.c.bf16 %v435_v9, %v433_v56  ;;  %v1065_v14 = vadd.f32 %v1064_v58, %v435_v9  ;;  %v1135_v15 = vmul.f32 %v435_v9, %v435_v9  ;;  %v2499_v56 = vpop.f32.mrf.mxu3 }
 0x108   :  { %v1964_v16 = vpack.c.bf16 %v668_v10, %v666_v57  ;;  %v1272_v21 = vadd.f32 %v1271_v60, %v668_v10  ;;  %v1342_v22 = vmul.f32 %v668_v10, %v668_v10 }
 0x109   :  { %2096 = vst [vmem:[%s3049_s3 + $0x30] sm:$0xff] %v1804_v11   ;;  %v1198_v23 = vadd.f32 %v1197_v6, %v1135_v15 }
 0x10a   :  { %2127 = vst [vmem:[%s3050_s4 + $0x30] sm:$0xff] %v1964_v16   ;;  %v1405_v24 = vadd.f32 %v1404_v7, %v1342_v22 }
 0x10c   :  { %v2507_v9 = vpop.f32.mrf.mxu2 }
 0x10d   :  { %v1884_v11 = vpack.c.bf16 %v2507_v9, %v2497_v55 }
 0x10e   :  { %v438_v28 = vpop.f32.mrf.mxu0 }
 0x10f   :  { %v671_v29 = vpop.f32.mrf.mxu1  ;;  %v1066_v30 = vadd.f32 %v1065_v14, %v438_v28  ;;  %v1136_v31 = vmul.f32 %v438_v28, %v438_v28  ;;  %v2509_v10 = vpop.f32.mrf.mxu3  ;;  %2112 = vst [vmem:[%s3049_s3 + $0xb0] sm:$0xff] %v1884_v11  }
 0x110   :  { %v1273_v34 = vadd.f32 %v1272_v21, %v671_v29  ;;  %v1343_v35 = vmul.f32 %v671_v29, %v671_v29  ;;  %v2044_v14 = vpack.c.bf16 %v2509_v10, %v2499_v56  ;;  %v1754_v21 = vld [vmem:[%s3048_s0 + $0xf8] sm:$0xff] }
 0x111   :  { %v1199_v42 = vadd.f32 %v1198_v23, %v1136_v31  ;;  %477 = vmatmul.bf16.gmra.mxu0 %v1738_v27  ;;  %557 = vmatmul.bf16.gmra.mxu2 %v1754_v21 }
 0x112   :  { %v1406_v43 = vadd.f32 %v1405_v24, %v1343_v35  ;;  %710 = vmatmul.bf16.gmra.mxu1 %v1738_v27  ;;  %2143 = vst [vmem:[%s3050_s4 + $0xb0] sm:$0xff] %v2044_v14   ;;  %790 = vmatmul.bf16.gmra.mxu3 %v1754_v21 }
 0x116   :  { %v440_v45 = vpop.f32.mrf.mxu0 }
 0x117   :  { %v673_v46 = vpop.f32.mrf.mxu1  ;;  %v1809_v49 = vpack.c.bf16 %v440_v45, %v438_v28  ;;  %v1067_v50 = vadd.f32 %v1066_v30, %v440_v45  ;;  %v1137_v53 = vmul.f32 %v440_v45, %v440_v45  ;;  %v2524_v30 = vpop.f32.mrf.mxu2 }
 0x118   :  { %v1969_v54 = vpack.c.bf16 %v673_v46, %v671_v29  ;;  %v1274_v57 = vadd.f32 %v1273_v34, %v673_v46  ;;  %v1344_v58 = vmul.f32 %v673_v46, %v673_v46  ;;  %v2526_v31 = vpop.f32.mrf.mxu3 }
 0x119   :  { %2097 = vst [vmem:[%s3049_s3 + $0x38] sm:$0xff] %v1809_v49   ;;  %v1200_v59 = vadd.f32 %v1199_v42, %v1137_v53 }
 0x11a   :  { %2128 = vst [vmem:[%s3050_s4 + $0x38] sm:$0xff] %v1969_v54   ;;  %v1407_v60 = vadd.f32 %v1406_v43, %v1344_v58 }
 0x11e   :  { %v443_v61 = vpop.f32.mrf.mxu0 }
 0x11f   :  { %v676_v4 = vpop.f32.mrf.mxu1  ;;  %v1068_v5 = vadd.f32 %v1067_v50, %v443_v61  ;;  %v1138_v6 = vmul.f32 %v443_v61, %v443_v61  ;;  %v2534_v50 = vpop.f32.mrf.mxu2 }
 0x120   :  { %v1275_v7 = vadd.f32 %v1274_v57, %v676_v4  ;;  %v1345_v8 = vmul.f32 %v676_v4, %v676_v4  ;;  %3097 = vst [vmem:[#allocation2_spill] sm:$0xff] %v2534_v50  ;;  %v2536_v53 = vpop.f32.mrf.mxu3  ;;  %v1889_v54 = vpack.c.bf16 %v2534_v50, %v2524_v30 }
 0x121   :  { %v1201_v15 = vadd.f32 %v1200_v59, %v1138_v6  ;;  %3098 = vst [vmem:[#allocation3_spill] sm:$0xff] %v2536_v53  ;;  %v2049_v57 = vpack.c.bf16 %v2536_v53, %v2526_v31 }
 0x122   :  { %v1408_v16 = vadd.f32 %v1407_v60, %v1345_v8  ;;  %2113 = vst [vmem:[%s3049_s3 + $0xb8] sm:$0xff] %v1889_v54  }
 0x123   :  { %2144 = vst [vmem:[%s3050_s4 + $0xb8] sm:$0xff] %v2049_v57  }
 0x126   :  { %v445_v22 = vpop.f32.mrf.mxu0 }
 0x127   :  { %v678_v23 = vpop.f32.mrf.mxu1  ;;  %v1814_v24 = vpack.c.bf16 %v445_v22, %v443_v61  ;;  %v1069_v27 = vadd.f32 %v1068_v5, %v445_v22  ;;  %v1139_v28 = vmul.f32 %v445_v22, %v445_v22  ;;  %v2548_v8 = vpop.f32.mrf.mxu2 }
 0x128   :  { %v1974_v29 = vpack.c.bf16 %v678_v23, %v676_v4  ;;  %v1276_v34 = vadd.f32 %v1275_v7, %v678_v23  ;;  %v1346_v35 = vmul.f32 %v678_v23, %v678_v23  ;;  %3099 = vst [vmem:[#allocation4_spill] sm:$0xff] %v2548_v8  ;;  %v2550_v11 = vpop.f32.mrf.mxu3 }
 0x129   :  { %2098 = vst [vmem:[%s3049_s3 + $0x40] sm:$0xff] %v1814_v24   ;;  %v1202_v40 = vadd.f32 %v1201_v15, %v1139_v28 }
 0x12a   :  { %2129 = vst [vmem:[%s3050_s4 + $0x40] sm:$0xff] %v1974_v29   ;;  %v1409_v41 = vadd.f32 %v1408_v16, %v1346_v35 }
 0x12b   :  { %3100 = vst [vmem:[#allocation5_spill] sm:$0xff] %v2550_v11 }
 0x12e   :  { %v448_v42 = vpop.f32.mrf.mxu0 }
 0x12f   :  { %v681_v43 = vpop.f32.mrf.mxu1  ;;  %v1070_v44 = vadd.f32 %v1069_v27, %v448_v42  ;;  %v1140_v45 = vmul.f32 %v448_v42, %v448_v42 }
 0x130   :  { %v1277_v46 = vadd.f32 %v1276_v34, %v681_v43  ;;  %v1347_v49 = vmul.f32 %v681_v43, %v681_v43  ;;  %v2562_v34 = vpop.f32.mrf.mxu2  ;;  %v2564_v35 = vpop.f32.mrf.mxu3 }
 0x131   :  { %v1203_v58 = vadd.f32 %v1202_v40, %v1140_v45  ;;  %3101 = vst [vmem:[#allocation6_spill] sm:$0xff] %v2562_v34  ;;  %v1894_v40 = vpack.c.bf16 %v2562_v34, %v2548_v8 }
 0x132   :  { %v1410_v59 = vadd.f32 %v1409_v41, %v1347_v49  ;;  %3102 = vst [vmem:[#allocation7_spill] sm:$0xff] %v2564_v35  ;;  %v2054_v41 = vpack.c.bf16 %v2564_v35, %v2550_v11 }
 0x133   :  { %2114 = vst [vmem:[%s3049_s3 + $0xc0] sm:$0xff] %v1894_v40  }
 0x134   :  { %2145 = vst [vmem:[%s3050_s4 + $0xc0] sm:$0xff] %v2054_v41  }
 0x136   :  { %v450_v60 = vpop.f32.mrf.mxu0 }
 0x137   :  { %v683_v61 = vpop.f32.mrf.mxu1  ;;  %v1819_v4 = vpack.c.bf16 %v450_v60, %v448_v42  ;;  %v1071_v5 = vadd.f32 %v1070_v44, %v450_v60  ;;  %v1141_v6 = vmul.f32 %v450_v60, %v450_v60 }
 0x138   :  { %v1979_v7 = vpack.c.bf16 %v683_v61, %v681_v43  ;;  %v1278_v14 = vadd.f32 %v1277_v46, %v683_v61  ;;  %v1348_v15 = vmul.f32 %v683_v61, %v683_v61  ;;  %v2586_v54 = vpop.f32.mrf.mxu2  ;;  %v2588_v57 = vpop.f32.mrf.mxu3 }
 0x139   :  { %2099 = vst [vmem:[%s3049_s3 + $0x48] sm:$0xff] %v1819_v4   ;;  %v1204_v16 = vadd.f32 %v1203_v58, %v1141_v6 }
 0x13a   :  { %2130 = vst [vmem:[%s3050_s4 + $0x48] sm:$0xff] %v1979_v7   ;;  %v1411_v21 = vadd.f32 %v1410_v59, %v1348_v15 }
 0x13b   :  { %3103 = vst [vmem:[#allocation8_spill] sm:$0xff] %v2586_v54 }
 0x13c   :  { %3104 = vst [vmem:[#allocation9_spill] sm:$0xff] %v2588_v57 }
 0x13e   :  { %v453_v22 = vpop.f32.mrf.mxu0 }
 0x13f   :  { %v686_v23 = vpop.f32.mrf.mxu1  ;;  %v2558_v24 = vadd.f32 %v1071_v5, %v453_v22  ;;  %v1142_v27 = vmul.f32 %v453_v22, %v453_v22 }
 0x140   :  { %v2560_v28 = vadd.f32 %v1278_v14, %v686_v23  ;;  %v1349_v29 = vmul.f32 %v686_v23, %v686_v23  ;;  %v2600_v60 = vpop.f32.mrf.mxu2  ;;  %v2602_v61 = vpop.f32.mrf.mxu3 }
 0x141   :  { %v2570_v42 = vadd.f32 %v1204_v16, %v1142_v27  ;;  %3105 = vst [vmem:[#allocation10_spill] sm:$0xff] %v2600_v60  ;;  %v1899_v4 = vpack.c.bf16 %v2600_v60, %v2586_v54  ;;  %v2059_v5 = vpack.c.bf16 %v2602_v61, %v2588_v57 }
 0x142   :  { %v2572_v43 = vadd.f32 %v1411_v21, %v1349_v29  ;;  %3106 = vst [vmem:[#allocation11_spill] sm:$0xff] %v2602_v61 }
 0x143   :  { %2115 = vst [vmem:[%s3049_s3 + $0xc8] sm:$0xff] %v1899_v4  }
 0x144   :  { %2146 = vst [vmem:[%s3050_s4 + $0xc8] sm:$0xff] %v2059_v5  }
 0x146   :  { %v2580_v44 = vpop.f32.mrf.mxu0 }
 0x147   :  { %v2582_v45 = vpop.f32.mrf.mxu1  ;;  %v1824_v46 = vpack.c.bf16 %v2580_v44, %v453_v22  ;;  %v1143_v57 = vmul.f32 %v2580_v44, %v2580_v44  ;;  %v1073_v35 = vadd.f32 %v2558_v24, %v2580_v44 }
 0x148   :  { %v1984_v49 = vpack.c.bf16 %v2582_v45, %v686_v23  ;;  %v2619_v16 = vpop.f32.mrf.mxu2  ;;  %v2621_v21 = vpop.f32.mrf.mxu3  ;;  %v1350_v54 = vmul.f32 %v2582_v45, %v2582_v45  ;;  %v1280_v8 = vadd.f32 %v2560_v28, %v2582_v45 }
 0x149   :  { %2100 = vst [vmem:[%s3049_s3 + $0x50] sm:$0xff] %v1824_v46  }
 0x14a   :  { %2131 = vst [vmem:[%s3050_s4 + $0x50] sm:$0xff] %v1984_v49   ;;  %v1413_v24 = vadd.f32 %v2572_v43, %v1350_v54 }
 0x14b   :  { %3107 = vst [vmem:[#allocation12_spill] sm:$0xff] %v2619_v16 }
 0x14c   :  { %3108 = vst [vmem:[#allocation13_spill] sm:$0xff] %v2621_v21 }
 0x14e   :  { %v2596_v58 = vpop.f32.mrf.mxu0 }
 0x14f   :  { %v2598_v59 = vpop.f32.mrf.mxu1  ;;  %v1144_v34 = vmul.f32 %v2596_v58, %v2596_v58  ;;  %v1074_v44 = vadd.f32 %v1073_v35, %v2596_v58 }
 0x150   :  { %v2633_v27 = vpop.f32.mrf.mxu2  ;;  %v2635_v29 = vpop.f32.mrf.mxu3  ;;  %v1351_v11 = vmul.f32 %v2598_v59, %v2598_v59 }
 0x151   :  { %3109 = vst [vmem:[#allocation14_spill] sm:$0xff] %v2633_v27  ;;  %v1904_v40 = vpack.c.bf16 %v2633_v27, %v2619_v16  ;;  %v2064_v41 = vpack.c.bf16 %v2635_v29, %v2621_v21 }
 0x152   :  { %3110 = vst [vmem:[#allocation15_spill] sm:$0xff] %v2635_v29  ;;  %v1414_v53 = vadd.f32 %v1413_v24, %v1351_v11 }
 0x153   :  { %2116 = vst [vmem:[%s3049_s3 + $0xd0] sm:$0xff] %v1904_v40  }
 0x154   :  { %2147 = vst [vmem:[%s3050_s4 + $0xd0] sm:$0xff] %v2064_v41  }
 0x156   :  { %v460_v6 = vpop.f32.mrf.mxu0 }
 0x157   :  { %v2614_v7 = vpop.f32.mrf.mxu1  ;;  %v1829_v14 = vpack.c.bf16 %v460_v6, %v2596_v58  ;;  %v1075_v50 = vadd.f32 %v1074_v44, %v460_v6 }
 0x158   :  { %v1989_v15 = vpack.c.bf16 %v2614_v7, %v2598_v59 }
 0x159   :  { %2101 = vst [vmem:[%s3049_s3 + $0x58] sm:$0xff] %v1829_v14   ;;  %v2655_v14 = vpop.f32.mrf.mxu2 }
 0x15a   :  { %2132 = vst [vmem:[%s3050_s4 + $0x58] sm:$0xff] %v1989_v15   ;;  %v2657_v15 = vpop.f32.mrf.mxu3 }
 0x15b   :  { %3111 = vst [vmem:[#allocation16_spill] sm:$0xff] %v2655_v14 }
 0x15c   :  { %3112 = vst [vmem:[#allocation17_spill] sm:$0xff] %v2657_v15 }
 0x15e   :  { %v2629_v22 = vpop.f32.mrf.mxu0 }
 0x15f   :  { %v2631_v23 = vpop.f32.mrf.mxu1  ;;  %v1146_v28 = vmul.f32 %v2629_v22, %v2629_v22 }
 0x160   :  { %v1353_v43 = vmul.f32 %v2631_v23, %v2631_v23 }
 0x161   :  { %v2669_v29 = vpop.f32.mrf.mxu2 }
 0x162   :  { %3113 = vst [vmem:[#allocation18_spill] sm:$0xff] %v2669_v29  ;;  %v2671_v27 = vpop.f32.mrf.mxu3  ;;  %v1909_v21 = vpack.c.bf16 %v2669_v29, %v2655_v14 }
 0x163   :  { %3114 = vst [vmem:[#allocation19_spill] sm:$0xff] %v2671_v27  ;;  %v2069_v16 = vpack.c.bf16 %v2671_v27, %v2657_v15 }
 0x164   :  { %2117 = vst [vmem:[%s3049_s3 + $0xd8] sm:$0xff] %v1909_v21  }
 0x165   :  { %2148 = vst [vmem:[%s3050_s4 + $0xd8] sm:$0xff] %v2069_v16  }
 0x166   :  { %v2647_v46 = vpop.f32.mrf.mxu0 }
 0x167   :  { %v2649_v49 = vpop.f32.mrf.mxu1  ;;  %v1834_v4 = vpack.c.bf16 %v2647_v46, %v2629_v22 }
 0x168   :  { %v1994_v5 = vpack.c.bf16 %v2649_v49, %v2631_v23 }
 0x169   :  { %2102 = vst [vmem:[%s3049_s3 + $0x60] sm:$0xff] %v1834_v4   ;;  %v2691_v14 = vpop.f32.mrf.mxu2 }
 0x16a   :  { %2133 = vst [vmem:[%s3050_s4 + $0x60] sm:$0xff] %v1994_v5   ;;  %v2693_v27 = vpop.f32.mrf.mxu3 }
 0x16b   :  { %3115 = vst [vmem:[#allocation20_spill] sm:$0xff] %v2691_v14 }
 0x16c   :  { %3116 = vst [vmem:[#allocation21_spill] sm:$0xff] %v2693_v27 }
 0x16e   :  { %v2665_v40 = vpop.f32.mrf.mxu0 }
 0x16f   :  { %v2667_v41 = vpop.f32.mrf.mxu1 }
 0x171   :  { %v2705_v15 = vpop.f32.mrf.mxu2 }
 0x172   :  { %3117 = vst [vmem:[#allocation22_spill] sm:$0xff] %v2705_v15  ;;  %v2707_v60 = vpop.f32.mrf.mxu3 }
 0x173   :  { %3118 = vst [vmem:[#allocation23_spill] sm:$0xff] %v2707_v60 }
 0x176   :  { %v2683_v4 = vpop.f32.mrf.mxu0 }
 0x177   :  { %v2685_v5 = vpop.f32.mrf.mxu1  ;;  %v1839_v61 = vpack.c.bf16 %v2683_v4, %v2665_v40 }
 0x178   :  { %v1999_v29 = vpack.c.bf16 %v2685_v5, %v2667_v41 }
 0x179   :  { %2103 = vst [vmem:[%s3049_s3 + $0x68] sm:$0xff] %v1839_v61   ;;  %v1914_v61 = vpack.c.bf16 %v2705_v15, %v2691_v14  ;;  %v1145_v15 = vmul.f32 %v460_v6, %v460_v6  ;;  %v1352_v14 = vmul.f32 %v2614_v7, %v2614_v7  ;;  %v2744_v54 = vpop.f32.mrf.mxu2  ;;  %v1354_v6 = vmul.f32 %v2649_v49, %v2649_v49 }
 0x17a   :  { %2134 = vst [vmem:[%s3050_s4 + $0x68] sm:$0xff] %v1999_v29   ;;  %v2074_v29 = vpack.c.bf16 %v2707_v60, %v2693_v27  ;;  %v1206_v60 = vadd.f32 %v2570_v42, %v1143_v57  ;;  %v1281_v27 = vadd.f32 %v1280_v8, %v2598_v59  ;;  %v2746_v57 = vpop.f32.mrf.mxu3  ;;  %v1076_v59 = vadd.f32 %v1075_v50, %v2629_v22 }
 0x17b   :  { %2118 = vst [vmem:[%s3049_s3 + $0xe0] sm:$0xff] %v1914_v61   ;;  %v1415_v58 = vadd.f32 %v1414_v53, %v1352_v14 }
 0x17c   :  { %2149 = vst [vmem:[%s3050_s4 + $0xe0] sm:$0xff] %v2074_v29   ;;  %v1207_v61 = vadd.f32 %v1206_v60, %v1144_v34  ;;  %v1282_v42 = vadd.f32 %v1281_v27, %v2614_v7  ;;  %v1147_v34 = vmul.f32 %v2647_v46, %v2647_v46  ;;  %v1148_v27 = vmul.f32 %v2665_v40, %v2665_v40 }
 0x17d   :  { %v1416_v53 = vadd.f32 %v1415_v58, %v1353_v43  ;;  %v1077_v50 = vadd.f32 %v1076_v59, %v2647_v46 }
 0x17e   :  { %v2701_v16 = vpop.f32.mrf.mxu0  ;;  %v1208_v11 = vadd.f32 %v1207_v61, %v1145_v15  ;;  %v1283_v60 = vadd.f32 %v1282_v42, %v2631_v23  ;;  %v1355_v23 = vmul.f32 %v2667_v41, %v2667_v41  ;;  %v1149_v15 = vmul.f32 %v2683_v4, %v2683_v4 }
 0x17f   :  { %v2703_v21 = vpop.f32.mrf.mxu1  ;;  %v1417_v24 = vadd.f32 %v1416_v53, %v1354_v6  ;;  %v1078_v44 = vadd.f32 %v1077_v50, %v2665_v40  ;;  %v1150_v46 = vmul.f32 %v2701_v16, %v2701_v16 }
 0x180   :  { %v1209_v7 = vadd.f32 %v1208_v11, %v1146_v28  ;;  %v1284_v22 = vadd.f32 %v1283_v60, %v2649_v49  ;;  %v1356_v28 = vmul.f32 %v2685_v5, %v2685_v5 }
 0x182   :  { %v1210_v14 = vadd.f32 %v1209_v7, %v1147_v34  ;;  %v1285_v61 = vadd.f32 %v1284_v22, %v2667_v41  ;;  %v2776_v34 = vpop.f32.mrf.mxu2  ;;  %v2778_v58 = vpop.f32.mrf.mxu3  ;;  %v1357_v41 = vmul.f32 %v2703_v21, %v2703_v21 }
 0x183   :  { %v1919_v60 = vpack.c.bf16 %v2776_v34, %v2744_v54 }
 0x184   :  { %v1211_v42 = vadd.f32 %v1210_v14, %v1148_v27  ;;  %v1286_v11 = vadd.f32 %v1285_v61, %v2685_v5 }
 0x185   :  { %2119 = vst [vmem:[%s3049_s3 + $0xe8] sm:$0xff] %v1919_v60  }
 0x186   :  { %v475_v45 = vpop.f32.mrf.mxu0  ;;  %v1212_v40 = vadd.f32 %v1211_v42, %v1149_v15  ;;  %v1287_v5 = vadd.f32 %v1286_v11, %v2703_v21 }
 0x187   :  { %v708_v29 = vpop.f32.mrf.mxu1  ;;  %v1844_v35 = vpack.c.bf16 %v475_v45, %v2701_v16  ;;  %v1151_v59 = vmul.f32 %v475_v45, %v475_v45 }
 0x188   :  { %v2004_v8 = vpack.c.bf16 %v708_v29, %v2703_v21  ;;  %v1213_v27 = vadd.f32 %v1212_v40, %v1150_v46  ;;  %v1358_v53 = vmul.f32 %v708_v29, %v708_v29 }
 0x189   :  { %2104 = vst [vmem:[%s3049_s3 + $0x70] sm:$0xff] %v1844_v35   ;;  %v1418_v35 = vadd.f32 %v1417_v24, %v1355_v23 }
 0x18a   :  { %2135 = vst [vmem:[%s3050_s4 + $0x70] sm:$0xff] %v2004_v8   ;;  %v1079_v8 = vadd.f32 %v1078_v44, %v2683_v4  ;;  %v2079_v4 = vpack.c.bf16 %v2778_v58, %v2746_v57  ;;  %v1214_v14 = vadd.f32 %v1213_v27, %v1151_v59  ;;  %v2794_v40 = vpop.f32.mrf.mxu2  ;;  %v1155_v27 = vmul.f32 %v2330_v12, %v2330_v12 }
 0x18b   :  { %v1419_v6 = vadd.f32 %v1418_v35, %v1356_v28 }
 0x18c   :  { %v1080_v7 = vadd.f32 %v1079_v8, %v2701_v16  ;;  %2150 = vst [vmem:[%s3050_s4 + $0xe8] sm:$0xff] %v2079_v4   ;;  %v1288_v16 = vadd.f32 %v1287_v5, %v708_v29  ;;  %v1154_v29 = vmul.f32 %v2317_v63, %v2317_v63 }
 0x18d   :  { %v1420_v23 = vadd.f32 %v1419_v6, %v1357_v41 }
 0x18e   :  { %v478_v49 = vpop.f32.mrf.mxu0  ;;  %v1081_v22 = vadd.f32 %v1080_v7, %v475_v45  ;;  %v2796_v45 = vpop.f32.mrf.mxu3 }
 0x18f   :  { %v711_v43 = vpop.f32.mrf.mxu1  ;;  %v1152_v50 = vmul.f32 %v478_v49, %v478_v49  ;;  %v1421_v44 = vadd.f32 %v1420_v23, %v1358_v53  ;;  %v1156_v23 = vmul.f32 %v2347_v25, %v2347_v25 }
 0x190   :  { %v1359_v15 = vmul.f32 %v711_v43, %v711_v43  ;;  %v1082_v24 = vadd.f32 %v1081_v22, %v478_v49  ;;  %v1289_v28 = vadd.f32 %v1288_v16, %v711_v43 }
 0x191   :  { %v1215_v61 = vadd.f32 %v1214_v14, %v1152_v50 }
 0x192   :  { %v1422_v60 = vadd.f32 %v1421_v44, %v1359_v15 }
 0x196   :  { %v480_v21 = vpop.f32.mrf.mxu0 }
 0x197   :  { %v713_v42 = vpop.f32.mrf.mxu1  ;;  %v1849_v46 = vpack.c.bf16 %v480_v21, %v478_v49  ;;  %v1083_v35 = vadd.f32 %v1082_v24, %v480_v21  ;;  %v1153_v8 = vmul.f32 %v480_v21, %v480_v21 }
 0x198   :  { %v2009_v11 = vpack.c.bf16 %v713_v42, %v711_v43  ;;  %v1290_v7 = vadd.f32 %v1289_v28, %v713_v42  ;;  %v1360_v41 = vmul.f32 %v713_v42, %v713_v42  ;;  %v1361_v43 = vmul.f32 %v2319_v0, %v2319_v0  ;;  %v2827_v28 = vpop.f32.mrf.mxu3 }
 0x199   :  { %2105 = vst [vmem:[%s3049_s3 + $0x78] sm:$0xff] %v1849_v46   ;;  %v1084_v59 = vadd.f32 %v1083_v35, %v2317_v63  ;;  %v1216_v49 = vadd.f32 %v1215_v61, %v1153_v8  ;;  %v1362_v63 = vmul.f32 %v2332_v13, %v2332_v13  ;;  %v1365_v8 = vmul.f32 %v2379_v52, %v2379_v52 }
 0x19a   :  { %2136 = vst [vmem:[%s3050_s4 + $0x78] sm:$0xff] %v2009_v11   ;;  %v1291_v6 = vadd.f32 %v1290_v7, %v2319_v0  ;;  %v1423_v4 = vadd.f32 %v1422_v60, %v1360_v41  ;;  %v1363_v0 = vmul.f32 %v2349_v26, %v2349_v26  ;;  %v2084_v7 = vpack.c.bf16 %v2827_v28, %v2796_v45 }
 0x19b   :  { %v1085_v5 = vadd.f32 %v1084_v59, %v2330_v12  ;;  %v1217_v53 = vadd.f32 %v1216_v49, %v1154_v29  ;;  %v1157_v12 = vmul.f32 %v2360_v38, %v2360_v38  ;;  %v1160_v49 = vmul.f32 %v2407_v17, %v2407_v17 }
 0x19c   :  { %v1292_v50 = vadd.f32 %v1291_v6, %v2332_v13  ;;  %v1424_v22 = vadd.f32 %v1423_v4, %v1361_v43  ;;  %v2825_v13 = vpop.f32.mrf.mxu2  ;;  %2151 = vst [vmem:[%s3050_s4 + $0xf0] sm:$0xff] %v2084_v7   ;;  %v1367_v6 = vmul.f32 %v2409_v18, %v2409_v18 }
 0x19d   :  { %v1086_v14 = vadd.f32 %v1085_v5, %v2347_v25  ;;  %v1218_v16 = vadd.f32 %v1217_v53, %v1155_v27  ;;  %v1364_v25 = vmul.f32 %v2362_v39, %v2362_v39 }
 0x19e   :  { %v1293_v15 = vadd.f32 %v1292_v50, %v2349_v26  ;;  %v1425_v24 = vadd.f32 %v1424_v22, %v1362_v63  ;;  %v1158_v26 = vmul.f32 %v2377_v51, %v2377_v51 }
 0x19f   :  { %v1087_v44 = vadd.f32 %v1086_v14, %v2360_v38  ;;  %v1219_v61 = vadd.f32 %v1218_v16, %v1156_v23  ;;  %v1924_v38 = vpack.c.bf16 %v2825_v13, %v2794_v40 }
 0x1a0   :  { %v1294_v21 = vadd.f32 %v1293_v15, %v2362_v39  ;;  %v1426_v42 = vadd.f32 %v1425_v24, %v1363_v0  ;;  %v1159_v39 = vmul.f32 %v2390_v2, %v2390_v2  ;;  %v2865_v50 = vpop.f32.mrf.mxu3  ;;  %v1163_v24 = vmul.f32 %v2450_v62, %v2450_v62 }
 0x1a1   :  { %v1088_v46 = vadd.f32 %v1087_v44, %v2377_v51  ;;  %v1220_v35 = vadd.f32 %v1219_v61, %v1157_v12  ;;  %2120 = vst [vmem:[%s3049_s3 + $0xf0] sm:$0xff] %v1924_v38   ;;  %v1366_v51 = vmul.f32 %v2392_v3, %v2392_v3 }
 0x1a2   :  { %v1295_v11 = vadd.f32 %v1294_v21, %v2379_v52  ;;  %v1427_v60 = vadd.f32 %v1426_v42, %v1364_v25 }
 0x1a3   :  { %v1089_v41 = vadd.f32 %v1088_v46, %v2390_v2  ;;  %v1221_v29 = vadd.f32 %v1220_v35, %v1158_v26 }
 0x1a4   :  { %v1296_v59 = vadd.f32 %v1295_v11, %v2392_v3  ;;  %v1428_v52 = vadd.f32 %v1427_v60, %v1365_v8  ;;  %v1161_v3 = vmul.f32 %v2420_v32, %v2420_v32  ;;  %v2863_v63 = vpop.f32.mrf.mxu2 }
 0x1a5   :  { %v1090_v2 = vadd.f32 %v1089_v41, %v2407_v17  ;;  %v1222_v43 = vadd.f32 %v1221_v29, %v1159_v39  ;;  %v1368_v17 = vmul.f32 %v2422_v33, %v2422_v33  ;;  %v1373_v41 = vmul.f32 %v2499_v56, %v2499_v56 }
 0x1a6   :  { %v1297_v4 = vadd.f32 %v1296_v59, %v2409_v18  ;;  %v1429_v27 = vadd.f32 %v1428_v52, %v1366_v51  ;;  %v1162_v18 = vmul.f32 %v2437_v47, %v2437_v47 }
 0x1a7   :  { %v1091_v5 = vadd.f32 %v1090_v2, %v2420_v32  ;;  %v1223_v53 = vadd.f32 %v1222_v43, %v1160_v49  ;;  %v1369_v32 = vmul.f32 %v2439_v48, %v2439_v48 }
 0x1a8   :  { %v1298_v22 = vadd.f32 %v1297_v4, %v2422_v33  ;;  %v1430_v23 = vadd.f32 %v1429_v27, %v1367_v6  ;;  %v1370_v33 = vmul.f32 %v2452_v1, %v2452_v1  ;;  %v2893_v8 = vpop.f32.mrf.mxu3  ;;  %v1375_v4 = vmul.f32 %v2526_v31, %v2526_v31 }
 0x1a9   :  { %v1092_v14 = vadd.f32 %v1091_v5, %v2437_v47  ;;  %v1224_v16 = vadd.f32 %v1223_v53, %v1161_v3  ;;  %v1164_v47 = vmul.f32 %v2467_v19, %v2467_v19  ;;  %v2089_v59 = vpack.c.bf16 %v2893_v8, %v2865_v50  ;;  %v3119_v5 = vld [vmem:[#allocation2_spill] sm:$0xff] }
 0x1aa   :  { %v1299_v0 = vadd.f32 %v1298_v22, %v2439_v48  ;;  %v1431_v15 = vadd.f32 %v1430_v23, %v1368_v17  ;;  %v1371_v48 = vmul.f32 %v2469_v20, %v2469_v20  ;;  %v3120_v22 = vld [vmem:[#allocation3_spill] sm:$0xff] }
 0x1ab   :  { %v1093_v12 = vadd.f32 %v1092_v14, %v2450_v62  ;;  %v1225_v44 = vadd.f32 %v1224_v16, %v1162_v18  ;;  %v1165_v62 = vmul.f32 %v2480_v36, %v2480_v36  ;;  %2152 = vst [vmem:[%s3050_s4 + $0xf8] sm:$0xff] %v2089_v59   ;;  %v1376_v23 = vmul.f32 %v3120_v22, %v3120_v22 }
 0x1ac   :  { %v1300_v61 = vadd.f32 %v1299_v0, %v2452_v1  ;;  %v1432_v25 = vadd.f32 %v1431_v15, %v1369_v32  ;;  %v2891_v1 = vpop.f32.mrf.mxu2  ;;  %v3122_v15 = vld [vmem:[#allocation5_spill] sm:$0xff] }
 0x1ad   :  { %v1094_v21 = vadd.f32 %v1093_v12, %v2467_v19  ;;  %v1226_v42 = vadd.f32 %v1225_v44, %v1163_v24  ;;  %v1372_v19 = vmul.f32 %v2482_v37, %v2482_v37  ;;  %v1377_v24 = vmul.f32 %v3122_v15, %v3122_v15 }
 0x1ae   :  { %v1301_v26 = vadd.f32 %v1300_v61, %v2469_v20  ;;  %v1433_v46 = vadd.f32 %v1432_v25, %v1370_v33  ;;  %v1166_v20 = vmul.f32 %v2497_v55, %v2497_v55  ;;  %v3123_v33 = vld [vmem:[#allocation6_spill] sm:$0xff] }
 0x1af   :  { %v1095_v35 = vadd.f32 %v1094_v21, %v2480_v36  ;;  %v1227_v38 = vadd.f32 %v1226_v42, %v1164_v47  ;;  %v1929_v36 = vpack.c.bf16 %v2891_v1, %v2863_v63  ;;  %v1171_v61 = vmul.f32 %v3123_v33, %v3123_v33  ;;  %v3124_v21 = vld [vmem:[#allocation7_spill] sm:$0xff] }
 0x1b0   :  { %v1302_v11 = vadd.f32 %v1301_v26, %v2482_v37  ;;  %v1434_v60 = vadd.f32 %v1433_v46, %v1371_v48  ;;  %v1167_v37 = vmul.f32 %v2507_v9, %v2507_v9  ;;  %v1378_v42 = vmul.f32 %v3124_v21, %v3124_v21  ;;  %v3125_v46 = vld [vmem:[#allocation8_spill] sm:$0xff] }
 0x1b1   :  { %v1228_v7 = vadd.f32 %v1227_v38, %v1165_v62  ;;  %v1096_v39 = vadd.f32 %v1095_v35, %v2497_v55  ;;  %2121 = vst [vmem:[%s3049_s3 + $0xf8] sm:$0xff] %v1929_v36   ;;  %v1374_v55 = vmul.f32 %v2509_v10, %v2509_v10  ;;  %v1172_v62 = vmul.f32 %v3125_v46, %v3125_v46 }
 0x1b2   :  { %v1435_v29 = vadd.f32 %v1434_v60, %v1372_v19  ;;  %v1303_v51 = vadd.f32 %v1302_v11, %v2499_v56  ;;  %v1168_v56 = vmul.f32 %v2524_v30, %v2524_v30  ;;  %v3126_v19 = vld [vmem:[#allocation9_spill] sm:$0xff] }
 0x1b3   :  { %v1097_v52 = vadd.f32 %v1096_v39, %v2507_v9  ;;  %v1229_v49 = vadd.f32 %v1228_v7, %v1166_v20  ;;  %v1379_v11 = vmul.f32 %v3126_v19, %v3126_v19  ;;  %v3127_v7 = vld [vmem:[#allocation10_spill] sm:$0xff] }
 0x1b4   :  { %v1304_v2 = vadd.f32 %v1303_v51, %v2509_v10  ;;  %v1436_v43 = vadd.f32 %v1435_v29, %v1373_v41  ;;  %v1169_v10 = vmul.f32 %v3119_v5, %v3119_v5  ;;  %v1173_v39 = vmul.f32 %v3127_v7, %v3127_v7  ;;  %v3128_v29 = vld [vmem:[#allocation11_spill] sm:$0xff] }
 0x1b5   :  { %v1098_v9 = vadd.f32 %v1097_v52, %v2524_v30  ;;  %v1230_v6 = vadd.f32 %v1229_v49, %v1167_v37  ;;  %v3121_v30 = vld [vmem:[#allocation4_spill] sm:$0xff]  ;;  %v1380_v51 = vmul.f32 %v3128_v29, %v3128_v29 }
 0x1b6   :  { %v1305_v27 = vadd.f32 %v1304_v2, %v2526_v31  ;;  %v1437_v3 = vadd.f32 %v1436_v43, %v1374_v55  ;;  %v1170_v16 = vmul.f32 %v3121_v30, %v3121_v30  ;;  %v2170_v31 = vmov 0.0   ;;  %v3129_v52 = vld [vmem:[#allocation12_spill] sm:$0xff]  ;;  %v3130_v43 = vld [vmem:[#allocation13_spill] sm:$0xff] }
 0x1b7   :  { %v1099_v53 = vadd.f32 %v1098_v9, %v3119_v5  ;;  %v1231_v17 = vadd.f32 %v1230_v6, %v1168_v56  ;;  %72 = vst [vmem:[%s3051_s5] sm:$0x3] %v2170_v31  ;;  %v1174_v49 = vmul.f32 %v3129_v52, %v3129_v52  ;;  %v1381_v56 = vmul.f32 %v3130_v43, %v3130_v43 }
 0x1b8   :  { %v1306_v18 = vadd.f32 %v1305_v27, %v3120_v22  ;;  %v1438_v14 = vadd.f32 %v1437_v3, %v1375_v4  ;;  %73 = vst [vmem:[%s3052_s6] sm:$0x3] %v2170_v31  ;;  %v3131_v4 = vld [vmem:[#allocation14_spill] sm:$0xff] }
 0x1b9   :  { %v1100_v32 = vadd.f32 %v1099_v53, %v3121_v30  ;;  %v1232_v0 = vadd.f32 %v1231_v17, %v1169_v10  ;;  %v1175_v27 = vmul.f32 %v3131_v4, %v3131_v4  ;;  %v3132_v10 = vld [vmem:[#allocation15_spill] sm:$0xff] }
 0x1ba   :  { %v1307_v12 = vadd.f32 %v1306_v18, %v3122_v15  ;;  %v1439_v44 = vadd.f32 %v1438_v14, %v1376_v23  ;;  %v1382_v53 = vmul.f32 %v3132_v10, %v3132_v10  ;;  %v3133_v23 = vld [vmem:[#allocation16_spill] sm:$0xff]  ;;  %v3135_v15 = vld [vmem:[#allocation18_spill] sm:$0xff] }
 0x1bb   :  { %v1101_v25 = vadd.f32 %v1100_v32, %v3123_v33  ;;  %v1233_v47 = vadd.f32 %v1232_v0, %v1170_v16  ;;  %v1176_v18 = vmul.f32 %v3133_v23, %v3133_v23  ;;  %v3134_v16 = vld [vmem:[#allocation17_spill] sm:$0xff]  ;;  %v3136_v33 = vld [vmem:[#allocation19_spill] sm:$0xff] }
 0x1bc   :  { %v1308_v48 = vadd.f32 %v1307_v12, %v3124_v21  ;;  %v1440_v26 = vadd.f32 %v1439_v44, %v1377_v24  ;;  %v1383_v32 = vmul.f32 %v3134_v16, %v3134_v16  ;;  %v1177_v24 = vmul.f32 %v3135_v15, %v3135_v15  ;;  %v3137_v21 = vld [vmem:[#allocation20_spill] sm:$0xff] }
 0x1bd   :  { %v1102_v35 = vadd.f32 %v1101_v25, %v3125_v46  ;;  %v1234_v38 = vadd.f32 %v1233_v47, %v1171_v61  ;;  %v1384_v61 = vmul.f32 %v3136_v33, %v3136_v33  ;;  %v3138_v46 = vld [vmem:[#allocation21_spill] sm:$0xff] }
 0x1be   :  { %v1309_v60 = vadd.f32 %v1308_v48, %v3126_v19  ;;  %v1441_v20 = vadd.f32 %v1440_v26, %v1378_v42  ;;  %v1178_v48 = vmul.f32 %v3137_v21, %v3137_v21 }
 0x1bf   :  { %v1103_v36 = vadd.f32 %v1102_v35, %v3127_v7  ;;  %v1235_v41 = vadd.f32 %v1234_v38, %v1172_v62  ;;  %v1385_v35 = vmul.f32 %v3138_v46, %v3138_v46 }
 0x1c0   :  { %v1310_v59 = vadd.f32 %v1309_v60, %v3128_v29  ;;  %v1442_v37 = vadd.f32 %v1441_v20, %v1379_v11  ;;  %v3139_v11 = vld [vmem:[#allocation22_spill] sm:$0xff] }
 0x1c1   :  { %v1104_v55 = vadd.f32 %v1103_v36, %v3129_v52  ;;  %v1236_v2 = vadd.f32 %v1235_v41, %v1173_v39  ;;  %v1179_v20 = vmul.f32 %v3139_v11, %v3139_v11  ;;  %v3140_v39 = vld [vmem:[#allocation23_spill] sm:$0xff] }
 0x1c2   :  { %v1311_v9 = vadd.f32 %v1310_v59, %v3130_v43  ;;  %v1443_v6 = vadd.f32 %v1442_v37, %v1380_v51  ;;  %v1386_v41 = vmul.f32 %v3140_v39, %v3140_v39  ;;  %v1180_v59 = vmul.f32 %v2744_v54, %v2744_v54 }
 0x1c3   :  { %v1105_v3 = vadd.f32 %v1104_v55, %v3131_v4  ;;  %v1237_v5 = vadd.f32 %v1236_v2, %v1174_v49  ;;  %v1387_v49 = vmul.f32 %v2746_v57, %v2746_v57  ;;  %v1181_v43 = vmul.f32 %v2776_v34, %v2776_v34 }
 0x1c4   :  { %v1312_v17 = vadd.f32 %v1311_v9, %v3132_v10  ;;  %v1444_v22 = vadd.f32 %v1443_v6, %v1381_v56  ;;  %v1388_v6 = vmul.f32 %v2778_v58, %v2778_v58 }
 0x1c5   :  { %v1106_v14 = vadd.f32 %v1105_v3, %v3133_v23  ;;  %v1238_v30 = vadd.f32 %v1237_v5, %v1175_v27  ;;  %v1182_v27 = vmul.f32 %v2794_v40, %v2794_v40  ;;  %v1389_v5 = vmul.f32 %v2796_v45, %v2796_v45 }
 0x1c6   :  { %v1313_v0 = vadd.f32 %v1312_v17, %v3134_v16  ;;  %v1445_v31 = vadd.f32 %v1444_v22, %v1382_v53  ;;  %v1183_v53 = vmul.f32 %v2825_v13, %v2825_v13  ;;  %v1390_v22 = vmul.f32 %v2827_v28, %v2827_v28 }
 0x1c7   :  { %v1107_v12 = vadd.f32 %v1106_v14, %v3135_v15  ;;  %v1239_v44 = vadd.f32 %v1238_v30, %v1176_v18  ;;  %v1184_v18 = vmul.f32 %v2863_v63, %v2863_v63  ;;  %v1391_v30 = vmul.f32 %v2865_v50, %v2865_v50 }
 0x1c8   :  { %v1314_v25 = vadd.f32 %v1313_v0, %v3136_v33  ;;  %v1446_v47 = vadd.f32 %v1445_v31, %v1383_v32  ;;  %v1185_v32 = vmul.f32 %v2891_v1, %v2891_v1  ;;  %v1392_v31 = vmul.f32 %v2893_v8, %v2893_v8 }
 0x1c9   :  { %v1108_v42 = vadd.f32 %v1107_v12, %v3137_v21  ;;  %v1240_v26 = vadd.f32 %v1239_v44, %v1177_v24 }
 0x1ca   :  { %v1315_v62 = vadd.f32 %v1314_v25, %v3138_v46  ;;  %v1447_v38 = vadd.f32 %v1446_v47, %v1384_v61 }
 0x1cb   :  { %v1241_v19 = vadd.f32 %v1240_v26, %v1178_v48  ;;  %v1109_v60 = vadd.f32 %v1108_v42, %v3139_v11 }
 0x1cc   :  { %v1448_v7 = vadd.f32 %v1447_v38, %v1385_v35  ;;  %v1316_v36 = vadd.f32 %v1315_v62, %v3140_v39  ;;  %v1259_v39 = vld [vmem:[%s3052_s6] sm:$0x3] }
 0x1cd   :  { %v1242_v29 = vadd.f32 %v1241_v19, %v1179_v20  ;;  %v1110_v51 = vadd.f32 %v1109_v60, %v2744_v54  ;;  %v1052_v60 = vld [vmem:[%s3051_s5] sm:$0x3] }
 0x1ce   :  { %v1449_v37 = vadd.f32 %v1448_v7, %v1386_v41  ;;  %v1317_v52 = vadd.f32 %v1316_v36, %v2746_v57 }
 0x1cf   :  { %v1243_v55 = vadd.f32 %v1242_v29, %v1180_v59  ;;  %v1111_v2 = vadd.f32 %v1110_v51, %v2776_v34 }
 0x1d0   :  { %v1450_v56 = vadd.f32 %v1449_v37, %v1387_v49  ;;  %v1318_v9 = vadd.f32 %v1317_v52, %v2778_v58 }
 0x1d1   :  { %v1244_v4 = vadd.f32 %v1243_v55, %v1181_v43  ;;  %v1112_v54 = vadd.f32 %v1111_v2, %v2794_v40 }
 0x1d2   :  { %v1451_v3 = vadd.f32 %v1450_v56, %v1388_v6  ;;  %v1319_v57 = vadd.f32 %v1318_v9, %v2796_v45 }
 0x1d3   :  { %v1245_v10 = vadd.f32 %v1244_v4, %v1182_v27  ;;  %v1113_v34 = vadd.f32 %v1112_v54, %v2825_v13 }
 0x1d4   :  { %v1452_v17 = vadd.f32 %v1451_v3, %v1389_v5  ;;  %v1320_v58 = vadd.f32 %v1319_v57, %v2827_v28 }
 0x1d5   :  { %v1246_v23 = vadd.f32 %v1245_v10, %v1183_v53  ;;  %v1114_v40 = vadd.f32 %v1113_v34, %v2863_v63 }
 0x1d6   :  { %v1453_v14 = vadd.f32 %v1452_v17, %v1390_v22  ;;  %v1321_v45 = vadd.f32 %v1320_v58, %v2865_v50 }
 0x1d7   :  { %v1247_v16 = vadd.f32 %v1246_v23, %v1184_v18  ;;  %v1115_v13 = vadd.f32 %v1114_v40, %v2891_v1 }
 0x1d8   :  { %v1454_v0 = vadd.f32 %v1453_v14, %v1391_v30  ;;  %v1322_v28 = vadd.f32 %v1321_v45, %v2893_v8 }
 0x1d9   :  { %v1116_v15 = vrot.slane %v1115_v13, 4  ;;  %v1248_v63 = vadd.f32 %v1247_v16, %v1185_v32 }
 0x1da   :  { %v1323_v24 = vrot.slane %v1322_v28, 4  ;;  %v1455_v12 = vadd.f32 %v1454_v0, %v1392_v31 }
 0x1db   :  { %v1117_v44 = vadd.f32 %v1116_v15, %v1115_v13  ;;  %v1249_v33 = vrot.slane %v1248_v63, 4 }
 0x1dc   :  { %v1324_v61 = vadd.f32 %v1323_v24, %v1322_v28  ;;  %v1456_v50 = vrot.slane %v1455_v12, 4 }
 0x1dd   :  { %v1118_v25 = vrot.slane %v1117_v44, 2  ;;  %v1250_v47 = vadd.f32 %v1249_v33, %v1248_v63 }
 0x1de   :  { %v1325_v21 = vrot.slane %v1324_v61, 2  ;;  %v1457_v42 = vadd.f32 %v1456_v50, %v1455_v12 }
 0x1df   :  { %v1119_v48 = vadd.f32 %v1118_v25, %v1117_v44  ;;  %v1251_v1 = vrot.slane %v1250_v47, 2 }
 0x1e0   :  { %v1326_v26 = vadd.f32 %v1325_v21, %v1324_v61  ;;  %v1458_v46 = vrot.slane %v1457_v42, 2 }
 0x1e1   :  { %v1120_v62 = vrot.slane %v1119_v48, 1  ;;  %v1252_v35 = vadd.f32 %v1251_v1, %v1250_v47 }
 0x1e2   :  { %v1327_v38 = vrot.slane %v1326_v26, 1  ;;  %v1459_v8 = vadd.f32 %v1458_v46, %v1457_v42 }
 0x1e3   :  { %v1253_v19 = vrot.slane %v1252_v35, 1  ;;  %v1121_v20 = vadd.f32 %v1120_v62, %v1119_v48 }
 0x1e4   :  { %v1460_v11 = vrot.slane %v1459_v8, 1  ;;  %v1328_v36 = vadd.f32 %v1327_v38, %v1326_v26 }
 0x1e5   :  { %v1254_v7 = vadd.f32 %v1253_v19, %v1252_v35 }
 0x1e6   :  { %v1461_v41 = vadd.f32 %v1460_v11, %v1459_v8 }
 0x1e7   :  { %v1256_v29 = vsel %vm1255_vm0, %v1121_v20, %v1254_v7 }
 0x1e8   :  { %v1257_v51 = vadd.f32 %v1256_v29, %v1052_v60  ;;  %v1462_v59 = vsel %vm1255_vm0, %v1328_v36, %v1461_v41 }
 0x1e9   :  { %v1463_v37 = vadd.f32 %v1462_v59, %v1259_v39 }
 0x1ea   :  { %1258 = vst [vmem:[%s3051_s5] sm:$0x3] %v1257_v51 }
 0x1eb   :  { %1464 = vst [vmem:[%s3052_s6] sm:$0x3] %v1463_v37 }

// kernel: res_bottleneck_block.6
= control target key start
LH: loop header
LB: loop body
LE: loop exit
PB: predicated region body
PF: predicated region fallthrough
CT: control target
= control target key end

     0   :  { %vm984_vm0 = vcmask 1040384   ;;  %s2129_s3 = inlined_call_operand.vmem [shape: bf16[128,128], index: 3, kind: input, shape index: {}]   ;;  %s2130_s1 = inlined_call_operand.vmem [shape: f32[1,128], index: 1, kind: input, shape index: {}]   ;;  %s2131_s2 = inlined_call_operand.vmem [shape: f32[1,128], index: 2, kind: input, shape index: {}]   ;;  %s2132_s0 = inlined_call_operand.vmem [shape: bf16[512,128], index: 0, kind: input, shape index: {}]   ;;  %s2133_s4 = inlined_call_operand.vmem [shape: bf16[512,128], index: 4, kind: output, shape index: {0}]   ;;  %s2134_s5 = inlined_call_operand.vmem [shape: f32[1,2,128], index: 5, kind: output, shape index: {1}]  }
   0x1   :  { %v1063_v0 = vld [vmem:[%s2129_s3 + $0x38] sm:$0xff]  ;;  %v1062_v1 = vld [vmem:[%s2129_s3 + $0x30] sm:$0xff]  ;;  %v1061_v2 = vld [vmem:[%s2129_s3 + $0x28] sm:$0xff] }
   0x2   :  { %484 = vmatpush.bf16.msra.mxu0 %v1063_v0  ;;  %1414 = vmatpush.bf16.msra.mxu1 %v1063_v0  ;;  %v1060_v3 = vld [vmem:[%s2129_s3 + $0x20] sm:$0xff]  ;;  %v1059_v8 = vld [vmem:[%s2129_s3 + $0x18] sm:$0xff]  ;;  %v1058_v17 = vld [vmem:[%s2129_s3 + $0x10] sm:$0xff] }
   0x3   :  { %1415 = vmatpush.bf16.msra.mxu2 %v1063_v0  ;;  %1416 = vmatpush.bf16.msra.mxu3 %v1063_v0  ;;  %v1065_v4 = vld [vmem:[%s2132_s0] sm:$0xff]   ;;  %v1057_v22 = vld [vmem:[%s2129_s3 + $0x8] sm:$0xff]  ;;  %v1353_v47 = vld [vmem:[%s2132_s0 + $0x10] sm:$0xff]  }
   0x4   :  { %v1066_v5 = vunpack.c.l.bf16 %v1065_v4  ;;  %v1067_v6 = vunpack.c.h.bf16 %v1065_v4  ;;  %v1490_v7 = vld [vmem:[%s2130_s1] ss:$0 sm:$0xff]  ;;  %v1352_v25 = vld [vmem:[%s2132_s0 + $0x8] sm:$0xff]   ;;  %v1074_v54 = vunpack.c.l.bf16 %v1353_v47  ;;  %v1075_v55 = vunpack.c.h.bf16 %v1353_v47  ;;  %v1361_v60 = vld [vmem:[%s2132_s0 + $0x50] sm:$0xff]  }
   0x5   :  { %v1359_v9 = vld [vmem:[%s2132_s0 + $0x40] sm:$0xff]   ;;  %v1070_v29 = vunpack.c.l.bf16 %v1352_v25  ;;  %v1071_v30 = vunpack.c.h.bf16 %v1352_v25  ;;  %v1360_v33 = vld [vmem:[%s2132_s0 + $0x48] sm:$0xff]   ;;  %v1106_v63 = vunpack.c.l.bf16 %v1361_v60  ;;  %v1107_v0 = vunpack.c.h.bf16 %v1361_v60 }
   0x6   :  { %485 = vmatpush.bf16.msra.mxu0 %v1062_v1  ;;  %1417 = vmatpush.bf16.msra.mxu1 %v1062_v1  ;;  %v1098_v10 = vunpack.c.l.bf16 %v1359_v9  ;;  %v1099_v11 = vunpack.c.h.bf16 %v1359_v9  ;;  %v192_v12 = vmul.f32 %v1490_v7, %v1066_v5  ;;  %v193_v13 = vmul.f32 %v1490_v7, %v1067_v6  ;;  %v1503_v14 = vld [vmem:[%s2131_s2] ss:$0 sm:$0xff] }
   0x7   :  { %1418 = vmatpush.bf16.msra.mxu2 %v1062_v1  ;;  %1419 = vmatpush.bf16.msra.mxu3 %v1062_v1  ;;  %v1056_v28 = vld [vmem:[%s2129_s3] sm:$0xff]  ;;  %v1102_v34 = vunpack.c.l.bf16 %v1360_v33  ;;  %v1103_v35 = vunpack.c.h.bf16 %v1360_v33  ;;  %v194_v36 = vmul.f32 %v1490_v7, %v1070_v29  ;;  %v195_v37 = vmul.f32 %v1490_v7, %v1071_v30 }
   0x8   :  { %v208_v15 = vmul.f32 %v1490_v7, %v1098_v10  ;;  %v209_v16 = vmul.f32 %v1490_v7, %v1099_v11  ;;  %v260_v18 = vadd.f32 %v1503_v14, %v192_v12  ;;  %v261_v19 = vadd.f32 %v1503_v14, %v193_v13  ;;  %v1367_v46 = vld [vmem:[%s2132_s0 + $0x80] sm:$0xff]   ;;  %v1368_v13 = vld [vmem:[%s2132_s0 + $0x88] sm:$0xff]  }
   0x9   :  { %v210_v38 = vmul.f32 %v1490_v7, %v1102_v34  ;;  %v211_v39 = vmul.f32 %v1490_v7, %v1103_v35  ;;  %v262_v40 = vadd.f32 %v1503_v14, %v194_v36  ;;  %v263_v41 = vadd.f32 %v1503_v14, %v195_v37  ;;  %v1375_v47 = vld [vmem:[%s2132_s0 + $0xc0] sm:$0xff]  }
   0xa   :  { %486 = vmatpush.bf16.msra.mxu0 %v1061_v2  ;;  %1420 = vmatpush.bf16.msra.mxu1 %v1061_v2  ;;  %v276_v20 = vadd.f32 %v1503_v14, %v208_v15  ;;  %v277_v21 = vadd.f32 %v1503_v14, %v209_v16  ;;  %v324_v23 = vmax.f32 %v260_v18, 0.0  ;;  %v325_v24 = vmax.f32 %v261_v19, 0.0  ;;  %v1354_v15 = vld [vmem:[%s2132_s0 + $0x18] sm:$0xff]  }
   0xb   :  { %1421 = vmatpush.bf16.msra.mxu2 %v1061_v2  ;;  %1422 = vmatpush.bf16.msra.mxu3 %v1061_v2  ;;  %v278_v42 = vadd.f32 %v1503_v14, %v210_v38  ;;  %v279_v43 = vadd.f32 %v1503_v14, %v211_v39  ;;  %v326_v44 = vmax.f32 %v262_v40, 0.0  ;;  %v327_v45 = vmax.f32 %v263_v41, 0.0 }
   0xc   :  { %v340_v26 = vmax.f32 %v276_v20, 0.0  ;;  %v341_v27 = vmax.f32 %v277_v21, 0.0  ;;  %v388_v31 = vpack.c.bf16 %v325_v24, %v324_v23  ;;  %v1130_v50 = vunpack.c.l.bf16 %v1367_v46 }
   0xd   :  { %v342_v48 = vmax.f32 %v278_v42, 0.0  ;;  %v343_v49 = vmax.f32 %v279_v43, 0.0  ;;  %v1131_v51 = vunpack.c.h.bf16 %v1367_v46  ;;  %v389_v56 = vpack.c.bf16 %v327_v45, %v326_v44  ;;  %v1369_v46 = vld [vmem:[%s2132_s0 + $0x90] sm:$0xff]  }
   0xe   :  { %487 = vmatpush.bf16.msra.mxu0 %v1060_v3  ;;  %1423 = vmatpush.bf16.msra.mxu1 %v1060_v3  ;;  %v396_v32 = vpack.c.bf16 %v341_v27, %v340_v26  ;;  %v224_v52 = vmul.f32 %v1490_v7, %v1130_v50  ;;  %v196_v1 = vmul.f32 %v1490_v7, %v1074_v54  ;;  %v1134_v18 = vunpack.c.l.bf16 %v1368_v13 }
   0xf   :  { %1424 = vmatpush.bf16.msra.mxu2 %v1060_v3  ;;  %1425 = vmatpush.bf16.msra.mxu3 %v1060_v3  ;;  %v225_v53 = vmul.f32 %v1490_v7, %v1131_v51  ;;  %v397_v57 = vpack.c.bf16 %v343_v49, %v342_v48  ;;  %v197_v2 = vmul.f32 %v1490_v7, %v1075_v55  ;;  %v1135_v19 = vunpack.c.h.bf16 %v1368_v13  ;;  %v1355_v48 = vld [vmem:[%s2132_s0 + $0x20] sm:$0xff]  }
  0x10   :  { %v292_v58 = vadd.f32 %v1503_v14, %v224_v52  ;;  %v212_v4 = vmul.f32 %v1490_v7, %v1106_v63  ;;  %v213_v5 = vmul.f32 %v1490_v7, %v1107_v0  ;;  %v264_v6 = vadd.f32 %v1503_v14, %v196_v1  ;;  %v1363_v1 = vld [vmem:[%s2132_s0 + $0x60] sm:$0xff]  }
  0x11   :  { %v293_v59 = vadd.f32 %v1503_v14, %v225_v53  ;;  %v226_v20 = vmul.f32 %v1490_v7, %v1134_v18  ;;  %v227_v21 = vmul.f32 %v1490_v7, %v1135_v19  ;;  %v1079_v23 = vunpack.c.h.bf16 %v1354_v15 }
  0x12   :  { %488 = vmatpush.bf16.msra.mxu0 %v1059_v8  ;;  %1426 = vmatpush.bf16.msra.mxu1 %v1059_v8  ;;  %v356_v61 = vmax.f32 %v292_v58, 0.0  ;;  %v280_v9 = vadd.f32 %v1503_v14, %v212_v4  ;;  %v281_v10 = vadd.f32 %v1503_v14, %v213_v5  ;;  %v328_v11 = vmax.f32 %v264_v6, 0.0 }
  0x13   :  { %1427 = vmatpush.bf16.msra.mxu2 %v1059_v8  ;;  %1428 = vmatpush.bf16.msra.mxu3 %v1059_v8  ;;  %v357_v62 = vmax.f32 %v293_v59, 0.0  ;;  %v265_v8 = vadd.f32 %v1503_v14, %v197_v2  ;;  %v294_v26 = vadd.f32 %v1503_v14, %v226_v20  ;;  %v295_v27 = vadd.f32 %v1503_v14, %v227_v21 }
  0x14   :  { %v344_v16 = vmax.f32 %v280_v9, 0.0  ;;  %v199_v34 = vmul.f32 %v1490_v7, %v1079_v23  ;;  %v1138_v49 = vunpack.c.l.bf16 %v1369_v46  ;;  %v1139_v50 = vunpack.c.h.bf16 %v1369_v46 }
  0x15   :  { %v404_v3 = vpack.c.bf16 %v357_v62, %v356_v61  ;;  %v329_v12 = vmax.f32 %v265_v8, 0.0  ;;  %v358_v29 = vmax.f32 %v294_v26, 0.0  ;;  %v359_v30 = vmax.f32 %v295_v27, 0.0  ;;  %v1356_v26 = vld [vmem:[%s2132_s0 + $0x28] sm:$0xff]  }
  0x16   :  { %489 = vmatpush.bf16.msra.mxu0 %v1058_v17  ;;  %1429 = vmatpush.bf16.msra.mxu1 %v1058_v17  ;;  %v267_v39 = vadd.f32 %v1503_v14, %v199_v34  ;;  %v1162_v51 = vunpack.c.l.bf16 %v1375_v47  ;;  %v1163_v52 = vunpack.c.h.bf16 %v1375_v47  ;;  %v228_v53 = vmul.f32 %v1490_v7, %v1138_v49 }
  0x17   :  { %1430 = vmatpush.bf16.msra.mxu2 %v1058_v17  ;;  %1431 = vmatpush.bf16.msra.mxu3 %v1058_v17  ;;  %v345_v17 = vmax.f32 %v281_v10, 0.0  ;;  %v390_v24 = vpack.c.bf16 %v329_v12, %v328_v11  ;;  %v405_v35 = vpack.c.bf16 %v359_v30, %v358_v29  ;;  %v229_v54 = vmul.f32 %v1490_v7, %v1139_v50 }
  0x18   :  { %v331_v43 = vmax.f32 %v267_v39, 0.0  ;;  %v240_v55 = vmul.f32 %v1490_v7, %v1162_v51  ;;  %v1082_v58 = vunpack.c.l.bf16 %v1355_v48  ;;  %v1083_v59 = vunpack.c.h.bf16 %v1355_v48 }
  0x19   :  { %v398_v25 = vpack.c.bf16 %v345_v17, %v344_v16  ;;  %v296_v61 = vadd.f32 %v1503_v14, %v228_v53  ;;  %v297_v62 = vadd.f32 %v1503_v14, %v229_v54  ;;  %v1114_v9 = vunpack.c.l.bf16 %v1363_v1 }
  0x1a   :  { %490 = vmatpush.bf16.msra.mxu0 %v1057_v22  ;;  %1432 = vmatpush.bf16.msra.mxu1 %v1057_v22  ;;  %v308_v63 = vadd.f32 %v1503_v14, %v240_v55  ;;  %v200_v6 = vmul.f32 %v1490_v7, %v1082_v58  ;;  %v201_v8 = vmul.f32 %v1490_v7, %v1083_v59  ;;  %v1115_v10 = vunpack.c.h.bf16 %v1363_v1  ;;  %v1377_v1 = vld [vmem:[%s2132_s0 + $0xd0] sm:$0xff]  }
  0x1b   :  { %1433 = vmatpush.bf16.msra.mxu2 %v1057_v22  ;;  %1434 = vmatpush.bf16.msra.mxu3 %v1057_v22  ;;  %v1078_v22 = vunpack.c.l.bf16 %v1354_v15  ;;  %v360_v2 = vmax.f32 %v296_v61, 0.0  ;;  %v216_v13 = vmul.f32 %v1490_v7, %v1114_v9 }
  0x1c   :  { %v372_v4 = vmax.f32 %v308_v63, 0.0  ;;  %v217_v15 = vmul.f32 %v1490_v7, %v1115_v10  ;;  %v268_v16 = vadd.f32 %v1503_v14, %v200_v6  ;;  %v269_v17 = vadd.f32 %v1503_v14, %v201_v8 }
  0x1d   :  { %v198_v33 = vmul.f32 %v1490_v7, %v1078_v22  ;;  %v284_v18 = vadd.f32 %v1503_v14, %v216_v13  ;;  %v1171_v6 = vunpack.c.h.bf16 %v1377_v1 }
  0x1e   :  { %491 = vmatpush.bf16.msra.mxu0 %v1056_v28  ;;  %1435 = vmatpush.bf16.msra.mxu1 %v1056_v28  ;;  %v285_v19 = vadd.f32 %v1503_v14, %v217_v15  ;;  %v332_v20 = vmax.f32 %v268_v16, 0.0  ;;  %v333_v21 = vmax.f32 %v269_v17, 0.0 }
  0x1f   :  { %1436 = vmatpush.bf16.msra.mxu2 %v1056_v28  ;;  %1437 = vmatpush.bf16.msra.mxu3 %v1056_v28  ;;  %v1362_v28 = vld [vmem:[%s2132_s0 + $0x58] sm:$0xff]   ;;  %v266_v38 = vadd.f32 %v1503_v14, %v198_v33  ;;  %v348_v22 = vmax.f32 %v284_v18, 0.0 }
  0x20   :  { %v349_v23 = vmax.f32 %v285_v19, 0.0 }
  0x21   :  { %492 = vmatmul.bf16.vlgmr.msra.gmra.mxu0 %v388_v31  ;;  %532 = vmatmul.bf16.vlgmr.msra.gmra.mxu1 %v396_v32  ;;  %v1110_v31 = vunpack.c.l.bf16 %v1362_v28  ;;  %v1111_v32 = vunpack.c.h.bf16 %v1362_v28  ;;  %v330_v42 = vmax.f32 %v266_v38, 0.0 }
  0x22   :  { %572 = vmatmul.bf16.vlgmr.msra.gmra.mxu2 %v404_v3  ;;  %v361_v3 = vmax.f32 %v297_v62, 0.0  ;;  %v400_v38 = vpack.c.bf16 %v349_v23, %v348_v22 }
  0x23   :  { %v214_v36 = vmul.f32 %v1490_v7, %v1110_v31  ;;  %v215_v37 = vmul.f32 %v1490_v7, %v1111_v32 }
  0x24   :  { %v406_v11 = vpack.c.bf16 %v361_v3, %v360_v2  ;;  %v1357_v2 = vld [vmem:[%s2132_s0 + $0x30] sm:$0xff]  }
  0x25   :  { %v282_v40 = vadd.f32 %v1503_v14, %v214_v36  ;;  %v283_v41 = vadd.f32 %v1503_v14, %v215_v37  ;;  %v1086_v36 = vunpack.c.l.bf16 %v1356_v26  ;;  %v1087_v37 = vunpack.c.h.bf16 %v1356_v26 }
  0x26   :  { %v1090_v13 = vunpack.c.l.bf16 %v1357_v2  ;;  %v1091_v15 = vunpack.c.h.bf16 %v1357_v2 }
  0x27   :  { %v346_v44 = vmax.f32 %v282_v40, 0.0  ;;  %v347_v45 = vmax.f32 %v283_v41, 0.0  ;;  %v202_v48 = vmul.f32 %v1490_v7, %v1086_v36  ;;  %v203_v49 = vmul.f32 %v1490_v7, %v1087_v37 }
  0x28   :  { %v204_v26 = vmul.f32 %v1490_v7, %v1090_v13 }
  0x29   :  { %v399_v60 = vpack.c.bf16 %v347_v45, %v346_v44 }
  0x31   :  { %497 = vmatmul.bf16.gmra.mxu0 %v389_v56  ;;  %537 = vmatmul.bf16.gmra.mxu1 %v397_v57  ;;  %v241_v56 = vmul.f32 %v1490_v7, %v1163_v52  ;;  %v391_v57 = vpack.c.bf16 %v331_v43, %v330_v42  ;;  %v1364_v43 = vld [vmem:[%s2132_s0 + $0x68] sm:$0xff]  }
  0x32   :  { %577 = vmatmul.bf16.gmra.mxu2 %v405_v35  ;;  %v392_v35 = vpack.c.bf16 %v333_v21, %v332_v20  ;;  %v1118_v50 = vunpack.c.l.bf16 %v1364_v43  ;;  %v1119_v51 = vunpack.c.h.bf16 %v1364_v43  ;;  %v1365_v21 = vld [vmem:[%s2132_s0 + $0x70] sm:$0xff]   ;;  %v1378_v43 = vld [vmem:[%s2132_s0 + $0xd8] sm:$0xff]  }
  0x33   :  { %v309_v0 = vadd.f32 %v1503_v14, %v241_v56  ;;  %v270_v56 = vadd.f32 %v1503_v14, %v202_v48  ;;  %v1175_v48 = vunpack.c.h.bf16 %v1378_v43 }
  0x34   :  { %v218_v54 = vmul.f32 %v1490_v7, %v1118_v50  ;;  %v219_v55 = vmul.f32 %v1490_v7, %v1119_v51 }
  0x35   :  { %v373_v5 = vmax.f32 %v309_v0, 0.0  ;;  %v1371_v0 = vld [vmem:[%s2132_s0 + $0xa0] sm:$0xff]  }
  0x36   :  { %v286_v58 = vadd.f32 %v1503_v14, %v218_v54  ;;  %v287_v59 = vadd.f32 %v1503_v14, %v219_v55  ;;  %v1146_v3 = vunpack.c.l.bf16 %v1371_v0 }
  0x37   :  { %v412_v12 = vpack.c.bf16 %v373_v5, %v372_v4  ;;  %v1147_v4 = vunpack.c.h.bf16 %v1371_v0  ;;  %v1170_v5 = vunpack.c.l.bf16 %v1377_v1 }
  0x38   :  { %v350_v62 = vmax.f32 %v286_v58, 0.0  ;;  %v351_v63 = vmax.f32 %v287_v59, 0.0  ;;  %v232_v8 = vmul.f32 %v1490_v7, %v1146_v3 }
  0x39   :  { %612 = vmatmul.bf16.vlgmr.msra.gmra.mxu3 %v412_v12  ;;  %v233_v9 = vmul.f32 %v1490_v7, %v1147_v4  ;;  %v244_v10 = vmul.f32 %v1490_v7, %v1170_v5 }
  0x3a   :  { %v401_v16 = vpack.c.bf16 %v351_v63, %v350_v62  ;;  %v300_v17 = vadd.f32 %v1503_v14, %v232_v8 }
  0x3b   :  { %v301_v18 = vadd.f32 %v1503_v14, %v233_v9  ;;  %v312_v19 = vadd.f32 %v1503_v14, %v244_v10 }
  0x3c   :  { %v364_v22 = vmax.f32 %v300_v17, 0.0 }
  0x3d   :  { %v365_v23 = vmax.f32 %v301_v18, 0.0 }
  0x41   :  { %502 = vmatmul.bf16.gmra.mxu0 %v390_v24  ;;  %542 = vmatmul.bf16.gmra.mxu1 %v398_v25  ;;  %v1370_v24 = vld [vmem:[%s2132_s0 + $0x98] sm:$0xff]   ;;  %v1376_v25 = vld [vmem:[%s2132_s0 + $0xc8] sm:$0xff]  }
  0x42   :  { %582 = vmatmul.bf16.gmra.mxu2 %v406_v11  ;;  %v1142_v27 = vunpack.c.l.bf16 %v1370_v24  ;;  %v1143_v28 = vunpack.c.h.bf16 %v1370_v24  ;;  %v1166_v29 = vunpack.c.l.bf16 %v1376_v25  ;;  %v1167_v30 = vunpack.c.h.bf16 %v1376_v25 }
  0x43   :  { %v245_v11 = vmul.f32 %v1490_v7, %v1171_v6  ;;  %v376_v24 = vmax.f32 %v312_v19, 0.0 }
  0x44   :  { %v230_v31 = vmul.f32 %v1490_v7, %v1142_v27  ;;  %v231_v32 = vmul.f32 %v1490_v7, %v1143_v28  ;;  %v242_v33 = vmul.f32 %v1490_v7, %v1166_v29  ;;  %v243_v34 = vmul.f32 %v1490_v7, %v1167_v30 }
  0x45   :  { %v313_v20 = vadd.f32 %v1503_v14, %v245_v11  ;;  %v205_v27 = vmul.f32 %v1490_v7, %v1091_v15  ;;  %v1122_v28 = vunpack.c.l.bf16 %v1365_v21  ;;  %v1123_v29 = vunpack.c.h.bf16 %v1365_v21  ;;  %v1379_v21 = vld [vmem:[%s2132_s0 + $0xe0] sm:$0xff]  }
  0x46   :  { %v298_v39 = vadd.f32 %v1503_v14, %v230_v31  ;;  %v299_v40 = vadd.f32 %v1503_v14, %v231_v32  ;;  %v310_v41 = vadd.f32 %v1503_v14, %v242_v33  ;;  %v311_v42 = vadd.f32 %v1503_v14, %v243_v34 }
  0x47   :  { %v377_v25 = vmax.f32 %v313_v20, 0.0  ;;  %v408_v30 = vpack.c.bf16 %v365_v23, %v364_v22  ;;  %v220_v32 = vmul.f32 %v1490_v7, %v1122_v28  ;;  %v221_v33 = vmul.f32 %v1490_v7, %v1123_v29  ;;  %v1373_v20 = vld [vmem:[%s2132_s0 + $0xb0] sm:$0xff]  }
  0x48   :  { %v362_v44 = vmax.f32 %v298_v39, 0.0  ;;  %v363_v45 = vmax.f32 %v299_v40, 0.0  ;;  %v374_v46 = vmax.f32 %v310_v41, 0.0  ;;  %v375_v47 = vmax.f32 %v311_v42, 0.0  ;;  %v1372_v42 = vld [vmem:[%s2132_s0 + $0xa8] sm:$0xff]  }
  0x49   :  { %v414_v31 = vpack.c.bf16 %v377_v25, %v376_v24  ;;  %v272_v34 = vadd.f32 %v1503_v14, %v204_v26  ;;  %v288_v36 = vadd.f32 %v1503_v14, %v220_v32  ;;  %v289_v37 = vadd.f32 %v1503_v14, %v221_v33 }
  0x4a   :  { %v407_v52 = vpack.c.bf16 %v363_v45, %v362_v44  ;;  %v413_v53 = vpack.c.bf16 %v375_v47, %v374_v46  ;;  %v1358_v44 = vld [vmem:[%s2132_s0 + $0x38] sm:$0xff]   ;;  %v1150_v45 = vunpack.c.l.bf16 %v1372_v42  ;;  %v1151_v46 = vunpack.c.h.bf16 %v1372_v42 }
  0x4b   :  { %v352_v40 = vmax.f32 %v288_v36, 0.0  ;;  %v353_v41 = vmax.f32 %v289_v37, 0.0  ;;  %v1174_v47 = vunpack.c.l.bf16 %v1378_v43  ;;  %v1094_v54 = vunpack.c.l.bf16 %v1358_v44  ;;  %v1374_v42 = vld [vmem:[%s2132_s0 + $0xb8] sm:$0xff]   ;;  %v1380_v43 = vld [vmem:[%s2132_s0 + $0xe8] sm:$0xff]  }
  0x4c   :  { %617 = vmatmul.bf16.gmra.mxu3 %v413_v53  ;;  %v235_v50 = vmul.f32 %v1490_v7, %v1151_v46  ;;  %v1095_v55 = vunpack.c.h.bf16 %v1358_v44  ;;  %v1154_v22 = vunpack.c.l.bf16 %v1373_v20  ;;  %v1155_v23 = vunpack.c.h.bf16 %v1373_v20 }
  0x4d   :  { %v246_v51 = vmul.f32 %v1490_v7, %v1174_v47  ;;  %v206_v2 = vmul.f32 %v1490_v7, %v1094_v54  ;;  %v1178_v24 = vunpack.c.l.bf16 %v1379_v21  ;;  %v1179_v25 = vunpack.c.h.bf16 %v1379_v21 }
  0x4e   :  { %v303_v58 = vadd.f32 %v1503_v14, %v235_v50  ;;  %v207_v3 = vmul.f32 %v1490_v7, %v1095_v55  ;;  %v236_v26 = vmul.f32 %v1490_v7, %v1154_v22  ;;  %v1158_v44 = vunpack.c.l.bf16 %v1374_v42 }
  0x4f   :  { %v314_v59 = vadd.f32 %v1503_v14, %v246_v51  ;;  %v274_v11 = vadd.f32 %v1503_v14, %v206_v2  ;;  %v248_v28 = vmul.f32 %v1490_v7, %v1178_v24  ;;  %v249_v29 = vmul.f32 %v1490_v7, %v1179_v25 }
  0x50   :  { %v367_v63 = vmax.f32 %v303_v58, 0.0  ;;  %v304_v32 = vadd.f32 %v1503_v14, %v236_v26  ;;  %v1182_v46 = vunpack.c.l.bf16 %v1380_v43  ;;  %v1183_v47 = vunpack.c.h.bf16 %v1380_v43 }
  0x51   :  { %507 = vmatmul.bf16.gmra.mxu0 %v391_v57  ;;  %547 = vmatmul.bf16.gmra.mxu1 %v399_v60  ;;  %v271_v57 = vadd.f32 %v1503_v14, %v203_v49  ;;  %v334_v60 = vmax.f32 %v270_v56, 0.0  ;;  %v234_v49 = vmul.f32 %v1490_v7, %v1150_v45  ;;  %v402_v56 = vpack.c.bf16 %v353_v41, %v352_v40 }
  0x52   :  { %587 = vmatmul.bf16.gmra.mxu2 %v407_v52  ;;  %v247_v52 = vmul.f32 %v1490_v7, %v1175_v48  ;;  %v378_v0 = vmax.f32 %v314_v59, 0.0  ;;  %v368_v36 = vmax.f32 %v304_v32, 0.0  ;;  %v1159_v45 = vunpack.c.h.bf16 %v1374_v42  ;;  %v1382_v32 = vld [vmem:[%s2132_s0 + $0xf8] sm:$0xff]  }
  0x53   :  { %v335_v61 = vmax.f32 %v271_v57, 0.0  ;;  %v302_v57 = vadd.f32 %v1503_v14, %v234_v49  ;;  %v238_v48 = vmul.f32 %v1490_v7, %v1158_v44  ;;  %v250_v50 = vmul.f32 %v1490_v7, %v1182_v46 }
  0x54   :  { %v239_v49 = vmul.f32 %v1490_v7, %v1159_v45  ;;  %v251_v51 = vmul.f32 %v1490_v7, %v1183_v47 }
  0x55   :  { %v393_v12 = vpack.c.bf16 %v335_v61, %v334_v60  ;;  %v315_v60 = vadd.f32 %v1503_v14, %v247_v52  ;;  %v1366_v61 = vld [vmem:[%s2132_s0 + $0x78] sm:$0xff]   ;;  %v366_v62 = vmax.f32 %v302_v57, 0.0  ;;  %v306_v52 = vadd.f32 %v1503_v14, %v238_v48 }
  0x56   :  { %v1126_v4 = vunpack.c.l.bf16 %v1366_v61  ;;  %v1127_v5 = vunpack.c.h.bf16 %v1366_v61  ;;  %v318_v54 = vadd.f32 %v1503_v14, %v250_v50  ;;  %v319_v55 = vadd.f32 %v1503_v14, %v251_v51 }
  0x57   :  { %v379_v1 = vmax.f32 %v315_v60, 0.0  ;;  %v409_v6 = vpack.c.bf16 %v367_v63, %v366_v62  ;;  %v370_v58 = vmax.f32 %v306_v52, 0.0 }
  0x58   :  { %v222_v9 = vmul.f32 %v1490_v7, %v1126_v4  ;;  %v223_v10 = vmul.f32 %v1490_v7, %v1127_v5  ;;  %v382_v60 = vmax.f32 %v318_v54, 0.0  ;;  %v383_v61 = vmax.f32 %v319_v55, 0.0 }
  0x59   :  { %v415_v8 = vpack.c.bf16 %v379_v1, %v378_v0 }
  0x5a   :  { %v290_v13 = vadd.f32 %v1503_v14, %v222_v9  ;;  %v291_v15 = vadd.f32 %v1503_v14, %v223_v10  ;;  %v417_v63 = vpack.c.bf16 %v383_v61, %v382_v60 }
  0x5c   :  { %622 = vmatmul.bf16.gmra.mxu3 %v414_v31  ;;  %v354_v18 = vmax.f32 %v290_v13, 0.0  ;;  %v355_v19 = vmax.f32 %v291_v15, 0.0 }
  0x5e   :  { %v403_v31 = vpack.c.bf16 %v355_v19, %v354_v18 }
  0x61   :  { %512 = vmatmul.bf16.gmra.mxu0 %v392_v35  ;;  %552 = vmatmul.bf16.gmra.mxu1 %v400_v38  ;;  %v273_v35 = vadd.f32 %v1503_v14, %v205_v27  ;;  %v336_v38 = vmax.f32 %v272_v34, 0.0  ;;  %v237_v27 = vmul.f32 %v1490_v7, %v1155_v23  ;;  %v316_v34 = vadd.f32 %v1503_v14, %v248_v28 }
  0x62   :  { %592 = vmatmul.bf16.gmra.mxu2 %v408_v30 }
  0x63   :  { %v337_v39 = vmax.f32 %v273_v35, 0.0  ;;  %v305_v33 = vadd.f32 %v1503_v14, %v237_v27  ;;  %v317_v35 = vadd.f32 %v1503_v14, %v249_v29 }
  0x65   :  { %v394_v53 = vpack.c.bf16 %v337_v39, %v336_v38  ;;  %v369_v37 = vmax.f32 %v305_v33, 0.0  ;;  %v380_v38 = vmax.f32 %v316_v34, 0.0  ;;  %v381_v39 = vmax.f32 %v317_v35, 0.0 }
  0x66   :  { %v1190_v34 = vunpack.c.l.bf16 %v1382_v32  ;;  %v1191_v35 = vunpack.c.h.bf16 %v1382_v32 }
  0x67   :  { %v410_v40 = vpack.c.bf16 %v369_v37, %v368_v36  ;;  %v416_v41 = vpack.c.bf16 %v381_v39, %v380_v38 }
  0x68   :  { %v254_v36 = vmul.f32 %v1490_v7, %v1190_v34  ;;  %v255_v37 = vmul.f32 %v1490_v7, %v1191_v35 }
  0x6a   :  { %v322_v38 = vadd.f32 %v1503_v14, %v254_v36  ;;  %v323_v39 = vadd.f32 %v1503_v14, %v255_v37 }
  0x6c   :  { %627 = vmatmul.bf16.gmra.mxu3 %v415_v8  ;;  %v1381_v8 = vld [vmem:[%s2132_s0 + $0xf0] sm:$0xff]   ;;  %v386_v45 = vmax.f32 %v322_v38, 0.0  ;;  %v387_v47 = vmax.f32 %v323_v39, 0.0 }
  0x6d   :  { %v1186_v10 = vunpack.c.l.bf16 %v1381_v8 }
  0x71   :  { %517 = vmatmul.bf16.gmra.mxu0 %v393_v12  ;;  %557 = vmatmul.bf16.gmra.mxu1 %v401_v16  ;;  %v275_v12 = vadd.f32 %v1503_v14, %v207_v3  ;;  %v338_v16 = vmax.f32 %v274_v11, 0.0  ;;  %v1187_v11 = vunpack.c.h.bf16 %v1381_v8 }
  0x72   :  { %597 = vmatmul.bf16.gmra.mxu2 %v409_v6 }
  0x73   :  { %v339_v17 = vmax.f32 %v275_v12, 0.0  ;;  %v252_v12 = vmul.f32 %v1490_v7, %v1186_v10  ;;  %v253_v13 = vmul.f32 %v1490_v7, %v1187_v11  ;;  %v419_v7 = vpack.c.bf16 %v387_v47, %v386_v45 }
  0x75   :  { %v395_v30 = vpack.c.bf16 %v339_v17, %v338_v16  ;;  %v320_v15 = vadd.f32 %v1503_v14, %v252_v12  ;;  %v321_v16 = vadd.f32 %v1503_v14, %v253_v13 }
  0x77   :  { %v384_v21 = vmax.f32 %v320_v15, 0.0  ;;  %v385_v22 = vmax.f32 %v321_v16, 0.0 }
  0x79   :  { %v418_v24 = vpack.c.bf16 %v385_v22, %v384_v21 }
  0x7c   :  { %632 = vmatmul.bf16.gmra.mxu3 %v416_v41 }
  0x81   :  { %522 = vmatmul.bf16.gmra.mxu0 %v394_v53  ;;  %562 = vmatmul.bf16.gmra.mxu1 %v402_v56  ;;  %v307_v53 = vadd.f32 %v1503_v14, %v239_v49 }
  0x82   :  { %602 = vmatmul.bf16.gmra.mxu2 %v410_v40 }
  0x83   :  { %v371_v59 = vmax.f32 %v307_v53, 0.0 }
  0x85   :  { %v411_v62 = vpack.c.bf16 %v371_v59, %v370_v58 }
  0x8c   :  { %637 = vmatmul.bf16.gmra.mxu3 %v417_v63 }
  0x91   :  { %527 = vmatmul.bf16.gmra.mxu0 %v395_v30  ;;  %567 = vmatmul.bf16.gmra.mxu1 %v403_v31 }
  0x92   :  { %607 = vmatmul.bf16.gmra.mxu2 %v411_v62 }
  0x9c   :  { %642 = vmatmul.bf16.gmra.mxu3 %v418_v24 }
  0x9e   :  { %v493_v56 = vpop.f32.mrf.mxu0  ;;  %v1716_v57 = vpop.f32.mrf.mxu1 }
  0x9f   :  { %v851_v0 = vmul.f32 %v493_v56, %v493_v56 }
  0xa5   :  { %v1741_v31 = vpop.f32.mrf.mxu2 }
  0xa6   :  { %v495_v1 = vpop.f32.mrf.mxu0  ;;  %v1718_v2 = vpop.f32.mrf.mxu1 }
  0xa7   :  { %v1195_v3 = vpack.c.bf16 %v495_v1, %v493_v56  ;;  %v782_v4 = vadd.f32 %v495_v1, %v493_v56  ;;  %v852_v5 = vmul.f32 %v495_v1, %v495_v1  ;;  %v1235_v6 = vpack.c.bf16 %v1718_v2, %v1716_v57 }
  0xa9   :  { %1196 = vst [vmem:[%s2133_s4] sm:$0xff] %v1195_v3   ;;  %v915_v9 = vadd.f32 %v852_v5, %v851_v0 }
  0xaa   :  { %1390 = vst [vmem:[%s2133_s4 + $0x40] sm:$0xff] %v1235_v6  }
  0xac   :  { %647 = vmatmul.bf16.gmra.mxu3 %v419_v7 }
  0xad   :  { %v1760_v44 = vpop.f32.mrf.mxu2 }
  0xae   :  { %v498_v17 = vpop.f32.mrf.mxu0  ;;  %v1735_v18 = vpop.f32.mrf.mxu1  ;;  %v1275_v46 = vpack.c.bf16 %v1760_v44, %v1741_v31 }
  0xaf   :  { %v783_v19 = vadd.f32 %v782_v4, %v498_v17  ;;  %v853_v20 = vmul.f32 %v498_v17, %v498_v17 }
  0xb0   :  { %1398 = vst [vmem:[%s2133_s4 + $0x80] sm:$0xff] %v1275_v46  }
  0xb1   :  { %v916_v23 = vadd.f32 %v915_v9, %v853_v20 }
  0xb5   :  { %v1773_v52 = vpop.f32.mrf.mxu2 }
  0xb6   :  { %v500_v25 = vpop.f32.mrf.mxu0  ;;  %v1737_v26 = vpop.f32.mrf.mxu1 }
  0xb7   :  { %v1200_v27 = vpack.c.bf16 %v500_v25, %v498_v17  ;;  %v784_v28 = vadd.f32 %v783_v19, %v500_v25  ;;  %v854_v29 = vmul.f32 %v500_v25, %v500_v25  ;;  %v1240_v30 = vpack.c.bf16 %v1737_v26, %v1735_v18 }
  0xb9   :  { %1383 = vst [vmem:[%s2133_s4 + $0x8] sm:$0xff] %v1200_v27   ;;  %v917_v33 = vadd.f32 %v916_v23, %v854_v29 }
  0xba   :  { %1391 = vst [vmem:[%s2133_s4 + $0x48] sm:$0xff] %v1240_v30  }
  0xbc   :  { %v1796_v63 = vpop.f32.mrf.mxu3 }
  0xbd   :  { %v1783_v55 = vpop.f32.mrf.mxu2 }
  0xbe   :  { %v503_v40 = vpop.f32.mrf.mxu0  ;;  %v1756_v41 = vpop.f32.mrf.mxu1  ;;  %v1280_v56 = vpack.c.bf16 %v1783_v55, %v1773_v52 }
  0xbf   :  { %v1758_v42 = vadd.f32 %v784_v28, %v503_v40  ;;  %v855_v43 = vmul.f32 %v503_v40, %v503_v40 }
  0xc0   :  { %1399 = vst [vmem:[%s2133_s4 + $0x88] sm:$0xff] %v1280_v56  }
  0xc1   :  { %v1764_v48 = vadd.f32 %v917_v33, %v855_v43 }
  0xc4   :  { %v1808_v4 = vpop.f32.mrf.mxu3 }
  0xc5   :  { %v1794_v62 = vpop.f32.mrf.mxu2  ;;  %v1315_v6 = vpack.c.bf16 %v1808_v4, %v1796_v63 }
  0xc6   :  { %v505_v14 = vpop.f32.mrf.mxu0  ;;  %v1769_v49 = vpop.f32.mrf.mxu1 }
  0xc7   :  { %v1205_v50 = vpack.c.bf16 %v505_v14, %v503_v40  ;;  %v1245_v51 = vpack.c.bf16 %v1769_v49, %v1756_v41  ;;  %1406 = vst [vmem:[%s2133_s4 + $0xc0] sm:$0xff] %v1315_v6   ;;  %v856_v34 = vmul.f32 %v505_v14, %v505_v14  ;;  %v786_v38 = vadd.f32 %v1758_v42, %v505_v14 }
  0xc9   :  { %1384 = vst [vmem:[%s2133_s4 + $0x10] sm:$0xff] %v1205_v50   ;;  %v919_v39 = vadd.f32 %v1764_v48, %v856_v34 }
  0xca   :  { %1392 = vst [vmem:[%s2133_s4 + $0x50] sm:$0xff] %v1245_v51  }
  0xcd   :  { %v1806_v3 = vpop.f32.mrf.mxu2 }
  0xce   :  { %v508_v53 = vpop.f32.mrf.mxu0  ;;  %v1781_v54 = vpop.f32.mrf.mxu1  ;;  %v1285_v5 = vpack.c.bf16 %v1806_v3, %v1794_v62 }
  0xcf   :  { %v1826_v13 = vpop.f32.mrf.mxu3  ;;  %v857_v37 = vmul.f32 %v508_v53, %v508_v53  ;;  %v787_v43 = vadd.f32 %v786_v38, %v508_v53 }
  0xd0   :  { %1400 = vst [vmem:[%s2133_s4 + $0x90] sm:$0xff] %v1285_v5  }
  0xd1   :  { %v920_v45 = vadd.f32 %v919_v39, %v857_v37 }
  0xd5   :  { %v1824_v12 = vpop.f32.mrf.mxu2 }
  0xd6   :  { %v510_v58 = vpop.f32.mrf.mxu0  ;;  %v1790_v59 = vpop.f32.mrf.mxu1 }
  0xd7   :  { %v1210_v60 = vpack.c.bf16 %v510_v58, %v508_v53  ;;  %v1250_v61 = vpack.c.bf16 %v1790_v59, %v1781_v54  ;;  %v1838_v19 = vpop.f32.mrf.mxu3  ;;  %v858_v40 = vmul.f32 %v510_v58, %v510_v58  ;;  %v788_v50 = vadd.f32 %v787_v43, %v510_v58 }
  0xd8   :  { %v1320_v21 = vpack.c.bf16 %v1838_v19, %v1826_v13 }
  0xd9   :  { %1385 = vst [vmem:[%s2133_s4 + $0x18] sm:$0xff] %v1210_v60   ;;  %v921_v14 = vadd.f32 %v920_v45, %v858_v40 }
  0xda   :  { %1393 = vst [vmem:[%s2133_s4 + $0x58] sm:$0xff] %v1250_v61  }
  0xdb   :  { %1407 = vst [vmem:[%s2133_s4 + $0xc8] sm:$0xff] %v1320_v21  }
  0xdd   :  { %v1836_v17 = vpop.f32.mrf.mxu2 }
  0xde   :  { %v513_v0 = vpop.f32.mrf.mxu0  ;;  %v1804_v1 = vpop.f32.mrf.mxu1  ;;  %v1290_v20 = vpack.c.bf16 %v1836_v17, %v1824_v12 }
  0xdf   :  { %v1856_v28 = vpop.f32.mrf.mxu3  ;;  %v859_v46 = vmul.f32 %v513_v0, %v513_v0  ;;  %v789_v5 = vadd.f32 %v788_v50, %v513_v0 }
  0xe0   :  { %1401 = vst [vmem:[%s2133_s4 + $0x98] sm:$0xff] %v1290_v20  }
  0xe1   :  { %v922_v48 = vadd.f32 %v921_v14, %v859_v46 }
  0xe5   :  { %v1854_v27 = vpop.f32.mrf.mxu2 }
  0xe6   :  { %v515_v8 = vpop.f32.mrf.mxu0  ;;  %v1820_v9 = vpop.f32.mrf.mxu1 }
  0xe7   :  { %v1215_v10 = vpack.c.bf16 %v515_v8, %v513_v0  ;;  %v1255_v11 = vpack.c.bf16 %v1820_v9, %v1804_v1  ;;  %v1868_v33 = vpop.f32.mrf.mxu3  ;;  %v860_v61 = vmul.f32 %v515_v8, %v515_v8  ;;  %v790_v58 = vadd.f32 %v789_v5, %v515_v8 }
  0xe8   :  { %v1325_v36 = vpack.c.bf16 %v1868_v33, %v1856_v28 }
  0xe9   :  { %1386 = vst [vmem:[%s2133_s4 + $0x20] sm:$0xff] %v1215_v10   ;;  %v923_v6 = vadd.f32 %v922_v48, %v860_v61 }
  0xea   :  { %1394 = vst [vmem:[%s2133_s4 + $0x60] sm:$0xff] %v1255_v11  }
  0xeb   :  { %1408 = vst [vmem:[%s2133_s4 + $0xd0] sm:$0xff] %v1325_v36  }
  0xed   :  { %v1866_v32 = vpop.f32.mrf.mxu2 }
  0xee   :  { %v518_v15 = vpop.f32.mrf.mxu0  ;;  %v1834_v16 = vpop.f32.mrf.mxu1  ;;  %v1295_v35 = vpack.c.bf16 %v1866_v32, %v1854_v27 }
  0xef   :  { %v1888_v42 = vpop.f32.mrf.mxu3  ;;  %v861_v53 = vmul.f32 %v518_v15, %v518_v15  ;;  %v791_v11 = vadd.f32 %v790_v58, %v518_v15 }
  0xf0   :  { %1402 = vst [vmem:[%s2133_s4 + $0xa0] sm:$0xff] %v1295_v35  }
  0xf1   :  { %v924_v20 = vadd.f32 %v923_v6, %v861_v53  ;;  %v868_v6 = vmul.f32 %v1718_v2, %v1718_v2 }
  0xf5   :  { %v1886_v60 = vpop.f32.mrf.mxu2 }
  0xf6   :  { %v520_v22 = vpop.f32.mrf.mxu0  ;;  %v1850_v23 = vpop.f32.mrf.mxu1 }
  0xf7   :  { %v1220_v24 = vpack.c.bf16 %v520_v22, %v518_v15  ;;  %v1260_v25 = vpack.c.bf16 %v1850_v23, %v1834_v16  ;;  %v862_v10 = vmul.f32 %v520_v22, %v520_v22  ;;  %v792_v0 = vadd.f32 %v791_v11, %v520_v22  ;;  %v1900_v35 = vpop.f32.mrf.mxu3 }
  0xf8   :  { %v1330_v8 = vpack.c.bf16 %v1900_v35, %v1888_v42 }
  0xf9   :  { %1387 = vst [vmem:[%s2133_s4 + $0x28] sm:$0xff] %v1220_v24   ;;  %v925_v36 = vadd.f32 %v924_v20, %v862_v10  ;;  %v869_v20 = vmul.f32 %v1735_v18, %v1735_v18 }
  0xfa   :  { %1395 = vst [vmem:[%s2133_s4 + $0x68] sm:$0xff] %v1260_v25  }
  0xfb   :  { %1409 = vst [vmem:[%s2133_s4 + $0xd8] sm:$0xff] %v1330_v8  }
  0xfd   :  { %v1898_v34 = vpop.f32.mrf.mxu2 }
  0xfe   :  { %v523_v29 = vpop.f32.mrf.mxu0  ;;  %v1864_v30 = vpop.f32.mrf.mxu1  ;;  %v1300_v38 = vpack.c.bf16 %v1898_v34, %v1886_v60 }
  0xff   :  { %v863_v21 = vmul.f32 %v523_v29, %v523_v29  ;;  %v793_v39 = vadd.f32 %v792_v0, %v523_v29  ;;  %v1918_v48 = vpop.f32.mrf.mxu3 }
 0x100   :  { %1403 = vst [vmem:[%s2133_s4 + $0xa8] sm:$0xff] %v1300_v38  }
 0x101   :  { %v926_v15 = vadd.f32 %v925_v36, %v863_v21 }
 0x105   :  { %v1916_v5 = vpop.f32.mrf.mxu2 }
 0x106   :  { %v525_v47 = vpop.f32.mrf.mxu0  ;;  %v1882_v7 = vpop.f32.mrf.mxu1 }
 0x107   :  { %v1225_v51 = vpack.c.bf16 %v525_v47, %v523_v29  ;;  %v1265_v56 = vpack.c.bf16 %v1882_v7, %v1864_v30  ;;  %v864_v37 = vmul.f32 %v525_v47, %v525_v47  ;;  %v794_v22 = vadd.f32 %v793_v39, %v525_v47  ;;  %v1940_v38 = vpop.f32.mrf.mxu3 }
 0x108   :  { %v867_v47 = vmul.f32 %v1716_v57, %v1716_v57  ;;  %v1335_v8 = vpack.c.bf16 %v1940_v38, %v1918_v48 }
 0x109   :  { %1388 = vst [vmem:[%s2133_s4 + $0x30] sm:$0xff] %v1225_v51   ;;  %v927_v43 = vadd.f32 %v926_v15, %v864_v37 }
 0x10a   :  { %1396 = vst [vmem:[%s2133_s4 + $0x70] sm:$0xff] %v1265_v56  }
 0x10b   :  { %1410 = vst [vmem:[%s2133_s4 + $0xe0] sm:$0xff] %v1335_v8   ;;  %v880_v8 = vmul.f32 %v1882_v7, %v1882_v7 }
 0x10d   :  { %v1938_v37 = vpop.f32.mrf.mxu2 }
 0x10e   :  { %v528_v24 = vpop.f32.mrf.mxu0  ;;  %v1896_v25 = vpop.f32.mrf.mxu1 }
 0x10f   :  { %v865_v40 = vmul.f32 %v528_v24, %v528_v24  ;;  %v795_v45 = vadd.f32 %v794_v22, %v528_v24 }
 0x111   :  { %v928_v46 = vadd.f32 %v927_v43, %v865_v40  ;;  %v873_v43 = vmul.f32 %v1781_v54, %v1781_v54 }
 0x116   :  { %v530_v50 = vpop.f32.mrf.mxu0  ;;  %v1912_v51 = vpop.f32.mrf.mxu1 }
 0x117   :  { %v1230_v56 = vpack.c.bf16 %v530_v50, %v528_v24  ;;  %v796_v14 = vadd.f32 %v795_v45, %v530_v50  ;;  %v866_v29 = vmul.f32 %v530_v50, %v530_v50  ;;  %v1270_v61 = vpack.c.bf16 %v1912_v51, %v1896_v25 }
 0x119   :  { %1389 = vst [vmem:[%s2133_s4 + $0x38] sm:$0xff] %v1230_v56   ;;  %v797_v53 = vadd.f32 %v796_v14, %v1716_v57  ;;  %v929_v58 = vadd.f32 %v928_v46, %v866_v29  ;;  %v870_v57 = vmul.f32 %v1737_v26, %v1737_v26  ;;  %v874_v46 = vmul.f32 %v1790_v59, %v1790_v59  ;;  %v1964_v14 = vpop.f32.mrf.mxu2 }
 0x11a   :  { %1397 = vst [vmem:[%s2133_s4 + $0x78] sm:$0xff] %v1270_v61   ;;  %v875_v29 = vmul.f32 %v1804_v1, %v1804_v1 }
 0x11b   :  { %v798_v10 = vadd.f32 %v797_v53, %v1718_v2  ;;  %v930_v11 = vadd.f32 %v929_v58, %v867_v47  ;;  %v1305_v2 = vpack.c.bf16 %v1938_v37, %v1916_v5  ;;  %v876_v53 = vmul.f32 %v1820_v9, %v1820_v9 }
 0x11d   :  { %v799_v21 = vadd.f32 %v798_v10, %v1735_v18  ;;  %v931_v24 = vadd.f32 %v930_v11, %v868_v6  ;;  %v871_v18 = vmul.f32 %v1756_v41, %v1756_v41  ;;  %1404 = vst [vmem:[%s2133_s4 + $0xb0] sm:$0xff] %v1305_v2   ;;  %v878_v11 = vmul.f32 %v1850_v23, %v1850_v23 }
 0x11f   :  { %v800_v0 = vadd.f32 %v799_v21, %v1737_v26  ;;  %v932_v36 = vadd.f32 %v931_v24, %v869_v20  ;;  %v872_v26 = vmul.f32 %v1769_v49, %v1769_v49 }
 0x121   :  { %v801_v39 = vadd.f32 %v800_v0, %v1756_v41  ;;  %v933_v15 = vadd.f32 %v932_v36, %v870_v57 }
 0x123   :  { %v802_v40 = vadd.f32 %v801_v39, %v1769_v49  ;;  %v934_v22 = vadd.f32 %v933_v15, %v871_v18  ;;  %v1966_v49 = vpop.f32.mrf.mxu3 }
 0x125   :  { %v935_v45 = vadd.f32 %v934_v22, %v872_v26  ;;  %v803_v41 = vadd.f32 %v802_v40, %v1781_v54  ;;  %v882_v40 = vmul.f32 %v1912_v51, %v1912_v51 }
 0x127   :  { %v804_v50 = vadd.f32 %v803_v41, %v1790_v59  ;;  %v936_v56 = vadd.f32 %v935_v45, %v873_v43  ;;  %v877_v59 = vmul.f32 %v1834_v16, %v1834_v16  ;;  %v884_v41 = vmul.f32 %v1760_v44, %v1760_v44 }
 0x129   :  { %v805_v61 = vadd.f32 %v804_v50, %v1804_v1  ;;  %v937_v47 = vadd.f32 %v936_v56, %v874_v46  ;;  %v1980_v1 = vpop.f32.mrf.mxu2  ;;  %v885_v50 = vmul.f32 %v1773_v52, %v1773_v52 }
 0x12b   :  { %v806_v54 = vadd.f32 %v805_v61, %v1820_v9  ;;  %v938_v58 = vadd.f32 %v937_v47, %v875_v29  ;;  %v1982_v24 = vpop.f32.mrf.mxu3  ;;  %v1310_v9 = vpack.c.bf16 %v1980_v1, %v1964_v14  ;;  %v886_v29 = vmul.f32 %v1783_v55, %v1783_v55 }
 0x12c   :  { %v1340_v57 = vpack.c.bf16 %v1982_v24, %v1966_v49 }
 0x12d   :  { %v807_v6 = vadd.f32 %v806_v54, %v1834_v16  ;;  %v939_v10 = vadd.f32 %v938_v58, %v876_v53  ;;  %v879_v16 = vmul.f32 %v1864_v30, %v1864_v30  ;;  %1405 = vst [vmem:[%s2133_s4 + $0xb8] sm:$0xff] %v1310_v9  }
 0x12e   :  { %1411 = vst [vmem:[%s2133_s4 + $0xe8] sm:$0xff] %v1340_v57   ;;  %v891_v57 = vmul.f32 %v1854_v27, %v1854_v27 }
 0x12f   :  { %v808_v20 = vadd.f32 %v807_v6, %v1850_v23  ;;  %v940_v21 = vadd.f32 %v939_v10, %v877_v59  ;;  %v889_v6 = vmul.f32 %v1824_v12, %v1824_v12 }
 0x131   :  { %v809_v0 = vadd.f32 %v808_v20, %v1864_v30  ;;  %v941_v36 = vadd.f32 %v940_v21, %v878_v11  ;;  %v881_v30 = vmul.f32 %v1896_v25, %v1896_v25 }
 0x133   :  { %v942_v23 = vadd.f32 %v941_v36, %v879_v16  ;;  %v810_v2 = vadd.f32 %v809_v0, %v1882_v7  ;;  %v2006_v22 = vpop.f32.mrf.mxu3  ;;  %v883_v7 = vmul.f32 %v1741_v31, %v1741_v31  ;;  %v892_v16 = vmul.f32 %v1866_v32, %v1866_v32 }
 0x135   :  { %v943_v18 = vadd.f32 %v942_v23, %v880_v8  ;;  %v811_v39 = vadd.f32 %v810_v2, %v1896_v25  ;;  %v893_v23 = vmul.f32 %v1886_v60, %v1886_v60 }
 0x137   :  { %v944_v15 = vadd.f32 %v943_v18, %v881_v30  ;;  %v812_v26 = vadd.f32 %v811_v39, %v1912_v51  ;;  %v894_v18 = vmul.f32 %v1898_v34, %v1898_v34 }
 0x139   :  { %v813_v43 = vadd.f32 %v812_v26, %v1741_v31  ;;  %v945_v45 = vadd.f32 %v944_v15, %v882_v40  ;;  %v895_v26 = vmul.f32 %v1916_v5, %v1916_v5 }
 0x13b   :  { %v814_v46 = vadd.f32 %v813_v43, %v1760_v44  ;;  %v946_v25 = vadd.f32 %v945_v45, %v883_v7  ;;  %v2020_v31 = vpop.f32.mrf.mxu3  ;;  %v887_v44 = vmul.f32 %v1794_v62, %v1794_v62  ;;  %v897_v45 = vmul.f32 %v1964_v14, %v1964_v14 }
 0x13c   :  { %v1345_v53 = vpack.c.bf16 %v2020_v31, %v2006_v22 }
 0x13d   :  { %v815_v56 = vadd.f32 %v814_v46, %v1773_v52  ;;  %v947_v51 = vadd.f32 %v946_v25, %v884_v41  ;;  %v888_v52 = vmul.f32 %v1806_v3, %v1806_v3  ;;  %v1441_v25 = vmov 0.0  }
 0x13e   :  { %1412 = vst [vmem:[%s2133_s4 + $0xf0] sm:$0xff] %v1345_v53   ;;  %v902_v53 = vmul.f32 %v1838_v19, %v1838_v19 }
 0x13f   :  { %v816_v61 = vadd.f32 %v815_v56, %v1783_v55  ;;  %v948_v47 = vadd.f32 %v947_v51, %v885_v50  ;;  %59 = vst [vmem:[%s2134_s5] sm:$0x3] %v1441_v25 }
 0x141   :  { %v817_v54 = vadd.f32 %v816_v61, %v1794_v62  ;;  %v949_v58 = vadd.f32 %v948_v47, %v886_v29  ;;  %v890_v62 = vmul.f32 %v1836_v17, %v1836_v17 }
 0x143   :  { %v818_v55 = vadd.f32 %v817_v54, %v1806_v3  ;;  %v950_v59 = vadd.f32 %v949_v58, %v887_v44  ;;  %v2039_v9 = vpop.f32.mrf.mxu3 }
 0x145   :  { %v951_v10 = vadd.f32 %v950_v59, %v888_v52  ;;  %v819_v11 = vadd.f32 %v818_v55, %v1824_v12 }
 0x147   :  { %v820_v20 = vadd.f32 %v819_v11, %v1836_v17  ;;  %v952_v21 = vadd.f32 %v951_v10, %v889_v6 }
 0x149   :  { %v821_v3 = vadd.f32 %v820_v20, %v1854_v27  ;;  %v953_v0 = vadd.f32 %v952_v21, %v890_v62 }
 0x14b   :  { %v822_v36 = vadd.f32 %v821_v3, %v1866_v32  ;;  %v954_v12 = vadd.f32 %v953_v0, %v891_v57  ;;  %v2053_v27 = vpop.f32.mrf.mxu3 }
 0x14c   :  { %v1350_v30 = vpack.c.bf16 %v2053_v27, %v2039_v9 }
 0x14d   :  { %v823_v17 = vadd.f32 %v822_v36, %v1886_v60  ;;  %v955_v2 = vadd.f32 %v954_v12, %v892_v16  ;;  %v910_v36 = vmul.f32 %v1982_v24, %v1982_v24 }
 0x14e   :  { %1413 = vst [vmem:[%s2133_s4 + $0xf8] sm:$0xff] %v1350_v30  }
 0x14f   :  { %v824_v8 = vadd.f32 %v823_v17, %v1898_v34  ;;  %v956_v39 = vadd.f32 %v955_v2, %v893_v23  ;;  %v896_v34 = vmul.f32 %v1938_v37, %v1938_v37  ;;  %v911_v17 = vmul.f32 %v2006_v22, %v2006_v22 }
 0x151   :  { %v957_v15 = vadd.f32 %v956_v39, %v894_v18  ;;  %v825_v32 = vadd.f32 %v824_v8, %v1916_v5  ;;  %v898_v5 = vmul.f32 %v1980_v1, %v1980_v1  ;;  %v912_v8 = vmul.f32 %v2020_v31, %v2020_v31 }
 0x152   :  { %v913_v39 = vmul.f32 %v2039_v9, %v2039_v9 }
 0x153   :  { %v958_v60 = vadd.f32 %v957_v15, %v895_v26  ;;  %v826_v40 = vadd.f32 %v825_v32, %v1938_v37  ;;  %v899_v37 = vmul.f32 %v1796_v63, %v1796_v63  ;;  %v914_v15 = vmul.f32 %v2053_v27, %v2053_v27 }
 0x155   :  { %v959_v7 = vadd.f32 %v958_v60, %v896_v34  ;;  %v827_v43 = vadd.f32 %v826_v40, %v1964_v14  ;;  %v900_v14 = vmul.f32 %v1808_v4, %v1808_v4 }
 0x157   :  { %v960_v41 = vadd.f32 %v959_v7, %v897_v45  ;;  %v828_v46 = vadd.f32 %v827_v43, %v1980_v1  ;;  %v901_v1 = vmul.f32 %v1826_v13, %v1826_v13 }
 0x159   :  { %v829_v50 = vadd.f32 %v828_v46, %v1796_v63  ;;  %v961_v56 = vadd.f32 %v960_v41, %v898_v5  ;;  %v903_v63 = vmul.f32 %v1856_v28, %v1856_v28 }
 0x15b   :  { %v830_v51 = vadd.f32 %v829_v50, %v1808_v4  ;;  %v962_v29 = vadd.f32 %v961_v56, %v899_v37  ;;  %v904_v4 = vmul.f32 %v1868_v33, %v1868_v33 }
 0x15d   :  { %v831_v61 = vadd.f32 %v830_v51, %v1826_v13  ;;  %v963_v47 = vadd.f32 %v962_v29, %v900_v14  ;;  %v905_v13 = vmul.f32 %v1888_v42, %v1888_v42 }
 0x15f   :  { %v832_v44 = vadd.f32 %v831_v61, %v1838_v19  ;;  %v964_v54 = vadd.f32 %v963_v47, %v901_v1  ;;  %v906_v19 = vmul.f32 %v1900_v35, %v1900_v35 }
 0x161   :  { %v833_v58 = vadd.f32 %v832_v44, %v1856_v28  ;;  %v965_v52 = vadd.f32 %v964_v54, %v902_v53  ;;  %v907_v28 = vmul.f32 %v1918_v48, %v1918_v48 }
 0x163   :  { %v834_v55 = vadd.f32 %v833_v58, %v1868_v33  ;;  %v966_v59 = vadd.f32 %v965_v52, %v903_v63  ;;  %v908_v33 = vmul.f32 %v1940_v38, %v1940_v38 }
 0x165   :  { %v967_v6 = vadd.f32 %v966_v59, %v904_v4  ;;  %v835_v10 = vadd.f32 %v834_v55, %v1888_v42  ;;  %v909_v42 = vmul.f32 %v1966_v49, %v1966_v49 }
 0x167   :  { %v836_v11 = vadd.f32 %v835_v10, %v1900_v35  ;;  %v968_v62 = vadd.f32 %v967_v6, %v905_v13 }
 0x169   :  { %v837_v20 = vadd.f32 %v836_v11, %v1918_v48  ;;  %v969_v21 = vadd.f32 %v968_v62, %v906_v19 }
 0x16b   :  { %v838_v57 = vadd.f32 %v837_v20, %v1940_v38  ;;  %v970_v3 = vadd.f32 %v969_v21, %v907_v28 }
 0x16d   :  { %v839_v0 = vadd.f32 %v838_v57, %v1966_v49  ;;  %v971_v16 = vadd.f32 %v970_v3, %v908_v33 }
 0x16f   :  { %v840_v35 = vadd.f32 %v839_v0, %v1982_v24  ;;  %v972_v12 = vadd.f32 %v971_v16, %v909_v42 }
 0x171   :  { %v973_v48 = vadd.f32 %v972_v12, %v910_v36  ;;  %v841_v23 = vadd.f32 %v840_v35, %v2006_v22 }
 0x173   :  { %v974_v38 = vadd.f32 %v973_v48, %v911_v17  ;;  %v842_v2 = vadd.f32 %v841_v23, %v2020_v31 }
 0x175   :  { %v975_v49 = vadd.f32 %v974_v38, %v912_v8  ;;  %v843_v18 = vadd.f32 %v842_v2, %v2039_v9  ;;  %v781_v9 = vld [vmem:[%s2134_s5] sm:$0x3] }
 0x177   :  { %v976_v24 = vadd.f32 %v975_v49, %v913_v39  ;;  %v844_v30 = vadd.f32 %v843_v18, %v2053_v27 }
 0x179   :  { %v845_v32 = vrot.slane %v844_v30, 4  ;;  %v977_v22 = vadd.f32 %v976_v24, %v914_v15 }
 0x17b   :  { %v846_v26 = vadd.f32 %v845_v32, %v844_v30  ;;  %v978_v60 = vrot.slane %v977_v22, 4 }
 0x17d   :  { %v847_v40 = vrot.slane %v846_v26, 2  ;;  %v979_v34 = vadd.f32 %v978_v60, %v977_v22 }
 0x17f   :  { %v848_v7 = vadd.f32 %v847_v40, %v846_v26  ;;  %v980_v31 = vrot.slane %v979_v34, 2 }
 0x181   :  { %v849_v43 = vrot.slane %v848_v7, 1  ;;  %v981_v45 = vadd.f32 %v980_v31, %v979_v34 }
 0x183   :  { %v982_v41 = vrot.slane %v981_v45, 1  ;;  %v850_v46 = vadd.f32 %v849_v43, %v848_v7 }
 0x185   :  { %v983_v5 = vadd.f32 %v982_v41, %v981_v45 }
 0x187   :  { %v985_v25 = vsel %vm984_vm0, %v850_v46, %v983_v5 }
 0x188   :  { %v986_v27 = vadd.f32 %v985_v25, %v781_v9 }
 0x18a   :  { %987 = vst [vmem:[%s2134_s5] sm:$0x3] %v986_v27 }

// kernel: res_bottleneck_block.7
= control target key start
LH: loop header
LB: loop body
LE: loop exit
PB: predicated region body
PF: predicated region fallthrough
CT: control target
= control target key end

     0   :  { %s1852_s0 = inlined_call_operand.vmem [shape: bf16[512,128], index: 0, kind: input, shape index: {}]   ;;  %s1853_s1 = inlined_call_operand.vmem [shape: f32[1,128], index: 1, kind: input, shape index: {}]   ;;  %s1854_s2 = inlined_call_operand.vmem [shape: f32[1,128], index: 2, kind: input, shape index: {}]   ;;  %s1855_s3 = inlined_call_operand.vmem [shape: bf16[512,128], index: 3, kind: input, shape index: {}]   ;;  %s1856_s4 = inlined_call_operand.vmem [shape: f32[1,128], index: 4, kind: input, shape index: {}]   ;;  %s1857_s5 = inlined_call_operand.vmem [shape: f32[1,128], index: 5, kind: input, shape index: {}]   ;;  %s1858_s6 = inlined_call_operand.vmem [shape: f32[512,128], index: 6, kind: output, shape index: {}]  }
   0x1   :  { %v812_v0 = vld [vmem:[%s1852_s0] sm:$0xff]   ;;  %v1067_v12 = vld [vmem:[%s1852_s0 + $0x8] sm:$0xff]   ;;  %v1068_v22 = vld [vmem:[%s1852_s0 + $0x10] sm:$0xff]  }
   0x2   :  { %v1178_v1 = vld [vmem:[%s1853_s1] ss:$0 sm:$0xff]  ;;  %v813_v2 = vunpack.c.l.bf16 %v812_v0  ;;  %v814_v5 = vunpack.c.h.bf16 %v812_v0  ;;  %v1098_v13 = vld [vmem:[%s1855_s3 + $0x8] sm:$0xff]   ;;  %v817_v16 = vunpack.c.l.bf16 %v1067_v12  ;;  %v818_v20 = vunpack.c.h.bf16 %v1067_v12  ;;  %v1099_v23 = vld [vmem:[%s1855_s3 + $0x10] sm:$0xff]  }
   0x3   :  { %v1183_v3 = vld [vmem:[%s1854_s2] ss:$0 sm:$0xff]  ;;  %v945_v17 = vunpack.c.l.bf16 %v1098_v13  ;;  %v946_v21 = vunpack.c.h.bf16 %v1098_v13  ;;  %v821_v34 = vunpack.c.l.bf16 %v1068_v22  ;;  %v949_v35 = vunpack.c.l.bf16 %v1099_v23  ;;  %v1069_v44 = vld [vmem:[%s1852_s0 + $0x18] sm:$0xff]  }
   0x4   :  { %v940_v4 = vld [vmem:[%s1855_s3] sm:$0xff]   ;;  %v155_v9 = vmul.f32 %v1178_v1, %v813_v2  ;;  %v156_v11 = vmul.f32 %v1178_v1, %v814_v5  ;;  %v157_v26 = vmul.f32 %v1178_v1, %v817_v16  ;;  %v158_v30 = vmul.f32 %v1178_v1, %v818_v20  ;;  %v1100_v45 = vld [vmem:[%s1855_s3 + $0x18] sm:$0xff]  }
   0x5   :  { %v941_v6 = vunpack.c.l.bf16 %v940_v4  ;;  %v1191_v7 = vld [vmem:[%s1856_s4] ss:$0 sm:$0xff]  ;;  %v942_v8 = vunpack.c.h.bf16 %v940_v4  ;;  %v159_v41 = vmul.f32 %v1178_v1, %v821_v34  ;;  %v822_v43 = vunpack.c.h.bf16 %v1068_v22 }
   0x6   :  { %v1197_v10 = vld [vmem:[%s1857_s5] ss:$0 sm:$0xff]  ;;  %v223_v18 = vadd.f32 %v1183_v3, %v155_v9  ;;  %v224_v19 = vadd.f32 %v1183_v3, %v156_v11  ;;  %v485_v27 = vmul.f32 %v1191_v7, %v945_v17  ;;  %v486_v31 = vmul.f32 %v1191_v7, %v946_v21 }
   0x7   :  { %v483_v14 = vmul.f32 %v1191_v7, %v941_v6  ;;  %v484_v15 = vmul.f32 %v1191_v7, %v942_v8  ;;  %v225_v32 = vadd.f32 %v1183_v3, %v157_v26  ;;  %v226_v38 = vadd.f32 %v1183_v3, %v158_v30  ;;  %v1070_v62 = vld [vmem:[%s1852_s0 + $0x20] sm:$0xff]  }
   0x8   :  { %v287_v28 = vmax.f32 %v223_v18, 0.0  ;;  %v288_v29 = vmax.f32 %v224_v19, 0.0  ;;  %v553_v33 = vadd.f32 %v1197_v10, %v485_v27  ;;  %v554_v39 = vadd.f32 %v1197_v10, %v486_v31  ;;  %v1101_v63 = vld [vmem:[%s1855_s3 + $0x20] sm:$0xff]  }
   0x9   :  { %v551_v24 = vadd.f32 %v1197_v10, %v483_v14  ;;  %v552_v25 = vadd.f32 %v1197_v10, %v484_v15  ;;  %v289_v40 = vmax.f32 %v225_v32, 0.0  ;;  %v487_v42 = vmul.f32 %v1191_v7, %v949_v35 }
   0xa   :  { %v290_v48 = vmax.f32 %v226_v38, 0.0  ;;  %v950_v49 = vunpack.c.h.bf16 %v1099_v23  ;;  %v227_v51 = vadd.f32 %v1183_v3, %v159_v41  ;;  %v160_v53 = vmul.f32 %v1178_v1, %v822_v43  ;;  %v1103_v43 = vld [vmem:[%s1855_s3 + $0x30] sm:$0xff]  }
   0xb   :  { %v615_v36 = vadd.f32 %v551_v24, %v287_v28  ;;  %v616_v37 = vadd.f32 %v552_v25, %v288_v29  ;;  %v617_v50 = vadd.f32 %v553_v33, %v289_v40  ;;  %v555_v52 = vadd.f32 %v1197_v10, %v487_v42  ;;  %v1071_v24 = vld [vmem:[%s1852_s0 + $0x28] sm:$0xff]   ;;  %v1072_v42 = vld [vmem:[%s1852_s0 + $0x30] sm:$0xff]  }
   0xc   :  { %v618_v54 = vadd.f32 %v554_v39, %v290_v48  ;;  %v488_v55 = vmul.f32 %v1191_v7, %v950_v49  ;;  %v825_v56 = vunpack.c.l.bf16 %v1069_v44  ;;  %v953_v57 = vunpack.c.l.bf16 %v1100_v45  ;;  %v1102_v25 = vld [vmem:[%s1855_s3 + $0x28] sm:$0xff]  }
   0xd   :  { %v679_v46 = vmax.f32 %v615_v36, 0.0  ;;  %v680_v47 = vmax.f32 %v616_v37, 0.0  ;;  %v681_v58 = vmax.f32 %v617_v50, 0.0  ;;  %v291_v59 = vmax.f32 %v227_v51, 0.0 }
   0xe   :  { %v228_v60 = vadd.f32 %v1183_v3, %v160_v53  ;;  %v826_v61 = vunpack.c.h.bf16 %v1069_v44  ;;  %v682_v0 = vmax.f32 %v618_v54, 0.0  ;;  %v556_v2 = vadd.f32 %v1197_v10, %v488_v55 }
   0xf   :  { %743 = vst [vmem:[%s1858_s6] sm:$0xff] %v679_v46  ;;  %v161_v4 = vmul.f32 %v1178_v1, %v825_v56  ;;  %v489_v5 = vmul.f32 %v1191_v7, %v953_v57  ;;  %v619_v6 = vadd.f32 %v555_v52, %v291_v59  ;;  %v954_v11 = vunpack.c.h.bf16 %v1100_v45 }
  0x10   :  { %744 = vst [vmem:[%s1858_s6 + $0x8] sm:$0xff] %v680_v47  ;;  %v292_v8 = vmax.f32 %v228_v60, 0.0  ;;  %v162_v9 = vmul.f32 %v1178_v1, %v826_v61  ;;  %v829_v14 = vunpack.c.l.bf16 %v1070_v62  ;;  %v957_v15 = vunpack.c.l.bf16 %v1101_v63 }
  0x11   :  { %745 = vst [vmem:[%s1858_s6 + $0x10] sm:$0xff] %v681_v58  ;;  %v229_v12 = vadd.f32 %v1183_v3, %v161_v4  ;;  %v557_v13 = vadd.f32 %v1197_v10, %v489_v5  ;;  %v683_v16 = vmax.f32 %v619_v6, 0.0  ;;  %v490_v19 = vmul.f32 %v1191_v7, %v954_v11 }
  0x12   :  { %746 = vst [vmem:[%s1858_s6 + $0x18] sm:$0xff] %v682_v0  ;;  %v620_v17 = vadd.f32 %v556_v2, %v292_v8  ;;  %v230_v18 = vadd.f32 %v1183_v3, %v162_v9  ;;  %v163_v21 = vmul.f32 %v1178_v1, %v829_v14  ;;  %v491_v22 = vmul.f32 %v1191_v7, %v957_v15  ;;  %v1073_v0 = vld [vmem:[%s1852_s0 + $0x38] sm:$0xff]  }
  0x13   :  { %v293_v20 = vmax.f32 %v229_v12, 0.0  ;;  %v830_v23 = vunpack.c.h.bf16 %v1070_v62  ;;  %747 = vst [vmem:[%s1858_s6 + $0x20] sm:$0xff] %v683_v16  ;;  %v558_v28 = vadd.f32 %v1197_v10, %v490_v19  ;;  %v958_v29 = vunpack.c.h.bf16 %v1101_v63  ;;  %v1104_v2 = vld [vmem:[%s1855_s3 + $0x38] sm:$0xff]  }
  0x14   :  { %v684_v26 = vmax.f32 %v620_v17, 0.0  ;;  %v294_v27 = vmax.f32 %v230_v18, 0.0  ;;  %v231_v31 = vadd.f32 %v1183_v3, %v163_v21  ;;  %v559_v32 = vadd.f32 %v1197_v10, %v491_v22  ;;  %v1074_v22 = vld [vmem:[%s1852_s0 + $0x40] sm:$0xff]  }
  0x15   :  { %v621_v30 = vadd.f32 %v557_v13, %v293_v20  ;;  %v164_v33 = vmul.f32 %v1178_v1, %v830_v23  ;;  %v492_v35 = vmul.f32 %v1191_v7, %v958_v29  ;;  %v833_v36 = vunpack.c.l.bf16 %v1071_v24  ;;  %v1105_v23 = vld [vmem:[%s1855_s3 + $0x40] sm:$0xff]  }
  0x16   :  { %748 = vst [vmem:[%s1858_s6 + $0x28] sm:$0xff] %v684_v26  ;;  %v622_v34 = vadd.f32 %v558_v28, %v294_v27  ;;  %v961_v37 = vunpack.c.l.bf16 %v1102_v25  ;;  %v295_v39 = vmax.f32 %v231_v31, 0.0  ;;  %v834_v41 = vunpack.c.h.bf16 %v1071_v24 }
  0x17   :  { %v685_v38 = vmax.f32 %v621_v30, 0.0  ;;  %v232_v40 = vadd.f32 %v1183_v3, %v164_v33  ;;  %v560_v45 = vadd.f32 %v1197_v10, %v492_v35  ;;  %v165_v46 = vmul.f32 %v1178_v1, %v833_v36 }
  0x18   :  { %v686_v44 = vmax.f32 %v622_v34, 0.0  ;;  %v493_v47 = vmul.f32 %v1191_v7, %v961_v37  ;;  %v623_v48 = vadd.f32 %v559_v32, %v295_v39  ;;  %v166_v50 = vmul.f32 %v1178_v1, %v834_v41 }
  0x19   :  { %749 = vst [vmem:[%s1858_s6 + $0x30] sm:$0xff] %v685_v38  ;;  %v296_v49 = vmax.f32 %v232_v40, 0.0  ;;  %v962_v51 = vunpack.c.h.bf16 %v1102_v25  ;;  %v233_v52 = vadd.f32 %v1183_v3, %v165_v46  ;;  %v837_v54 = vunpack.c.l.bf16 %v1072_v42 }
  0x1a   :  { %750 = vst [vmem:[%s1858_s6 + $0x38] sm:$0xff] %v686_v44  ;;  %v561_v53 = vadd.f32 %v1197_v10, %v493_v47  ;;  %v965_v55 = vunpack.c.l.bf16 %v1103_v43  ;;  %v687_v56 = vmax.f32 %v623_v48, 0.0  ;;  %v234_v58 = vadd.f32 %v1183_v3, %v166_v50  ;;  %v1075_v44 = vld [vmem:[%s1852_s0 + $0x48] sm:$0xff]  }
  0x1b   :  { %v624_v57 = vadd.f32 %v560_v45, %v296_v49  ;;  %v494_v59 = vmul.f32 %v1191_v7, %v962_v51  ;;  %v297_v60 = vmax.f32 %v233_v52, 0.0  ;;  %v167_v61 = vmul.f32 %v1178_v1, %v837_v54  ;;  %v1106_v45 = vld [vmem:[%s1855_s3 + $0x48] sm:$0xff]  }
  0x1c   :  { %v495_v62 = vmul.f32 %v1191_v7, %v965_v55  ;;  %v838_v63 = vunpack.c.h.bf16 %v1072_v42  ;;  %751 = vst [vmem:[%s1858_s6 + $0x40] sm:$0xff] %v687_v56  ;;  %v298_v5 = vmax.f32 %v234_v58, 0.0  ;;  %v966_v8 = vunpack.c.h.bf16 %v1103_v43 }
  0x1d   :  { %v688_v4 = vmax.f32 %v624_v57, 0.0  ;;  %v562_v6 = vadd.f32 %v1197_v10, %v494_v59  ;;  %v625_v9 = vadd.f32 %v561_v53, %v297_v60  ;;  %v235_v11 = vadd.f32 %v1183_v3, %v167_v61 }
  0x1e   :  { %v563_v12 = vadd.f32 %v1197_v10, %v495_v62  ;;  %v168_v13 = vmul.f32 %v1178_v1, %v838_v63  ;;  %v496_v15 = vmul.f32 %v1191_v7, %v966_v8  ;;  %v841_v16 = vunpack.c.l.bf16 %v1073_v0  ;;  %v1076_v62 = vld [vmem:[%s1852_s0 + $0x50] sm:$0xff]  }
  0x1f   :  { %752 = vst [vmem:[%s1858_s6 + $0x48] sm:$0xff] %v688_v4  ;;  %v626_v14 = vadd.f32 %v562_v6, %v298_v5  ;;  %v969_v17 = vunpack.c.l.bf16 %v1104_v2  ;;  %v689_v18 = vmax.f32 %v625_v9, 0.0  ;;  %v299_v19 = vmax.f32 %v235_v11, 0.0  ;;  %v1107_v63 = vld [vmem:[%s1855_s3 + $0x50] sm:$0xff]  }
  0x20   :  { %v236_v20 = vadd.f32 %v1183_v3, %v168_v13  ;;  %v842_v21 = vunpack.c.h.bf16 %v1073_v0  ;;  %v564_v25 = vadd.f32 %v1197_v10, %v496_v15  ;;  %v169_v26 = vmul.f32 %v1178_v1, %v841_v16 }
  0x21   :  { %v690_v24 = vmax.f32 %v626_v14, 0.0  ;;  %v497_v27 = vmul.f32 %v1191_v7, %v969_v17  ;;  %753 = vst [vmem:[%s1858_s6 + $0x50] sm:$0xff] %v689_v18  ;;  %v627_v28 = vadd.f32 %v563_v12, %v299_v19  ;;  %v970_v31 = vunpack.c.h.bf16 %v1104_v2 }
  0x22   :  { %v300_v29 = vmax.f32 %v236_v20, 0.0  ;;  %v170_v30 = vmul.f32 %v1178_v1, %v842_v21  ;;  %v237_v32 = vadd.f32 %v1183_v3, %v169_v26  ;;  %v845_v34 = vunpack.c.l.bf16 %v1074_v22 }
  0x23   :  { %754 = vst [vmem:[%s1858_s6 + $0x58] sm:$0xff] %v690_v24  ;;  %v565_v33 = vadd.f32 %v1197_v10, %v497_v27  ;;  %v973_v35 = vunpack.c.l.bf16 %v1105_v23  ;;  %v691_v36 = vmax.f32 %v627_v28, 0.0  ;;  %v498_v39 = vmul.f32 %v1191_v7, %v970_v31  ;;  %v1077_v24 = vld [vmem:[%s1852_s0 + $0x58] sm:$0xff]  }
  0x24   :  { %v628_v37 = vadd.f32 %v564_v25, %v300_v29  ;;  %v238_v38 = vadd.f32 %v1183_v3, %v170_v30  ;;  %v301_v40 = vmax.f32 %v237_v32, 0.0  ;;  %v171_v41 = vmul.f32 %v1178_v1, %v845_v34  ;;  %v1108_v25 = vld [vmem:[%s1855_s3 + $0x58] sm:$0xff]  }
  0x25   :  { %v499_v42 = vmul.f32 %v1191_v7, %v973_v35  ;;  %v846_v43 = vunpack.c.h.bf16 %v1074_v22  ;;  %755 = vst [vmem:[%s1858_s6 + $0x60] sm:$0xff] %v691_v36  ;;  %v566_v48 = vadd.f32 %v1197_v10, %v498_v39  ;;  %v974_v49 = vunpack.c.h.bf16 %v1105_v23 }
  0x26   :  { %v692_v46 = vmax.f32 %v628_v37, 0.0  ;;  %v302_v47 = vmax.f32 %v238_v38, 0.0  ;;  %v629_v50 = vadd.f32 %v565_v33, %v301_v40  ;;  %v239_v51 = vadd.f32 %v1183_v3, %v171_v41 }
  0x27   :  { %v567_v52 = vadd.f32 %v1197_v10, %v499_v42  ;;  %v172_v53 = vmul.f32 %v1178_v1, %v846_v43  ;;  %v500_v55 = vmul.f32 %v1191_v7, %v974_v49  ;;  %v849_v56 = vunpack.c.l.bf16 %v1075_v44  ;;  %v1078_v42 = vld [vmem:[%s1852_s0 + $0x60] sm:$0xff]  }
  0x28   :  { %756 = vst [vmem:[%s1858_s6 + $0x68] sm:$0xff] %v692_v46  ;;  %v630_v54 = vadd.f32 %v566_v48, %v302_v47  ;;  %v977_v57 = vunpack.c.l.bf16 %v1106_v45  ;;  %v693_v58 = vmax.f32 %v629_v50, 0.0  ;;  %v303_v59 = vmax.f32 %v239_v51, 0.0  ;;  %v1109_v43 = vld [vmem:[%s1855_s3 + $0x60] sm:$0xff]  }
  0x29   :  { %v240_v60 = vadd.f32 %v1183_v3, %v172_v53  ;;  %v850_v61 = vunpack.c.h.bf16 %v1075_v44  ;;  %v568_v2 = vadd.f32 %v1197_v10, %v500_v55  ;;  %v173_v4 = vmul.f32 %v1178_v1, %v849_v56 }
  0x2a   :  { %v694_v0 = vmax.f32 %v630_v54, 0.0  ;;  %v501_v5 = vmul.f32 %v1191_v7, %v977_v57  ;;  %757 = vst [vmem:[%s1858_s6 + $0x70] sm:$0xff] %v693_v58  ;;  %v631_v6 = vadd.f32 %v567_v52, %v303_v59  ;;  %v978_v11 = vunpack.c.h.bf16 %v1106_v45 }
  0x2b   :  { %v304_v8 = vmax.f32 %v240_v60, 0.0  ;;  %v174_v9 = vmul.f32 %v1178_v1, %v850_v61  ;;  %v241_v12 = vadd.f32 %v1183_v3, %v173_v4  ;;  %v853_v14 = vunpack.c.l.bf16 %v1076_v62 }
  0x2c   :  { %758 = vst [vmem:[%s1858_s6 + $0x78] sm:$0xff] %v694_v0  ;;  %v569_v13 = vadd.f32 %v1197_v10, %v501_v5  ;;  %v981_v15 = vunpack.c.l.bf16 %v1107_v63  ;;  %v695_v16 = vmax.f32 %v631_v6, 0.0  ;;  %v502_v19 = vmul.f32 %v1191_v7, %v978_v11  ;;  %v1079_v0 = vld [vmem:[%s1852_s0 + $0x68] sm:$0xff]  }
  0x2d   :  { %v632_v17 = vadd.f32 %v568_v2, %v304_v8  ;;  %v242_v18 = vadd.f32 %v1183_v3, %v174_v9  ;;  %v305_v20 = vmax.f32 %v241_v12, 0.0  ;;  %v175_v21 = vmul.f32 %v1178_v1, %v853_v14  ;;  %v1110_v2 = vld [vmem:[%s1855_s3 + $0x68] sm:$0xff]  }
  0x2e   :  { %v503_v22 = vmul.f32 %v1191_v7, %v981_v15  ;;  %v854_v23 = vunpack.c.h.bf16 %v1076_v62  ;;  %759 = vst [vmem:[%s1858_s6 + $0x80] sm:$0xff] %v695_v16  ;;  %v570_v28 = vadd.f32 %v1197_v10, %v502_v19  ;;  %v982_v29 = vunpack.c.h.bf16 %v1107_v63 }
  0x2f   :  { %v696_v26 = vmax.f32 %v632_v17, 0.0  ;;  %v306_v27 = vmax.f32 %v242_v18, 0.0  ;;  %v633_v30 = vadd.f32 %v569_v13, %v305_v20  ;;  %v243_v31 = vadd.f32 %v1183_v3, %v175_v21 }
  0x30   :  { %v571_v32 = vadd.f32 %v1197_v10, %v503_v22  ;;  %v176_v33 = vmul.f32 %v1178_v1, %v854_v23  ;;  %v504_v35 = vmul.f32 %v1191_v7, %v982_v29  ;;  %v857_v36 = vunpack.c.l.bf16 %v1077_v24  ;;  %v1080_v22 = vld [vmem:[%s1852_s0 + $0x70] sm:$0xff]  }
  0x31   :  { %760 = vst [vmem:[%s1858_s6 + $0x88] sm:$0xff] %v696_v26  ;;  %v634_v34 = vadd.f32 %v570_v28, %v306_v27  ;;  %v985_v37 = vunpack.c.l.bf16 %v1108_v25  ;;  %v697_v38 = vmax.f32 %v633_v30, 0.0  ;;  %v307_v39 = vmax.f32 %v243_v31, 0.0  ;;  %v1111_v23 = vld [vmem:[%s1855_s3 + $0x70] sm:$0xff]  }
  0x32   :  { %v244_v40 = vadd.f32 %v1183_v3, %v176_v33  ;;  %v858_v41 = vunpack.c.h.bf16 %v1077_v24  ;;  %v572_v45 = vadd.f32 %v1197_v10, %v504_v35  ;;  %v177_v46 = vmul.f32 %v1178_v1, %v857_v36 }
  0x33   :  { %v698_v44 = vmax.f32 %v634_v34, 0.0  ;;  %v505_v47 = vmul.f32 %v1191_v7, %v985_v37  ;;  %761 = vst [vmem:[%s1858_s6 + $0x90] sm:$0xff] %v697_v38  ;;  %v635_v48 = vadd.f32 %v571_v32, %v307_v39  ;;  %v986_v51 = vunpack.c.h.bf16 %v1108_v25 }
  0x34   :  { %v308_v49 = vmax.f32 %v244_v40, 0.0  ;;  %v178_v50 = vmul.f32 %v1178_v1, %v858_v41  ;;  %v245_v52 = vadd.f32 %v1183_v3, %v177_v46  ;;  %v861_v54 = vunpack.c.l.bf16 %v1078_v42 }
  0x35   :  { %762 = vst [vmem:[%s1858_s6 + $0x98] sm:$0xff] %v698_v44  ;;  %v573_v53 = vadd.f32 %v1197_v10, %v505_v47  ;;  %v989_v55 = vunpack.c.l.bf16 %v1109_v43  ;;  %v699_v56 = vmax.f32 %v635_v48, 0.0  ;;  %v506_v59 = vmul.f32 %v1191_v7, %v986_v51  ;;  %v1081_v44 = vld [vmem:[%s1852_s0 + $0x78] sm:$0xff]  }
  0x36   :  { %v636_v57 = vadd.f32 %v572_v45, %v308_v49  ;;  %v246_v58 = vadd.f32 %v1183_v3, %v178_v50  ;;  %v309_v60 = vmax.f32 %v245_v52, 0.0  ;;  %v179_v61 = vmul.f32 %v1178_v1, %v861_v54  ;;  %v1112_v45 = vld [vmem:[%s1855_s3 + $0x78] sm:$0xff]  }
  0x37   :  { %v507_v62 = vmul.f32 %v1191_v7, %v989_v55  ;;  %v862_v63 = vunpack.c.h.bf16 %v1078_v42  ;;  %763 = vst [vmem:[%s1858_s6 + $0xa0] sm:$0xff] %v699_v56  ;;  %v574_v6 = vadd.f32 %v1197_v10, %v506_v59  ;;  %v990_v8 = vunpack.c.h.bf16 %v1109_v43 }
  0x38   :  { %v700_v4 = vmax.f32 %v636_v57, 0.0  ;;  %v310_v5 = vmax.f32 %v246_v58, 0.0  ;;  %v637_v9 = vadd.f32 %v573_v53, %v309_v60  ;;  %v247_v11 = vadd.f32 %v1183_v3, %v179_v61 }
  0x39   :  { %v575_v12 = vadd.f32 %v1197_v10, %v507_v62  ;;  %v180_v13 = vmul.f32 %v1178_v1, %v862_v63  ;;  %v508_v15 = vmul.f32 %v1191_v7, %v990_v8  ;;  %v865_v16 = vunpack.c.l.bf16 %v1079_v0  ;;  %v1082_v62 = vld [vmem:[%s1852_s0 + $0x80] sm:$0xff]  }
  0x3a   :  { %764 = vst [vmem:[%s1858_s6 + $0xa8] sm:$0xff] %v700_v4  ;;  %v638_v14 = vadd.f32 %v574_v6, %v310_v5  ;;  %v993_v17 = vunpack.c.l.bf16 %v1110_v2  ;;  %v701_v18 = vmax.f32 %v637_v9, 0.0  ;;  %v311_v19 = vmax.f32 %v247_v11, 0.0  ;;  %v1113_v63 = vld [vmem:[%s1855_s3 + $0x80] sm:$0xff]  }
  0x3b   :  { %v248_v20 = vadd.f32 %v1183_v3, %v180_v13  ;;  %v866_v21 = vunpack.c.h.bf16 %v1079_v0  ;;  %v576_v25 = vadd.f32 %v1197_v10, %v508_v15  ;;  %v181_v26 = vmul.f32 %v1178_v1, %v865_v16 }
  0x3c   :  { %v702_v24 = vmax.f32 %v638_v14, 0.0  ;;  %v509_v27 = vmul.f32 %v1191_v7, %v993_v17  ;;  %765 = vst [vmem:[%s1858_s6 + $0xb0] sm:$0xff] %v701_v18  ;;  %v639_v28 = vadd.f32 %v575_v12, %v311_v19  ;;  %v994_v31 = vunpack.c.h.bf16 %v1110_v2 }
  0x3d   :  { %v312_v29 = vmax.f32 %v248_v20, 0.0  ;;  %v182_v30 = vmul.f32 %v1178_v1, %v866_v21  ;;  %v249_v32 = vadd.f32 %v1183_v3, %v181_v26  ;;  %v869_v34 = vunpack.c.l.bf16 %v1080_v22 }
  0x3e   :  { %766 = vst [vmem:[%s1858_s6 + $0xb8] sm:$0xff] %v702_v24  ;;  %v577_v33 = vadd.f32 %v1197_v10, %v509_v27  ;;  %v997_v35 = vunpack.c.l.bf16 %v1111_v23  ;;  %v703_v36 = vmax.f32 %v639_v28, 0.0  ;;  %v510_v39 = vmul.f32 %v1191_v7, %v994_v31  ;;  %v1083_v24 = vld [vmem:[%s1852_s0 + $0x88] sm:$0xff]  }
  0x3f   :  { %v640_v37 = vadd.f32 %v576_v25, %v312_v29  ;;  %v250_v38 = vadd.f32 %v1183_v3, %v182_v30  ;;  %v313_v40 = vmax.f32 %v249_v32, 0.0  ;;  %v183_v41 = vmul.f32 %v1178_v1, %v869_v34  ;;  %v1114_v25 = vld [vmem:[%s1855_s3 + $0x88] sm:$0xff]  }
  0x40   :  { %v511_v42 = vmul.f32 %v1191_v7, %v997_v35  ;;  %v870_v43 = vunpack.c.h.bf16 %v1080_v22  ;;  %767 = vst [vmem:[%s1858_s6 + $0xc0] sm:$0xff] %v703_v36  ;;  %v578_v48 = vadd.f32 %v1197_v10, %v510_v39  ;;  %v998_v49 = vunpack.c.h.bf16 %v1111_v23 }
  0x41   :  { %v704_v46 = vmax.f32 %v640_v37, 0.0  ;;  %v314_v47 = vmax.f32 %v250_v38, 0.0  ;;  %v641_v50 = vadd.f32 %v577_v33, %v313_v40  ;;  %v251_v51 = vadd.f32 %v1183_v3, %v183_v41 }
  0x42   :  { %v579_v52 = vadd.f32 %v1197_v10, %v511_v42  ;;  %v184_v53 = vmul.f32 %v1178_v1, %v870_v43  ;;  %v512_v55 = vmul.f32 %v1191_v7, %v998_v49  ;;  %v873_v56 = vunpack.c.l.bf16 %v1081_v44  ;;  %v1084_v42 = vld [vmem:[%s1852_s0 + $0x90] sm:$0xff]  }
  0x43   :  { %768 = vst [vmem:[%s1858_s6 + $0xc8] sm:$0xff] %v704_v46  ;;  %v642_v54 = vadd.f32 %v578_v48, %v314_v47  ;;  %v1001_v57 = vunpack.c.l.bf16 %v1112_v45  ;;  %v705_v58 = vmax.f32 %v641_v50, 0.0  ;;  %v315_v59 = vmax.f32 %v251_v51, 0.0  ;;  %v1115_v43 = vld [vmem:[%s1855_s3 + $0x90] sm:$0xff]  }
  0x44   :  { %v252_v60 = vadd.f32 %v1183_v3, %v184_v53  ;;  %v874_v61 = vunpack.c.h.bf16 %v1081_v44  ;;  %v580_v2 = vadd.f32 %v1197_v10, %v512_v55  ;;  %v185_v4 = vmul.f32 %v1178_v1, %v873_v56 }
  0x45   :  { %v706_v0 = vmax.f32 %v642_v54, 0.0  ;;  %v513_v5 = vmul.f32 %v1191_v7, %v1001_v57  ;;  %769 = vst [vmem:[%s1858_s6 + $0xd0] sm:$0xff] %v705_v58  ;;  %v643_v6 = vadd.f32 %v579_v52, %v315_v59  ;;  %v1002_v11 = vunpack.c.h.bf16 %v1112_v45 }
  0x46   :  { %v316_v8 = vmax.f32 %v252_v60, 0.0  ;;  %v186_v9 = vmul.f32 %v1178_v1, %v874_v61  ;;  %v253_v12 = vadd.f32 %v1183_v3, %v185_v4  ;;  %v877_v14 = vunpack.c.l.bf16 %v1082_v62 }
  0x47   :  { %770 = vst [vmem:[%s1858_s6 + $0xd8] sm:$0xff] %v706_v0  ;;  %v581_v13 = vadd.f32 %v1197_v10, %v513_v5  ;;  %v1005_v15 = vunpack.c.l.bf16 %v1113_v63  ;;  %v707_v16 = vmax.f32 %v643_v6, 0.0  ;;  %v514_v19 = vmul.f32 %v1191_v7, %v1002_v11  ;;  %v1085_v0 = vld [vmem:[%s1852_s0 + $0x98] sm:$0xff]  }
  0x48   :  { %v644_v17 = vadd.f32 %v580_v2, %v316_v8  ;;  %v254_v18 = vadd.f32 %v1183_v3, %v186_v9  ;;  %v317_v20 = vmax.f32 %v253_v12, 0.0  ;;  %v187_v21 = vmul.f32 %v1178_v1, %v877_v14  ;;  %v1116_v2 = vld [vmem:[%s1855_s3 + $0x98] sm:$0xff]  }
  0x49   :  { %v515_v22 = vmul.f32 %v1191_v7, %v1005_v15  ;;  %v878_v23 = vunpack.c.h.bf16 %v1082_v62  ;;  %771 = vst [vmem:[%s1858_s6 + $0xe0] sm:$0xff] %v707_v16  ;;  %v582_v28 = vadd.f32 %v1197_v10, %v514_v19  ;;  %v1006_v29 = vunpack.c.h.bf16 %v1113_v63 }
  0x4a   :  { %v708_v26 = vmax.f32 %v644_v17, 0.0  ;;  %v318_v27 = vmax.f32 %v254_v18, 0.0  ;;  %v645_v30 = vadd.f32 %v581_v13, %v317_v20  ;;  %v255_v31 = vadd.f32 %v1183_v3, %v187_v21 }
  0x4b   :  { %v583_v32 = vadd.f32 %v1197_v10, %v515_v22  ;;  %v188_v33 = vmul.f32 %v1178_v1, %v878_v23  ;;  %v516_v35 = vmul.f32 %v1191_v7, %v1006_v29  ;;  %v881_v36 = vunpack.c.l.bf16 %v1083_v24  ;;  %v1086_v22 = vld [vmem:[%s1852_s0 + $0xa0] sm:$0xff]  }
  0x4c   :  { %772 = vst [vmem:[%s1858_s6 + $0xe8] sm:$0xff] %v708_v26  ;;  %v646_v34 = vadd.f32 %v582_v28, %v318_v27  ;;  %v1009_v37 = vunpack.c.l.bf16 %v1114_v25  ;;  %v709_v38 = vmax.f32 %v645_v30, 0.0  ;;  %v319_v39 = vmax.f32 %v255_v31, 0.0  ;;  %v1117_v23 = vld [vmem:[%s1855_s3 + $0xa0] sm:$0xff]  }
  0x4d   :  { %v256_v40 = vadd.f32 %v1183_v3, %v188_v33  ;;  %v882_v41 = vunpack.c.h.bf16 %v1083_v24  ;;  %v584_v45 = vadd.f32 %v1197_v10, %v516_v35  ;;  %v189_v46 = vmul.f32 %v1178_v1, %v881_v36 }
  0x4e   :  { %v710_v44 = vmax.f32 %v646_v34, 0.0  ;;  %v517_v47 = vmul.f32 %v1191_v7, %v1009_v37  ;;  %773 = vst [vmem:[%s1858_s6 + $0xf0] sm:$0xff] %v709_v38  ;;  %v647_v48 = vadd.f32 %v583_v32, %v319_v39  ;;  %v1010_v51 = vunpack.c.h.bf16 %v1114_v25 }
  0x4f   :  { %v320_v49 = vmax.f32 %v256_v40, 0.0  ;;  %v190_v50 = vmul.f32 %v1178_v1, %v882_v41  ;;  %v257_v52 = vadd.f32 %v1183_v3, %v189_v46  ;;  %v885_v54 = vunpack.c.l.bf16 %v1084_v42 }
  0x50   :  { %774 = vst [vmem:[%s1858_s6 + $0xf8] sm:$0xff] %v710_v44  ;;  %v585_v53 = vadd.f32 %v1197_v10, %v517_v47  ;;  %v1013_v55 = vunpack.c.l.bf16 %v1115_v43  ;;  %v711_v56 = vmax.f32 %v647_v48, 0.0  ;;  %v518_v59 = vmul.f32 %v1191_v7, %v1010_v51  ;;  %v1087_v44 = vld [vmem:[%s1852_s0 + $0xa8] sm:$0xff]  }
  0x51   :  { %v648_v57 = vadd.f32 %v584_v45, %v320_v49  ;;  %v258_v58 = vadd.f32 %v1183_v3, %v190_v50  ;;  %v321_v60 = vmax.f32 %v257_v52, 0.0  ;;  %v191_v61 = vmul.f32 %v1178_v1, %v885_v54  ;;  %v1118_v45 = vld [vmem:[%s1855_s3 + $0xa8] sm:$0xff]  }
  0x52   :  { %v519_v62 = vmul.f32 %v1191_v7, %v1013_v55  ;;  %v886_v63 = vunpack.c.h.bf16 %v1084_v42  ;;  %775 = vst [vmem:[%s1858_s6 + $0x100] sm:$0xff] %v711_v56  ;;  %v586_v6 = vadd.f32 %v1197_v10, %v518_v59  ;;  %v1014_v8 = vunpack.c.h.bf16 %v1115_v43 }
  0x53   :  { %v712_v4 = vmax.f32 %v648_v57, 0.0  ;;  %v322_v5 = vmax.f32 %v258_v58, 0.0  ;;  %v649_v9 = vadd.f32 %v585_v53, %v321_v60  ;;  %v259_v11 = vadd.f32 %v1183_v3, %v191_v61 }
  0x54   :  { %v587_v12 = vadd.f32 %v1197_v10, %v519_v62  ;;  %v192_v13 = vmul.f32 %v1178_v1, %v886_v63  ;;  %v520_v15 = vmul.f32 %v1191_v7, %v1014_v8  ;;  %v889_v16 = vunpack.c.l.bf16 %v1085_v0  ;;  %v1088_v62 = vld [vmem:[%s1852_s0 + $0xb0] sm:$0xff]  }
  0x55   :  { %776 = vst [vmem:[%s1858_s6 + $0x108] sm:$0xff] %v712_v4  ;;  %v650_v14 = vadd.f32 %v586_v6, %v322_v5  ;;  %v1017_v17 = vunpack.c.l.bf16 %v1116_v2  ;;  %v713_v18 = vmax.f32 %v649_v9, 0.0  ;;  %v323_v19 = vmax.f32 %v259_v11, 0.0  ;;  %v1119_v63 = vld [vmem:[%s1855_s3 + $0xb0] sm:$0xff]  }
  0x56   :  { %v260_v20 = vadd.f32 %v1183_v3, %v192_v13  ;;  %v890_v21 = vunpack.c.h.bf16 %v1085_v0  ;;  %v588_v25 = vadd.f32 %v1197_v10, %v520_v15  ;;  %v193_v26 = vmul.f32 %v1178_v1, %v889_v16 }
  0x57   :  { %v714_v24 = vmax.f32 %v650_v14, 0.0  ;;  %v521_v27 = vmul.f32 %v1191_v7, %v1017_v17  ;;  %777 = vst [vmem:[%s1858_s6 + $0x110] sm:$0xff] %v713_v18  ;;  %v651_v28 = vadd.f32 %v587_v12, %v323_v19  ;;  %v1018_v31 = vunpack.c.h.bf16 %v1116_v2 }
  0x58   :  { %v324_v29 = vmax.f32 %v260_v20, 0.0  ;;  %v194_v30 = vmul.f32 %v1178_v1, %v890_v21  ;;  %v261_v32 = vadd.f32 %v1183_v3, %v193_v26  ;;  %v893_v34 = vunpack.c.l.bf16 %v1086_v22 }
  0x59   :  { %778 = vst [vmem:[%s1858_s6 + $0x118] sm:$0xff] %v714_v24  ;;  %v589_v33 = vadd.f32 %v1197_v10, %v521_v27  ;;  %v1021_v35 = vunpack.c.l.bf16 %v1117_v23  ;;  %v715_v36 = vmax.f32 %v651_v28, 0.0  ;;  %v522_v39 = vmul.f32 %v1191_v7, %v1018_v31  ;;  %v1089_v24 = vld [vmem:[%s1852_s0 + $0xb8] sm:$0xff]  }
  0x5a   :  { %v652_v37 = vadd.f32 %v588_v25, %v324_v29  ;;  %v262_v38 = vadd.f32 %v1183_v3, %v194_v30  ;;  %v325_v40 = vmax.f32 %v261_v32, 0.0  ;;  %v195_v41 = vmul.f32 %v1178_v1, %v893_v34  ;;  %v1120_v25 = vld [vmem:[%s1855_s3 + $0xb8] sm:$0xff]  }
  0x5b   :  { %v523_v42 = vmul.f32 %v1191_v7, %v1021_v35  ;;  %v894_v43 = vunpack.c.h.bf16 %v1086_v22  ;;  %779 = vst [vmem:[%s1858_s6 + $0x120] sm:$0xff] %v715_v36  ;;  %v590_v48 = vadd.f32 %v1197_v10, %v522_v39  ;;  %v1022_v49 = vunpack.c.h.bf16 %v1117_v23 }
  0x5c   :  { %v716_v46 = vmax.f32 %v652_v37, 0.0  ;;  %v326_v47 = vmax.f32 %v262_v38, 0.0  ;;  %v653_v50 = vadd.f32 %v589_v33, %v325_v40  ;;  %v263_v51 = vadd.f32 %v1183_v3, %v195_v41 }
  0x5d   :  { %v591_v52 = vadd.f32 %v1197_v10, %v523_v42  ;;  %v196_v53 = vmul.f32 %v1178_v1, %v894_v43  ;;  %v524_v55 = vmul.f32 %v1191_v7, %v1022_v49  ;;  %v897_v56 = vunpack.c.l.bf16 %v1087_v44  ;;  %v1090_v42 = vld [vmem:[%s1852_s0 + $0xc0] sm:$0xff]  }
  0x5e   :  { %780 = vst [vmem:[%s1858_s6 + $0x128] sm:$0xff] %v716_v46  ;;  %v654_v54 = vadd.f32 %v590_v48, %v326_v47  ;;  %v1025_v57 = vunpack.c.l.bf16 %v1118_v45  ;;  %v717_v58 = vmax.f32 %v653_v50, 0.0  ;;  %v327_v59 = vmax.f32 %v263_v51, 0.0  ;;  %v1121_v43 = vld [vmem:[%s1855_s3 + $0xc0] sm:$0xff]  }
  0x5f   :  { %v264_v60 = vadd.f32 %v1183_v3, %v196_v53  ;;  %v898_v61 = vunpack.c.h.bf16 %v1087_v44  ;;  %v592_v2 = vadd.f32 %v1197_v10, %v524_v55  ;;  %v197_v4 = vmul.f32 %v1178_v1, %v897_v56  ;;  %v1660_v49 = vld [vmem:[%s1853_s1] ss:$0 sm:$0xff] }
  0x60   :  { %v718_v0 = vmax.f32 %v654_v54, 0.0  ;;  %v525_v5 = vmul.f32 %v1191_v7, %v1025_v57  ;;  %781 = vst [vmem:[%s1858_s6 + $0x130] sm:$0xff] %v717_v58  ;;  %v655_v6 = vadd.f32 %v591_v52, %v327_v59  ;;  %v1026_v11 = vunpack.c.h.bf16 %v1118_v45  ;;  %v1677_v58 = vld [vmem:[%s1856_s4] ss:$0 sm:$0xff] }
  0x61   :  { %v328_v8 = vmax.f32 %v264_v60, 0.0  ;;  %v198_v9 = vmul.f32 %v1178_v1, %v898_v61  ;;  %v265_v12 = vadd.f32 %v1183_v3, %v197_v4  ;;  %v901_v14 = vunpack.c.l.bf16 %v1088_v62 }
  0x62   :  { %782 = vst [vmem:[%s1858_s6 + $0x138] sm:$0xff] %v718_v0  ;;  %v593_v13 = vadd.f32 %v1197_v10, %v525_v5  ;;  %v1029_v15 = vunpack.c.l.bf16 %v1119_v63  ;;  %v719_v16 = vmax.f32 %v655_v6, 0.0  ;;  %v526_v19 = vmul.f32 %v1191_v7, %v1026_v11  ;;  %v1122_v0 = vld [vmem:[%s1855_s3 + $0xc8] sm:$0xff]   ;;  %v1694_v5 = vld [vmem:[%s1857_s5] ss:$0 sm:$0xff] }
  0x63   :  { %v656_v17 = vadd.f32 %v592_v2, %v328_v8  ;;  %v266_v18 = vadd.f32 %v1183_v3, %v198_v9  ;;  %v329_v20 = vmax.f32 %v265_v12, 0.0  ;;  %v199_v21 = vmul.f32 %v1178_v1, %v901_v14 }
  0x64   :  { %v527_v22 = vmul.f32 %v1191_v7, %v1029_v15  ;;  %v902_v23 = vunpack.c.h.bf16 %v1088_v62  ;;  %783 = vst [vmem:[%s1858_s6 + $0x140] sm:$0xff] %v719_v16  ;;  %v594_v28 = vadd.f32 %v1197_v10, %v526_v19  ;;  %v1030_v29 = vunpack.c.h.bf16 %v1119_v63 }
  0x65   :  { %v720_v26 = vmax.f32 %v656_v17, 0.0  ;;  %v330_v27 = vmax.f32 %v266_v18, 0.0  ;;  %v657_v30 = vadd.f32 %v593_v13, %v329_v20  ;;  %v267_v31 = vadd.f32 %v1183_v3, %v199_v21 }
  0x66   :  { %v595_v32 = vadd.f32 %v1197_v10, %v527_v22  ;;  %v200_v33 = vmul.f32 %v1178_v1, %v902_v23  ;;  %v528_v35 = vmul.f32 %v1191_v7, %v1030_v29  ;;  %v905_v36 = vunpack.c.l.bf16 %v1089_v24  ;;  %v1092_v22 = vld [vmem:[%s1852_s0 + $0xd0] sm:$0xff]  }
  0x67   :  { %784 = vst [vmem:[%s1858_s6 + $0x148] sm:$0xff] %v720_v26  ;;  %v658_v34 = vadd.f32 %v594_v28, %v330_v27  ;;  %v1033_v37 = vunpack.c.l.bf16 %v1120_v25  ;;  %v721_v38 = vmax.f32 %v657_v30, 0.0  ;;  %v331_v39 = vmax.f32 %v267_v31, 0.0  ;;  %v1123_v23 = vld [vmem:[%s1855_s3 + $0xd0] sm:$0xff]  }
  0x68   :  { %v268_v40 = vadd.f32 %v1183_v3, %v200_v33  ;;  %v906_v41 = vunpack.c.h.bf16 %v1089_v24  ;;  %v596_v45 = vadd.f32 %v1197_v10, %v528_v35  ;;  %v201_v46 = vmul.f32 %v1178_v1, %v905_v36  ;;  %v1669_v1 = vld [vmem:[%s1854_s2] ss:$0 sm:$0xff] }
  0x69   :  { %v722_v44 = vmax.f32 %v658_v34, 0.0  ;;  %v529_v47 = vmul.f32 %v1191_v7, %v1033_v37  ;;  %785 = vst [vmem:[%s1858_s6 + $0x150] sm:$0xff] %v721_v38  ;;  %v659_v3 = vadd.f32 %v595_v32, %v331_v39  ;;  %v1034_v51 = vunpack.c.h.bf16 %v1120_v25 }
  0x6a   :  { %v332_v48 = vmax.f32 %v268_v40, 0.0  ;;  %v202_v50 = vmul.f32 %v1660_v49, %v906_v41  ;;  %v269_v7 = vadd.f32 %v1669_v1, %v201_v46  ;;  %v909_v53 = vunpack.c.l.bf16 %v1090_v42 }
  0x6b   :  { %786 = vst [vmem:[%s1858_s6 + $0x158] sm:$0xff] %v722_v44  ;;  %v597_v52 = vadd.f32 %v1197_v10, %v529_v47  ;;  %v1037_v54 = vunpack.c.l.bf16 %v1121_v43  ;;  %v723_v55 = vmax.f32 %v659_v3, 0.0  ;;  %v530_v59 = vmul.f32 %v1677_v58, %v1034_v51  ;;  %v1091_v10 = vld [vmem:[%s1852_s0 + $0xc8] sm:$0xff]   ;;  %v1093_v44 = vld [vmem:[%s1852_s0 + $0xd8] sm:$0xff]  }
  0x6c   :  { %v660_v56 = vadd.f32 %v596_v45, %v332_v48  ;;  %v270_v57 = vadd.f32 %v1669_v1, %v202_v50  ;;  %v333_v60 = vmax.f32 %v269_v7, 0.0  ;;  %v203_v61 = vmul.f32 %v1660_v49, %v909_v53  ;;  %v1124_v45 = vld [vmem:[%s1855_s3 + $0xd8] sm:$0xff]  }
  0x6d   :  { %v531_v62 = vmul.f32 %v1677_v58, %v1037_v54  ;;  %v910_v63 = vunpack.c.h.bf16 %v1090_v42  ;;  %787 = vst [vmem:[%s1858_s6 + $0x160] sm:$0xff] %v723_v55  ;;  %v598_v6 = vadd.f32 %v1694_v5, %v530_v59  ;;  %v1038_v8 = vunpack.c.h.bf16 %v1121_v43 }
  0x6e   :  { %v724_v2 = vmax.f32 %v660_v56, 0.0  ;;  %v334_v4 = vmax.f32 %v270_v57, 0.0  ;;  %v661_v9 = vadd.f32 %v597_v52, %v333_v60  ;;  %v271_v11 = vadd.f32 %v1669_v1, %v203_v61 }
  0x6f   :  { %v599_v12 = vadd.f32 %v1694_v5, %v531_v62  ;;  %v204_v13 = vmul.f32 %v1660_v49, %v910_v63  ;;  %v532_v15 = vmul.f32 %v1677_v58, %v1038_v8  ;;  %v913_v16 = vunpack.c.l.bf16 %v1091_v10  ;;  %v1094_v62 = vld [vmem:[%s1852_s0 + $0xe0] sm:$0xff]  }
  0x70   :  { %788 = vst [vmem:[%s1858_s6 + $0x168] sm:$0xff] %v724_v2  ;;  %v662_v14 = vadd.f32 %v598_v6, %v334_v4  ;;  %v1041_v17 = vunpack.c.l.bf16 %v1122_v0  ;;  %v725_v18 = vmax.f32 %v661_v9, 0.0  ;;  %v335_v19 = vmax.f32 %v271_v11, 0.0  ;;  %v1125_v63 = vld [vmem:[%s1855_s3 + $0xe0] sm:$0xff]  }
  0x71   :  { %v272_v20 = vadd.f32 %v1669_v1, %v204_v13  ;;  %v914_v21 = vunpack.c.h.bf16 %v1091_v10  ;;  %v600_v25 = vadd.f32 %v1694_v5, %v532_v15  ;;  %v205_v26 = vmul.f32 %v1660_v49, %v913_v16 }
  0x72   :  { %v726_v24 = vmax.f32 %v662_v14, 0.0  ;;  %v533_v27 = vmul.f32 %v1677_v58, %v1041_v17  ;;  %789 = vst [vmem:[%s1858_s6 + $0x170] sm:$0xff] %v725_v18  ;;  %v663_v28 = vadd.f32 %v599_v12, %v335_v19  ;;  %v1042_v31 = vunpack.c.h.bf16 %v1122_v0 }
  0x73   :  { %v336_v29 = vmax.f32 %v272_v20, 0.0  ;;  %v206_v30 = vmul.f32 %v1660_v49, %v914_v21  ;;  %v273_v32 = vadd.f32 %v1669_v1, %v205_v26  ;;  %v917_v34 = vunpack.c.l.bf16 %v1092_v22 }
  0x74   :  { %790 = vst [vmem:[%s1858_s6 + $0x178] sm:$0xff] %v726_v24  ;;  %v601_v33 = vadd.f32 %v1694_v5, %v533_v27  ;;  %v1045_v35 = vunpack.c.l.bf16 %v1123_v23  ;;  %v727_v36 = vmax.f32 %v663_v28, 0.0  ;;  %v534_v39 = vmul.f32 %v1677_v58, %v1042_v31  ;;  %v1095_v24 = vld [vmem:[%s1852_s0 + $0xe8] sm:$0xff]  }
  0x75   :  { %v664_v37 = vadd.f32 %v600_v25, %v336_v29  ;;  %v274_v38 = vadd.f32 %v1669_v1, %v206_v30  ;;  %v337_v40 = vmax.f32 %v273_v32, 0.0  ;;  %v207_v41 = vmul.f32 %v1660_v49, %v917_v34  ;;  %v1126_v25 = vld [vmem:[%s1855_s3 + $0xe8] sm:$0xff]  }
  0x76   :  { %v535_v42 = vmul.f32 %v1677_v58, %v1045_v35  ;;  %v918_v43 = vunpack.c.h.bf16 %v1092_v22  ;;  %791 = vst [vmem:[%s1858_s6 + $0x180] sm:$0xff] %v727_v36  ;;  %v602_v3 = vadd.f32 %v1694_v5, %v534_v39  ;;  %v1046_v48 = vunpack.c.h.bf16 %v1123_v23 }
  0x77   :  { %v728_v46 = vmax.f32 %v664_v37, 0.0  ;;  %v338_v47 = vmax.f32 %v274_v38, 0.0  ;;  %v665_v50 = vadd.f32 %v601_v33, %v337_v40  ;;  %v275_v51 = vadd.f32 %v1669_v1, %v207_v41 }
  0x78   :  { %v603_v7 = vadd.f32 %v1694_v5, %v535_v42  ;;  %v208_v52 = vmul.f32 %v1660_v49, %v918_v43  ;;  %v536_v54 = vmul.f32 %v1677_v58, %v1046_v48  ;;  %v921_v55 = vunpack.c.l.bf16 %v1093_v44  ;;  %v1096_v42 = vld [vmem:[%s1852_s0 + $0xf0] sm:$0xff]  }
  0x79   :  { %792 = vst [vmem:[%s1858_s6 + $0x188] sm:$0xff] %v728_v46  ;;  %v666_v53 = vadd.f32 %v602_v3, %v338_v47  ;;  %v1049_v56 = vunpack.c.l.bf16 %v1124_v45  ;;  %v729_v57 = vmax.f32 %v665_v50, 0.0  ;;  %v339_v59 = vmax.f32 %v275_v51, 0.0  ;;  %v1127_v43 = vld [vmem:[%s1855_s3 + $0xf0] sm:$0xff]  }
  0x7a   :  { %v276_v60 = vadd.f32 %v1669_v1, %v208_v52  ;;  %v922_v61 = vunpack.c.h.bf16 %v1093_v44  ;;  %v604_v0 = vadd.f32 %v1694_v5, %v536_v54  ;;  %v209_v2 = vmul.f32 %v1660_v49, %v921_v55 }
  0x7b   :  { %v730_v10 = vmax.f32 %v666_v53, 0.0  ;;  %v537_v4 = vmul.f32 %v1677_v58, %v1049_v56  ;;  %793 = vst [vmem:[%s1858_s6 + $0x190] sm:$0xff] %v729_v57  ;;  %v667_v6 = vadd.f32 %v603_v7, %v339_v59  ;;  %v1050_v11 = vunpack.c.h.bf16 %v1124_v45 }
  0x7c   :  { %v340_v8 = vmax.f32 %v276_v60, 0.0  ;;  %v210_v9 = vmul.f32 %v1660_v49, %v922_v61  ;;  %v277_v12 = vadd.f32 %v1669_v1, %v209_v2  ;;  %v925_v14 = vunpack.c.l.bf16 %v1094_v62 }
  0x7d   :  { %794 = vst [vmem:[%s1858_s6 + $0x198] sm:$0xff] %v730_v10  ;;  %v605_v13 = vadd.f32 %v1694_v5, %v537_v4  ;;  %v1053_v15 = vunpack.c.l.bf16 %v1125_v63  ;;  %v731_v16 = vmax.f32 %v667_v6, 0.0  ;;  %v538_v19 = vmul.f32 %v1677_v58, %v1050_v11  ;;  %v1097_v10 = vld [vmem:[%s1852_s0 + $0xf8] sm:$0xff]  }
  0x7e   :  { %v668_v17 = vadd.f32 %v604_v0, %v340_v8  ;;  %v278_v18 = vadd.f32 %v1669_v1, %v210_v9  ;;  %v341_v20 = vmax.f32 %v277_v12, 0.0  ;;  %v211_v21 = vmul.f32 %v1660_v49, %v925_v14  ;;  %v1128_v0 = vld [vmem:[%s1855_s3 + $0xf8] sm:$0xff]  }
  0x7f   :  { %v539_v22 = vmul.f32 %v1677_v58, %v1053_v15  ;;  %v926_v23 = vunpack.c.h.bf16 %v1094_v62  ;;  %795 = vst [vmem:[%s1858_s6 + $0x1a0] sm:$0xff] %v731_v16  ;;  %v606_v28 = vadd.f32 %v1694_v5, %v538_v19  ;;  %v1054_v29 = vunpack.c.h.bf16 %v1125_v63 }
  0x80   :  { %v732_v26 = vmax.f32 %v668_v17, 0.0  ;;  %v342_v27 = vmax.f32 %v278_v18, 0.0  ;;  %v669_v30 = vadd.f32 %v605_v13, %v341_v20  ;;  %v279_v31 = vadd.f32 %v1669_v1, %v211_v21 }
  0x81   :  { %v607_v32 = vadd.f32 %v1694_v5, %v539_v22  ;;  %v212_v33 = vmul.f32 %v1660_v49, %v926_v23  ;;  %v540_v35 = vmul.f32 %v1677_v58, %v1054_v29  ;;  %v929_v36 = vunpack.c.l.bf16 %v1095_v24 }
  0x82   :  { %796 = vst [vmem:[%s1858_s6 + $0x1a8] sm:$0xff] %v732_v26  ;;  %v670_v34 = vadd.f32 %v606_v28, %v342_v27  ;;  %v1057_v37 = vunpack.c.l.bf16 %v1126_v25  ;;  %v733_v38 = vmax.f32 %v669_v30, 0.0  ;;  %v343_v39 = vmax.f32 %v279_v31, 0.0 }
  0x83   :  { %v280_v40 = vadd.f32 %v1669_v1, %v212_v33  ;;  %v930_v41 = vunpack.c.h.bf16 %v1095_v24  ;;  %v608_v45 = vadd.f32 %v1694_v5, %v540_v35  ;;  %v213_v46 = vmul.f32 %v1660_v49, %v929_v36 }
  0x84   :  { %v734_v44 = vmax.f32 %v670_v34, 0.0  ;;  %v541_v47 = vmul.f32 %v1677_v58, %v1057_v37  ;;  %797 = vst [vmem:[%s1858_s6 + $0x1b0] sm:$0xff] %v733_v38  ;;  %v671_v3 = vadd.f32 %v607_v32, %v343_v39  ;;  %v1058_v51 = vunpack.c.h.bf16 %v1126_v25 }
  0x85   :  { %v344_v48 = vmax.f32 %v280_v40, 0.0  ;;  %v214_v50 = vmul.f32 %v1660_v49, %v930_v41  ;;  %v281_v7 = vadd.f32 %v1669_v1, %v213_v46  ;;  %v933_v53 = vunpack.c.l.bf16 %v1096_v42 }
  0x86   :  { %798 = vst [vmem:[%s1858_s6 + $0x1b8] sm:$0xff] %v734_v44  ;;  %v609_v52 = vadd.f32 %v1694_v5, %v541_v47  ;;  %v1061_v54 = vunpack.c.l.bf16 %v1127_v43  ;;  %v735_v55 = vmax.f32 %v671_v3, 0.0  ;;  %v542_v59 = vmul.f32 %v1677_v58, %v1058_v51 }
  0x87   :  { %v672_v56 = vadd.f32 %v608_v45, %v344_v48  ;;  %v282_v57 = vadd.f32 %v1669_v1, %v214_v50  ;;  %v345_v60 = vmax.f32 %v281_v7, 0.0  ;;  %v215_v61 = vmul.f32 %v1660_v49, %v933_v53 }
  0x88   :  { %v543_v62 = vmul.f32 %v1677_v58, %v1061_v54  ;;  %v934_v63 = vunpack.c.h.bf16 %v1096_v42  ;;  %799 = vst [vmem:[%s1858_s6 + $0x1c0] sm:$0xff] %v735_v55  ;;  %v610_v6 = vadd.f32 %v1694_v5, %v542_v59  ;;  %v1062_v8 = vunpack.c.h.bf16 %v1127_v43 }
  0x89   :  { %v736_v2 = vmax.f32 %v672_v56, 0.0  ;;  %v346_v4 = vmax.f32 %v282_v57, 0.0  ;;  %v673_v9 = vadd.f32 %v609_v52, %v345_v60  ;;  %v283_v11 = vadd.f32 %v1669_v1, %v215_v61 }
  0x8a   :  { %v611_v12 = vadd.f32 %v1694_v5, %v543_v62  ;;  %v216_v13 = vmul.f32 %v1660_v49, %v934_v63  ;;  %v544_v15 = vmul.f32 %v1677_v58, %v1062_v8  ;;  %v937_v16 = vunpack.c.l.bf16 %v1097_v10 }
  0x8b   :  { %800 = vst [vmem:[%s1858_s6 + $0x1c8] sm:$0xff] %v736_v2  ;;  %v674_v14 = vadd.f32 %v610_v6, %v346_v4  ;;  %v1065_v17 = vunpack.c.l.bf16 %v1128_v0  ;;  %v737_v18 = vmax.f32 %v673_v9, 0.0  ;;  %v347_v19 = vmax.f32 %v283_v11, 0.0 }
  0x8c   :  { %v284_v20 = vadd.f32 %v1669_v1, %v216_v13  ;;  %v938_v21 = vunpack.c.h.bf16 %v1097_v10  ;;  %v612_v23 = vadd.f32 %v1694_v5, %v544_v15  ;;  %v217_v24 = vmul.f32 %v1660_v49, %v937_v16 }
  0x8d   :  { %v738_v22 = vmax.f32 %v674_v14, 0.0  ;;  %v545_v25 = vmul.f32 %v1677_v58, %v1065_v17  ;;  %801 = vst [vmem:[%s1858_s6 + $0x1d0] sm:$0xff] %v737_v18  ;;  %v675_v26 = vadd.f32 %v611_v12, %v347_v19  ;;  %v1066_v29 = vunpack.c.h.bf16 %v1128_v0 }
  0x8e   :  { %v348_v27 = vmax.f32 %v284_v20, 0.0  ;;  %v218_v28 = vmul.f32 %v1660_v49, %v938_v21  ;;  %v285_v30 = vadd.f32 %v1669_v1, %v217_v24 }
  0x8f   :  { %802 = vst [vmem:[%s1858_s6 + $0x1d8] sm:$0xff] %v738_v22  ;;  %v613_v31 = vadd.f32 %v1694_v5, %v545_v25  ;;  %v739_v32 = vmax.f32 %v675_v26, 0.0  ;;  %v546_v35 = vmul.f32 %v1677_v58, %v1066_v29 }
  0x90   :  { %v676_v33 = vadd.f32 %v612_v23, %v348_v27  ;;  %v286_v34 = vadd.f32 %v1669_v1, %v218_v28  ;;  %v349_v36 = vmax.f32 %v285_v30, 0.0 }
  0x91   :  { %803 = vst [vmem:[%s1858_s6 + $0x1e0] sm:$0xff] %v739_v32  ;;  %v614_v38 = vadd.f32 %v1694_v5, %v546_v35 }
  0x92   :  { %v740_v49 = vmax.f32 %v676_v33, 0.0  ;;  %v350_v37 = vmax.f32 %v286_v34, 0.0  ;;  %v677_v39 = vadd.f32 %v613_v31, %v349_v36 }
  0x94   :  { %804 = vst [vmem:[%s1858_s6 + $0x1e8] sm:$0xff] %v740_v49  ;;  %v678_v40 = vadd.f32 %v614_v38, %v350_v37  ;;  %v741_v41 = vmax.f32 %v677_v39, 0.0 }
  0x96   :  { %v742_v42 = vmax.f32 %v678_v40, 0.0  ;;  %805 = vst [vmem:[%s1858_s6 + $0x1f0] sm:$0xff] %v741_v41 }
  0x98   :  { %806 = vst [vmem:[%s1858_s6 + $0x1f8] sm:$0xff] %v742_v42 }

// kernel: res_bottleneck_block.5
= control target key start
LH: loop header
LB: loop body
LE: loop exit
PB: predicated region body
PF: predicated region fallthrough
CT: control target
= control target key end

     0   :  { %s6526_s18 = smov 0   ;;  %s6528_s19 = smov 0   ;;  %s8104_s0 = inlined_call_operand.vmem [shape: bf16[2,16,16,128], index: 0, kind: input, shape index: {}]   ;;  %s8105_s1 = inlined_call_operand.vmem [shape: f32[1,128], index: 1, kind: input, shape index: {}]   ;;  %s8106_s2 = inlined_call_operand.vmem [shape: f32[1,128], index: 2, kind: input, shape index: {}]   ;;  %s8107_s3 = inlined_call_operand.vmem [shape: bf16[9,128,128], index: 3, kind: input, shape index: {}]   ;;  %s8108_s4 = inlined_call_operand.vmem [shape: bf16[2,16,16,128], index: 4, kind: output, shape index: {0}]   ;;  %s8109_s5 = inlined_call_operand.vmem [shape: f32[2,2,128], index: 5, kind: output, shape index: {1}]  }
   0x1   :  { %s6530_s20 = smov 0  }
   0x2 LB: > { %s28_s21 = sadd.s32 1, %s6488_s19  ;;  %p5398_p0 = scmp.ge.s32.totalorder %s6492_s20, 1  ;;  %s6492_s20 = sphi %s6530_s20, %s16_s20   ;;  %s6488_s19 = sphi %s6528_s19, %s8137_s19   ;;  %s6484_s18 = sphi %s6526_s18, %s8136_s18  }
   0x3   : > { %p30_p1 = scmp.ge.s32.totalorder %s28_s21, 2  ;;  %p208_p2 = scmp.lt.s32.totalorder %s6492_s20, 3 }
   0x5   : > { %s8139_s21 = smov (%p30_p1, %s28_s21), 0  ;;  %p209_p3 = pnand %p5398_p0, %p208_p2 }
   0x7   : > { %212 = sbr.rel (%p209_p3) target bundleno = 875 (0x36b), region = 36 }
   0xc   : > { %v6095_v0 = vld [vmem:[%s8107_s3 + $0x78] sm:$0xff]  ;;  %p243_p4 = scmp.lt.s32.totalorder %s6484_s18, 1  ;;  %v6494_v1 = vmov 0   ;;  %v6094_v2 = vld [vmem:[%s8107_s3 + $0x70] sm:$0xff]  ;;  %v6566_v3 = vld [vmem:[%s8105_s1] ss:$0 sm:$0xff] }
   0xd   : > { %278 = vst [vmem:[#allocation2 + $0x30] sm:$0xf] %v6494_v1  ;;  %6358 = vmatpush.bf16.msra.mxu1 %v6095_v0  ;;  %6359 = vmatpush.bf16.msra.mxu2 %v6095_v0  ;;  %v6093_v4 = vld [vmem:[%s8107_s3 + $0x68] sm:$0xff]  ;;  %v6576_v9 = vld [vmem:[%s8106_s2] ss:$0 sm:$0xff]  ;;  %vm844_vm0 = vcmask 1043456  }
   0xe   : > { %s8141_s18 = smov (!%p243_p4, %s6484_s18), 1  ;;  %279 = vst [vmem:[#allocation2 + $0x34] sm:$0xf] %v6494_v1  ;;  %6360 = vmatpush.bf16.msra.mxu3 %v6095_v0  ;;  %1541 = vmatpush.bf16.msra.mxu0 %v6095_v0  ;;  %v6092_v16 = vld [vmem:[%s8107_s3 + $0x60] sm:$0xff]  ;;  %v6091_v22 = vld [vmem:[%s8107_s3 + $0x58] sm:$0xff]  ;;  %vm851_vm2 = vcmask 1040384  }
   0xf   : > { %280 = vst [vmem:[#allocation2 + $0x38] sm:$0xf] %v6494_v1  ;;  %s6062_s26 = sshll.u32 %s8141_s18, 7  ;;  %vm520_vm1 = vsmask.f32 256  ;;  %v6090_v39 = vld [vmem:[%s8107_s3 + $0x50] sm:$0xff] }
  0x10   : > { %s6561_s29 = scalar_lea.vmem %s8104_s0, %s6062_s26  ;;  %266 = vst [vmem:[#allocation2] sm:$0xf] %v6494_v1  ;;  %vm521_vm3 = vsmask.f32 4368  ;;  %vm845_vm4 = vsmask.f32 7938  ;;  %vm6628_vm7 = vmand %vm851_vm2, %vm520_vm1  ;;  %s7887_s6 = scalar_lea.vmem %s8108_s4, %s6062_s26 }
  0x11   : > { %6361 = vmatpush.bf16.msra.mxu1 %v6094_v2  ;;  %6362 = vmatpush.bf16.msra.mxu2 %v6094_v2  ;;  %v6330_v5 = vld [vmem:[%s6561_s29 + $0x18] sm:$0xff]   ;;  %267 = vst [vmem:[#allocation2 + $0x4] sm:$0xf] %v6494_v1  ;;  %vm6613_vm5 = vmor %vm520_vm1, %vm521_vm3  ;;  %v6089_v55 = vld [vmem:[%s8107_s3 + $0x48] sm:$0xff]  ;;  %vm1025_vm8 = vsmask.f32 3328 }
  0x12   : > { %v6334_v6 = vld [vmem:[%s6561_s29 + $0x38] sm:$0xff]   ;;  %6363 = vmatpush.bf16.msra.mxu3 %v6094_v2  ;;  %1542 = vmatpush.bf16.msra.mxu0 %v6094_v2  ;;  %v6198_v7 = vunpack.c.l.bf16 %v6330_v5  ;;  %v6199_v8 = vunpack.c.h.bf16 %v6330_v5  ;;  %268 = vst [vmem:[#allocation2 + $0x8] sm:$0xf] %v6494_v1  ;;  %vm6621_vm6 = vmand %vm844_vm0, %vm845_vm4  ;;  %v6088_v0 = vld [vmem:[%s8107_s3 + $0x40] sm:$0xff]  ;;  %vm1026_vm9 = vsmask.f32 7440 }
  0x13   : > { %v6214_v10 = vunpack.c.l.bf16 %v6334_v6  ;;  %v6215_v11 = vunpack.c.h.bf16 %v6334_v6  ;;  %269 = vst [vmem:[#allocation2 + $0xc] sm:$0xf] %v6494_v1  ;;  %v6338_v21 = vld [vmem:[%s6561_s29 + $0x58] sm:$0xff]   ;;  %vm6686_vm10 = vmor %vm1025_vm8, %vm1026_vm9  ;;  %vm1911_vm11 = vcmask 1042432   ;;  %vm1912_vm12 = vcmask 1046532   ;;  %s5403_s26 = sshll.u32 %s8141_s18, 1 }
  0x14   : > { %v394_v12 = vmul.f32 %v6566_v3, %v6198_v7  ;;  %v395_v13 = vmul.f32 %v6566_v3, %v6199_v8  ;;  %270 = vst [vmem:[#allocation2 + $0x10] sm:$0xf] %v6494_v1  ;;  %v6230_v26 = vunpack.c.l.bf16 %v6338_v21  ;;  %v6231_v28 = vunpack.c.h.bf16 %v6338_v21  ;;  %v870_v45 = vld [vmem:[#allocation2 + $0x30] sm:$0xf]  ;;  %vm7193_vm13 = vmor %vm1911_vm11, %vm1912_vm12  ;;  %s8082_s9 = scalar_lea.vmem %s8109_s5, %s5403_s26 }
  0x15   : > { %v402_v14 = vmul.f32 %v6566_v3, %v6214_v10  ;;  %v403_v15 = vmul.f32 %v6566_v3, %v6215_v11  ;;  %6364 = vmatpush.bf16.msra.mxu1 %v6093_v4  ;;  %6365 = vmatpush.bf16.msra.mxu2 %v6093_v4  ;;  %271 = vst [vmem:[#allocation2 + $0x14] sm:$0xf] %v6494_v1 }
  0x16   : > { %6366 = vmatpush.bf16.msra.mxu3 %v6093_v4  ;;  %1543 = vmatpush.bf16.msra.mxu0 %v6093_v4  ;;  %v430_v17 = vadd.f32 %v6576_v9, %v394_v12  ;;  %v431_v18 = vadd.f32 %v6576_v9, %v395_v13  ;;  %272 = vst [vmem:[#allocation2 + $0x18] sm:$0xf] %v6494_v1  ;;  %v874_v47 = vld [vmem:[#allocation2 + $0x38] sm:$0x1] }
  0x17   : > { %v438_v19 = vadd.f32 %v6576_v9, %v402_v14  ;;  %v439_v20 = vadd.f32 %v6576_v9, %v403_v15  ;;  %273 = vst [vmem:[#allocation2 + $0x1c] sm:$0xf] %v6494_v1  ;;  %v410_v33 = vmul.f32 %v6566_v3, %v6230_v26  ;;  %v411_v34 = vmul.f32 %v6566_v3, %v6231_v28 }
  0x18   : > { %v462_v23 = vmax.f32 %v430_v17, 0.0  ;;  %v463_v24 = vmax.f32 %v431_v18, 0.0  ;;  %274 = vst [vmem:[#allocation2 + $0x20] sm:$0xf] %v6494_v1  ;;  %v6331_v18 = vld [vmem:[%s6561_s29 + $0x20] sm:$0xff]  }
  0x19   : > { %v470_v25 = vmax.f32 %v438_v19, 0.0  ;;  %6367 = vmatpush.bf16.msra.mxu1 %v6092_v16  ;;  %6368 = vmatpush.bf16.msra.mxu2 %v6092_v16  ;;  %v471_v27 = vmax.f32 %v439_v20, 0.0  ;;  %275 = vst [vmem:[#allocation2 + $0x24] sm:$0xf] %v6494_v1  ;;  %v446_v49 = vadd.f32 %v6576_v9, %v410_v33  ;;  %v447_v50 = vadd.f32 %v6576_v9, %v411_v34 }
  0x1a   : > { %6369 = vmatpush.bf16.msra.mxu3 %v6092_v16  ;;  %1544 = vmatpush.bf16.msra.mxu0 %v6092_v16  ;;  %v494_v29 = vpack.c.bf16 %v462_v23, %v462_v23  ;;  %v495_v30 = vpack.c.bf16 %v463_v24, %v463_v24  ;;  %276 = vst [vmem:[#allocation2 + $0x28] sm:$0xf] %v6494_v1  ;;  %v6335_v24 = vld [vmem:[%s6561_s29 + $0x40] sm:$0xff]   ;;  %v6202_v28 = vunpack.c.l.bf16 %v6331_v18 }
  0x1b   : > { %v6602_v31 = vpack.c.bf16 %v470_v25, %v470_v25  ;;  %v503_v32 = vpack.c.bf16 %v471_v27, %v471_v27  ;;  %277 = vst [vmem:[#allocation2 + $0x2c] sm:$0xf] %v6494_v1  ;;  %v478_v62 = vmax.f32 %v446_v49, 0.0  ;;  %v479_v63 = vmax.f32 %v447_v50, 0.0 }
  0x1c   : > { %v575_v35 = vshrl.u32 %v494_v29, 16  ;;  %v578_v36 = vshll.u32 %v494_v29, 16  ;;  %v583_v37 = vshrl.u32 %v495_v30, 16  ;;  %v586_v38 = vshll.u32 %v495_v30, 16  ;;  %281 = vst [vmem:[#allocation2 + $0x3c] sm:$0xf] %v6494_v1 }
  0x1d   : > { %6370 = vmatpush.bf16.msra.mxu1 %v6091_v22  ;;  %6371 = vmatpush.bf16.msra.mxu2 %v6091_v22  ;;  %v643_v41 = vshrl.u32 %v6602_v31, 16  ;;  %282 = vst [vmem:[#allocation2 + $0x40] sm:$0xf] %v6494_v1  ;;  %v651_v48 = vshrl.u32 %v503_v32, 16  ;;  %v654_v61 = vshll.u32 %v503_v32, 16  ;;  %v510_v2 = vpack.c.bf16 %v478_v62, %v478_v62 }
  0x1e   : > { %6372 = vmatpush.bf16.msra.mxu3 %v6091_v22  ;;  %1545 = vmatpush.bf16.msra.mxu0 %v6091_v22  ;;  %v577_v42 = vrot.slane %v575_v35, 7  ;;  %v585_v43 = vrot.slane %v583_v37, 7  ;;  %283 = vst [vmem:[#allocation2 + $0x44] sm:$0xf] %v6494_v1  ;;  %v511_v4 = vpack.c.bf16 %v479_v63, %v479_v63  ;;  %v646_v5 = vshll.u32 %v6602_v31, 16 }
  0x1f   : > { %284 = vst [vmem:[#allocation2 + $0x48] sm:$0xf] %v6494_v1  ;;  %v645_v56 = vrot.slane %v643_v41, 7  ;;  %v6647_v60 = vrot.slane %v651_v48, 7  ;;  %v711_v8 = vshrl.u32 %v510_v2, 16  ;;  %v714_v17 = vshll.u32 %v510_v2, 16 }
  0x20   : > { %v580_v51 = vor.u32 %v578_v36, %v577_v42  ;;  %v581_v52 = vrot.slane %v577_v42, 4  ;;  %v588_v53 = vor.u32 %v586_v38, %v585_v43  ;;  %v590_v54 = vrot.slane %v585_v43, 4  ;;  %285 = vst [vmem:[#allocation2 + $0x4c] sm:$0xf] %v6494_v1  ;;  %v6679_v38 = vld [vmem:[%s6561_s29 + $0x60] sm:$0xff]  }
  0x21   : > { %6373 = vmatpush.bf16.msra.mxu1 %v6090_v39  ;;  %6374 = vmatpush.bf16.msra.mxu2 %v6090_v39  ;;  %286 = vst [vmem:[#allocation2 + $0x50] sm:$0xf] %v6494_v1  ;;  %v649_v6 = vrot.slane %v645_v56, 4  ;;  %v656_v7 = vor.u32 %v654_v61, %v6647_v60  ;;  %v719_v10 = vshrl.u32 %v511_v4, 16  ;;  %v722_v11 = vshll.u32 %v511_v4, 16 }
  0x22   : > { %6375 = vmatpush.bf16.msra.mxu3 %v6090_v39  ;;  %1546 = vmatpush.bf16.msra.mxu0 %v6090_v39  ;;  %v589_v57 = vsel %vm6613_vm5, %v581_v52, %v588_v53  ;;  %v871_v58 = vsel %vm6621_vm6, %v580_v51, %v870_v45  ;;  %v875_v59 = vsel %vm6628_vm7, %v590_v54, %v874_v47  ;;  %v658_v12 = vrot.slane %v6647_v60, 4 }
  0x23   : > { %872 = vst [vmem:[#allocation2 + $0x30] sm:$0xf] %v871_v58  ;;  %v713_v13 = vrot.slane %v711_v8, 7  ;;  %v6659_v14 = vrot.slane %v719_v10, 7  ;;  %v6662_v16 = vor.u32 %v646_v5, %v645_v56  ;;  %v6668_v22 = vsel %vm6613_vm5, %v649_v6, %v656_v7  ;;  %v961_v10 = vld [vmem:[#allocation2] sm:$0xf] }
  0x24   : > { %873 = vst [vmem:[#allocation2 + $0x34] sm:$0xf] %v589_v57  ;;  %v6203_v29 = vunpack.c.h.bf16 %v6331_v18  ;;  %v396_v37 = vmul.f32 %v6566_v3, %v6202_v28  ;;  %v6218_v49 = vunpack.c.l.bf16 %v6335_v24  ;;  %v6219_v50 = vunpack.c.h.bf16 %v6335_v24 }
  0x25   : > { %6376 = vmatpush.bf16.msra.mxu1 %v6089_v55  ;;  %6377 = vmatpush.bf16.msra.mxu2 %v6089_v55  ;;  %876 = vst [vmem:[#allocation2 + $0x38] sm:$0x1] %v875_v59  ;;  %v724_v23 = vor.u32 %v722_v11, %v6659_v14  ;;  %v717_v33 = vrot.slane %v713_v13, 4  ;;  %v6675_v36 = vor.u32 %v714_v17, %v713_v13  ;;  %v726_v42 = vrot.slane %v6659_v14, 4  ;;  %v962_v11 = vld [vmem:[#allocation2 + $0x4] sm:$0xf] }
  0x26   : > { %6378 = vmatpush.bf16.msra.mxu3 %v6089_v55  ;;  %1547 = vmatpush.bf16.msra.mxu0 %v6089_v55  ;;  %287 = vst [vmem:[#allocation2 + $0x54] sm:$0xf] %v6494_v1  ;;  %v397_v43 = vmul.f32 %v6566_v3, %v6203_v29  ;;  %v432_v48 = vadd.f32 %v6576_v9, %v396_v37  ;;  %v6234_v55 = vunpack.c.l.bf16 %v6679_v38  ;;  %v6235_v59 = vunpack.c.h.bf16 %v6679_v38  ;;  %v6086_v14 = vld [vmem:[%s8107_s3 + $0x30] sm:$0xff] }
  0x27   : > { %288 = vst [vmem:[#allocation2 + $0x58] sm:$0xf] %v6494_v1  ;;  %v6697_v53 = vsel %vm6613_vm5, %v717_v33, %v724_v23  ;;  %v404_v58 = vmul.f32 %v6566_v3, %v6218_v49  ;;  %v1029_v18 = vshrl.u32 %v961_v10, 16 }
  0x28   : > { %289 = vst [vmem:[#allocation2 + $0x5c] sm:$0xf] %v6494_v1  ;;  %v433_v54 = vadd.f32 %v6576_v9, %v397_v43  ;;  %v464_v57 = vmax.f32 %v432_v48, 0.0  ;;  %v412_v7 = vmul.f32 %v6566_v3, %v6234_v55  ;;  %v6731_v43 = vld [vmem:[#allocation2 + $0x3c] sm:$0xf] }
  0x29   : > { %6379 = vmatpush.bf16.msra.mxu1 %v6088_v0  ;;  %6380 = vmatpush.bf16.msra.mxu2 %v6088_v0  ;;  %290 = vst [vmem:[#allocation2 + $0x60] sm:$0xf] %v6494_v1 }
  0x2a   : > { %6381 = vmatpush.bf16.msra.mxu3 %v6088_v0  ;;  %1548 = vmatpush.bf16.msra.mxu0 %v6088_v0  ;;  %v969_v15 = vld [vmem:[#allocation2 + $0x30] sm:$0xf]  ;;  %291 = vst [vmem:[#allocation2 + $0x64] sm:$0xf] %v6494_v1  ;;  %v465_v63 = vmax.f32 %v433_v54, 0.0  ;;  %v405_v0 = vmul.f32 %v6566_v3, %v6219_v50  ;;  %v496_v6 = vpack.c.bf16 %v464_v57, %v464_v57 }
  0x2b   : > { %v970_v19 = vld [vmem:[#allocation2 + $0x34] sm:$0xf]  ;;  %v1125_v20 = vshrl.u32 %v969_v15, 16  ;;  %v1128_v21 = vshll.u32 %v969_v15, 16  ;;  %292 = vst [vmem:[#allocation2 + $0x68] sm:$0xf] %v6494_v1  ;;  %v440_v15 = vadd.f32 %v6576_v9, %v404_v58 }
  0x2c   : > { %v1013_v25 = vld [vmem:[#allocation2 + $0x38] sm:$0x1]  ;;  %v1134_v26 = vshll.u32 %v970_v19, 16  ;;  %v1138_v27 = vshrl.u32 %v970_v19, 16  ;;  %293 = vst [vmem:[#allocation2 + $0x6c] sm:$0xf] %v6494_v1  ;;  %v497_v13 = vpack.c.bf16 %v465_v63, %v465_v63  ;;  %v441_v17 = vadd.f32 %v6576_v9, %v405_v0 }
  0x2d   : > { %v1127_v30 = vrot.slane %v1125_v20, 4  ;;  %v1130_v31 = vrot.slane %v1128_v21, 5  ;;  %v1144_v32 = vshll.u32 %v1013_v25, 16  ;;  %294 = vst [vmem:[#allocation2 + $0x70] sm:$0xf] %v6494_v1  ;;  %v1032_v19 = vshll.u32 %v961_v10, 16 }
  0x2e   : > { %v1136_v34 = vrot.slane %v1134_v26, 5  ;;  %v1140_v35 = vrot.slane %v1138_v27, 4  ;;  %295 = vst [vmem:[#allocation2 + $0x74] sm:$0xf] %v6494_v1  ;;  %v1038_v20 = vshll.u32 %v962_v11, 16  ;;  %v1042_v21 = vshrl.u32 %v962_v11, 16 }
  0x2f   : > { %v1131_v39 = vor.u32 %v1130_v31, %v1127_v30  ;;  %v1146_v41 = vrot.slane %v1144_v32, 5  ;;  %296 = vst [vmem:[#allocation2 + $0x78] sm:$0xf] %v6494_v1  ;;  %v592_v24 = vshrl.u32 %v496_v6, 16  ;;  %v595_v25 = vshll.u32 %v496_v6, 16 }
  0x30   : > { %v1141_v47 = vor.u32 %v1140_v35, %v1136_v34  ;;  %297 = vst [vmem:[#allocation2 + $0x7c] sm:$0xf] %v6494_v1  ;;  %v6693_v52 = vld [vmem:[#allocation2 + $0x60] sm:$0xf]  ;;  %v600_v26 = vshrl.u32 %v497_v13, 16  ;;  %v1031_v27 = vrot.slane %v1029_v18, 4  ;;  %v413_v35 = vmul.f32 %v6566_v3, %v6235_v59 }
  0x31   : > { %v1132_v51 = vrot.slane %v1131_v39, 4  ;;  %298 = vst [vmem:[#allocation2 + $0x80] sm:$0xf] %v6494_v1  ;;  %v899_v62 = vsel %vm6621_vm6, %v6662_v16, %v6693_v52  ;;  %v1034_v28 = vrot.slane %v1032_v19, 5  ;;  %v1040_v29 = vrot.slane %v1038_v20, 5 }
  0x32   : > { %v1142_v56 = vrot.slane %v1141_v47, 4  ;;  %299 = vst [vmem:[#allocation2 + $0x84] sm:$0xf] %v6494_v1  ;;  %v902_v5 = vld [vmem:[#allocation2 + $0x68] sm:$0x1]  ;;  %v1044_v30 = vrot.slane %v1042_v21, 4  ;;  %v6741_v59 = vadd.f32 %v6576_v9, %v412_v7 }
  0x33   : > { %v1137_v61 = vsel %vm6686_vm10, %v1132_v51, %v1136_v34  ;;  %300 = vst [vmem:[#allocation2 + $0x88] sm:$0xf] %v6494_v1  ;;  %v6727_v31 = vsel %vm6628_vm7, %v658_v12, %v902_v5  ;;  %v1009_v32 = vld [vmem:[#allocation2 + $0x8] sm:$0x1]  ;;  %v594_v33 = vrot.slane %v592_v24, 7  ;;  %v602_v34 = vrot.slane %v600_v26, 7 }
  0x34   : > { %v1147_v2 = vsel %vm6686_vm10, %v1142_v56, %v1146_v41  ;;  %v1437_v4 = vunpack.c.l.b16 %v1137_v61  ;;  %301 = vst [vmem:[#allocation2 + $0x8c] sm:$0xf] %v6494_v1  ;;  %v1035_v37 = vor.u32 %v1034_v28, %v1031_v27  ;;  %v1045_v38 = vor.u32 %v1044_v30, %v1040_v29  ;;  %v6185_v5 = vld [vmem:[%s6561_s29] sm:$0xff]   ;;  %v6768_v20 = vld [vmem:[#allocation2 + $0x6c] sm:$0xf]  ;;  %v6103_v21 = vld [vmem:[%s8107_s3 + $0xb8] sm:$0xff] }
  0x35   : > { %v1438_v8 = vunpack.c.l.b16 %v1147_v2  ;;  %302 = vst [vmem:[#allocation2 + $0x90] sm:$0xf] %v6494_v1  ;;  %v1048_v39 = vshll.u32 %v1009_v32, 16  ;;  %v603_v41 = vshll.u32 %v497_v13, 16  ;;  %v6734_v60 = vor.u32 %v595_v25, %v594_v33  ;;  %v6332_v13 = vld [vmem:[%s6561_s29 + $0x28] sm:$0xff]   ;;  %v6127_v24 = vld [vmem:[%s8107_s3 + $0xf8] sm:$0xff]  ;;  %2155 = vmatpush.bf16.msrb.mxu2 %v6103_v21 }
  0x36   : > { %303 = vst [vmem:[#allocation2 + $0x94] sm:$0xf] %v6494_v1  ;;  %v598_v47 = vrot.slane %v594_v33, 4  ;;  %v472_v12 = vmax.f32 %v440_v15, 0.0  ;;  %v473_v48 = vmax.f32 %v441_v17, 0.0  ;;  %v1036_v49 = vrot.slane %v1035_v37, 4  ;;  %2469 = vmatpush.bf16.msrb.mxu3 %v6127_v24 }
  0x37   : > { %v1465_v23 = vpack.c.b16 %v1438_v8, %v1437_v4  ;;  %304 = vst [vmem:[#allocation2 + $0x98] sm:$0xf] %v6494_v1  ;;  %v1046_v50 = vrot.slane %v1045_v38, 4  ;;  %v1050_v51 = vrot.slane %v1048_v39, 5  ;;  %v605_v54 = vor.u32 %v603_v41, %v602_v34  ;;  %v881_v4 = vld [vmem:[#allocation2 + $0x44] sm:$0x1] }
  0x38   : > { %305 = vst [vmem:[#allocation2 + $0x9c] sm:$0xf] %v6494_v1  ;;  %v607_v56 = vrot.slane %v602_v34, 4  ;;  %v504_v57 = vpack.c.bf16 %v472_v12, %v472_v12  ;;  %v505_v58 = vpack.c.bf16 %v473_v48, %v473_v48  ;;  %v1041_v63 = vsel %vm6686_vm10, %v1036_v49, %v1040_v29  ;;  %v6087_v25 = vld [vmem:[%s8107_s3 + $0x38] sm:$0xff]  ;;  %v6102_v30 = vld [vmem:[%s8107_s3 + $0xb0] sm:$0xff] }
  0x39   : > { %1569 = vmatmul.bf16.vlgmr.msra.gmra.mxu1 %v1465_v23  ;;  %306 = vst [vmem:[#allocation2 + $0xa0] sm:$0xf] %v6494_v1  ;;  %v1051_v0 = vsel %vm6686_vm10, %v1046_v50, %v1050_v51  ;;  %v878_v2 = vsel %vm6621_vm6, %v6734_v60, %v6731_v43  ;;  %v1429_v7 = vunpack.c.l.b16 %v1041_v63  ;;  %v6760_v10 = vsel %vm6613_vm5, %v598_v47, %v605_v54  ;;  %v6126_v32 = vld [vmem:[%s8107_s3 + $0xf0] sm:$0xff]  ;;  %v6135_v33 = vld [vmem:[%s8107_s3 + $0x138] sm:$0xff]  ;;  %v6807_v51 = vld [vmem:[%s6561_s29 + $0x48] sm:$0xff]  }
  0x3a   : > { %307 = vst [vmem:[#allocation2 + $0xa4] sm:$0xf] %v6494_v1  ;;  %v1430_v8 = vunpack.c.l.b16 %v1051_v0  ;;  %v660_v11 = vshrl.u32 %v504_v57, 16  ;;  %v6766_v15 = vsel %vm6628_vm7, %v607_v56, %v881_v4  ;;  %v663_v17 = vshll.u32 %v504_v57, 16  ;;  %v909_v39 = vld [vmem:[#allocation2 + $0x74] sm:$0x1]  ;;  %1774 = vmatpush.bf16.msrb.mxu1 %v6087_v25  ;;  %3151 = vmatpush.bf16.msrb.mxu0 %v6135_v33 }
  0x3b   : > { %308 = vst [vmem:[#allocation2 + $0xa8] sm:$0xf] %v6494_v1  ;;  %v668_v18 = vshrl.u32 %v505_v58, 16  ;;  %v671_v19 = vshll.u32 %v505_v58, 16  ;;  %v449_v27 = vadd.f32 %v6576_v9, %v413_v35  ;;  %v6186_v28 = vunpack.c.l.bf16 %v6185_v5  ;;  %2156 = vmatpush.bf16.msrb.mxu2 %v6102_v30  ;;  %2470 = vmatpush.bf16.msrb.mxu3 %v6126_v32 }
  0x3c   : > { %309 = vst [vmem:[#allocation2 + $0xac] sm:$0xf] %v6494_v1  ;;  %v6738_v55 = vld [vmem:[#allocation2 + $0x90] sm:$0xf]  ;;  %v1461_v23 = vpack.c.b16 %v1430_v8, %v1429_v7  ;;  %v662_v26 = vrot.slane %v660_v11, 7  ;;  %v6187_v35 = vunpack.c.h.bf16 %v6185_v5  ;;  %v6206_v37 = vunpack.c.l.bf16 %v6332_v13 }
  0x3d   : > { %310 = vst [vmem:[#allocation2 + $0xb0] sm:$0xf] %v6494_v1  ;;  %v927_v61 = vsel %vm6621_vm6, %v6675_v36, %v6738_v55  ;;  %v670_v34 = vrot.slane %v668_v18, 7  ;;  %v388_v41 = vmul.f32 %v6566_v3, %v6186_v28  ;;  %v6207_v47 = vunpack.c.h.bf16 %v6332_v13 }
  0x3e   : > { %311 = vst [vmem:[#allocation2 + $0xb4] sm:$0xf] %v6494_v1  ;;  %v930_v6 = vld [vmem:[#allocation2 + $0x98] sm:$0x1]  ;;  %1549 = vmatmul.bf16.vlgmr.msra.gmra.mxu0 %v1461_v23  ;;  %v666_v38 = vrot.slane %v662_v26, 4  ;;  %v480_v49 = vmax.f32 %v6741_v59, 0.0  ;;  %v389_v56 = vmul.f32 %v6566_v3, %v6187_v35  ;;  %v6222_v58 = vunpack.c.l.bf16 %v6807_v51  ;;  %1775 = vmatpush.bf16.msrb.mxu1 %v6086_v14 }
  0x3f   : > { %312 = vst [vmem:[#allocation2 + $0xb8] sm:$0xf] %v6494_v1  ;;  %v6786_v29 = vsel %vm6628_vm7, %v726_v42, %v930_v6  ;;  %v6801_v42 = vor.u32 %v663_v17, %v662_v26  ;;  %v673_v12 = vor.u32 %v671_v19, %v670_v34  ;;  %v675_v48 = vrot.slane %v670_v34, 4  ;;  %v6836_v18 = vld [vmem:[#allocation2 + $0x9c] sm:$0xf] }
  0x40   : > { %313 = vst [vmem:[#allocation2 + $0xbc] sm:$0xf] %v6494_v1  ;;  %v481_v50 = vmax.f32 %v449_v27, 0.0  ;;  %v424_v57 = vadd.f32 %v6576_v9, %v388_v41  ;;  %v512_v0 = vpack.c.bf16 %v480_v49, %v480_v49  ;;  %v425_v5 = vadd.f32 %v6576_v9, %v389_v56 }
  0x41   : > { %314 = vst [vmem:[#allocation2 + $0xc0] sm:$0xf] %v6494_v1  ;;  %v906_v54 = vsel %vm6621_vm6, %v6801_v42, %v6768_v20  ;;  %v6820_v59 = vsel %vm6613_vm5, %v666_v38, %v673_v12  ;;  %v6824_v63 = vsel %vm6628_vm7, %v675_v48, %v909_v39  ;;  %v398_v7 = vmul.f32 %v6566_v3, %v6206_v37 }
  0x42   : > { %315 = vst [vmem:[#allocation2 + $0xc4] sm:$0xf] %v6494_v1  ;;  %v513_v4 = vpack.c.bf16 %v481_v50, %v481_v50  ;;  %v456_v6 = vmax.f32 %v424_v57, 0.0  ;;  %v399_v8 = vmul.f32 %v6566_v3, %v6207_v47  ;;  %v728_v11 = vshrl.u32 %v512_v0, 16 }
  0x43   : > { %316 = vst [vmem:[#allocation2 + $0xc8] sm:$0xf] %v6494_v1  ;;  %v731_v13 = vshll.u32 %v512_v0, 16  ;;  %v457_v19 = vmax.f32 %v425_v5, 0.0  ;;  %v434_v23 = vadd.f32 %v6576_v9, %v398_v7  ;;  %v6223_v25 = vunpack.c.h.bf16 %v6807_v51  ;;  %v6101_v5 = vld [vmem:[%s8107_s3 + $0xa8] sm:$0xff] }
  0x44   : > { %317 = vst [vmem:[#allocation2 + $0xcc] sm:$0xf] %v6494_v1  ;;  %v736_v17 = vshrl.u32 %v513_v4, 16  ;;  %v488_v21 = vpack.c.bf16 %v456_v6, %v456_v6  ;;  %v435_v24 = vadd.f32 %v6576_v9, %v399_v8  ;;  %v730_v16 = vrot.slane %v728_v11, 7  ;;  %2157 = vmatpush.bf16.msrb.mxu2 %v6101_v5 }
  0x45   : > { %318 = vst [vmem:[#allocation2 + $0xd0] sm:$0xf] %v6494_v1  ;;  %v406_v26 = vmul.f32 %v6566_v3, %v6222_v58  ;;  %v466_v30 = vmax.f32 %v434_v23, 0.0  ;;  %v407_v49 = vmul.f32 %v6566_v3, %v6223_v25 }
  0x46   : > { %319 = vst [vmem:[#allocation2 + $0xd4] sm:$0xf] %v6494_v1  ;;  %v739_v1 = vshll.u32 %v513_v4, 16  ;;  %v738_v52 = vrot.slane %v736_v17, 7  ;;  %v524_v27 = vshrl.u32 %v488_v21, 16  ;;  %v527_v28 = vshll.u32 %v488_v21, 16 }
  0x47   : > { %900 = vst [vmem:[#allocation2 + $0x60] sm:$0xf] %v899_v62  ;;  %v937_v62 = vld [vmem:[#allocation2 + $0xa4] sm:$0x1]  ;;  %v734_v32 = vrot.slane %v730_v16, 4  ;;  %v467_v38 = vmax.f32 %v435_v24, 0.0  ;;  %v6887_v50 = vadd.f32 %v6576_v9, %v406_v26  ;;  %v6905_v6 = vadd.f32 %v6576_v9, %v407_v49 }
  0x48   : > { %901 = vst [vmem:[#allocation2 + $0x64] sm:$0xf] %v6668_v22  ;;  %v489_v22 = vpack.c.bf16 %v457_v19, %v457_v19  ;;  %v741_v33 = vor.u32 %v739_v1, %v738_v52  ;;  %v743_v34 = vrot.slane %v738_v52, 4  ;;  %v6852_v35 = vrot.slane %v524_v27, 7 }
  0x49   : > { %904 = vst [vmem:[#allocation2 + $0x68] sm:$0x1] %v6727_v31  ;;  %v6849_v31 = vor.u32 %v731_v13, %v730_v16  ;;  %v6882_v41 = vpack.c.bf16 %v467_v38, %v467_v38 }
  0x4a   : > { %928 = vst [vmem:[#allocation2 + $0x90] sm:$0xf] %v927_v61  ;;  %v532_v37 = vshrl.u32 %v489_v22, 16  ;;  %v535_v14 = vshll.u32 %v489_v22, 16  ;;  %v6861_v36 = vsel %vm6613_vm5, %v734_v32, %v741_v33  ;;  %v6869_v55 = vsel %vm6628_vm7, %v743_v34, %v937_v62  ;;  %v6871_v61 = vld [vmem:[#allocation2 + $0xc] sm:$0xf] }
  0x4b   : > { %929 = vst [vmem:[#allocation2 + $0x94] sm:$0xf] %v6697_v53  ;;  %v934_v53 = vsel %vm6621_vm6, %v6849_v31, %v6836_v18  ;;  %v6877_v43 = vor.u32 %v527_v28, %v6852_v35  ;;  %v530_v60 = vrot.slane %v6852_v35, 4  ;;  %v6125_v34 = vld [vmem:[%s8107_s3 + $0xe8] sm:$0xff] }
  0x4c   : > { %932 = vst [vmem:[#allocation2 + $0x98] sm:$0x1] %v6786_v29  ;;  %v6873_v29 = vpack.c.bf16 %v466_v30, %v466_v30  ;;  %2471 = vmatpush.bf16.msrb.mxu3 %v6125_v34  ;;  %v6133_v18 = vld [vmem:[%s8107_s3 + $0x128] sm:$0xff] }
  0x4d   : > { %879 = vst [vmem:[#allocation2 + $0x3c] sm:$0xf] %v878_v2  ;;  %v6880_v2 = vrot.slane %v532_v37, 7  ;;  %v848_v3 = vsel %vm6621_vm6, %v6877_v43, %v6871_v61 }
  0x4e   : > { %v977_v39 = vld [vmem:[#allocation2 + $0x60] sm:$0xf]  ;;  %880 = vst [vmem:[#allocation2 + $0x40] sm:$0xf] %v6760_v10  ;;  %v609_v61 = vshrl.u32 %v6873_v29, 16  ;;  %v612_v43 = vshll.u32 %v6873_v29, 16 }
  0x4f   : > { %v978_v47 = vld [vmem:[#allocation2 + $0x64] sm:$0xf]  ;;  %v1221_v12 = vshrl.u32 %v977_v39, 16  ;;  %v1224_v48 = vshll.u32 %v977_v39, 16  ;;  %883 = vst [vmem:[#allocation2 + $0x44] sm:$0x1] %v6766_v15  ;;  %v6895_v57 = vor.u32 %v535_v14, %v6880_v2 }
  0x50   : > { %v1017_v10 = vld [vmem:[#allocation2 + $0x68] sm:$0x1]  ;;  %v1230_v51 = vshll.u32 %v978_v47, 16  ;;  %v1234_v56 = vshrl.u32 %v978_v47, 16  ;;  %907 = vst [vmem:[#allocation2 + $0x6c] sm:$0xf] %v906_v54 }
  0x51   : > { %v1223_v15 = vrot.slane %v1221_v12, 4  ;;  %v1226_v58 = vrot.slane %v1224_v48, 5  ;;  %v1240_v0 = vshll.u32 %v1017_v10, 16  ;;  %v985_v4 = vld [vmem:[#allocation2 + $0x90] sm:$0xf] }
  0x52   : > { %v1232_v20 = vrot.slane %v1230_v51, 5  ;;  %v1236_v42 = vrot.slane %v1234_v56, 4  ;;  %v986_v54 = vld [vmem:[#allocation2 + $0x94] sm:$0xf]  ;;  %v1317_v7 = vshrl.u32 %v985_v4, 16  ;;  %v1320_v8 = vshll.u32 %v985_v4, 16 }
  0x53   : > { %v1227_v11 = vor.u32 %v1226_v58, %v1223_v15  ;;  %v1242_v13 = vrot.slane %v1240_v0, 5  ;;  %v1021_v17 = vld [vmem:[#allocation2 + $0x98] sm:$0x1]  ;;  %v1326_v1 = vshll.u32 %v986_v54, 16  ;;  %v1330_v19 = vshrl.u32 %v986_v54, 16  ;;  %v6134_v51 = vld [vmem:[%s8107_s3 + $0x130] sm:$0xff] }
  0x54   : > { %v1237_v21 = vor.u32 %v1236_v42, %v1232_v20  ;;  %v1319_v23 = vrot.slane %v1317_v7, 4  ;;  %v1322_v24 = vrot.slane %v1320_v8, 5  ;;  %v1336_v16 = vshll.u32 %v1021_v17, 16  ;;  %v971_v52 = vld [vmem:[#allocation2 + $0x3c] sm:$0xf]  ;;  %v6085_v56 = vld [vmem:[%s8107_s3 + $0x28] sm:$0xff]  ;;  %3152 = vmatpush.bf16.msrb.mxu0 %v6134_v51 }
  0x55   : > { %v1228_v62 = vrot.slane %v1227_v11, 4  ;;  %v1328_v25 = vrot.slane %v1326_v1, 5  ;;  %v1332_v9 = vrot.slane %v1330_v19, 4  ;;  %v972_v26 = vld [vmem:[#allocation2 + $0x40] sm:$0xf]  ;;  %v1149_v22 = vshrl.u32 %v971_v52, 16  ;;  %1776 = vmatpush.bf16.msrb.mxu1 %v6085_v56 }
  0x56   : > { %v1238_v27 = vrot.slane %v1237_v21, 4  ;;  %v1323_v28 = vor.u32 %v1322_v24, %v1319_v23  ;;  %v1338_v30 = vrot.slane %v1336_v16, 5  ;;  %v1014_v32 = vld [vmem:[#allocation2 + $0x44] sm:$0x1]  ;;  %v1152_v33 = vshll.u32 %v971_v52, 16 }
  0x57   : > { %v1233_v37 = vsel %vm6686_vm10, %v1228_v62, %v1232_v20  ;;  %v1333_v14 = vor.u32 %v1332_v9, %v1328_v25  ;;  %v1151_v38 = vrot.slane %v1149_v22, 4  ;;  %v1158_v39 = vshll.u32 %v972_v26, 16  ;;  %908 = vst [vmem:[#allocation2 + $0x70] sm:$0xf] %v6820_v59  ;;  %v979_v47 = vld [vmem:[#allocation2 + $0x6c] sm:$0xf] }
  0x58   : > { %v1243_v12 = vsel %vm6686_vm10, %v1238_v27, %v1242_v13  ;;  %v1445_v48 = vunpack.c.l.b16 %v1233_v37  ;;  %v1324_v49 = vrot.slane %v1323_v28, 4  ;;  %v1154_v10 = vrot.slane %v1152_v33, 5  ;;  %911 = vst [vmem:[#allocation2 + $0x74] sm:$0x1] %v6824_v63  ;;  %v6100_v63 = vld [vmem:[%s8107_s3 + $0xa0] sm:$0xff]  ;;  %3153 = vmatpush.bf16.msrb.mxu0 %v6133_v18 }
  0x59   : > { %v1446_v15 = vunpack.c.l.b16 %v1243_v12  ;;  %v1334_v59 = vrot.slane %v1333_v14, 4  ;;  %v1160_v58 = vrot.slane %v1158_v39, 5  ;;  %v1162_v0 = vshrl.u32 %v972_v26, 16  ;;  %935 = vst [vmem:[#allocation2 + $0x9c] sm:$0xf] %v934_v53  ;;  %v6124_v54 = vld [vmem:[%s8107_s3 + $0xe0] sm:$0xff]  ;;  %2158 = vmatpush.bf16.msrb.mxu2 %v6100_v63 }
  0x5a   : > { %v1329_v4 = vsel %vm6686_vm10, %v1324_v49, %v1328_v25  ;;  %v1155_v5 = vor.u32 %v1154_v10, %v1151_v38  ;;  %v1168_v20 = vshll.u32 %v1014_v32, 16  ;;  %v1245_v42 = vshrl.u32 %v979_v47, 16  ;;  %936 = vst [vmem:[#allocation2 + $0xa0] sm:$0xf] %v6861_v36  ;;  %v6084_v36 = vld [vmem:[%s8107_s3 + $0x20] sm:$0xff]  ;;  %2472 = vmatpush.bf16.msrb.mxu3 %v6124_v54 }
  0x5b   : > { %v1469_v31 = vpack.c.b16 %v1446_v15, %v1445_v48  ;;  %v1339_v53 = vsel %vm6686_vm10, %v1334_v59, %v1338_v30  ;;  %v1453_v7 = vunpack.c.l.b16 %v1329_v4  ;;  %v1164_v8 = vrot.slane %v1162_v0, 4  ;;  %939 = vst [vmem:[#allocation2 + $0xa4] sm:$0x1] %v6869_v55  ;;  %v853_v24 = vld [vmem:[#allocation2 + $0x14] sm:$0x1]  ;;  %1777 = vmatpush.bf16.msrb.mxu1 %v6084_v36 }
  0x5c   : > { %v1454_v11 = vunpack.c.l.b16 %v1339_v53  ;;  %v1156_v13 = vrot.slane %v1155_v5, 4  ;;  %v1170_v17 = vrot.slane %v1168_v20, 5  ;;  %v1247_v1 = vrot.slane %v1245_v42, 4  ;;  %849 = vst [vmem:[#allocation2 + $0xc] sm:$0xf] %v848_v3 }
  0x5d   : > { %1589 = vmatmul.bf16.vlgmr.msra.gmra.mxu2 %v1469_v31  ;;  %v1165_v19 = vor.u32 %v1164_v8, %v1160_v58  ;;  %v1248_v21 = vshll.u32 %v979_v47, 16  ;;  %v538_v55 = vsel %vm6613_vm5, %v530_v60, %v6895_v57  ;;  %v539_v23 = vrot.slane %v6880_v2, 4 }
  0x5e   : > { %v1473_v16 = vpack.c.b16 %v1454_v11, %v1453_v7  ;;  %v1161_v52 = vsel %vm6686_vm10, %v1156_v13, %v1160_v58  ;;  %v980_v62 = vld [vmem:[#allocation2 + $0x70] sm:$0xf]  ;;  %850 = vst [vmem:[#allocation2 + $0x10] sm:$0xf] %v538_v55  ;;  %v6962_v27 = vrot.slane %v609_v61, 7 }
  0x5f   : > { %v1166_v3 = vrot.slane %v1165_v19, 4  ;;  %v1439_v35 = vunpack.c.l.b16 %v1161_v52  ;;  %v1018_v25 = vld [vmem:[#allocation2 + $0x74] sm:$0x1]  ;;  %v1250_v9 = vrot.slane %v1248_v21, 5  ;;  %v1254_v60 = vshll.u32 %v980_v62, 16 }
  0x60   : > { %1609 = vmatmul.bf16.vlgmr.msra.gmra.mxu3 %v1473_v16  ;;  %v1258_v2 = vshrl.u32 %v980_v62, 16  ;;  %v1264_v57 = vshll.u32 %v1018_v25, 16  ;;  %v987_v26 = vld [vmem:[#allocation2 + $0x9c] sm:$0xf]  ;;  %v854_v22 = vsel %vm6628_vm7, %v539_v23, %v853_v24  ;;  %v615_v62 = vrot.slane %v6962_v27, 4 }
  0x61   : > { %v1171_v28 = vsel %vm6686_vm10, %v1166_v3, %v1170_v17  ;;  %v1251_v30 = vor.u32 %v1250_v9, %v1247_v1  ;;  %v1256_v32 = vrot.slane %v1254_v60, 5  ;;  %v988_v29 = vld [vmem:[#allocation2 + $0xa0] sm:$0xf]  ;;  %v1341_v33 = vshrl.u32 %v987_v26, 16  ;;  %855 = vst [vmem:[#allocation2 + $0x14] sm:$0x1] %v854_v22 }
  0x62   : > { %v1440_v34 = vunpack.c.l.b16 %v1171_v28  ;;  %v1260_v37 = vrot.slane %v1258_v2, 4  ;;  %v1266_v14 = vrot.slane %v1264_v57, 5  ;;  %v1022_v38 = vld [vmem:[#allocation2 + $0xa4] sm:$0x1]  ;;  %v1344_v39 = vshll.u32 %v987_v26, 16  ;;  %v6340_v26 = vld [vmem:[%s6561_s29 + $0x68] sm:$0xff]  }
  0x63   : > { %v1252_v47 = vrot.slane %v1251_v30, 4  ;;  %v1343_v12 = vrot.slane %v1341_v33, 4  ;;  %v1350_v48 = vshll.u32 %v988_v29, 16  ;;  %v1354_v49 = vshrl.u32 %v988_v29, 16  ;;  %v963_v10 = vld [vmem:[#allocation2 + $0xc] sm:$0xf] }
  0x64   : > { %v1466_v51 = vpack.c.b16 %v1440_v34, %v1439_v35  ;;  %v1261_v56 = vor.u32 %v1260_v37, %v1256_v32  ;;  %v1346_v15 = vrot.slane %v1344_v39, 5  ;;  %v1360_v59 = vshll.u32 %v1022_v38, 16  ;;  %v884_v61 = vld [vmem:[#allocation2 + $0x48] sm:$0xf] }
  0x65   : > { %v1257_v58 = vsel %vm6686_vm10, %v1252_v47, %v1256_v32  ;;  %v1352_v0 = vrot.slane %v1350_v48, 5  ;;  %v1356_v63 = vrot.slane %v1354_v49, 4  ;;  %v6968_v4 = vld [vmem:[#allocation2 + $0x10] sm:$0xf]  ;;  %v1053_v5 = vshrl.u32 %v963_v10, 16 }
  0x66   : > { %1574 = vmatmul.bf16.gmra.mxu1 %v1466_v51  ;;  %v1262_v20 = vrot.slane %v1261_v56, 4  ;;  %v1447_v42 = vunpack.c.l.b16 %v1257_v58  ;;  %v1347_v54 = vor.u32 %v1346_v15, %v1343_v12  ;;  %v1362_v18 = vrot.slane %v1360_v59, 5  ;;  %v7002_v58 = vld [vmem:[%s8105_s1] ss:$0 sm:$0xff] }
  0x67   : > { %v1357_v31 = vor.u32 %v1356_v63, %v1352_v0  ;;  %v1055_v53 = vrot.slane %v1053_v5, 4  ;;  %v1056_v7 = vshll.u32 %v963_v10, 16  ;;  %v1062_v8 = vshll.u32 %v6968_v4, 16  ;;  %v7007_v5 = vld [vmem:[%s6561_s29 + $0x30] sm:$0xff]  }
  0x68   : > { %v1267_v36 = vsel %vm6686_vm10, %v1262_v20, %v1266_v14  ;;  %v1348_v11 = vrot.slane %v1347_v54, 4  ;;  %v6973_v13 = vld [vmem:[#allocation2 + $0x14] sm:$0x1]  ;;  %v1066_v17 = vshrl.u32 %v6968_v4, 16  ;;  %v614_v1 = vor.u32 %v612_v43, %v6962_v27  ;;  %v888_v14 = vld [vmem:[#allocation2 + $0x50] sm:$0x1] }
  0x69   : > { %v1448_v19 = vunpack.c.l.b16 %v1267_v36  ;;  %v1358_v21 = vrot.slane %v1357_v31, 4  ;;  %v1058_v55 = vrot.slane %v1056_v7, 5  ;;  %v1064_v23 = vrot.slane %v1062_v8, 5  ;;  %v912_v31 = vld [vmem:[#allocation2 + $0x78] sm:$0xf] }
  0x6a   : > { %v1353_v24 = vsel %vm6686_vm10, %v1348_v11, %v1352_v0  ;;  %v1068_v16 = vrot.slane %v1066_v17, 4  ;;  %v1072_v52 = vshll.u32 %v6973_v13, 16  ;;  %v617_v57 = vshrl.u32 %v6882_v41, 16 }
  0x6b   : > { %v1470_v3 = vpack.c.b16 %v1448_v19, %v1447_v42  ;;  %v1363_v35 = vsel %vm6686_vm10, %v1358_v21, %v1362_v18  ;;  %v1455_v25 = vunpack.c.l.b16 %v1353_v24  ;;  %v1059_v43 = vor.u32 %v1058_v55, %v1055_v53  ;;  %v7012_v53 = vld [vmem:[%s8106_s2] ss:$0 sm:$0xff] }
  0x6c   : > { %v1456_v9 = vunpack.c.l.b16 %v1363_v35  ;;  %v1069_v60 = vor.u32 %v1068_v16, %v1064_v23  ;;  %v1074_v2 = vrot.slane %v1072_v52, 5  ;;  %v620_v28 = vshll.u32 %v6882_v41, 16  ;;  %v916_v16 = vld [vmem:[#allocation2 + $0x80] sm:$0x1] }
  0x6d   : > { %1594 = vmatmul.bf16.gmra.mxu2 %v1470_v3  ;;  %v1060_v22 = vrot.slane %v1059_v43, 4  ;;  %v885_v27 = vsel %vm6621_vm6, %v614_v1, %v884_v61  ;;  %v474_v30 = vmax.f32 %v6887_v50, 0.0  ;;  %v619_v33 = vrot.slane %v617_v57, 7 }
  0x6e   : > { %v1474_v32 = vpack.c.b16 %v1456_v9, %v1455_v25  ;;  %v1070_v29 = vrot.slane %v1069_v60, 4  ;;  %886 = vst [vmem:[#allocation2 + $0x48] sm:$0xf] %v885_v27  ;;  %v475_v34 = vmax.f32 %v6905_v6, 0.0  ;;  %v6238_v39 = vunpack.c.l.bf16 %v6340_v26  ;;  %v6328_v6 = vld [vmem:[%s6561_s29 + $0x8] sm:$0xff]  }
  0x6f   : > { %v1065_v37 = vsel %vm6686_vm10, %v1060_v22, %v1064_v23  ;;  %v506_v38 = vpack.c.bf16 %v474_v30, %v474_v30  ;;  %v6239_v47 = vunpack.c.h.bf16 %v6340_v26  ;;  %v622_v12 = vor.u32 %v620_v28, %v619_v33  ;;  %v6099_v22 = vld [vmem:[%s8107_s3 + $0x98] sm:$0xff] }
  0x70   : > { %1614 = vmatmul.bf16.gmra.mxu3 %v1474_v32  ;;  %v1075_v41 = vsel %vm6686_vm10, %v1070_v29, %v1074_v2  ;;  %v1431_v50 = vunpack.c.l.b16 %v1065_v37  ;;  %v624_v48 = vrot.slane %v619_v33, 4  ;;  %v507_v10 = vpack.c.bf16 %v475_v34, %v475_v34  ;;  %2159 = vmatpush.bf16.msrb.mxu2 %v6099_v22 }
  0x71   : > { %v1432_v49 = vunpack.c.l.b16 %v1075_v41  ;;  %v677_v51 = vshrl.u32 %v506_v38, 16  ;;  %v680_v56 = vshll.u32 %v506_v38, 16  ;;  %v623_v15 = vsel %vm6613_vm5, %v615_v62, %v622_v12 }
  0x72   : > { %v889_v59 = vsel %vm6628_vm7, %v624_v48, %v888_v14  ;;  %v414_v0 = vmul.f32 %v7002_v58, %v6238_v39  ;;  %v415_v63 = vmul.f32 %v7002_v58, %v6239_v47  ;;  %887 = vst [vmem:[#allocation2 + $0x4c] sm:$0xf] %v623_v15  ;;  %v685_v54 = vshrl.u32 %v507_v10, 16 }
  0x73   : > { %v1462_v20 = vpack.c.b16 %v1432_v49, %v1431_v50  ;;  %v679_v42 = vrot.slane %v677_v51, 7  ;;  %v688_v18 = vshll.u32 %v507_v10, 16  ;;  %890 = vst [vmem:[#allocation2 + $0x50] sm:$0x1] %v889_v59  ;;  %v6190_v36 = vunpack.c.l.bf16 %v6328_v6 }
  0x74   : > { %v450_v7 = vadd.f32 %v7012_v53, %v414_v0  ;;  %v451_v8 = vadd.f32 %v7012_v53, %v415_v63  ;;  %v6191_v11 = vunpack.c.h.bf16 %v6328_v6  ;;  %v687_v21 = vrot.slane %v685_v54, 7  ;;  %v940_v63 = vld [vmem:[#allocation2 + $0xa8] sm:$0xf] }
  0x75   : > { %1554 = vmatmul.bf16.gmra.mxu0 %v1462_v20  ;;  %v973_v17 = vld [vmem:[#allocation2 + $0x48] sm:$0xf]  ;;  %v682_v1 = vor.u32 %v680_v56, %v679_v42  ;;  %v683_v19 = vrot.slane %v679_v42, 4  ;;  %v6210_v55 = vunpack.c.l.bf16 %v7007_v5  ;;  %v390_v25 = vmul.f32 %v7002_v58, %v6190_v36 }
  0x76   : > { %v1173_v23 = vshrl.u32 %v973_v17, 16  ;;  %v1176_v24 = vshll.u32 %v973_v17, 16  ;;  %v482_v52 = vmax.f32 %v450_v7, 0.0  ;;  %v483_v62 = vmax.f32 %v451_v8, 0.0  ;;  %v944_v17 = vld [vmem:[#allocation2 + $0xb0] sm:$0x1] }
  0x77   : > { %v690_v61 = vor.u32 %v688_v18, %v687_v21  ;;  %v692_v3 = vrot.slane %v687_v21, 4  ;;  %v913_v35 = vsel %vm6621_vm6, %v682_v1, %v912_v31  ;;  %v391_v28 = vmul.f32 %v7002_v58, %v6191_v11 }
  0x78   : > { %v1175_v43 = vrot.slane %v1173_v23, 4  ;;  %v1178_v9 = vrot.slane %v1176_v24, 5  ;;  %914 = vst [vmem:[#allocation2 + $0x78] sm:$0xf] %v913_v35  ;;  %v514_v60 = vpack.c.bf16 %v482_v52, %v482_v52  ;;  %v515_v2 = vpack.c.bf16 %v483_v62, %v483_v62 }
  0x79   : > { %v691_v57 = vsel %vm6613_vm5, %v683_v19, %v690_v61  ;;  %v917_v26 = vsel %vm6628_vm7, %v692_v3, %v916_v16  ;;  %v426_v27 = vadd.f32 %v7012_v53, %v390_v25  ;;  %v974_v30 = vld [vmem:[#allocation2 + $0x4c] sm:$0xf]  ;;  %v6211_v34 = vunpack.c.h.bf16 %v7007_v5  ;;  %v860_v5 = vld [vmem:[#allocation2 + $0x20] sm:$0x1] }
  0x7a   : > { %v1179_v32 = vor.u32 %v1178_v9, %v1175_v43  ;;  %915 = vst [vmem:[#allocation2 + $0x7c] sm:$0xf] %v691_v57  ;;  %v745_v29 = vshrl.u32 %v514_v60, 16  ;;  %v748_v33 = vshll.u32 %v514_v60, 16  ;;  %v1015_v37 = vld [vmem:[#allocation2 + $0x50] sm:$0x1]  ;;  %v427_v39 = vadd.f32 %v7012_v53, %v391_v28 }
  0x7b   : > { %v1182_v14 = vshll.u32 %v974_v30, 16  ;;  %v1186_v38 = vshrl.u32 %v974_v30, 16  ;;  %918 = vst [vmem:[#allocation2 + $0x80] sm:$0x1] %v917_v26  ;;  %v7032_v47 = vmul.f32 %v7002_v58, %v6210_v55  ;;  %v1192_v50 = vshll.u32 %v1015_v37, 16  ;;  %v6123_v9 = vld [vmem:[%s8107_s3 + $0xd8] sm:$0xff] }
  0x7c   : > { %v1180_v41 = vrot.slane %v1179_v32, 4  ;;  %v747_v12 = vrot.slane %v745_v29, 7  ;;  %v753_v48 = vshrl.u32 %v515_v2, 16  ;;  %v756_v51 = vshll.u32 %v515_v2, 16  ;;  %v6132_v60 = vld [vmem:[%s8107_s3 + $0x120] sm:$0xff]  ;;  %v6083_v2 = vld [vmem:[%s8107_s3 + $0x18] sm:$0xff]  ;;  %2473 = vmatpush.bf16.msrb.mxu3 %v6123_v9 }
  0x7d   : > { %v1184_v49 = vrot.slane %v1182_v14, 5  ;;  %v1188_v10 = vrot.slane %v1186_v38, 4  ;;  %v458_v56 = vmax.f32 %v426_v27, 0.0  ;;  %v1194_v6 = vrot.slane %v1192_v50, 5  ;;  %v7054_v57 = vld [vmem:[%s6561_s29 + $0x50] sm:$0xff]   ;;  %3154 = vmatpush.bf16.msrb.mxu0 %v6132_v60  ;;  %1778 = vmatpush.bf16.msrb.mxu1 %v6083_v2 }
  0x7e   : > { %v750_v15 = vor.u32 %v748_v33, %v747_v12  ;;  %v751_v59 = vrot.slane %v747_v12, 4  ;;  %v755_v0 = vrot.slane %v753_v48, 7  ;;  %v459_v18 = vmax.f32 %v427_v39, 0.0  ;;  %v6098_v30 = vld [vmem:[%s8107_s3 + $0x90] sm:$0xff]  ;;  %v6131_v12 = vld [vmem:[%s8107_s3 + $0x118] sm:$0xff] }
  0x7f   : > { %v1185_v20 = vsel %vm6686_vm10, %v1180_v41, %v1184_v49  ;;  %v1189_v42 = vor.u32 %v1188_v10, %v1184_v49  ;;  %v981_v54 = vld [vmem:[#allocation2 + $0x78] sm:$0xf]  ;;  %v490_v31 = vpack.c.bf16 %v458_v56, %v458_v56  ;;  %v6122_v32 = vld [vmem:[%s8107_s3 + $0xd0] sm:$0xff]  ;;  %2160 = vmatpush.bf16.msrb.mxu2 %v6098_v30  ;;  %v436_v56 = vadd.f32 %v7012_v53, %v7032_v47 }
  0x80   : > { %v1441_v7 = vunpack.c.l.b16 %v1185_v20  ;;  %v1269_v8 = vshrl.u32 %v981_v54, 16  ;;  %v1272_v36 = vshll.u32 %v981_v54, 16  ;;  %v758_v11 = vor.u32 %v756_v51, %v755_v0  ;;  %v6082_v48 = vld [vmem:[%s8107_s3 + $0x10] sm:$0xff]  ;;  %2474 = vmatpush.bf16.msrb.mxu3 %v6122_v32 }
  0x81   : > { %v1190_v1 = vrot.slane %v1189_v42, 4  ;;  %v982_v19 = vld [vmem:[#allocation2 + $0x7c] sm:$0xf]  ;;  %v760_v21 = vrot.slane %v755_v0, 4  ;;  %v941_v55 = vsel %vm6621_vm6, %v750_v15, %v940_v63  ;;  %v491_v23 = vpack.c.bf16 %v459_v18, %v459_v18  ;;  %v856_v18 = vld [vmem:[#allocation2 + $0x18] sm:$0xf]  ;;  %3155 = vmatpush.bf16.msrb.mxu0 %v6131_v12  ;;  %1779 = vmatpush.bf16.msrb.mxu1 %v6082_v48 }
  0x82   : > { %v1019_v24 = vld [vmem:[#allocation2 + $0x80] sm:$0x1]  ;;  %v1271_v16 = vrot.slane %v1269_v8, 4  ;;  %v1274_v52 = vrot.slane %v1272_v36, 5  ;;  %v1278_v62 = vshll.u32 %v982_v19, 16  ;;  %v1282_v61 = vshrl.u32 %v982_v19, 16 }
  0x83   : > { %v1195_v3 = vsel %vm6686_vm10, %v1190_v1, %v1194_v6  ;;  %v1288_v35 = vshll.u32 %v1019_v24, 16  ;;  %v759_v25 = vsel %vm6613_vm5, %v751_v59, %v758_v11  ;;  %942 = vst [vmem:[#allocation2 + $0xa8] sm:$0xf] %v941_v55  ;;  %v945_v43 = vsel %vm6628_vm7, %v760_v21, %v944_v17  ;;  %v7087_v60 = vld [vmem:[%s6561_s29 + $0x70] sm:$0xff]  }
  0x84   : > { %v1442_v26 = vunpack.c.l.b16 %v1195_v3  ;;  %v1275_v22 = vor.u32 %v1274_v52, %v1271_v16  ;;  %v1280_v28 = vrot.slane %v1278_v62, 5  ;;  %v1284_v27 = vrot.slane %v1282_v61, 4  ;;  %943 = vst [vmem:[#allocation2 + $0xac] sm:$0xf] %v759_v25 }
  0x85   : > { %v1290_v29 = vrot.slane %v1288_v35, 5  ;;  %946 = vst [vmem:[#allocation2 + $0xb0] sm:$0x1] %v945_v43  ;;  %v541_v33 = vshrl.u32 %v490_v31, 16  ;;  %v544_v37 = vshll.u32 %v490_v31, 16  ;;  %v549_v14 = vshrl.u32 %v491_v23, 16 }
  0x86   : > { %v1467_v38 = vpack.c.b16 %v1442_v26, %v1441_v7  ;;  %v1276_v39 = vrot.slane %v1275_v22, 4  ;;  %v1285_v41 = vor.u32 %v1284_v27, %v1280_v28  ;;  %v552_v50 = vshll.u32 %v491_v23, 16 }
  0x87   : > { %v543_v49 = vrot.slane %v541_v33, 7  ;;  %v551_v10 = vrot.slane %v549_v14, 7  ;;  %v401_v51 = vmul.f32 %v7002_v58, %v6211_v34  ;;  %v6226_v59 = vunpack.c.l.bf16 %v7054_v57 }
  0x88   : > { %1579 = vmatmul.bf16.gmra.mxu1 %v1467_v38  ;;  %v1281_v6 = vsel %vm6686_vm10, %v1276_v39, %v1280_v28  ;;  %v1286_v15 = vrot.slane %v1285_v41, 4  ;;  %v6227_v0 = vunpack.c.h.bf16 %v7054_v57  ;;  %v468_v8 = vmax.f32 %v436_v56, 0.0 }
  0x89   : > { %v1449_v63 = vunpack.c.l.b16 %v1281_v6  ;;  %v546_v20 = vor.u32 %v544_v37, %v543_v49  ;;  %v547_v42 = vrot.slane %v543_v49, 4  ;;  %v554_v54 = vor.u32 %v552_v50, %v551_v10 }
  0x8a   : > { %v1291_v34 = vsel %vm6686_vm10, %v1286_v15, %v1290_v29  ;;  %v989_v47 = vld [vmem:[#allocation2 + $0xa8] sm:$0xf]  ;;  %v556_v31 = vrot.slane %v551_v10, 4  ;;  %v437_v7 = vadd.f32 %v7012_v53, %v401_v51  ;;  %v500_v9 = vpack.c.bf16 %v468_v8, %v468_v8 }
  0x8b   : > { %v1450_v36 = vunpack.c.l.b16 %v1291_v34  ;;  %v990_v11 = vld [vmem:[#allocation2 + $0xac] sm:$0xf]  ;;  %v1365_v17 = vshrl.u32 %v989_v47, 16  ;;  %v1368_v1 = vshll.u32 %v989_v47, 16  ;;  %v555_v19 = vsel %vm6613_vm5, %v547_v42, %v554_v54 }
  0x8c   : > { %v1023_v21 = vld [vmem:[#allocation2 + $0xb0] sm:$0x1]  ;;  %v1374_v55 = vshll.u32 %v990_v11, 16  ;;  %v1378_v23 = vshrl.u32 %v990_v11, 16  ;;  %v857_v24 = vsel %vm6621_vm6, %v546_v20, %v856_v18  ;;  %859 = vst [vmem:[#allocation2 + $0x1c] sm:$0xf] %v555_v19  ;;  %v861_v16 = vsel %vm6628_vm7, %v556_v31, %v860_v5 }
  0x8d   : > { %v1471_v52 = vpack.c.b16 %v1450_v36, %v1449_v63  ;;  %v1367_v62 = vrot.slane %v1365_v17, 4  ;;  %v1370_v61 = vrot.slane %v1368_v1, 5  ;;  %v1384_v3 = vshll.u32 %v1023_v21, 16  ;;  %858 = vst [vmem:[#allocation2 + $0x18] sm:$0xf] %v857_v24 }
  0x8e   : > { %v1376_v35 = vrot.slane %v1374_v55, 5  ;;  %v1380_v25 = vrot.slane %v1378_v23, 4  ;;  %862 = vst [vmem:[#allocation2 + $0x20] sm:$0x1] %v861_v16  ;;  %v469_v43 = vmax.f32 %v437_v7, 0.0  ;;  %v408_v26 = vmul.f32 %v7002_v58, %v6226_v59 }
  0x8f   : > { %1599 = vmatmul.bf16.gmra.mxu2 %v1471_v52  ;;  %v1371_v2 = vor.u32 %v1370_v61, %v1367_v62  ;;  %v1386_v57 = vrot.slane %v1384_v3, 5  ;;  %v409_v22 = vmul.f32 %v7002_v58, %v6227_v0  ;;  %v626_v30 = vshrl.u32 %v500_v9, 16  ;;  %v891_v5 = vld [vmem:[#allocation2 + $0x54] sm:$0xf]  ;;  %v895_v55 = vld [vmem:[#allocation2 + $0x5c] sm:$0x1] }
  0x90   : > { %v1381_v28 = vor.u32 %v1380_v25, %v1376_v35  ;;  %v501_v27 = vpack.c.bf16 %v469_v43, %v469_v43  ;;  %v629_v32 = vshll.u32 %v500_v9, 16  ;;  %v444_v33 = vadd.f32 %v7012_v53, %v408_v26 }
  0x91   : > { %v1372_v29 = vrot.slane %v1371_v2, 4  ;;  %v445_v37 = vadd.f32 %v7012_v53, %v409_v22  ;;  %v6242_v14 = vunpack.c.l.bf16 %v7087_v60  ;;  %v628_v39 = vrot.slane %v626_v30, 7 }
  0x92   : > { %v1382_v38 = vrot.slane %v1381_v28, 4  ;;  %v634_v41 = vshrl.u32 %v501_v27, 16  ;;  %v637_v50 = vshll.u32 %v501_v27, 16  ;;  %v476_v49 = vmax.f32 %v444_v33, 0.0  ;;  %v6329_v27 = vld [vmem:[%s6561_s29 + $0x10] sm:$0xff]  }
  0x93   : > { %v1377_v12 = vsel %vm6686_vm10, %v1372_v29, %v1376_v35  ;;  %v7096_v48 = vld [vmem:[#allocation2 + $0x1c] sm:$0xf]  ;;  %v477_v10 = vmax.f32 %v445_v37, 0.0  ;;  %v6243_v51 = vunpack.c.h.bf16 %v7087_v60  ;;  %v631_v18 = vor.u32 %v629_v32, %v628_v39  ;;  %v919_v33 = vld [vmem:[#allocation2 + $0x84] sm:$0xf] }
  0x94   : > { %v1387_v56 = vsel %vm6686_vm10, %v1382_v38, %v1386_v57  ;;  %v1457_v6 = vunpack.c.l.b16 %v1377_v12  ;;  %v965_v15 = vld [vmem:[#allocation2 + $0x18] sm:$0xf]  ;;  %v1086_v59 = vshll.u32 %v7096_v48, 16  ;;  %v1090_v0 = vshrl.u32 %v7096_v48, 16 }
  0x95   : > { %v1458_v63 = vunpack.c.l.b16 %v1387_v56  ;;  %v7103_v20 = vld [vmem:[#allocation2 + $0x20] sm:$0x1]  ;;  %v1077_v42 = vshrl.u32 %v965_v15, 16  ;;  %v1080_v54 = vshll.u32 %v965_v15, 16  ;;  %v632_v7 = vrot.slane %v628_v39, 4 }
  0x96   : > { %v1088_v34 = vrot.slane %v1086_v59, 5  ;;  %v1092_v47 = vrot.slane %v1090_v0, 4  ;;  %v1096_v31 = vshll.u32 %v7103_v20, 16  ;;  %v636_v17 = vrot.slane %v634_v41, 7  ;;  %v923_v41 = vld [vmem:[#allocation2 + $0x8c] sm:$0x1] }
  0x97   : > { %v1475_v8 = vpack.c.b16 %v1458_v63, %v1457_v6  ;;  %v1079_v36 = vrot.slane %v1077_v42, 4  ;;  %v1082_v11 = vrot.slane %v1080_v54, 5  ;;  %v892_v21 = vsel %vm6621_vm6, %v631_v18, %v891_v5 }
  0x98   : > { %v1093_v1 = vor.u32 %v1092_v47, %v1088_v34  ;;  %v1098_v19 = vrot.slane %v1096_v31, 5  ;;  %v508_v23 = vpack.c.bf16 %v476_v49, %v476_v49  ;;  %v639_v16 = vor.u32 %v637_v50, %v636_v17  ;;  %893 = vst [vmem:[#allocation2 + $0x54] sm:$0xf] %v892_v21 }
  0x99   : > { %1619 = vmatmul.bf16.gmra.mxu3 %v1475_v8  ;;  %v1083_v24 = vor.u32 %v1082_v11, %v1079_v36  ;;  %v641_v52 = vrot.slane %v636_v17, 4  ;;  %v509_v62 = vpack.c.bf16 %v477_v10, %v477_v10  ;;  %v416_v25 = vmul.f32 %v7002_v58, %v6242_v14 }
  0x9a   : > { %v1094_v61 = vrot.slane %v1093_v1, 4  ;;  %v694_v3 = vshrl.u32 %v508_v23, 16  ;;  %v697_v35 = vshll.u32 %v508_v23, 16  ;;  %v640_v9 = vsel %vm6613_vm5, %v632_v7, %v639_v16 }
  0x9b   : > { %v1084_v43 = vrot.slane %v1083_v24, 4  ;;  %v896_v60 = vsel %vm6628_vm7, %v641_v52, %v895_v55  ;;  %v702_v2 = vshrl.u32 %v509_v62, 16  ;;  %894 = vst [vmem:[#allocation2 + $0x58] sm:$0xf] %v640_v9  ;;  %v705_v22 = vshll.u32 %v509_v62, 16  ;;  %v6097_v52 = vld [vmem:[%s8107_s3 + $0x88] sm:$0xff] }
  0x9c   : > { %v1099_v57 = vsel %vm6686_vm10, %v1094_v61, %v1098_v19  ;;  %v696_v26 = vrot.slane %v694_v3, 7  ;;  %v417_v28 = vmul.f32 %v7002_v58, %v6243_v51  ;;  %897 = vst [vmem:[#allocation2 + $0x5c] sm:$0x1] %v896_v60  ;;  %v452_v37 = vadd.f32 %v7012_v53, %v416_v25  ;;  %2161 = vmatpush.bf16.msrb.mxu2 %v6097_v52  ;;  %v7168_v52 = vld [vmem:[#allocation2 + $0x4] sm:$0xf] }
  0x9d   : > { %v1089_v30 = vsel %vm6686_vm10, %v1084_v43, %v1088_v34  ;;  %v1434_v32 = vunpack.c.l.b16 %v1099_v57  ;;  %v704_v29 = vrot.slane %v702_v2, 7  ;;  %v6194_v51 = vunpack.c.l.bf16 %v6329_v27 }
  0x9e   : > { %v1433_v14 = vunpack.c.l.b16 %v1089_v30  ;;  %v699_v38 = vor.u32 %v697_v35, %v696_v26  ;;  %v700_v39 = vrot.slane %v696_v26, 4  ;;  %v453_v50 = vadd.f32 %v7012_v53, %v417_v28 }
  0x9f   : > { %v707_v12 = vor.u32 %v705_v22, %v704_v29  ;;  %v709_v49 = vrot.slane %v704_v29, 4  ;;  %v484_v10 = vmax.f32 %v452_v37, 0.0  ;;  %v975_v6 = vld [vmem:[#allocation2 + $0x54] sm:$0xf]  ;;  %v6195_v0 = vunpack.c.h.bf16 %v6329_v27 }
  0xa0   : > { %v1463_v56 = vpack.c.b16 %v1434_v32, %v1433_v14  ;;  %v920_v15 = vsel %vm6621_vm6, %v699_v38, %v919_v33  ;;  %v485_v59 = vmax.f32 %v453_v50, 0.0  ;;  %v1197_v63 = vshrl.u32 %v975_v6, 16  ;;  %v947_v33 = vld [vmem:[#allocation2 + $0xb4] sm:$0xf] }
  0xa1   : > { %v1200_v42 = vshll.u32 %v975_v6, 16  ;;  %v708_v54 = vsel %vm6613_vm5, %v700_v39, %v707_v12  ;;  %921 = vst [vmem:[#allocation2 + $0x84] sm:$0xf] %v920_v15  ;;  %v924_v18 = vsel %vm6628_vm7, %v709_v49, %v923_v41  ;;  %v516_v5 = vpack.c.bf16 %v484_v10, %v484_v10  ;;  %v951_v10 = vld [vmem:[#allocation2 + $0xbc] sm:$0x1] }
  0xa2   : > { %1559 = vmatmul.bf16.gmra.mxu0 %v1463_v56  ;;  %922 = vst [vmem:[#allocation2 + $0x88] sm:$0xf] %v708_v54  ;;  %v517_v34 = vpack.c.bf16 %v485_v59, %v485_v59  ;;  %v392_v47 = vmul.f32 %v7002_v58, %v6194_v51  ;;  %v7128_v31 = vld [vmem:[#allocation2 + $0x58] sm:$0xf]  ;;  %v1199_v7 = vrot.slane %v1197_v63, 4  ;;  %v393_v36 = vmul.f32 %v7002_v58, %v6195_v0 }
  0xa3   : > { %v1202_v8 = vrot.slane %v1200_v42, 5  ;;  %925 = vst [vmem:[#allocation2 + $0x8c] sm:$0x1] %v924_v18  ;;  %v7131_v11 = vld [vmem:[#allocation2 + $0x5c] sm:$0x1]  ;;  %v1206_v17 = vshll.u32 %v7128_v31, 16 }
  0xa4   : > { %v1210_v1 = vshrl.u32 %v7128_v31, 16  ;;  %v762_v19 = vshrl.u32 %v516_v5, 16  ;;  %v765_v21 = vshll.u32 %v516_v5, 16  ;;  %v1216_v23 = vshll.u32 %v7131_v11, 16 }
  0xa5   : > { %v1203_v55 = vor.u32 %v1202_v8, %v1199_v7  ;;  %v770_v24 = vshrl.u32 %v517_v34, 16  ;;  %v773_v16 = vshll.u32 %v517_v34, 16  ;;  %v1208_v62 = vrot.slane %v1206_v17, 5  ;;  %v6121_v8 = vld [vmem:[%s8107_s3 + $0xc8] sm:$0xff] }
  0xa6   : > { %v1212_v61 = vrot.slane %v1210_v1, 4  ;;  %v764_v58 = vrot.slane %v762_v19, 7  ;;  %v428_v3 = vadd.f32 %v7012_v53, %v392_v47  ;;  %v1218_v25 = vrot.slane %v1216_v23, 5  ;;  %v6081_v17 = vld [vmem:[%s8107_s3 + $0x8] sm:$0xff]  ;;  %v6096_v23 = vld [vmem:[%s8107_s3 + $0x80] sm:$0xff]  ;;  %2475 = vmatpush.bf16.msrb.mxu3 %v6121_v8 }
  0xa7   : > { %v1204_v35 = vrot.slane %v1203_v55, 4  ;;  %v772_v43 = vrot.slane %v770_v24, 7  ;;  %v429_v9 = vadd.f32 %v7012_v53, %v393_v36  ;;  %v6130_v36 = vld [vmem:[%s8107_s3 + $0x110] sm:$0xff]  ;;  %1780 = vmatpush.bf16.msrb.mxu1 %v6081_v17  ;;  %2162 = vmatpush.bf16.msrb.mxu2 %v6096_v23  ;;  %v2590_v23 = vld [vmem:[#allocation2 + $0xc] sm:$0xf] }
  0xa8   : > { %v1213_v60 = vor.u32 %v1212_v61, %v1208_v62  ;;  %v983_v2 = vld [vmem:[#allocation2 + $0x84] sm:$0xf]  ;;  %v767_v57 = vor.u32 %v765_v21, %v764_v58  ;;  %v768_v26 = vrot.slane %v764_v58, 4  ;;  %v460_v22 = vmax.f32 %v428_v3, 0.0  ;;  %3156 = vmatpush.bf16.msrb.mxu0 %v6130_v36 }
  0xa9   : > { %v1209_v28 = vsel %vm6686_vm10, %v1204_v35, %v1208_v62  ;;  %v984_v27 = vld [vmem:[#allocation2 + $0x88] sm:$0xf]  ;;  %v1293_v30 = vshrl.u32 %v983_v2, 16  ;;  %v1296_v32 = vshll.u32 %v983_v2, 16  ;;  %v775_v29 = vor.u32 %v773_v16, %v772_v43  ;;  %v6120_v16 = vld [vmem:[%s8107_s3 + $0xc0] sm:$0xff] }
  0xaa   : > { %v1214_v37 = vrot.slane %v1213_v60, 4  ;;  %v1443_v14 = vunpack.c.l.b16 %v1209_v28  ;;  %v1020_v38 = vld [vmem:[#allocation2 + $0x8c] sm:$0x1]  ;;  %v1302_v39 = vshll.u32 %v984_v27, 16  ;;  %v1306_v41 = vshrl.u32 %v984_v27, 16  ;;  %2476 = vmatpush.bf16.msrb.mxu3 %v6120_v16 }
  0xab   : > { %v1295_v50 = vrot.slane %v1293_v30, 4  ;;  %v1298_v53 = vrot.slane %v1296_v32, 5  ;;  %v1312_v12 = vshll.u32 %v1020_v38, 16  ;;  %v776_v49 = vsel %vm6613_vm5, %v768_v26, %v775_v29  ;;  %v1863_v60 = vld [vmem:[#allocation2] sm:$0xe] }
  0xac   : > { %v1219_v51 = vsel %vm6686_vm10, %v1214_v37, %v1218_v25  ;;  %v1304_v56 = vrot.slane %v1302_v39, 5  ;;  %v1308_v6 = vrot.slane %v1306_v41, 4  ;;  %v777_v15 = vrot.slane %v772_v43, 4  ;;  %950 = vst [vmem:[#allocation2 + $0xb8] sm:$0xf] %v776_v49  ;;  %v6129_v43 = vld [vmem:[%s8107_s3 + $0x108] sm:$0xff] }
  0xad   : > { %v1444_v59 = vunpack.c.l.b16 %v1219_v51  ;;  %v1299_v0 = vor.u32 %v1298_v53, %v1295_v50  ;;  %v1314_v63 = vrot.slane %v1312_v12, 5  ;;  %v948_v42 = vsel %vm6621_vm6, %v767_v57, %v947_v33  ;;  %v863_v25 = vld [vmem:[#allocation2 + $0x24] sm:$0xf]  ;;  %v867_v32 = vld [vmem:[#allocation2 + $0x2c] sm:$0x1]  ;;  %3157 = vmatpush.bf16.msrb.mxu0 %v6129_v43 }
  0xae   : > { %v1309_v54 = vor.u32 %v1308_v6, %v1304_v56  ;;  %949 = vst [vmem:[#allocation2 + $0xb4] sm:$0xf] %v948_v42  ;;  %v952_v18 = vsel %vm6628_vm7, %v777_v15, %v951_v10  ;;  %v461_v5 = vmax.f32 %v429_v9, 0.0  ;;  %v492_v34 = vpack.c.bf16 %v460_v22, %v460_v22  ;;  %v6080_v9 = vld [vmem:[%s8107_s3] sm:$0xff]  ;;  %v6167_v22 = vld [vmem:[%s8107_s3 + $0x1b8] sm:$0xff] }
  0xaf   : > { %v1468_v47 = vpack.c.b16 %v1444_v59, %v1443_v14  ;;  %v1300_v7 = vrot.slane %v1299_v0, 4  ;;  %953 = vst [vmem:[#allocation2 + $0xbc] sm:$0x1] %v952_v18  ;;  %v1916_v62 = vrot.slane %v7168_v52, 5  ;;  %v5548_v29 = vrot.slane %v1863_v60, 9  ;;  %v6128_v39 = vld [vmem:[%s8107_s3 + $0x100] sm:$0xff]  ;;  %3892 = vmatpush.bf16.msra.mxu2 %v6167_v22  ;;  %1781 = vmatpush.bf16.msrb.mxu1 %v6080_v9 }
  0xb0   : > { %v1310_v1 = vrot.slane %v1309_v54, 4  ;;  %v493_v19 = vpack.c.bf16 %v461_v5, %v461_v5  ;;  %v558_v21 = vshrl.u32 %v492_v34, 16  ;;  %v561_v55 = vshll.u32 %v492_v34, 16  ;;  %v6413_v42 = vld [vmem:[#allocation2 + $0x8] sm:$0x1]  ;;  %v6183_v60 = vld [vmem:[%s8107_s3 + $0x238] sm:$0xff] }
  0xb1   : > { %1584 = vmatmul.bf16.gmra.mxu1 %v1468_v47  ;;  %v1305_v24 = vsel %vm6686_vm10, %v1300_v7, %v1304_v56  ;;  %v1918_v41 = vrot.slane %v1916_v62, 4  ;;  %v1919_v54 = vrot.slane %v6413_v42, 5  ;;  %3158 = vmatpush.bf16.msrb.mxu0 %v6128_v39  ;;  %v2591_v16 = vld [vmem:[#allocation2 + $0x10] sm:$0xf]  ;;  %v2639_v9 = vshrl.u32 %v2590_v23, 16 }
  0xb2   : > { %v1315_v61 = vsel %vm6686_vm10, %v1310_v1, %v1314_v63  ;;  %v1451_v58 = vunpack.c.l.b16 %v1305_v24  ;;  %v560_v3 = vrot.slane %v558_v21, 7  ;;  %v566_v35 = vshrl.u32 %v493_v19, 16 }
  0xb3   : > { %v1452_v2 = vunpack.c.l.b16 %v1315_v61  ;;  %v992_v57 = vld [vmem:[#allocation2 + $0xb8] sm:$0xf]  ;;  %v569_v26 = vshll.u32 %v493_v19, 16  ;;  %v1917_v1 = vsel %vm7193_vm13, %v5548_v29, %v1916_v62  ;;  %v1920_v19 = vsel %vm7193_vm13, %v1918_v41, %v1919_v54 }
  0xb4   : > { %v1398_v28 = vshll.u32 %v992_v57, 16  ;;  %v1402_v27 = vshrl.u32 %v992_v57, 16  ;;  %v563_v30 = vor.u32 %v561_v55, %v560_v3  ;;  %v564_v14 = vrot.slane %v560_v3, 4  ;;  %v6064_v55 = vld [vmem:[#allocation2] sm:$0xff]  ;;  %v6143_v62 = vld [vmem:[%s8107_s3 + $0x178] sm:$0xff] }
  0xb5   : > { %v1472_v33 = vpack.c.b16 %v1452_v2, %v1451_v58  ;;  %v991_v37 = vld [vmem:[#allocation2 + $0xb4] sm:$0xf]  ;;  %v568_v38 = vrot.slane %v566_v35, 7  ;;  %v2043_v58 = vunpack.c.l.b16 %v1917_v1  ;;  %v2044_v3 = vunpack.c.l.b16 %v1920_v19  ;;  %v6175_v35 = vld [vmem:[%s8107_s3 + $0x1f8] sm:$0xff]  ;;  %3577 = vmatpush.bf16.msra.mxu1 %v6143_v62  ;;  %5000 = vmatpush.bf16.msra.mxu0 %v6183_v60 }
  0xb6   : > { %v1024_v50 = vld [vmem:[#allocation2 + $0xbc] sm:$0x1]  ;;  %v1389_v53 = vshrl.u32 %v991_v37, 16  ;;  %v1392_v12 = vshll.u32 %v991_v37, 16  ;;  %v1400_v49 = vrot.slane %v1398_v28, 5  ;;  %v1404_v10 = vrot.slane %v1402_v27, 4  ;;  %4574 = vmatpush.bf16.msra.mxu3 %v6175_v35 }
  0xb7   : > { %1604 = vmatmul.bf16.gmra.mxu2 %v1472_v33  ;;  %v1408_v51 = vshll.u32 %v1024_v50, 16  ;;  %v571_v56 = vor.u32 %v569_v26, %v568_v38  ;;  %v573_v6 = vrot.slane %v568_v38, 4  ;;  %v864_v15 = vsel %vm6621_vm6, %v563_v30, %v863_v25  ;;  %v2593_v35 = vld [vmem:[#allocation2 + $0x18] sm:$0xf] }
  0xb8   : > { %v1391_v59 = vrot.slane %v1389_v53, 4  ;;  %v1394_v0 = vrot.slane %v1392_v12, 5  ;;  %v1405_v63 = vor.u32 %v1404_v10, %v1400_v49  ;;  %865 = vst [vmem:[#allocation2 + $0x24] sm:$0xf] %v864_v15  ;;  %v2642_v26 = vshll.u32 %v2590_v23, 16 }
  0xb9   : > { %v1410_v18 = vrot.slane %v1408_v51, 5  ;;  %v572_v5 = vsel %vm6613_vm5, %v564_v14, %v571_v56  ;;  %v868_v34 = vsel %vm6628_vm7, %v573_v6, %v867_v32  ;;  %v2648_v22 = vshll.u32 %v2591_v16, 16  ;;  %v1864_v10 = vld [vmem:[#allocation2 + $0xc] sm:$0xe] }
  0xba   : > { %v1395_v7 = vor.u32 %v1394_v0, %v1391_v59  ;;  %v1406_v8 = vrot.slane %v1405_v63, 4  ;;  %866 = vst [vmem:[#allocation2 + $0x28] sm:$0xf] %v572_v5  ;;  %v2652_v28 = vshrl.u32 %v2591_v16, 16  ;;  %v2075_v14 = vpack.c.b16 %v2044_v3, %v2043_v58  ;;  %v2592_v59 = vld [vmem:[#allocation2 + $0x14] sm:$0x1] }
  0xbb   : > { %869 = vst [vmem:[#allocation2 + $0x2c] sm:$0x1] %v868_v34  ;;  %v1923_v38 = vrot.slane %v6968_v4, 5  ;;  %v2641_v53 = vrot.slane %v2639_v9, 4  ;;  %v2644_v12 = vrot.slane %v2642_v26, 5  ;;  %v5549_v54 = vrot.slane %v1864_v10, 9 }
  0xbc   : > { %v1396_v36 = vrot.slane %v1395_v7, 4  ;;  %v1411_v17 = vsel %vm6686_vm10, %v1406_v8, %v1410_v18  ;;  %v2654_v15 = vrot.slane %v2652_v28, 4  ;;  %v1926_v4 = vrot.slane %v6973_v13, 5  ;;  %v6104_v13 = vld [vmem:[#allocation2 + $0xc] sm:$0xff] }
  0xbd   : > { %v1460_v21 = vunpack.c.l.b16 %v1411_v17  ;;  %v1925_v0 = vrot.slane %v1923_v38, 4  ;;  %v2645_v34 = vor.u32 %v2644_v12, %v2641_v53  ;;  %v2658_v8 = vshll.u32 %v2592_v59, 16  ;;  %v6166_v28 = vld [vmem:[%s8107_s3 + $0x1b0] sm:$0xff]  ;;  %v2595_v12 = vld [vmem:[#allocation2 + $0x20] sm:$0x1] }
  0xbe   : > { %v1401_v24 = vsel %vm6686_vm10, %v1396_v36, %v1400_v49  ;;  %v2650_v49 = vrot.slane %v2648_v22, 5  ;;  %v1924_v17 = vsel %vm7193_vm13, %v5549_v54, %v1923_v38  ;;  %v1930_v58 = vrot.slane %v7096_v48, 5  ;;  %3893 = vmatpush.bf16.msra.mxu2 %v6166_v28 }
  0xbf   : > { %v1459_v52 = vunpack.c.l.b16 %v1401_v24  ;;  %v967_v61 = vld [vmem:[#allocation2 + $0x24] sm:$0xf]  ;;  %v1927_v1 = vsel %vm7193_vm13, %v1925_v0, %v1926_v4  ;;  %v2660_v24 = vrot.slane %v2658_v8, 5  ;;  %v2045_v16 = vunpack.c.l.b16 %v1924_v17  ;;  %v6174_v0 = vld [vmem:[%s8107_s3 + $0x1f0] sm:$0xff] }
  0xc0   : > { %v1101_v25 = vshrl.u32 %v967_v61, 16  ;;  %v1104_v43 = vshll.u32 %v967_v61, 16  ;;  %v2655_v7 = vor.u32 %v2654_v15, %v2650_v49  ;;  %v1865_v61 = vld [vmem:[#allocation2 + $0x18] sm:$0xe]  ;;  %v1933_v3 = vrot.slane %v7103_v20, 5  ;;  %4575 = vmatpush.bf16.msra.mxu3 %v6174_v0 }
  0xc1   : > { %v1476_v2 = vpack.c.b16 %v1460_v21, %v1459_v52  ;;  %v7214_v57 = vld [vmem:[#allocation2 + $0x28] sm:$0xf]  ;;  %1782 = vmatmul.bf16.vlgmr.msrb.gmra.mxu1 %v6064_v55  ;;  %v6065_v21 = vld [vmem:[#allocation2 + $0xc] sm:$0xff]  ;;  %v2646_v55 = vrot.slane %v2645_v34, 4  ;;  %v2046_v52 = vunpack.c.l.b16 %v1927_v1  ;;  %v5550_v62 = vrot.slane %v1865_v61, 9  ;;  %v6105_v15 = vld [vmem:[#allocation2 + $0x18] sm:$0xff] }
  0xc2   : > { %v7216_v27 = vld [vmem:[#allocation2 + $0x2c] sm:$0x1]  ;;  %v1103_v30 = vrot.slane %v1101_v25, 4  ;;  %v1106_v32 = vrot.slane %v1104_v43, 5  ;;  %v1110_v29 = vshll.u32 %v7214_v57, 16  ;;  %v1114_v33 = vshrl.u32 %v7214_v57, 16 }
  0xc3   : > { %1624 = vmatmul.bf16.gmra.mxu3 %v1476_v2  ;;  %v1120_v37 = vshll.u32 %v7216_v27, 16  ;;  %v2656_v23 = vrot.slane %v2655_v7, 4  ;;  %v2594_v25 = vld [vmem:[#allocation2 + $0x1c] sm:$0xf]  ;;  %v1932_v43 = vrot.slane %v1930_v58, 4  ;;  %v2651_v9 = vsel %vm6686_vm10, %v2646_v55, %v2650_v49 }
  0xc4   : > { %v1107_v39 = vor.u32 %v1106_v32, %v1103_v30  ;;  %v1112_v41 = vrot.slane %v1110_v29, 5  ;;  %v1116_v50 = vrot.slane %v1114_v33, 4  ;;  %v1931_v2 = vsel %vm7193_vm13, %v5550_v62, %v1930_v58  ;;  %v2596_v59 = vld [vmem:[#allocation2 + $0x24] sm:$0xf]  ;;  %v2601_v0 = vld [vmem:[#allocation2 + $0x38] sm:$0x1] }
  0xc5   : > { %v1122_v6 = vrot.slane %v1120_v37, 5  ;;  %v2661_v60 = vsel %vm6686_vm10, %v2656_v23, %v2660_v24  ;;  %v2076_v26 = vpack.c.b16 %v2046_v52, %v2045_v16  ;;  %v2663_v22 = vshrl.u32 %v2593_v35, 16 }
  0xc6   : > { %v1108_v51 = vrot.slane %v1107_v39, 4  ;;  %v1117_v56 = vor.u32 %v1116_v50, %v1112_v41  ;;  %v1934_v48 = vsel %vm7193_vm13, %v1932_v43, %v1933_v3  ;;  %v2047_v20 = vunpack.c.l.b16 %v1931_v2  ;;  %v6067_v2 = vld [vmem:[#allocation2 + $0x24] sm:$0xff] }
  0xc7   : > { %2163 = vmatmul.bf16.vlgmr.msrb.gmra.mxu2 %v2075_v14  ;;  %v2666_v30 = vshll.u32 %v2593_v35, 16  ;;  %v2672_v32 = vshll.u32 %v2594_v25, 16  ;;  %v2676_v29 = vshrl.u32 %v2594_v25, 16  ;;  %v2048_v33 = vunpack.c.l.b16 %v1934_v48  ;;  %v2598_v35 = vld [vmem:[#allocation2 + $0x2c] sm:$0x1] }
  0xc8   : > { %v1113_v63 = vsel %vm6686_vm10, %v1108_v51, %v1112_v41  ;;  %v1118_v42 = vrot.slane %v1117_v56, 4  ;;  %v3039_v14 = vunpack.c.l.b16 %v2651_v9  ;;  %v3040_v38 = vunpack.c.l.b16 %v2661_v60 }
  0xc9   : > { %v1435_v18 = vunpack.c.l.b16 %v1113_v63  ;;  %v2077_v37 = vpack.c.b16 %v2048_v33, %v2047_v20  ;;  %v2665_v39 = vrot.slane %v2663_v22, 4  ;;  %v2668_v41 = vrot.slane %v2666_v30, 5  ;;  %v6142_v63 = vld [vmem:[%s8107_s3 + $0x170] sm:$0xff]  ;;  %v6106_v22 = vld [vmem:[#allocation2 + $0x24] sm:$0xff] }
  0xca   : > { %v1123_v5 = vsel %vm6686_vm10, %v1118_v42, %v1122_v6  ;;  %v2674_v50 = vrot.slane %v2672_v32, 5  ;;  %v2678_v53 = vrot.slane %v2676_v29, 4  ;;  %v3071_v49 = vpack.c.b16 %v3040_v38, %v3039_v14  ;;  %v6066_v6 = vld [vmem:[#allocation2 + $0x18] sm:$0xff]  ;;  %v6182_v42 = vld [vmem:[%s8107_s3 + $0x230] sm:$0xff]  ;;  %3578 = vmatpush.bf16.msra.mxu1 %v6142_v63 }
  0xcb   : > { %v1436_v36 = vunpack.c.l.b16 %v1123_v5  ;;  %v2669_v10 = vor.u32 %v2668_v41, %v2665_v39  ;;  %v2682_v56 = vshll.u32 %v2595_v12, 16  ;;  %v2597_v5 = vld [vmem:[#allocation2 + $0x28] sm:$0xf]  ;;  %v2687_v34 = vshrl.u32 %v2596_v59, 16  ;;  %5001 = vmatpush.bf16.msra.mxu0 %v6182_v42  ;;  %v2600_v32 = vld [vmem:[#allocation2 + $0x34] sm:$0xf] }
  0xcc   : > { %v2679_v51 = vor.u32 %v2678_v53, %v2674_v50  ;;  %v2690_v7 = vshll.u32 %v2596_v59, 16  ;;  %v2696_v8 = vshll.u32 %v2597_v5, 16  ;;  %v2700_v1 = vshrl.u32 %v2597_v5, 16  ;;  %v6165_v39 = vld [vmem:[%s8107_s3 + $0x1a8] sm:$0xff]  ;;  %v6414_v53 = vld [vmem:[#allocation2 + $0x34] sm:$0xf] }
  0xcd   : > { %v1464_v19 = vpack.c.b16 %v1436_v36, %v1435_v18  ;;  %v2670_v54 = vrot.slane %v2669_v10, 4  ;;  %v2684_v18 = vrot.slane %v2682_v56, 5  ;;  %v2689_v55 = vrot.slane %v2687_v34, 4  ;;  %3894 = vmatpush.bf16.msra.mxu2 %v6165_v39 }
  0xce   : > { %v2680_v4 = vrot.slane %v2679_v51, 4  ;;  %v2692_v23 = vrot.slane %v2690_v7, 5  ;;  %v2698_v16 = vrot.slane %v2696_v8, 5  ;;  %v2702_v52 = vrot.slane %v2700_v1, 4  ;;  %v7270_v51 = vpop.f32.mrf.mxu1  ;;  %v6068_v1 = vld [vmem:[#allocation2 + $0x30] sm:$0xff] }
  0xcf   : > { %1564 = vmatmul.bf16.gmra.mxu0 %v1464_v19  ;;  %v2675_v36 = vsel %vm6686_vm10, %v2670_v54, %v2674_v50  ;;  %v1937_v19 = vrot.slane %v7214_v57, 5  ;;  %v1940_v3 = vrot.slane %v7216_v27, 5  ;;  %v2706_v9 = vshll.u32 %v2598_v35, 16  ;;  %v2599_v27 = vld [vmem:[#allocation2 + $0x30] sm:$0xf] }
  0xd0   : > { %v2685_v17 = vsel %vm6686_vm10, %v2680_v4, %v2684_v18  ;;  %v3041_v24 = vunpack.c.l.b16 %v2675_v36  ;;  %v2693_v62 = vor.u32 %v2692_v23, %v2689_v55  ;;  %v2703_v43 = vor.u32 %v2702_v52, %v2698_v16  ;;  %v6415_v4 = vld [vmem:[#allocation2 + $0x38] sm:$0x1]  ;;  %v6181_v52 = vld [vmem:[%s8107_s3 + $0x228] sm:$0xff]  ;;  %v2603_v35 = vld [vmem:[#allocation2 + $0x40] sm:$0xf] }
  0xd1   : > { %1787 = vmatmul.bf16.gmra.mxu1 %v6065_v21  ;;  %v1866_v21 = vld [vmem:[#allocation2 + $0x24] sm:$0xe]  ;;  %v1939_v58 = vrot.slane %v1937_v19, 4  ;;  %v2708_v30 = vrot.slane %v2706_v9, 5  ;;  %v2714_v14 = vshll.u32 %v2599_v27, 16  ;;  %v2720_v38 = vshll.u32 %v2600_v32, 16  ;;  %5002 = vmatpush.bf16.msra.mxu0 %v6181_v52 }
  0xd2   : > { %v5551_v61 = vrot.slane %v1866_v21, 9  ;;  %v2704_v28 = vrot.slane %v2703_v43, 4  ;;  %v2724_v50 = vshrl.u32 %v2600_v32, 16  ;;  %v1944_v12 = vrot.slane %v6414_v53, 5  ;;  %v2602_v21 = vld [vmem:[#allocation2 + $0x3c] sm:$0xf] }
  0xd3   : > { %2477 = vmatmul.bf16.vlgmr.msrb.gmra.mxu3 %v6104_v13  ;;  %v3042_v13 = vunpack.c.l.b16 %v2685_v17  ;;  %v1941_v60 = vsel %vm7193_vm13, %v1939_v58, %v1940_v3  ;;  %v2722_v59 = vrot.slane %v2720_v38, 5  ;;  %v1947_v18 = vrot.slane %v6415_v4, 5  ;;  %v2604_v53 = vld [vmem:[#allocation2 + $0x44] sm:$0x1] }
  0xd4   : > { %v1938_v57 = vsel %vm7193_vm13, %v5551_v61, %v1937_v19  ;;  %v2050_v20 = vunpack.c.l.b16 %v1941_v60  ;;  %v2709_v41 = vsel %vm6686_vm10, %v2704_v28, %v2708_v30  ;;  %v2726_v63 = vrot.slane %v2724_v50, 4  ;;  %v6107_v19 = vld [vmem:[#allocation2 + $0x30] sm:$0xff] }
  0xd5   : > { %v3072_v25 = vpack.c.b16 %v3042_v13, %v3041_v24  ;;  %v2049_v48 = vunpack.c.l.b16 %v1938_v57  ;;  %v3044_v56 = vunpack.c.l.b16 %v2709_v41  ;;  %v1946_v54 = vrot.slane %v1944_v12, 4  ;;  %v6173_v24 = vld [vmem:[%s8107_s3 + $0x1e8] sm:$0xff]  ;;  %v6417_v41 = vld [vmem:[#allocation2 + $0x44] sm:$0x1] }
  0xd6   : > { %v2730_v34 = vshll.u32 %v2601_v0, 16  ;;  %v2727_v8 = vor.u32 %v2726_v63, %v2722_v59  ;;  %4576 = vmatpush.bf16.msra.mxu3 %v6173_v24  ;;  %v2738_v43 = vshll.u32 %v2602_v21, 16  ;;  %v2744_v57 = vshll.u32 %v2603_v35, 16  ;;  %v6069_v0 = vld [vmem:[#allocation2 + $0x3c] sm:$0xff] }
  0xd7   : > { %2168 = vmatmul.bf16.gmra.mxu2 %v2076_v26  ;;  %v2694_v26 = vrot.slane %v2693_v62, 4  ;;  %v2078_v33 = vpack.c.b16 %v2050_v20, %v2049_v48  ;;  %v1948_v17 = vsel %vm7193_vm13, %v1946_v54, %v1947_v18  ;;  %v7287_v62 = vpop.f32.mrf.mxu1  ;;  %v1868_v20 = vld [vmem:[#allocation2 + $0x3c] sm:$0xe]  ;;  %v1954_v50 = vrot.slane %v6417_v41, 5  ;;  %v7303_v18 = vpop.f32.mrf.mxu0  ;;  %v6164_v24 = vld [vmem:[%s8107_s3 + $0x1a0] sm:$0xff] }
  0xd8   : > { %v2052_v23 = vunpack.c.l.b16 %v1948_v17  ;;  %v2728_v58 = vrot.slane %v2727_v8, 4  ;;  %v2732_v3 = vrot.slane %v2730_v34, 5  ;;  %v2740_v30 = vrot.slane %v2738_v43, 5  ;;  %v2606_v8 = vld [vmem:[#allocation2 + $0x4c] sm:$0xf]  ;;  %3895 = vmatpush.bf16.msra.mxu2 %v6164_v24 }
  0xd9   : > { %v2699_v29 = vsel %vm6686_vm10, %v2694_v26, %v2698_v16  ;;  %v6141_v16 = vld [vmem:[%s8107_s3 + $0x168] sm:$0xff]  ;;  %v2748_v26 = vshrl.u32 %v2603_v35, 16  ;;  %v5553_v38 = vrot.slane %v1868_v20, 9  ;;  %v6419_v20 = vld [vmem:[#allocation2 + $0x50] sm:$0x1] }
  0xda   : > { %v3043_v10 = vunpack.c.l.b16 %v2699_v29  ;;  %3579 = vmatpush.bf16.msra.mxu1 %v6141_v16  ;;  %v2746_v29 = vrot.slane %v2744_v57, 5  ;;  %v1869_v35 = vld [vmem:[#allocation2 + $0x48] sm:$0xe] }
  0xdc   : > { %v3073_v5 = vpack.c.b16 %v3044_v56, %v3043_v10 }
  0xdf   : > { %3159 = vmatmul.bf16.vlgmr.msrb.gmra.mxu0 %v3071_v49  ;;  %v1867_v49 = vld [vmem:[#allocation2 + $0x30] sm:$0xe] }
  0xe0   : > { %v5552_v42 = vrot.slane %v1867_v49, 9  ;;  %v7279_v13 = vpop.f32.mrf.mxu2 }
  0xe1   : > { %1792 = vmatmul.bf16.gmra.mxu1 %v6066_v6 }
  0xe2   : > { %v1945_v36 = vsel %vm7193_vm13, %v5552_v42, %v1944_v12  ;;  %v6108_v42 = vld [vmem:[#allocation2 + $0x3c] sm:$0xff] }
  0xe3   : > { %2482 = vmatmul.bf16.gmra.mxu3 %v6105_v15  ;;  %v2716_v15 = vrot.slane %v2714_v14, 5  ;;  %v2051_v55 = vunpack.c.l.b16 %v1945_v36  ;;  %v7295_v14 = vpop.f32.mrf.mxu1  ;;  %v7297_v49 = vpop.f32.mrf.mxu3 }
  0xe5   : > { %v2079_v9 = vpack.c.b16 %v2052_v23, %v2051_v55  ;;  %v2768_v23 = vshll.u32 %v2606_v8, 16 }
  0xe7   : > { %2173 = vmatmul.bf16.gmra.mxu2 %v2077_v37  ;;  %v2711_v37 = vshrl.u32 %v2599_v27, 16 }
  0xe9   : > { %v2713_v6 = vrot.slane %v2711_v37, 4  ;;  %v7293_v37 = vpop.f32.mrf.mxu2 }
  0xeb   : > { %v2717_v7 = vor.u32 %v2716_v15, %v2713_v6  ;;  %v2754_v6 = vshll.u32 %v2604_v53, 16  ;;  %v7305_v36 = vpop.f32.mrf.mxu1  ;;  %v7316_v52 = vpop.f32.mrf.mxu3  ;;  %v6070_v53 = vld [vmem:[#allocation2 + $0x48] sm:$0xff] }
  0xed   : > { %v2718_v61 = vrot.slane %v2717_v7, 4  ;;  %v2756_v34 = vrot.slane %v2754_v6, 5  ;;  %v2605_v7 = vld [vmem:[#allocation2 + $0x48] sm:$0xf] }
  0xee   : > { %v2762_v55 = vshll.u32 %v2605_v7, 16 }
  0xef   : > { %3164 = vmatmul.bf16.gmra.mxu0 %v3072_v25  ;;  %v2735_v25 = vshrl.u32 %v2602_v21, 16  ;;  %v2723_v60 = vsel %vm6686_vm10, %v2718_v61, %v2722_v59  ;;  %v2759_v21 = vshrl.u32 %v2605_v7, 16  ;;  %v2772_v61 = vshrl.u32 %v2606_v8, 16 }
  0xf0   : > { %v3045_v27 = vunpack.c.l.b16 %v2723_v60  ;;  %v2764_v57 = vrot.slane %v2762_v55, 5  ;;  %v2770_v60 = vrot.slane %v2768_v23, 5 }
  0xf1   : > { %1797 = vmatmul.bf16.gmra.mxu1 %v6067_v2  ;;  %v2733_v2 = vsel %vm6686_vm10, %v2728_v58, %v2732_v3  ;;  %v2737_v28 = vrot.slane %v2735_v25, 4  ;;  %v6418_v58 = vld [vmem:[#allocation2 + $0x4c] sm:$0xf] }
  0xf2   : > { %v3046_v32 = vunpack.c.l.b16 %v2733_v2  ;;  %v1958_v3 = vrot.slane %v6418_v58, 5  ;;  %v2607_v2 = vld [vmem:[#allocation2 + $0x50] sm:$0x1] }
  0xf3   : > { %2487 = vmatmul.bf16.gmra.mxu3 %v6106_v22  ;;  %v6416_v22 = vld [vmem:[#allocation2 + $0x40] sm:$0xf]  ;;  %v2741_v12 = vor.u32 %v2740_v30, %v2737_v28  ;;  %v1961_v28 = vrot.slane %v6419_v20, 5  ;;  %v7318_v30 = vpop.f32.mrf.mxu0 }
  0xf4   : > { %v1951_v48 = vrot.slane %v6416_v22, 5  ;;  %v3074_v10 = vpack.c.b16 %v3046_v32, %v3045_v27  ;;  %v5554_v22 = vrot.slane %v1869_v35, 9 }
  0xf5   : > { %v2742_v63 = vrot.slane %v2741_v12, 4  ;;  %v6109_v12 = vld [vmem:[#allocation2 + $0x48] sm:$0xff] }
  0xf6   : > { %v1953_v39 = vrot.slane %v1951_v48, 4  ;;  %v1952_v15 = vsel %vm7193_vm13, %v5553_v38, %v1951_v48  ;;  %v1960_v48 = vrot.slane %v1958_v3, 4  ;;  %v1959_v41 = vsel %vm7193_vm13, %v5554_v22, %v1958_v3 }
  0xf7   : > { %2178 = vmatmul.bf16.gmra.mxu2 %v2078_v33  ;;  %v2750_v33 = vrot.slane %v2748_v26, 4  ;;  %v2053_v54 = vunpack.c.l.b16 %v1952_v15  ;;  %v2747_v17 = vsel %vm6686_vm10, %v2742_v63, %v2746_v29  ;;  %v2774_v26 = vrot.slane %v2772_v61, 4  ;;  %v6180_v63 = vld [vmem:[%s8107_s3 + $0x220] sm:$0xff]  ;;  %v1870_v61 = vld [vmem:[#allocation2 + $0x54] sm:$0xe] }
  0xf8   : > { %v1955_v59 = vsel %vm7193_vm13, %v1953_v39, %v1954_v50  ;;  %v3047_v25 = vunpack.c.l.b16 %v2747_v17  ;;  %v1962_v50 = vsel %vm7193_vm13, %v1960_v48, %v1961_v28  ;;  %v2055_v6 = vunpack.c.l.b16 %v1959_v41  ;;  %5003 = vmatpush.bf16.msra.mxu0 %v6180_v63  ;;  %v2610_v48 = vld [vmem:[#allocation2 + $0x5c] sm:$0x1]  ;;  %v2612_v63 = vld [vmem:[#allocation2 + $0x64] sm:$0xf] }
  0xf9   : > { %v2751_v56 = vor.u32 %v2750_v33, %v2746_v29  ;;  %v2054_v4 = vunpack.c.l.b16 %v1955_v59  ;;  %v2778_v29 = vshll.u32 %v2607_v2, 16  ;;  %v2775_v38 = vor.u32 %v2774_v26, %v2770_v60  ;;  %v6172_v59 = vld [vmem:[%s8107_s3 + $0x1e0] sm:$0xff] }
  0xfa   : > { %v2056_v15 = vunpack.c.l.b16 %v1962_v50  ;;  %4577 = vmatpush.bf16.msra.mxu3 %v6172_v59  ;;  %v5555_v2 = vrot.slane %v1870_v61, 9  ;;  %v1968_v22 = vrot.slane %v7131_v11, 5 }
  0xfc   : > { %v2081_v8 = vpack.c.b16 %v2056_v15, %v2055_v6 }
  0xff   : > { %3169 = vmatmul.bf16.gmra.mxu0 %v3073_v5  ;;  %v2752_v5 = vrot.slane %v2751_v56, 4  ;;  %v2608_v56 = vld [vmem:[#allocation2 + $0x54] sm:$0xf] }
 0x100   : > { %v2786_v7 = vshll.u32 %v2608_v56, 16 }
 0x101   : > { %1802 = vmatmul.bf16.gmra.mxu1 %v6068_v1  ;;  %v7309_v1 = vpop.f32.mrf.mxu2  ;;  %v2757_v16 = vsel %vm6686_vm10, %v2752_v5, %v2756_v34  ;;  %v2609_v5 = vld [vmem:[#allocation2 + $0x58] sm:$0xf]  ;;  %v2783_v34 = vshrl.u32 %v2608_v56, 16 }
 0x102   : > { %v3048_v43 = vunpack.c.l.b16 %v2757_v16  ;;  %v2792_v17 = vshll.u32 %v2609_v5, 16  ;;  %v2796_v23 = vshrl.u32 %v2609_v5, 16  ;;  %v1965_v16 = vrot.slane %v7128_v31, 5 }
 0x103   : > { %2492 = vmatmul.bf16.gmra.mxu3 %v6107_v19  ;;  %v2080_v19 = vpack.c.b16 %v2054_v4, %v2053_v54  ;;  %v2776_v54 = vrot.slane %v2775_v38, 4  ;;  %v2780_v4 = vrot.slane %v2778_v29, 5  ;;  %v2785_v58 = vrot.slane %v2783_v34, 4  ;;  %v6071_v38 = vld [vmem:[#allocation2 + $0x54] sm:$0xff] }
 0x104   : > { %v3075_v32 = vpack.c.b16 %v3048_v43, %v3047_v25  ;;  %v2788_v3 = vrot.slane %v2786_v7, 5  ;;  %v1967_v26 = vrot.slane %v1965_v16, 4  ;;  %v1966_v29 = vsel %vm7193_vm13, %v5555_v2, %v1965_v16 }
 0x105   : > { %v7320_v27 = vpop.f32.mrf.mxu1  ;;  %v2781_v55 = vsel %vm6686_vm10, %v2776_v54, %v2780_v4  ;;  %v2057_v11 = vunpack.c.l.b16 %v1966_v29  ;;  %v2816_v7 = vshll.u32 %v2612_v63, 16 }
 0x106   : > { %v3050_v43 = vunpack.c.l.b16 %v2781_v55  ;;  %v2789_v20 = vor.u32 %v2788_v3, %v2785_v58 }
 0x107   : > { %2183 = vmatmul.bf16.gmra.mxu2 %v2079_v9  ;;  %v2761_v9 = vrot.slane %v2759_v21, 4 }
 0x108   : > { %v2790_v50 = vrot.slane %v2789_v20, 4  ;;  %v2613_v20 = vld [vmem:[#allocation2 + $0x68] sm:$0x1] }
 0x109   : > { %v2765_v33 = vor.u32 %v2764_v57, %v2761_v9  ;;  %v7322_v39 = vpop.f32.mrf.mxu2  ;;  %v2794_v9 = vrot.slane %v2792_v17, 5  ;;  %v2820_v17 = vshrl.u32 %v2612_v63, 16 }
 0x10d   : > { %v7345_v24 = vpop.f32.mrf.mxu1 }
 0x10f   : > { %3174 = vmatmul.bf16.gmra.mxu0 %v3074_v10  ;;  %v7328_v10 = vpop.f32.mrf.mxu3 }
 0x111   : > { %1807 = vmatmul.bf16.gmra.mxu1 %v6069_v0  ;;  %v6140_v0 = vld [vmem:[%s8107_s3 + $0x160] sm:$0xff] }
 0x112   : > { %3580 = vmatpush.bf16.msra.mxu1 %v6140_v0  ;;  %v7348_v35 = vpop.f32.mrf.mxu2  ;;  %v2611_v0 = vld [vmem:[#allocation2 + $0x60] sm:$0xf] }
 0x113   : > { %2497 = vmatmul.bf16.gmra.mxu3 %v6108_v42  ;;  %v2766_v42 = vrot.slane %v2765_v33, 4  ;;  %v1969_v33 = vsel %vm7193_vm13, %v1967_v26, %v1968_v22  ;;  %v2807_v5 = vshrl.u32 %v2611_v0, 16  ;;  %v2810_v34 = vshll.u32 %v2611_v0, 16  ;;  %v6421_v22 = vld [vmem:[#allocation2 + $0x68] sm:$0x1] }
 0x114   : > { %v2058_v56 = vunpack.c.l.b16 %v1969_v33  ;;  %v2614_v0 = vld [vmem:[#allocation2 + $0x6c] sm:$0xf] }
 0x115   : > { %v2771_v21 = vsel %vm6686_vm10, %v2766_v42, %v2770_v60  ;;  %v2798_v60 = vrot.slane %v2796_v23, 4  ;;  %v2795_v42 = vsel %vm6686_vm10, %v2790_v50, %v2794_v9  ;;  %v1871_v23 = vld [vmem:[#allocation2 + $0x60] sm:$0xe]  ;;  %v2809_v3 = vrot.slane %v2807_v5, 4  ;;  %v2615_v5 = vld [vmem:[#allocation2 + $0x70] sm:$0xf] }
 0x116   : > { %v3049_v25 = vunpack.c.l.b16 %v2771_v21  ;;  %v2082_v4 = vpack.c.b16 %v2058_v56, %v2057_v11  ;;  %v6420_v21 = vld [vmem:[#allocation2 + $0x64] sm:$0xf]  ;;  %v3051_v16 = vunpack.c.l.b16 %v2795_v42  ;;  %v5556_v2 = vrot.slane %v1871_v23, 9  ;;  %v6163_v11 = vld [vmem:[%s8107_s3 + $0x198] sm:$0xff] }
 0x117   : > { %2188 = vmatmul.bf16.gmra.mxu2 %v2080_v19  ;;  %v7339_v19 = vpop.f32.mrf.mxu0  ;;  %v7350_v57 = vpop.f32.mrf.mxu3  ;;  %v2799_v31 = vor.u32 %v2798_v60, %v2794_v9  ;;  %v1972_v55 = vrot.slane %v6420_v21, 5  ;;  %v2822_v60 = vrot.slane %v2820_v17, 4  ;;  %v6072_v56 = vld [vmem:[#allocation2 + $0x60] sm:$0xff] }
 0x118   : > { %v3076_v28 = vpack.c.b16 %v3050_v43, %v3049_v25  ;;  %v2812_v25 = vrot.slane %v2810_v34, 5  ;;  %v2818_v43 = vrot.slane %v2816_v7, 5  ;;  %3896 = vmatpush.bf16.msra.mxu2 %v6163_v11  ;;  %v6171_v34 = vld [vmem:[%s8107_s3 + $0x1d8] sm:$0xff] }
 0x119   : > { %v2800_v6 = vrot.slane %v2799_v31, 4  ;;  %v1974_v26 = vrot.slane %v1972_v55, 4  ;;  %v1973_v50 = vsel %vm7193_vm13, %v5556_v2, %v1972_v55  ;;  %v6139_v7 = vld [vmem:[%s8107_s3 + $0x158] sm:$0xff]  ;;  %4578 = vmatpush.bf16.msra.mxu3 %v6171_v34 }
 0x11a   : > { %v7361_v59 = vpop.f32.mrf.mxu2  ;;  %v2823_v33 = vor.u32 %v2822_v60, %v2818_v43  ;;  %v2059_v42 = vunpack.c.l.b16 %v1973_v50  ;;  %3581 = vmatpush.bf16.msra.mxu1 %v6139_v7 }
 0x11c   : > { %v2824_v17 = vrot.slane %v2823_v33, 4 }
 0x11f   : > { %3179 = vmatmul.bf16.gmra.mxu0 %v3075_v32  ;;  %v2802_v32 = vshll.u32 %v2610_v48, 16  ;;  %v7357_v41 = vpop.f32.mrf.mxu0  ;;  %v7365_v54 = vpop.f32.mrf.mxu3  ;;  %v1975_v48 = vrot.slane %v6421_v22, 5  ;;  %v6422_v22 = vld [vmem:[#allocation2 + $0x70] sm:$0xf] }
 0x121   : > { %1812 = vmatmul.bf16.gmra.mxu1 %v6070_v53  ;;  %v2804_v15 = vrot.slane %v2802_v32, 5  ;;  %v2813_v32 = vor.u32 %v2812_v25, %v2809_v3  ;;  %v2844_v3 = vshrl.u32 %v2615_v5, 16 }
 0x123   : > { %2502 = vmatmul.bf16.gmra.mxu3 %v6109_v12  ;;  %v6110_v12 = vld [vmem:[#allocation2 + $0x54] sm:$0xff]  ;;  %v2846_v50 = vrot.slane %v2844_v3, 4 }
 0x127   : > { %2193 = vmatmul.bf16.gmra.mxu2 %v2081_v8  ;;  %v2805_v8 = vsel %vm6686_vm10, %v2800_v6, %v2804_v15  ;;  %v7371_v9 = vpop.f32.mrf.mxu0  ;;  %v7375_v29 = vpop.f32.mrf.mxu3  ;;  %v6111_v6 = vld [vmem:[#allocation2 + $0x60] sm:$0xff] }
 0x128   : > { %v3052_v58 = vunpack.c.l.b16 %v2805_v8  ;;  %v2814_v8 = vrot.slane %v2813_v32, 4 }
 0x12a   : > { %v3077_v31 = vpack.c.b16 %v3052_v58, %v3051_v16  ;;  %v2834_v16 = vshll.u32 %v2614_v0, 16  ;;  %v2840_v58 = vshll.u32 %v2615_v5, 16  ;;  %v2819_v60 = vsel %vm6686_vm10, %v2814_v8, %v2818_v43 }
 0x12b   : > { %v3053_v11 = vunpack.c.l.b16 %v2819_v60 }
 0x12c   : > { %v2836_v33 = vrot.slane %v2834_v16, 5 }
 0x12e   : > { %v7359_v53 = vpop.f32.mrf.mxu1 }
 0x12f   : > { %3184 = vmatmul.bf16.gmra.mxu0 %v3076_v28  ;;  %v7391_v55 = vpop.f32.mrf.mxu0 }
 0x131   : > { %1817 = vmatmul.bf16.gmra.mxu1 %v6071_v38  ;;  %v2826_v38 = vshll.u32 %v2613_v20, 16  ;;  %v1872_v20 = vld [vmem:[#allocation2 + $0x6c] sm:$0xe] }
 0x133   : > { %2507 = vmatmul.bf16.gmra.mxu3 %v6110_v12  ;;  %v1976_v12 = vsel %vm7193_vm13, %v1974_v26, %v1975_v48  ;;  %v2828_v21 = vrot.slane %v2826_v38, 5  ;;  %v6179_v26 = vld [vmem:[%s8107_s3 + $0x218] sm:$0xff]  ;;  %v1979_v48 = vrot.slane %v6422_v22, 5  ;;  %v2842_v38 = vrot.slane %v2840_v58, 5  ;;  %v6073_v58 = vld [vmem:[#allocation2 + $0x6c] sm:$0xff] }
 0x134   : > { %5004 = vmatpush.bf16.msra.mxu0 %v6179_v26  ;;  %v6112_v22 = vld [vmem:[#allocation2 + $0x6c] sm:$0xff] }
 0x135   : > { %v2829_v2 = vsel %vm6686_vm10, %v2824_v17, %v2828_v21  ;;  %v2847_v5 = vor.u32 %v2846_v50, %v2842_v38  ;;  %v2618_v50 = vld [vmem:[#allocation2 + $0x7c] sm:$0xf] }
 0x136   : > { %v7369_v61 = vpop.f32.mrf.mxu1  ;;  %v3054_v43 = vunpack.c.l.b16 %v2829_v2 }
 0x137   : > { %2198 = vmatmul.bf16.gmra.mxu2 %v2082_v4  ;;  %v2060_v4 = vunpack.c.l.b16 %v1976_v12  ;;  %v2848_v60 = vrot.slane %v2847_v5, 4  ;;  %v2868_v5 = vshrl.u32 %v2618_v50, 16 }
 0x138   : > { %v3078_v8 = vpack.c.b16 %v3054_v43, %v3053_v11 }
 0x139   : > { %v2083_v25 = vpack.c.b16 %v2060_v4, %v2059_v42 }
 0x13a   : > { %v7373_v28 = vpop.f32.mrf.mxu2 }
 0x13e   : > { %v1783_v15 = vpop.f32.mrf.mxu1 }
 0x13f   : > { %3189 = vmatmul.bf16.gmra.mxu0 %v3077_v31  ;;  %v1784_v63 = vadd.f32 %v1783_v15, %v7303_v18  ;;  %v2831_v18 = vshrl.u32 %v2614_v0, 16  ;;  %v1981_v15 = vrot.slane %v1979_v48, 4  ;;  %v6423_v0 = vld [vmem:[#allocation2 + $0x74] sm:$0x1] }
 0x140   : > { %v1982_v42 = vrot.slane %v6423_v0, 5 }
 0x141   : > { %1822 = vmatmul.bf16.gmra.mxu1 %v6072_v56  ;;  %v2833_v32 = vrot.slane %v2831_v18, 4  ;;  %v2616_v56 = vld [vmem:[#allocation2 + $0x74] sm:$0x1] }
 0x142   : > { %v7393_v23 = vpop.f32.mrf.mxu2  ;;  %v2850_v34 = vshll.u32 %v2616_v56, 16  ;;  %v1983_v16 = vsel %vm7193_vm13, %v1981_v15, %v1982_v42 }
 0x143   : > { %2512 = vmatmul.bf16.gmra.mxu3 %v6111_v6  ;;  %v5557_v6 = vrot.slane %v1872_v20, 9  ;;  %v2837_v4 = vor.u32 %v2836_v33, %v2833_v32  ;;  %v2062_v32 = vunpack.c.l.b16 %v1983_v16  ;;  %v2617_v33 = vld [vmem:[#allocation2 + $0x78] sm:$0xf] }
 0x144   : > { %v2852_v2 = vrot.slane %v2850_v34, 5  ;;  %v2858_v42 = vshll.u32 %v2617_v33, 16  ;;  %v6424_v34 = vld [vmem:[#allocation2 + $0x7c] sm:$0xf] }
 0x145   : > { %v1980_v18 = vsel %vm7193_vm13, %v5557_v6, %v1979_v48  ;;  %v2855_v6 = vshrl.u32 %v2617_v33, 16  ;;  %v2619_v33 = vld [vmem:[#allocation2 + $0x80] sm:$0x1] }
 0x146   : > { %v7402_v31 = vpop.f32.mrf.mxu3  ;;  %v1785_v12 = vpop.f32.mrf.mxu1  ;;  %v2853_v43 = vsel %vm6686_vm10, %v2848_v60, %v2852_v2  ;;  %v2870_v2 = vrot.slane %v2868_v5, 4 }
 0x147   : > { %2203 = vmatmul.bf16.gmra.mxu2 %v2083_v25  ;;  %v2838_v25 = vrot.slane %v2837_v4, 4  ;;  %v1786_v48 = vadd.f32 %v1785_v12, %v7318_v30  ;;  %v1873_v30 = vld [vmem:[#allocation2 + $0x78] sm:$0xe] }
 0x149   : > { %v2843_v11 = vsel %vm6686_vm10, %v2838_v25, %v2842_v38  ;;  %v2860_v25 = vrot.slane %v2858_v42, 5  ;;  %v6074_v42 = vld [vmem:[#allocation2 + $0x78] sm:$0xff] }
 0x14a   : > { %v2164_v7 = vpop.f32.mrf.mxu2  ;;  %v3055_v12 = vunpack.c.l.b16 %v2843_v11 }
 0x14b   : > { %v2244_v17 = vadd.f32 %v2164_v7, %v1784_v63  ;;  %v2061_v63 = vunpack.c.l.b16 %v1980_v18  ;;  %v1986_v7 = vrot.slane %v6424_v34, 5 }
 0x14c   : > { %v7404_v21 = vpop.f32.mrf.mxu0 }
 0x14d   : > { %v2084_v0 = vpack.c.b16 %v2062_v32, %v2061_v63  ;;  %v6425_v63 = vld [vmem:[#allocation2 + $0x80] sm:$0x1] }
 0x14e   : > { %v7410_v3 = vpop.f32.mrf.mxu3  ;;  %v1788_v26 = vpop.f32.mrf.mxu1  ;;  %v1989_v32 = vrot.slane %v6425_v63, 5 }
 0x14f   : > { %8120 = vst [vmem:[#allocation3_spill] sm:$0xff] %v7410_v3  ;;  %3194 = vmatmul.bf16.gmra.mxu0 %v3078_v8  ;;  %v1789_v20 = vadd.f32 %v1788_v26, %v7339_v19  ;;  %v2864_v19 = vshll.u32 %v2618_v50, 16  ;;  %v3056_v8 = vunpack.c.l.b16 %v2853_v43  ;;  %v5558_v26 = vrot.slane %v1873_v30, 9  ;;  %v6113_v30 = vld [vmem:[#allocation2 + $0x78] sm:$0xff] }
 0x150   : > { %v2874_v43 = vshll.u32 %v2619_v33, 16 }
 0x151   : > { %1827 = vmatmul.bf16.gmra.mxu1 %v6073_v58  ;;  %v2857_v58 = vrot.slane %v2855_v6, 4  ;;  %v2866_v60 = vrot.slane %v2864_v19, 5  ;;  %v3079_v50 = vpack.c.b16 %v3056_v8, %v3055_v12 }
 0x152   : > { %v2166_v56 = vpop.f32.mrf.mxu2 }
 0x153   : > { %2517 = vmatmul.bf16.gmra.mxu3 %v6112_v22  ;;  %v2245_v15 = vadd.f32 %v2166_v56, %v1786_v48  ;;  %v1988_v22 = vrot.slane %v1986_v7, 4  ;;  %v2861_v56 = vor.u32 %v2860_v25, %v2857_v58  ;;  %v2871_v11 = vor.u32 %v2870_v2, %v2866_v60  ;;  %v2621_v25 = vld [vmem:[#allocation2 + $0x88] sm:$0xf]  ;;  %v6170_v2 = vld [vmem:[%s8107_s3 + $0x1d0] sm:$0xff] }
 0x154   : > { %v7418_v4 = vpop.f32.mrf.mxu0  ;;  %4579 = vmatpush.bf16.msra.mxu3 %v6170_v2  ;;  %v2888_v33 = vshll.u32 %v2621_v25, 16 }
 0x155   : > { %v1990_v6 = vsel %vm7193_vm13, %v1988_v22, %v1989_v32  ;;  %v2876_v22 = vrot.slane %v2874_v43, 5  ;;  %v1874_v43 = vld [vmem:[#allocation2 + $0x84] sm:$0xe] }
 0x156   : > { %v2478_v18 = vpop.f32.mrf.mxu3  ;;  %v1790_v38 = vpop.f32.mrf.mxu1  ;;  %v2064_v58 = vunpack.c.l.b16 %v1990_v6 }
 0x157   : > { %v2558_v16 = vadd.f32 %v2478_v18, %v2244_v17  ;;  %2208 = vmatmul.bf16.gmra.mxu2 %v2084_v0  ;;  %v1987_v17 = vsel %vm7193_vm13, %v5558_v26, %v1986_v7  ;;  %v6162_v0 = vld [vmem:[%s8107_s3 + $0x190] sm:$0xff]  ;;  %v2872_v26 = vrot.slane %v2871_v11, 4  ;;  %v1791_v63 = vadd.f32 %v1790_v38, %v7357_v41  ;;  %v6426_v38 = vld [vmem:[#allocation2 + $0x88] sm:$0xf] }
 0x158   : > { %3897 = vmatpush.bf16.msra.mxu2 %v6162_v0  ;;  %v2063_v7 = vunpack.c.l.b16 %v1987_v17  ;;  %v6178_v41 = vld [vmem:[%s8107_s3 + $0x210] sm:$0xff]  ;;  %v1993_v11 = vrot.slane %v6426_v38, 5 }
 0x159   : > { %5005 = vmatpush.bf16.msra.mxu0 %v6178_v41 }
 0x15a   : > { %v2169_v48 = vpop.f32.mrf.mxu2  ;;  %v2085_v17 = vpack.c.b16 %v2064_v58, %v2063_v7 }
 0x15b   : > { %v2246_v34 = vadd.f32 %v2169_v48, %v1789_v20  ;;  %v2620_v20 = vld [vmem:[#allocation2 + $0x84] sm:$0xf]  ;;  %v2892_v48 = vshrl.u32 %v2621_v25, 16 }
 0x15c   : > { %v3160_v3 = vpop.f32.mrf.mxu0  ;;  %v2882_v32 = vshll.u32 %v2620_v20, 16 }
 0x15d   : > { %v7427_v19 = vadd.f32 %v3160_v3, %v2558_v16  ;;  %v6138_v3 = vld [vmem:[%s8107_s3 + $0x150] sm:$0xff]  ;;  %v2862_v16 = vrot.slane %v2861_v56, 4  ;;  %v2877_v56 = vsel %vm6686_vm10, %v2872_v26, %v2876_v22  ;;  %v2894_v7 = vrot.slane %v2892_v48, 4 }
 0x15e   : > { %v2480_v5 = vpop.f32.mrf.mxu3  ;;  %v1793_v12 = vpop.f32.mrf.mxu1  ;;  %3582 = vmatpush.bf16.msra.mxu1 %v6138_v3  ;;  %v3058_v25 = vunpack.c.l.b16 %v2877_v56  ;;  %v2622_v3 = vld [vmem:[#allocation2 + $0x8c] sm:$0x1]  ;;  %v5559_v26 = vrot.slane %v1874_v43, 9  ;;  %v1995_v22 = vrot.slane %v1993_v11, 4 }
 0x15f   : > { %3199 = vmatmul.bf16.gmra.mxu0 %v3079_v50  ;;  %v2559_v8 = vadd.f32 %v2480_v5, %v2245_v15  ;;  %v1794_v18 = vadd.f32 %v1793_v12, %v7371_v9  ;;  %v2879_v9 = vshrl.u32 %v2620_v20, 16  ;;  %v2867_v0 = vsel %vm6686_vm10, %v2862_v16, %v2866_v60 }
 0x160   : > { %v2884_v12 = vrot.slane %v2882_v32, 5  ;;  %v2890_v20 = vrot.slane %v2888_v33, 5  ;;  %v3057_v60 = vunpack.c.l.b16 %v2867_v0  ;;  %v2898_v38 = vshll.u32 %v2622_v3, 16 }
 0x161   : > { %1832 = vmatmul.bf16.gmra.mxu1 %v6074_v42  ;;  %v1994_v0 = vsel %vm7193_vm13, %v5559_v26, %v1993_v11  ;;  %v2624_v11 = vld [vmem:[#allocation2 + $0x94] sm:$0xf] }
 0x162   : > { %v2171_v15 = vpop.f32.mrf.mxu2  ;;  %v3080_v32 = vpack.c.b16 %v3058_v25, %v3057_v60  ;;  %v2623_v25 = vld [vmem:[#allocation2 + $0x90] sm:$0xf] }
 0x163   : > { %2522 = vmatmul.bf16.gmra.mxu3 %v6113_v30  ;;  %v2247_v50 = vadd.f32 %v2171_v15, %v1791_v63  ;;  %v2881_v30 = vrot.slane %v2879_v9, 4  ;;  %v6427_v63 = vld [vmem:[#allocation2 + $0x8c] sm:$0x1] }
 0x164   : > { %v3162_v6 = vpop.f32.mrf.mxu0  ;;  %v1996_v15 = vrot.slane %v6427_v63, 5 }
 0x165   : > { %v7444_v42 = vadd.f32 %v3162_v6, %v2559_v8  ;;  %v2885_v8 = vor.u32 %v2884_v12, %v2881_v30  ;;  %v2895_v6 = vor.u32 %v2894_v7, %v2890_v20  ;;  %v6114_v7 = vld [vmem:[#allocation2 + $0x84] sm:$0xff] }
 0x166   : > { %v2483_v5 = vpop.f32.mrf.mxu3  ;;  %v1795_v58 = vpop.f32.mrf.mxu1 }
 0x167   : > { %v2560_v2 = vadd.f32 %v2483_v5, %v2246_v34  ;;  %2213 = vmatmul.bf16.gmra.mxu2 %v2085_v17  ;;  %v1796_v16 = vadd.f32 %v1795_v58, %v7391_v55  ;;  %v1997_v34 = vsel %vm7193_vm13, %v1995_v22, %v1996_v15  ;;  %v6075_v17 = vld [vmem:[#allocation2 + $0x84] sm:$0xff]  ;;  %v2886_v41 = vrot.slane %v2885_v8, 4 }
 0x168   : > { %v2896_v43 = vrot.slane %v2895_v6, 4  ;;  %v2900_v5 = vrot.slane %v2898_v38, 5  ;;  %v2065_v58 = vunpack.c.l.b16 %v1994_v0  ;;  %v2066_v60 = vunpack.c.l.b16 %v1997_v34  ;;  %v6428_v38 = vld [vmem:[#allocation2 + $0x94] sm:$0xf] }
 0x169   : > { %v2891_v3 = vsel %vm6686_vm10, %v2886_v41, %v2890_v20  ;;  %v2903_v22 = vshrl.u32 %v2623_v25, 16  ;;  %v2912_v8 = vshll.u32 %v2624_v11, 16 }
 0x16a   : > { %v2174_v9 = vpop.f32.mrf.mxu2  ;;  %v2086_v15 = vpack.c.b16 %v2066_v60, %v2065_v58  ;;  %v3059_v0 = vunpack.c.l.b16 %v2891_v3  ;;  %v6429_v60 = vld [vmem:[#allocation2 + $0x98] sm:$0x1] }
 0x16b   : > { %v2248_v33 = vadd.f32 %v2174_v9, %v1794_v18  ;;  %v2000_v9 = vrot.slane %v6428_v38, 5 }
 0x16c   : > { %v3165_v48 = vpop.f32.mrf.mxu0 }
 0x16d   : > { %v7451_v56 = vadd.f32 %v3165_v48, %v2560_v2  ;;  %v2901_v2 = vsel %vm6686_vm10, %v2896_v43, %v2900_v5  ;;  %v2914_v5 = vrot.slane %v2912_v8, 5  ;;  %v2002_v58 = vrot.slane %v2000_v9, 4  ;;  %v2626_v8 = vld [vmem:[#allocation2 + $0x9c] sm:$0xf] }
 0x16e   : > { %v2485_v55 = vpop.f32.mrf.mxu3  ;;  %v1798_v30 = vpop.f32.mrf.mxu1  ;;  %v3060_v34 = vunpack.c.l.b16 %v2901_v2 }
 0x16f   : > { %3204 = vmatmul.bf16.gmra.mxu0 %v3080_v32  ;;  %v2561_v12 = vadd.f32 %v2485_v55, %v2247_v50  ;;  %v1799_v18 = vadd.f32 %v1798_v30, %v7404_v21  ;;  %v2906_v50 = vshll.u32 %v2623_v25, 16  ;;  %v2916_v21 = vshrl.u32 %v2624_v11, 16  ;;  %v1875_v32 = vld [vmem:[#allocation2 + $0x90] sm:$0xe]  ;;  %v2625_v11 = vld [vmem:[#allocation2 + $0x98] sm:$0x1] }
 0x170   : > { %v2003_v25 = vrot.slane %v6429_v60, 5  ;;  %v2930_v60 = vshll.u32 %v2626_v8, 16 }
 0x171   : > { %1837 = vmatmul.bf16.gmra.mxu1 %v6075_v17  ;;  %v2905_v17 = vrot.slane %v2903_v22, 4  ;;  %v2908_v43 = vrot.slane %v2906_v50, 5  ;;  %v2918_v30 = vrot.slane %v2916_v21, 4  ;;  %v2922_v22 = vshll.u32 %v2625_v11, 16  ;;  %v6076_v50 = vld [vmem:[#allocation2 + $0x90] sm:$0xff] }
 0x172   : > { %v2176_v26 = vpop.f32.mrf.mxu2 }
 0x173   : > { %2527 = vmatmul.bf16.gmra.mxu3 %v6114_v7  ;;  %v2249_v63 = vadd.f32 %v2176_v26, %v1796_v16  ;;  %v5560_v7 = vrot.slane %v1875_v32, 9  ;;  %v2919_v38 = vor.u32 %v2918_v30, %v2914_v5 }
 0x174   : > { %v3167_v6 = vpop.f32.mrf.mxu0 }
 0x175   : > { %v7458_v48 = vadd.f32 %v3167_v6, %v2561_v12  ;;  %v3081_v12 = vpack.c.b16 %v3060_v34, %v3059_v0  ;;  %v2909_v6 = vor.u32 %v2908_v43, %v2905_v17  ;;  %v6137_v43 = vld [vmem:[%s8107_s3 + $0x148] sm:$0xff] }
 0x176   : > { %v2488_v20 = vpop.f32.mrf.mxu3  ;;  %v1800_v55 = vpop.f32.mrf.mxu1  ;;  %3583 = vmatpush.bf16.msra.mxu1 %v6137_v43 }
 0x177   : > { %v2562_v41 = vadd.f32 %v2488_v20, %v2248_v33  ;;  %2218 = vmatmul.bf16.gmra.mxu2 %v2086_v15  ;;  %v1801_v16 = vadd.f32 %v1800_v55, %v7418_v4  ;;  %v2001_v33 = vsel %vm7193_vm13, %v5560_v7, %v2000_v9  ;;  %v2004_v15 = vsel %vm7193_vm13, %v2002_v58, %v2003_v25  ;;  %v6161_v4 = vld [vmem:[%s8107_s3 + $0x188] sm:$0xff]  ;;  %v6115_v20 = vld [vmem:[#allocation2 + $0x90] sm:$0xff] }
 0x178   : > { %3898 = vmatpush.bf16.msra.mxu2 %v6161_v4  ;;  %v2067_v17 = vunpack.c.l.b16 %v2001_v33  ;;  %v2068_v9 = vunpack.c.l.b16 %v2004_v15  ;;  %v6169_v55 = vld [vmem:[%s8107_s3 + $0x1c8] sm:$0xff]  ;;  %v2910_v30 = vrot.slane %v2909_v6, 4  ;;  %v2924_v7 = vrot.slane %v2922_v22, 5  ;;  %v6430_v15 = vld [vmem:[#allocation2 + $0xa0] sm:$0xf] }
 0x179   : > { %v2927_v58 = vshrl.u32 %v2626_v8, 16  ;;  %4580 = vmatpush.bf16.msra.mxu3 %v6169_v55  ;;  %v6177_v22 = vld [vmem:[%s8107_s3 + $0x208] sm:$0xff]  ;;  %v2007_v4 = vrot.slane %v6430_v15, 5 }
 0x17a   : > { %v2179_v26 = vpop.f32.mrf.mxu2  ;;  %v2915_v33 = vsel %vm6686_vm10, %v2910_v30, %v2914_v5  ;;  %v2628_v5 = vld [vmem:[#allocation2 + $0xa4] sm:$0x1]  ;;  %5006 = vmatpush.bf16.msra.mxu0 %v6177_v22 }
 0x17b   : > { %v2250_v3 = vadd.f32 %v2179_v26, %v1799_v18  ;;  %v2627_v18 = vld [vmem:[#allocation2 + $0xa0] sm:$0xf] }
 0x17c   : > { %v3170_v2 = vpop.f32.mrf.mxu0  ;;  %v2936_v25 = vshll.u32 %v2627_v18, 16  ;;  %v2940_v11 = vshrl.u32 %v2627_v18, 16 }
 0x17d   : > { %v7468_v21 = vadd.f32 %v3170_v2, %v2562_v41  ;;  %v2920_v41 = vrot.slane %v2919_v38, 4  ;;  %v2929_v38 = vrot.slane %v2927_v58, 4 }
 0x17e   : > { %v2490_v32 = vpop.f32.mrf.mxu3  ;;  %v1803_v0 = vpop.f32.mrf.mxu1  ;;  %v7483_v8 = vrot.slane %v2936_v25, 5 }
 0x17f   : > { %8121 = vst [vmem:[#allocation4_spill] sm:$0xff] %v7468_v21  ;;  %3209 = vmatmul.bf16.gmra.mxu0 %v3081_v12  ;;  %v2563_v34 = vadd.f32 %v2490_v32, %v2249_v63  ;;  %v2087_v12 = vpack.c.b16 %v2068_v9, %v2067_v17  ;;  %v2925_v6 = vsel %vm6686_vm10, %v2920_v41, %v2924_v7  ;;  %v1876_v32 = vld [vmem:[#allocation2 + $0x9c] sm:$0xe]  ;;  %v3061_v9 = vunpack.c.l.b16 %v2915_v33  ;;  %v6431_v7 = vld [vmem:[#allocation2 + $0xa4] sm:$0x1] }
 0x180   : > { %v3062_v55 = vunpack.c.l.b16 %v2925_v6  ;;  %v5561_v30 = vrot.slane %v1876_v32, 9  ;;  %v2009_v41 = vrot.slane %v2007_v4, 4  ;;  %v2010_v58 = vrot.slane %v6431_v7, 5  ;;  %v6077_v32 = vld [vmem:[#allocation2 + $0x9c] sm:$0xff] }
 0x181   : > { %1842 = vmatmul.bf16.gmra.mxu1 %v6076_v50  ;;  %v2932_v50 = vrot.slane %v2930_v60, 5  ;;  %v6342_v60 = vld [vmem:[%s6561_s29 + $0x78] sm:$0xff]   ;;  %v1804_v25 = vadd.f32 %v1803_v0, %v7270_v51  ;;  %v6432_v51 = vld [vmem:[%s8105_s1] ss:$0 sm:$0xff] }
 0x182   : > { %v2181_v63 = vpop.f32.mrf.mxu2  ;;  %v6246_v15 = vunpack.c.l.bf16 %v6342_v60  ;;  %v3082_v21 = vpack.c.b16 %v3062_v55, %v3061_v9  ;;  %v2629_v55 = vld [vmem:[#allocation2 + $0xa8] sm:$0xf] }
 0x183   : > { %2532 = vmatmul.bf16.gmra.mxu3 %v6115_v20  ;;  %v2251_v26 = vadd.f32 %v2181_v63, %v1801_v16  ;;  %v2942_v16 = vrot.slane %v2940_v11, 4  ;;  %v2933_v63 = vor.u32 %v2932_v50, %v2929_v38 }
 0x184   : > { %v3172_v2 = vpop.f32.mrf.mxu0  ;;  %v418_v0 = vmul.f32 %v6432_v51, %v6246_v15 }
 0x185   : > { %v7485_v18 = vadd.f32 %v3172_v2, %v2563_v34  ;;  %v2943_v11 = vor.u32 %v2942_v16, %v7483_v8  ;;  %v2946_v34 = vshll.u32 %v2628_v5, 16  ;;  %v2934_v38 = vrot.slane %v2933_v63, 4 }
 0x186   : > { %v2493_v20 = vpop.f32.mrf.mxu3  ;;  %v1805_v17 = vpop.f32.mrf.mxu1 }
 0x187   : > { %8122 = vst [vmem:[#allocation5_spill] sm:$0xff] %v7485_v18  ;;  %v2564_v43 = vadd.f32 %v2493_v20, %v2250_v3  ;;  %2223 = vmatmul.bf16.gmra.mxu2 %v2087_v12  ;;  %v6247_v18 = vunpack.c.h.bf16 %v6342_v60  ;;  %v2008_v3 = vsel %vm7193_vm13, %v5561_v30, %v2007_v4  ;;  %v2011_v12 = vsel %vm7193_vm13, %v2009_v41, %v2010_v58  ;;  %v6433_v4 = vld [vmem:[%s8106_s2] ss:$0 sm:$0xff] }
 0x188   : > { %v2944_v50 = vrot.slane %v2943_v11, 4  ;;  %v2948_v16 = vrot.slane %v2946_v34, 5  ;;  %v454_v30 = vadd.f32 %v6433_v4, %v418_v0  ;;  %v6116_v58 = vld [vmem:[#allocation2 + $0x9c] sm:$0xff]  ;;  %v2069_v60 = vunpack.c.l.b16 %v2008_v3 }
 0x189   : > { %v419_v6 = vmul.f32 %v6432_v51, %v6247_v18  ;;  %v2070_v18 = vunpack.c.l.b16 %v2011_v12  ;;  %v1806_v34 = vadd.f32 %v1805_v17, %v7287_v62 }
 0x18a   : > { %v2184_v2 = vpop.f32.mrf.mxu2  ;;  %v486_v63 = vmax.f32 %v454_v30, 0.0  ;;  %v2949_v11 = vsel %vm6686_vm10, %v2944_v50, %v2948_v16  ;;  %v1877_v50 = vld [vmem:[#allocation2 + $0xa8] sm:$0xe] }
 0x18b   : > { %v2252_v22 = vadd.f32 %v2184_v2, %v1804_v25  ;;  %v455_v41 = vadd.f32 %v6433_v4, %v419_v6  ;;  %v2630_v25 = vld [vmem:[#allocation2 + $0xac] sm:$0xf]  ;;  %v2951_v2 = vshrl.u32 %v2629_v55, 16  ;;  %v2088_v12 = vpack.c.b16 %v2070_v18, %v2069_v60 }
 0x18c   : > { %v3175_v33 = vpop.f32.mrf.mxu0  ;;  %v518_v0 = vpack.c.bf16 %v486_v63, %v486_v63  ;;  %v6434_v4 = vld [vmem:[#allocation2 + $0xac] sm:$0xf]  ;;  %v5562_v60 = vrot.slane %v1877_v50, 9  ;;  %v6435_v63 = vld [vmem:[#allocation2 + $0xb0] sm:$0x1] }
 0x18d   : > { %v7497_v20 = vadd.f32 %v3175_v33, %v2564_v43  ;;  %v2939_v43 = vsel %vm6686_vm10, %v2934_v38, %v7483_v8  ;;  %v2954_v33 = vshll.u32 %v2629_v55, 16  ;;  %v487_v51 = vmax.f32 %v455_v41, 0.0 }
 0x18e   : > { %v2495_v5 = vpop.f32.mrf.mxu3  ;;  %v1808_v9 = vpop.f32.mrf.mxu1  ;;  %v2014_v8 = vrot.slane %v6434_v4, 5  ;;  %v3064_v38 = vunpack.c.l.b16 %v2949_v11  ;;  %v2953_v30 = vrot.slane %v2951_v2, 4  ;;  %v779_v16 = vshrl.u32 %v518_v0, 16 }
 0x18f   : > { %8123 = vst [vmem:[#allocation6_spill] sm:$0xff] %v7497_v20  ;;  %3214 = vmatmul.bf16.gmra.mxu0 %v3082_v21  ;;  %v2565_v7 = vadd.f32 %v2495_v5, %v2251_v26  ;;  %v2960_v21 = vshll.u32 %v2630_v25, 16  ;;  %v2964_v26 = vshrl.u32 %v2630_v25, 16  ;;  %v3063_v5 = vunpack.c.l.b16 %v2939_v43 }
 0x190   : > { %v2016_v18 = vrot.slane %v2014_v8, 4  ;;  %v2017_v43 = vrot.slane %v6435_v63, 5  ;;  %v781_v11 = vrot.slane %v779_v16, 7  ;;  %v1809_v4 = vadd.f32 %v1808_v9, %v7295_v14  ;;  %v6160_v14 = vld [vmem:[%s8107_s3 + $0x180] sm:$0xff]  ;;  %v958_v16 = vld [vmem:[#allocation2 + $0xc8] sm:$0x1] }
 0x191   : > { %1847 = vmatmul.bf16.gmra.mxu1 %v6077_v32  ;;  %v2956_v32 = vrot.slane %v2954_v33, 5  ;;  %v7510_v55 = vrot.slane %v2960_v21, 5  ;;  %v2966_v25 = vrot.slane %v2964_v26, 4  ;;  %v3083_v2 = vpack.c.b16 %v3064_v38, %v3063_v5  ;;  %3899 = vmatpush.bf16.msra.mxu2 %v6160_v14 }
 0x192   : > { %v2186_v15 = vpop.f32.mrf.mxu2  ;;  %v782_v21 = vshll.u32 %v518_v0, 16  ;;  %v785_v5 = vrot.slane %v781_v11, 4 }
 0x193   : > { %2537 = vmatmul.bf16.gmra.mxu3 %v6116_v58  ;;  %v2253_v3 = vadd.f32 %v2186_v15, %v1806_v34  ;;  %v519_v58 = vpack.c.bf16 %v487_v51, %v487_v51  ;;  %v2631_v15 = vld [vmem:[#allocation2 + $0xb0] sm:$0x1]  ;;  %v2018_v51 = vsel %vm7193_vm13, %v2016_v18, %v2017_v43  ;;  %v2632_v18 = vld [vmem:[#allocation2 + $0xb4] sm:$0xf] }
 0x194   : > { %v3177_v6 = vpop.f32.mrf.mxu0  ;;  %v2970_v26 = vshll.u32 %v2631_v15, 16  ;;  %v784_v9 = vor.u32 %v782_v21, %v781_v11 }
 0x195   : > { %v7508_v62 = vadd.f32 %v3177_v6, %v2565_v7  ;;  %v2957_v7 = vor.u32 %v2956_v32, %v2953_v30  ;;  %v2967_v6 = vor.u32 %v2966_v25, %v7510_v55  ;;  %v790_v0 = vshll.u32 %v519_v58, 16  ;;  %v6078_v30 = vld [vmem:[#allocation2 + $0xa8] sm:$0xff] }
 0x196   : > { %v2498_v17 = vpop.f32.mrf.mxu3  ;;  %v1810_v41 = vpop.f32.mrf.mxu1  ;;  %v6117_v25 = vld [vmem:[#allocation2 + $0xa8] sm:$0xff]  ;;  %v2972_v21 = vrot.slane %v2970_v26, 5 }
 0x197   : > { %8124 = vst [vmem:[#allocation7_spill] sm:$0xff] %v7508_v62  ;;  %v2566_v34 = vadd.f32 %v2498_v17, %v2252_v22  ;;  %2228 = vmatmul.bf16.gmra.mxu2 %v2088_v12  ;;  %v787_v62 = vshrl.u32 %v519_v58, 16  ;;  %v2015_v22 = vsel %vm7193_vm13, %v5562_v60, %v2014_v8  ;;  %v954_v12 = vld [vmem:[#allocation2 + $0xc0] sm:$0xf]  ;;  %v2958_v8 = vrot.slane %v2957_v7, 4 }
 0x198   : > { %v955_v15 = vsel %vm6621_vm6, %v784_v9, %v954_v12  ;;  %v2071_v11 = vunpack.c.l.b16 %v2015_v22  ;;  %v2633_v58 = vld [vmem:[#allocation2 + $0xb8] sm:$0xf]  ;;  %v6136_v7 = vld [vmem:[%s8107_s3 + $0x140] sm:$0xff]  ;;  %v2975_v22 = vshrl.u32 %v2632_v18, 16 }
 0x199   : > { %v789_v38 = vrot.slane %v787_v62, 7  ;;  %v2072_v62 = vunpack.c.l.b16 %v2018_v51  ;;  %956 = vst [vmem:[#allocation2 + $0xc0] sm:$0xf] %v955_v15  ;;  %v2978_v51 = vshll.u32 %v2632_v18, 16  ;;  %v2988_v14 = vshrl.u32 %v2633_v58, 16  ;;  %3584 = vmatpush.bf16.msra.mxu1 %v6136_v7 }
 0x19a   : > { %v2189_v33 = vpop.f32.mrf.mxu2  ;;  %v2963_v46 = vsel %vm6686_vm10, %v2958_v8, %v7510_v55  ;;  %v6436_v9 = vld [vmem:[#allocation2 + $0xb8] sm:$0xf]  ;;  %v2634_v15 = vld [vmem:[#allocation2 + $0xbc] sm:$0x1] }
 0x19b   : > { %v7514_v20 = vadd.f32 %v2189_v33, %v1809_v4  ;;  %v792_v63 = vor.u32 %v790_v0, %v789_v38  ;;  %v794_v43 = vrot.slane %v789_v38, 4  ;;  %v2968_v33 = vrot.slane %v2967_v6, 4 }
 0x19c   : > { %v3180_v50 = vpop.f32.mrf.mxu0  ;;  %v2089_v26 = vpack.c.b16 %v2072_v62, %v2071_v11  ;;  %v2977_v38 = vrot.slane %v2975_v22, 4  ;;  %v2980_v0 = vrot.slane %v2978_v51, 5  ;;  %v2990_v18 = vrot.slane %v2988_v14, 4 }
 0x19d   : > { %v7523_v17 = vadd.f32 %v3180_v50, %v2566_v34  ;;  %v6168_v34 = vld [vmem:[%s8107_s3 + $0x1c0] sm:$0xff]  ;;  %v793_v44 = vsel %vm6613_vm5, %v785_v5, %v792_v63  ;;  %v2984_v50 = vshll.u32 %v2633_v58, 16  ;;  %v2021_v5 = vrot.slane %v6436_v9, 5  ;;  %v6437_v58 = vld [vmem:[#allocation2 + $0xbc] sm:$0x1] }
 0x19e   : > { %v2500_v32 = vpop.f32.mrf.mxu3  ;;  %v1813_v60 = vpop.f32.mrf.mxu1  ;;  %4581 = vmatpush.bf16.msra.mxu3 %v6168_v34  ;;  %957 = vst [vmem:[#allocation2 + $0xc4] sm:$0xf] %v793_v44  ;;  %v3065_v55 = vunpack.c.l.b16 %v2963_v46  ;;  %v2024_v34 = vrot.slane %v6437_v58, 5 }
 0x19f   : > { %3219 = vmatmul.bf16.gmra.mxu0 %v3083_v2  ;;  %v2567_v4 = vadd.f32 %v2500_v32, %v2253_v3  ;;  %v959_v3 = vsel %vm6628_vm7, %v794_v43, %v958_v16  ;;  %v1811_v2 = vadd.f32 %v1810_v41, %v7305_v36  ;;  %v2973_v36 = vsel %vm6686_vm10, %v2968_v33, %v2972_v21  ;;  %v6176_v41 = vld [vmem:[%s8107_s3 + $0x200] sm:$0xff] }
 0x1a0   : > { %960 = vst [vmem:[#allocation2 + $0xc8] sm:$0x1] %v959_v3  ;;  %5007 = vmatpush.bf16.msra.mxu0 %v6176_v41  ;;  %v3066_v8 = vunpack.c.l.b16 %v2973_v36  ;;  %v2023_v62 = vrot.slane %v2021_v5, 4  ;;  %v1814_v7 = vadd.f32 %v1813_v60, %v7320_v27  ;;  %v2981_v33 = vor.u32 %v2980_v0, %v2977_v38  ;;  %v2635_v46 = vld [vmem:[#allocation2 + $0xc0] sm:$0xf]  ;;  %v6118_v41 = vld [vmem:[#allocation2 + $0xb4] sm:$0xff] }
 0x1a1   : > { %1852 = vmatmul.bf16.gmra.mxu1 %v6078_v30  ;;  %v1878_v30 = vld [vmem:[#allocation2 + $0xb4] sm:$0xe]  ;;  %v2994_v21 = vshll.u32 %v2634_v15, 16  ;;  %v3002_v15 = vshll.u32 %v2635_v46, 16 }
 0x1a2   : > { %v2191_v12 = vpop.f32.mrf.mxu2  ;;  %v5563_v11 = vrot.slane %v1878_v30, 9  ;;  %v3084_v3 = vpack.c.b16 %v3066_v8, %v3065_v55  ;;  %v6438_v30 = vld [vmem:[#allocation2 + $0x10] sm:$0xf]  ;;  %v2999_v55 = vshrl.u32 %v2635_v46, 16 }
 0x1a3   : > { %2542 = vmatmul.bf16.gmra.mxu3 %v6117_v25  ;;  %v2255_v6 = vadd.f32 %v2191_v12, %v1811_v2  ;;  %v2986_v25 = vrot.slane %v2984_v50, 5  ;;  %v2982_v12 = vrot.slane %v2981_v33, 4  ;;  %v6079_v50 = vld [vmem:[#allocation2 + $0xb4] sm:$0xff]  ;;  %v2996_v27 = vrot.slane %v2994_v21, 5 }
 0x1a4   : > { %v3182_v40 = vpop.f32.mrf.mxu0  ;;  %v2022_v51 = vsel %vm7193_vm13, %v5563_v11, %v2021_v5  ;;  %v3338_v5 = vrot.slane %v6438_v30, 5  ;;  %v4013_v21 = vld [vmem:[#allocation2 + $0x18] sm:$0xf] }
 0x1a5   : > { %v7546_v16 = vadd.f32 %v3182_v40, %v2567_v4  ;;  %v2991_v4 = vor.u32 %v2990_v18, %v2986_v25  ;;  %v2073_v9 = vunpack.c.l.b16 %v2022_v51  ;;  %v2636_v0 = vld [vmem:[#allocation2 + $0xc4] sm:$0xf] }
 0x1a6   : > { %v2503_v32 = vpop.f32.mrf.mxu3  ;;  %v1815_v63 = vpop.f32.mrf.mxu1  ;;  %v3008_v11 = vshll.u32 %v2636_v0, 16 }
 0x1a7   : > { %v2568_v43 = vadd.f32 %v2503_v32, %v7514_v20  ;;  %2233 = vmatmul.bf16.gmra.mxu2 %v2089_v26  ;;  %v2025_v20 = vsel %vm7193_vm13, %v2023_v62, %v2024_v34  ;;  %v2992_v40 = vrot.slane %v2991_v4, 4  ;;  %v2987_v32 = vsel %vm6686_vm10, %v2982_v12, %v2986_v25  ;;  %v2637_v46 = vld [vmem:[#allocation2 + $0xc8] sm:$0x1] }
 0x1a8   : > { %v2074_v38 = vunpack.c.l.b16 %v2025_v20  ;;  %v1816_v18 = vadd.f32 %v1815_v63, %v7345_v24  ;;  %v3340_v34 = vrot.slane %v3338_v5, 4  ;;  %v3067_v25 = vunpack.c.l.b16 %v2987_v32  ;;  %v3272_v63 = vld [vmem:[#allocation2 + $0xc] sm:$0xe] }
 0x1a9   : > { %v2997_v8 = vsel %vm6686_vm10, %v2992_v40, %v2996_v27  ;;  %v3001_v24 = vrot.slane %v2999_v55, 4  ;;  %v3004_v20 = vrot.slane %v3002_v15, 5  ;;  %v3010_v12 = vrot.slane %v3008_v11, 5 }
 0x1aa   : > { %v2194_v44 = vpop.f32.mrf.mxu2  ;;  %v2090_v58 = vpack.c.b16 %v2074_v38, %v2073_v9  ;;  %v5772_v40 = vrot.slane %v3272_v63, 9  ;;  %v4065_v9 = vshll.u32 %v4013_v21, 16  ;;  %v3018_v15 = vshll.u32 %v2637_v46, 16 }
 0x1ab   : > { %v2256_v2 = vadd.f32 %v2194_v44, %v1814_v7  ;;  %v6439_v7 = vld [vmem:[#allocation2 + $0x14] sm:$0x1]  ;;  %v3068_v44 = vunpack.c.l.b16 %v2997_v8 }
 0x1ac   : > { %v3185_v22 = vpop.f32.mrf.mxu0  ;;  %v3341_v33 = vrot.slane %v6439_v7, 5  ;;  %v3339_v38 = vsel %vm7193_vm13, %v5772_v40, %v3338_v5  ;;  %v4067_v5 = vrot.slane %v4065_v9, 5  ;;  %v3020_v40 = vrot.slane %v3018_v15, 5  ;;  %v3273_v15 = vld [vmem:[#allocation2 + $0x18] sm:$0xe] }
 0x1ad   : > { %v7554_v14 = vadd.f32 %v3185_v22, %v2568_v43  ;;  %v3085_v8 = vpack.c.b16 %v3068_v44, %v3067_v25 }
 0x1ae   : > { %v2505_v26 = vpop.f32.mrf.mxu3  ;;  %v1818_v60 = vpop.f32.mrf.mxu1 }
 0x1af   : > { %3224 = vmatmul.bf16.gmra.mxu0 %v3084_v3  ;;  %v2569_v36 = vadd.f32 %v2505_v26, %v2255_v6  ;;  %v3012_v6 = vshrl.u32 %v2636_v0, 16  ;;  %v7561_v3 = vld [vmem:[#allocation2 + $0x1c] sm:$0xf]  ;;  %v3342_v0 = vsel %vm7193_vm13, %v3340_v34, %v3341_v33  ;;  %v1819_v32 = vadd.f32 %v1818_v60, %v7359_v53  ;;  %v7572_v33 = vld [vmem:[#allocation2 + $0x20] sm:$0x1] }
 0x1b0   : > { %v4075_v30 = vshrl.u32 %v7561_v3, 16  ;;  %v3466_v55 = vunpack.c.l.b16 %v3342_v0  ;;  %v4081_v46 = vshll.u32 %v7572_v33, 16  ;;  %v4016_v0 = vld [vmem:[#allocation2 + $0x24] sm:$0xf] }
 0x1b1   : > { %1857 = vmatmul.bf16.gmra.mxu1 %v6079_v50  ;;  %v3014_v50 = vrot.slane %v3012_v6, 4 }
 0x1b2   : > { %v2196_v43 = vpop.f32.mrf.mxu2  ;;  %v4077_v34 = vrot.slane %v4075_v30, 4  ;;  %v6144_v30 = vld [vmem:[#allocation2 + $0x18] sm:$0xff] }
 0x1b3   : > { %2547 = vmatmul.bf16.gmra.mxu3 %v6118_v41  ;;  %v2257_v62 = vadd.f32 %v2196_v43, %v1816_v18  ;;  %v4062_v41 = vshrl.u32 %v4013_v21, 16  ;;  %v3465_v18 = vunpack.c.l.b16 %v3339_v38  ;;  %v3015_v43 = vor.u32 %v3014_v50, %v3010_v12 }
 0x1b4   : > { %v3187_v4 = vpop.f32.mrf.mxu0 }
 0x1b5   : > { %v7563_v22 = vadd.f32 %v3187_v4, %v2569_v36  ;;  %v4071_v36 = vshll.u32 %v7561_v3, 16  ;;  %v4064_v7 = vrot.slane %v4062_v41, 4  ;;  %v3016_v60 = vrot.slane %v3015_v43, 4  ;;  %v7582_v43 = vld [vmem:[#allocation2 + $0x28] sm:$0xf] }
 0x1b6   : > { %v2508_v51 = vpop.f32.mrf.mxu3  ;;  %v1820_v26 = vpop.f32.mrf.mxu1 }
 0x1b7   : > { %v2570_v27 = vadd.f32 %v2508_v51, %v2256_v2  ;;  %2238 = vmatmul.bf16.gmra.mxu2 %v2090_v58  ;;  %v3005_v2 = vor.u32 %v3004_v20, %v3001_v24  ;;  %v3497_v58 = vpack.c.b16 %v3466_v55, %v3465_v18  ;;  %v4073_v21 = vrot.slane %v4071_v36, 5  ;;  %v6119_v24 = vld [vmem:[#allocation2 + $0xc0] sm:$0xff] }
 0x1b8   : > { %v4068_v20 = vor.u32 %v4067_v5, %v4064_v7  ;;  %v1821_v41 = vadd.f32 %v1820_v26, %v7369_v61  ;;  %v4083_v55 = vrot.slane %v4081_v46, 5  ;;  %v5773_v5 = vrot.slane %v3273_v15, 9 }
 0x1b9   : > { %v3006_v53 = vrot.slane %v3005_v2, 4  ;;  %v4078_v50 = vor.u32 %v4077_v34, %v4073_v21  ;;  %v6441_v34 = vld [vmem:[#allocation2 + $0x20] sm:$0x1] }
 0x1ba   : > { %v2199_v11 = vpop.f32.mrf.mxu2 }
 0x1bb   : > { %v2258_v6 = vadd.f32 %v2199_v11, %v1819_v32  ;;  %v3011_v9 = vsel %vm6686_vm10, %v3006_v53, %v3010_v12  ;;  %v4079_v18 = vrot.slane %v4078_v50, 4  ;;  %v4086_v12 = vshrl.u32 %v4016_v0, 16 }
 0x1bc   : > { %v3190_v4 = vpop.f32.mrf.mxu0  ;;  %v3069_v61 = vunpack.c.l.b16 %v3011_v9  ;;  %v4089_v53 = vshll.u32 %v4016_v0, 16 }
 0x1bd   : > { %v7574_v63 = vadd.f32 %v3190_v4, %v2570_v27  ;;  %v3021_v27 = vsel %vm6686_vm10, %v3016_v60, %v3020_v40 }
 0x1be   : > { %v2510_v51 = vpop.f32.mrf.mxu3  ;;  %v1823_v25 = vpop.f32.mrf.mxu1  ;;  %v3070_v26 = vunpack.c.l.b16 %v3021_v27 }
 0x1bf   : > { %3229 = vmatmul.bf16.gmra.mxu0 %v3085_v8  ;;  %v2571_v44 = vadd.f32 %v2510_v51, %v2257_v62  ;;  %v4069_v62 = vrot.slane %v4068_v20, 4  ;;  %v6440_v8 = vld [vmem:[#allocation2 + $0x1c] sm:$0xf]  ;;  %v3348_v51 = vrot.slane %v6441_v34, 5  ;;  %v4099_v20 = vshrl.u32 %v7582_v43, 16 }
 0x1c0   : > { %v3345_v2 = vrot.slane %v6440_v8, 5  ;;  %v4695_v8 = vld [vmem:[#allocation2 + $0x18] sm:$0xe] }
 0x1c1   : > { %3585 = vmatmul.bf16.vlgmr.msra.gmra.mxu1 %v3497_v58  ;;  %v4074_v40 = vsel %vm6686_vm10, %v4069_v62, %v4073_v21  ;;  %v4761_v21 = vrot.slane %v7561_v3, 5  ;;  %v4091_v62 = vrot.slane %v4089_v53, 5  ;;  %v4101_v15 = vrot.slane %v4099_v20, 4 }
 0x1c2   : > { %v2201_v38 = vpop.f32.mrf.mxu2  ;;  %v3347_v4 = vrot.slane %v3345_v2, 4  ;;  %v3346_v50 = vsel %vm7193_vm13, %v5773_v5, %v3345_v2 }
 0x1c3   : > { %2552 = vmatmul.bf16.gmra.mxu3 %v6119_v24  ;;  %v2259_v36 = vadd.f32 %v2201_v38, %v1821_v41  ;;  %v4095_v24 = vshll.u32 %v7582_v43, 16  ;;  %v3086_v41 = vpack.c.b16 %v3070_v26, %v3069_v61  ;;  %v3467_v9 = vunpack.c.l.b16 %v3346_v50 }
 0x1c4   : > { %v3192_v32 = vpop.f32.mrf.mxu0  ;;  %v3349_v46 = vsel %vm7193_vm13, %v3347_v4, %v3348_v51  ;;  %v4462_v38 = vunpack.c.l.b16 %v4074_v40  ;;  %v4763_v26 = vrot.slane %v4761_v21, 4  ;;  %v4764_v4 = vrot.slane %v7572_v33, 5 }
 0x1c5   : > { %v7584_v11 = vadd.f32 %v3192_v32, %v2571_v44  ;;  %v4084_v44 = vsel %vm6686_vm10, %v4079_v18, %v4083_v55  ;;  %v3468_v27 = vunpack.c.l.b16 %v3349_v46  ;;  %v4097_v55 = vrot.slane %v4095_v24, 5  ;;  %v6145_v46 = vld [vmem:[#allocation2 + $0x24] sm:$0xff] }
 0x1c6   : > { %v2513_v58 = vpop.f32.mrf.mxu3  ;;  %v1825_v7 = vpop.f32.mrf.mxu1  ;;  %v4463_v32 = vunpack.c.l.b16 %v4084_v44  ;;  %v4765_v20 = vsel %vm7193_vm13, %v4763_v26, %v4764_v4 }
 0x1c7   : > { %v2572_v60 = vadd.f32 %v2513_v58, %v2258_v6  ;;  %3900 = vmatmul.bf16.vlgmr.msra.gmra.mxu2 %v6144_v30  ;;  %v1824_v6 = vadd.f32 %v1823_v25, %v7279_v13  ;;  %v4088_v30 = vrot.slane %v4086_v12, 4  ;;  %v7598_v58 = vld [vmem:[#allocation2 + $0x2c] sm:$0x1]  ;;  %v3498_v5 = vpack.c.b16 %v3468_v27, %v3467_v9  ;;  %v6442_v9 = vld [vmem:[#allocation2 + $0x28] sm:$0xf] }
 0x1c8   : > { %v5996_v25 = vrot.slane %v4695_v8, 9  ;;  %v4494_v51 = vpack.c.b16 %v4463_v32, %v4462_v38  ;;  %v4102_v53 = vor.u32 %v4101_v15, %v4097_v55  ;;  %v4105_v40 = vshll.u32 %v7598_v58, 16  ;;  %v4019_v38 = vld [vmem:[#allocation2 + $0x30] sm:$0xf] }
 0x1c9   : > { %v4092_v34 = vor.u32 %v4091_v62, %v4088_v30  ;;  %v1826_v24 = vadd.f32 %v1825_v7, %v7293_v37  ;;  %v3352_v27 = vrot.slane %v6442_v9, 5  ;;  %v4889_v37 = vunpack.c.l.b16 %v4765_v20  ;;  %v3274_v7 = vld [vmem:[#allocation2 + $0x24] sm:$0xe]  ;;  %v7609_v30 = vld [vmem:[#allocation2 + $0x34] sm:$0xf] }
 0x1ca   : > { %v2204_v0 = vpop.f32.mrf.mxu2  ;;  %v5774_v15 = vrot.slane %v3274_v7, 9  ;;  %v4110_v4 = vshrl.u32 %v4019_v38, 16 }
 0x1cb   : > { %v2260_v18 = vadd.f32 %v2204_v0, %v1824_v6  ;;  %v4093_v50 = vrot.slane %v4092_v34, 4  ;;  %v4113_v34 = vshll.u32 %v4019_v38, 16 }
 0x1cc   : > { %v3195_v2 = vpop.f32.mrf.mxu0 }
 0x1cd   : > { %v7600_v61 = vadd.f32 %v3195_v2, %v2572_v60  ;;  %v4762_v60 = vsel %vm7193_vm13, %v5996_v25, %v4761_v21  ;;  %v4098_v32 = vsel %vm6686_vm10, %v4093_v50, %v4097_v55  ;;  %v3354_v2 = vrot.slane %v3352_v27, 4 }
 0x1ce   : > { %v2515_v13 = vpop.f32.mrf.mxu3  ;;  %v1828_v3 = vpop.f32.mrf.mxu1  ;;  %v4888_v0 = vunpack.c.l.b16 %v4762_v60  ;;  %v4119_v55 = vshll.u32 %v7609_v30, 16  ;;  %v4464_v20 = vunpack.c.l.b16 %v4098_v32  ;;  %v4115_v9 = vrot.slane %v4113_v34, 5 }
 0x1cf   : > { %3234 = vmatmul.bf16.gmra.mxu0 %v3086_v41  ;;  %v2573_v12 = vadd.f32 %v2515_v13, %v2259_v36  ;;  %v4103_v41 = vrot.slane %v4102_v53, 4  ;;  %v4107_v36 = vrot.slane %v4105_v40, 5  ;;  %v4123_v53 = vshrl.u32 %v7609_v30, 16 }
 0x1d0   : > { %v1829_v40 = vadd.f32 %v1828_v3, %v7309_v1  ;;  %v4920_v60 = vpack.c.b16 %v4889_v37, %v4888_v0  ;;  %v4121_v38 = vrot.slane %v4119_v55, 5  ;;  %v4771_v37 = vrot.slane %v7598_v58, 5  ;;  %v4022_v55 = vld [vmem:[#allocation2 + $0x3c] sm:$0xf] }
 0x1d1   : > { %3590 = vmatmul.bf16.gmra.mxu1 %v3498_v5  ;;  %v6443_v5 = vld [vmem:[#allocation2 + $0x2c] sm:$0x1]  ;;  %v4108_v26 = vsel %vm6686_vm10, %v4103_v41, %v4107_v36  ;;  %v4696_v41 = vld [vmem:[#allocation2 + $0x24] sm:$0xe]  ;;  %v4125_v7 = vrot.slane %v4123_v53, 4  ;;  %v6146_v53 = vld [vmem:[#allocation2 + $0x30] sm:$0xff] }
 0x1d2   : > { %v2206_v44 = vpop.f32.mrf.mxu2  ;;  %v3355_v13 = vrot.slane %v6443_v5, 5  ;;  %v5997_v3 = vrot.slane %v4696_v41, 9 }
 0x1d3   : > { %4582 = vmatmul.bf16.vlgmr.msra.gmra.mxu3 %v4494_v51  ;;  %v2261_v33 = vadd.f32 %v2206_v44, %v1826_v24  ;;  %v4768_v44 = vrot.slane %v7582_v43, 5 }
 0x1d4   : > { %v3197_v6 = vpop.f32.mrf.mxu0  ;;  %v3356_v51 = vsel %vm7193_vm13, %v3354_v2, %v3355_v13 }
 0x1d5   : > { %v7611_v21 = vadd.f32 %v3197_v6, %v2573_v12  ;;  %v3353_v12 = vsel %vm7193_vm13, %v5774_v15, %v3352_v27  ;;  %v4112_v6 = vrot.slane %v4110_v4, 4  ;;  %v7625_v15 = vld [vmem:[#allocation2 + $0x38] sm:$0x1]  ;;  %v4770_v0 = vrot.slane %v4768_v44, 4 }
 0x1d6   : > { %v2518_v62 = vpop.f32.mrf.mxu3  ;;  %v1830_v8 = vpop.f32.mrf.mxu1  ;;  %v3469_v24 = vunpack.c.l.b16 %v3353_v12  ;;  %v4129_v4 = vshll.u32 %v7625_v15, 16 }
 0x1d7   : > { %v2574_v25 = vadd.f32 %v2518_v62, %v2260_v18  ;;  %3905 = vmatmul.bf16.gmra.mxu2 %v6145_v46  ;;  %v3470_v18 = vunpack.c.l.b16 %v3356_v51  ;;  %v4465_v46 = vunpack.c.l.b16 %v4108_v26  ;;  %v4116_v13 = vor.u32 %v4115_v9, %v4112_v6 }
 0x1d8   : > { %v4126_v26 = vor.u32 %v4125_v7, %v4121_v38  ;;  %v1831_v34 = vadd.f32 %v1830_v8, %v7322_v39  ;;  %v4772_v12 = vsel %vm7193_vm13, %v4770_v0, %v4771_v37 }
 0x1d9   : > { %v3499_v62 = vpack.c.b16 %v3470_v18, %v3469_v24  ;;  %v4495_v5 = vpack.c.b16 %v4465_v46, %v4464_v20  ;;  %v4131_v18 = vrot.slane %v4129_v4, 5  ;;  %v4891_v8 = vunpack.c.l.b16 %v4772_v12  ;;  %v3275_v46 = vld [vmem:[#allocation2 + $0x30] sm:$0xe] }
 0x1da   : > { %v2209_v50 = vpop.f32.mrf.mxu2  ;;  %v4127_v24 = vrot.slane %v4126_v26, 4 }
 0x1db   : > { %v2262_v36 = vadd.f32 %v2209_v50, %v1829_v40  ;;  %v7636_v50 = vld [vmem:[#allocation2 + $0x40] sm:$0xf] }
 0x1dc   : > { %v3200_v27 = vpop.f32.mrf.mxu0 }
 0x1dd   : > { %v7627_v2 = vadd.f32 %v3200_v27, %v2574_v25  ;;  %v4769_v25 = vsel %vm7193_vm13, %v5997_v3, %v4768_v44  ;;  %v4134_v44 = vshrl.u32 %v4022_v55, 16  ;;  %v5775_v27 = vrot.slane %v3275_v46, 9 }
 0x1de   : > { %v2520_v1 = vpop.f32.mrf.mxu3  ;;  %v1833_v43 = vpop.f32.mrf.mxu1  ;;  %v4890_v39 = vunpack.c.l.b16 %v4769_v25  ;;  %v4137_v3 = vshll.u32 %v4022_v55, 16 }
 0x1df   : > { %5008 = vmatmul.bf16.vlgmr.msra.gmra.mxu0 %v4920_v60  ;;  %v2575_v32 = vadd.f32 %v2520_v1, %v2261_v33  ;;  %v4117_v33 = vrot.slane %v4116_v13, 4  ;;  %v6444_v60 = vld [vmem:[#allocation2 + $0x34] sm:$0xf]  ;;  %v4147_v13 = vshrl.u32 %v7636_v50, 16 }
 0x1e0   : > { %v3359_v20 = vrot.slane %v6444_v60, 5  ;;  %v4697_v60 = vld [vmem:[#allocation2 + $0x30] sm:$0xe] }
 0x1e1   : > { %3595 = vmatmul.bf16.gmra.mxu1 %v3499_v62  ;;  %v6445_v62 = vld [vmem:[#allocation2 + $0x38] sm:$0x1]  ;;  %v4122_v37 = vsel %vm6686_vm10, %v4117_v33, %v4121_v38  ;;  %v4775_v38 = vrot.slane %v7609_v30, 5  ;;  %v4139_v33 = vrot.slane %v4137_v3, 5  ;;  %v4149_v46 = vrot.slane %v4147_v13, 4 }
 0x1e2   : > { %v2211_v51 = vpop.f32.mrf.mxu2  ;;  %v3361_v7 = vrot.slane %v3359_v20, 4  ;;  %v3362_v1 = vrot.slane %v6445_v62, 5  ;;  %v3360_v26 = vsel %vm7193_vm13, %v5775_v27, %v3359_v20 }
 0x1e3   : > { %4587 = vmatmul.bf16.gmra.mxu3 %v4495_v5  ;;  %v2263_v58 = vadd.f32 %v2211_v51, %v1831_v34  ;;  %v4143_v5 = vshll.u32 %v7636_v50, 16  ;;  %v4921_v34 = vpack.c.b16 %v4891_v8, %v4890_v39  ;;  %v3471_v25 = vunpack.c.l.b16 %v3360_v26 }
 0x1e4   : > { %v3202_v40 = vpop.f32.mrf.mxu0  ;;  %v3363_v4 = vsel %vm7193_vm13, %v3361_v7, %v3362_v1  ;;  %v4466_v51 = vunpack.c.l.b16 %v4122_v37  ;;  %v4777_v8 = vrot.slane %v4775_v38, 4  ;;  %v4778_v7 = vrot.slane %v7625_v15, 5 }
 0x1e5   : > { %v7638_v41 = vadd.f32 %v3202_v40, %v2575_v32  ;;  %v4132_v32 = vsel %vm6686_vm10, %v4127_v24, %v4131_v18  ;;  %v3472_v12 = vunpack.c.l.b16 %v3363_v4  ;;  %v4145_v18 = vrot.slane %v4143_v5, 5  ;;  %v6147_v4 = vld [vmem:[#allocation2 + $0x3c] sm:$0xff] }
 0x1e6   : > { %v2523_v6 = vpop.f32.mrf.mxu3  ;;  %v1835_v9 = vpop.f32.mrf.mxu1  ;;  %v4467_v40 = vunpack.c.l.b16 %v4132_v32  ;;  %v4779_v13 = vsel %vm7193_vm13, %v4777_v8, %v4778_v7 }
 0x1e7   : > { %v2576_v0 = vadd.f32 %v2523_v6, %v2262_v36  ;;  %3910 = vmatmul.bf16.gmra.mxu2 %v6146_v53  ;;  %v1834_v36 = vadd.f32 %v1833_v43, %v7348_v35  ;;  %v4136_v53 = vrot.slane %v4134_v44, 4  ;;  %v7652_v6 = vld [vmem:[#allocation2 + $0x44] sm:$0x1]  ;;  %v3500_v27 = vpack.c.b16 %v3472_v12, %v3471_v25  ;;  %v6446_v25 = vld [vmem:[#allocation2 + $0x40] sm:$0xf] }
 0x1e8   : > { %v5998_v43 = vrot.slane %v4697_v60, 9  ;;  %v4496_v1 = vpack.c.b16 %v4467_v40, %v4466_v51  ;;  %v4150_v3 = vor.u32 %v4149_v46, %v4145_v18  ;;  %v4153_v37 = vshll.u32 %v7652_v6, 16  ;;  %v4025_v51 = vld [vmem:[#allocation2 + $0x48] sm:$0xf] }
 0x1e9   : > { %v4140_v62 = vor.u32 %v4139_v33, %v4136_v53  ;;  %v1836_v5 = vadd.f32 %v1835_v9, %v7361_v59  ;;  %v3366_v12 = vrot.slane %v6446_v25, 5  ;;  %v4893_v59 = vunpack.c.l.b16 %v4779_v13  ;;  %v3276_v9 = vld [vmem:[#allocation2 + $0x3c] sm:$0xe]  ;;  %v7663_v53 = vld [vmem:[#allocation2 + $0x4c] sm:$0xf] }
 0x1ea   : > { %v2214_v55 = vpop.f32.mrf.mxu2  ;;  %v5776_v46 = vrot.slane %v3276_v9, 9  ;;  %v4158_v7 = vshrl.u32 %v4025_v51, 16 }
 0x1eb   : > { %v2264_v24 = vadd.f32 %v2214_v55, %v1834_v36  ;;  %v4141_v26 = vrot.slane %v4140_v62, 4  ;;  %v4161_v62 = vshll.u32 %v4025_v51, 16 }
 0x1ec   : > { %v3205_v20 = vpop.f32.mrf.mxu0 }
 0x1ed   : > { %v7654_v39 = vadd.f32 %v3205_v20, %v2576_v0  ;;  %v4776_v0 = vsel %vm7193_vm13, %v5998_v43, %v4775_v38  ;;  %v4146_v40 = vsel %vm6686_vm10, %v4141_v26, %v4145_v18  ;;  %v3368_v20 = vrot.slane %v3366_v12, 4 }
 0x1ee   : > { %v2525_v35 = vpop.f32.mrf.mxu3  ;;  %v1838_v30 = vpop.f32.mrf.mxu1  ;;  %v4892_v55 = vunpack.c.l.b16 %v4776_v0  ;;  %v4167_v18 = vshll.u32 %v7663_v53, 16  ;;  %v4468_v13 = vunpack.c.l.b16 %v4146_v40  ;;  %v4163_v25 = vrot.slane %v4161_v62, 5 }
 0x1ef   : > { %5013 = vmatmul.bf16.gmra.mxu0 %v4921_v34  ;;  %v2577_v44 = vadd.f32 %v2525_v35, %v2263_v58  ;;  %v4151_v34 = vrot.slane %v4150_v3, 4  ;;  %v4155_v58 = vrot.slane %v4153_v37, 5  ;;  %v4171_v3 = vshrl.u32 %v7663_v53, 16 }
 0x1f0   : > { %v1839_v37 = vadd.f32 %v1838_v30, %v7373_v28  ;;  %v4922_v0 = vpack.c.b16 %v4893_v59, %v4892_v55  ;;  %v4169_v51 = vrot.slane %v4167_v18, 5  ;;  %v4785_v59 = vrot.slane %v7652_v6, 5  ;;  %v4028_v18 = vld [vmem:[#allocation2 + $0x54] sm:$0xf] }
 0x1f1   : > { %3600 = vmatmul.bf16.gmra.mxu1 %v3500_v27  ;;  %v6447_v27 = vld [vmem:[#allocation2 + $0x44] sm:$0x1]  ;;  %v4156_v8 = vsel %vm6686_vm10, %v4151_v34, %v4155_v58  ;;  %v4698_v34 = vld [vmem:[#allocation2 + $0x3c] sm:$0xe]  ;;  %v4173_v9 = vrot.slane %v4171_v3, 4  ;;  %v6148_v3 = vld [vmem:[#allocation2 + $0x48] sm:$0xff] }
 0x1f2   : > { %v2216_v32 = vpop.f32.mrf.mxu2  ;;  %v3369_v35 = vrot.slane %v6447_v27, 5  ;;  %v5999_v30 = vrot.slane %v4698_v34, 9 }
 0x1f3   : > { %4592 = vmatmul.bf16.gmra.mxu3 %v4496_v1  ;;  %v2265_v15 = vadd.f32 %v2216_v32, %v1836_v5  ;;  %v4782_v32 = vrot.slane %v7636_v50, 5 }
 0x1f4   : > { %v3207_v36 = vpop.f32.mrf.mxu0  ;;  %v3370_v1 = vsel %vm7193_vm13, %v3368_v20, %v3369_v35 }
 0x1f5   : > { %v7665_v38 = vadd.f32 %v3207_v36, %v2577_v44  ;;  %v3367_v44 = vsel %vm7193_vm13, %v5776_v46, %v3366_v12  ;;  %v4160_v36 = vrot.slane %v4158_v7, 4  ;;  %v7679_v46 = vld [vmem:[#allocation2 + $0x50] sm:$0x1]  ;;  %v4784_v55 = vrot.slane %v4782_v32, 4 }
 0x1f6   : > { %v2528_v33 = vpop.f32.mrf.mxu3  ;;  %v1840_v60 = vpop.f32.mrf.mxu1  ;;  %v3473_v5 = vunpack.c.l.b16 %v3367_v44  ;;  %v4177_v7 = vshll.u32 %v7679_v46, 16 }
 0x1f7   : > { %v2578_v43 = vadd.f32 %v2528_v33, %v2264_v24  ;;  %3915 = vmatmul.bf16.gmra.mxu2 %v6147_v4  ;;  %v3474_v24 = vunpack.c.l.b16 %v3370_v1  ;;  %v4469_v4 = vunpack.c.l.b16 %v4156_v8  ;;  %v4164_v35 = vor.u32 %v4163_v25, %v4160_v36 }
 0x1f8   : > { %v4174_v8 = vor.u32 %v4173_v9, %v4169_v51  ;;  %v1841_v62 = vadd.f32 %v1840_v60, %v7393_v23  ;;  %v4786_v44 = vsel %vm7193_vm13, %v4784_v55, %v4785_v59 }
 0x1f9   : > { %v3501_v33 = vpack.c.b16 %v3474_v24, %v3473_v5  ;;  %v4497_v27 = vpack.c.b16 %v4469_v4, %v4468_v13  ;;  %v4179_v24 = vrot.slane %v4177_v7, 5  ;;  %v4895_v60 = vunpack.c.l.b16 %v4786_v44  ;;  %v3277_v4 = vld [vmem:[#allocation2 + $0x48] sm:$0xe] }
 0x1fa   : > { %v2219_v26 = vpop.f32.mrf.mxu2  ;;  %v4175_v5 = vrot.slane %v4174_v8, 4 }
 0x1fb   : > { %v2266_v58 = vadd.f32 %v2219_v26, %v1839_v37  ;;  %v7690_v26 = vld [vmem:[#allocation2 + $0x58] sm:$0xf] }
 0x1fc   : > { %v3210_v12 = vpop.f32.mrf.mxu0 }
 0x1fd   : > { %v7681_v20 = vadd.f32 %v3210_v12, %v2578_v43  ;;  %v4783_v43 = vsel %vm7193_vm13, %v5999_v30, %v4782_v32  ;;  %v4182_v32 = vshrl.u32 %v4028_v18, 16  ;;  %v5777_v12 = vrot.slane %v3277_v4, 9 }
 0x1fe   : > { %v2530_v28 = vpop.f32.mrf.mxu3  ;;  %v1843_v50 = vpop.f32.mrf.mxu1  ;;  %v4894_v23 = vunpack.c.l.b16 %v4783_v43  ;;  %v4185_v30 = vshll.u32 %v4028_v18, 16 }
 0x1ff   : > { %5018 = vmatmul.bf16.gmra.mxu0 %v4922_v0  ;;  %v2579_v40 = vadd.f32 %v2530_v28, %v2265_v15  ;;  %v4165_v15 = vrot.slane %v4164_v35, 4  ;;  %v6448_v0 = vld [vmem:[#allocation2 + $0x4c] sm:$0xf]  ;;  %v4195_v35 = vshrl.u32 %v7690_v26, 16 }
 0x200   : > { %v3373_v13 = vrot.slane %v6448_v0, 5  ;;  %v4699_v0 = vld [vmem:[#allocation2 + $0x48] sm:$0xe] }
 0x201   : > { %3605 = vmatmul.bf16.gmra.mxu1 %v3501_v33  ;;  %v6449_v33 = vld [vmem:[#allocation2 + $0x50] sm:$0x1]  ;;  %v4170_v59 = vsel %vm6686_vm10, %v4165_v15, %v4169_v51  ;;  %v4789_v51 = vrot.slane %v7663_v53, 5  ;;  %v4187_v15 = vrot.slane %v4185_v30, 5  ;;  %v4197_v4 = vrot.slane %v4195_v35, 4 }
 0x202   : > { %v2221_v1 = vpop.f32.mrf.mxu2  ;;  %v3375_v9 = vrot.slane %v3373_v13, 4  ;;  %v3376_v28 = vrot.slane %v6449_v33, 5  ;;  %v3374_v8 = vsel %vm7193_vm13, %v5777_v12, %v3373_v13 }
 0x203   : > { %4597 = vmatmul.bf16.gmra.mxu3 %v4497_v27  ;;  %v2267_v6 = vadd.f32 %v2221_v1, %v1841_v62  ;;  %v4191_v27 = vshll.u32 %v7690_v26, 16  ;;  %v4923_v62 = vpack.c.b16 %v4895_v60, %v4894_v23  ;;  %v3475_v43 = vunpack.c.l.b16 %v3374_v8 }
 0x204   : > { %v3212_v37 = vpop.f32.mrf.mxu0  ;;  %v3377_v7 = vsel %vm7193_vm13, %v3375_v9, %v3376_v28  ;;  %v4470_v1 = vunpack.c.l.b16 %v4170_v59  ;;  %v4791_v60 = vrot.slane %v4789_v51, 4  ;;  %v4792_v9 = vrot.slane %v7679_v46, 5 }
 0x205   : > { %v7692_v34 = vadd.f32 %v3212_v37, %v2579_v40  ;;  %v4180_v40 = vsel %vm6686_vm10, %v4175_v5, %v4179_v24  ;;  %v3476_v44 = vunpack.c.l.b16 %v3377_v7  ;;  %v4193_v24 = vrot.slane %v4191_v27, 5  ;;  %v6149_v7 = vld [vmem:[#allocation2 + $0x54] sm:$0xff] }
 0x206   : > { %v2533_v36 = vpop.f32.mrf.mxu3  ;;  %v1845_v25 = vpop.f32.mrf.mxu1  ;;  %v4471_v37 = vunpack.c.l.b16 %v4180_v40  ;;  %v4793_v35 = vsel %vm7193_vm13, %v4791_v60, %v4792_v9 }
 0x207   : > { %v2580_v55 = vadd.f32 %v2533_v36, %v2266_v58  ;;  %3920 = vmatmul.bf16.gmra.mxu2 %v6148_v3  ;;  %v1844_v58 = vadd.f32 %v1843_v50, %v7297_v49  ;;  %v4184_v3 = vrot.slane %v4182_v32, 4  ;;  %v7706_v36 = vld [vmem:[#allocation2 + $0x5c] sm:$0x1]  ;;  %v3502_v12 = vpack.c.b16 %v3476_v44, %v3475_v43  ;;  %v6450_v43 = vld [vmem:[#allocation2 + $0x58] sm:$0xf] }
 0x208   : > { %v6000_v50 = vrot.slane %v4699_v0, 9  ;;  %v4498_v28 = vpack.c.b16 %v4471_v37, %v4470_v1  ;;  %v4198_v30 = vor.u32 %v4197_v4, %v4193_v24  ;;  %v4201_v59 = vshll.u32 %v7706_v36, 16  ;;  %v4031_v1 = vld [vmem:[#allocation2 + $0x60] sm:$0xf] }
 0x209   : > { %v4188_v33 = vor.u32 %v4187_v15, %v4184_v3  ;;  %v1846_v27 = vadd.f32 %v1845_v25, %v7316_v52  ;;  %v3380_v44 = vrot.slane %v6450_v43, 5  ;;  %v4897_v52 = vunpack.c.l.b16 %v4793_v35  ;;  %v3278_v25 = vld [vmem:[#allocation2 + $0x54] sm:$0xe]  ;;  %v7717_v3 = vld [vmem:[#allocation2 + $0x64] sm:$0xf] }
 0x20a   : > { %v2224_v18 = vpop.f32.mrf.mxu2  ;;  %v5778_v4 = vrot.slane %v3278_v25, 9  ;;  %v4206_v9 = vshrl.u32 %v4031_v1, 16 }
 0x20b   : > { %v2268_v5 = vadd.f32 %v2224_v18, %v1844_v58  ;;  %v4189_v8 = vrot.slane %v4188_v33, 4  ;;  %v4209_v33 = vshll.u32 %v4031_v1, 16 }
 0x20c   : > { %v3215_v13 = vpop.f32.mrf.mxu0 }
 0x20d   : > { %v7708_v23 = vadd.f32 %v3215_v13, %v2580_v55  ;;  %v4790_v55 = vsel %vm7193_vm13, %v6000_v50, %v4789_v51  ;;  %v4194_v37 = vsel %vm6686_vm10, %v4189_v8, %v4193_v24  ;;  %v3382_v13 = vrot.slane %v3380_v44, 4 }
 0x20e   : > { %v2535_v49 = vpop.f32.mrf.mxu3  ;;  %v1848_v53 = vpop.f32.mrf.mxu1  ;;  %v4896_v18 = vunpack.c.l.b16 %v4790_v55  ;;  %v4215_v24 = vshll.u32 %v7717_v3, 16  ;;  %v4472_v35 = vunpack.c.l.b16 %v4194_v37  ;;  %v4211_v43 = vrot.slane %v4209_v33, 5 }
 0x20f   : > { %5023 = vmatmul.bf16.gmra.mxu0 %v4923_v62  ;;  %v2581_v32 = vadd.f32 %v2535_v49, %v2267_v6  ;;  %v4199_v62 = vrot.slane %v4198_v30, 4  ;;  %v4203_v6 = vrot.slane %v4201_v59, 5  ;;  %v4219_v30 = vshrl.u32 %v7717_v3, 16 }
 0x210   : > { %v1849_v59 = vadd.f32 %v1848_v53, %v7328_v10  ;;  %v4924_v55 = vpack.c.b16 %v4897_v52, %v4896_v18  ;;  %v4217_v1 = vrot.slane %v4215_v24, 5  ;;  %v4799_v52 = vrot.slane %v7706_v36, 5  ;;  %v4034_v24 = vld [vmem:[#allocation2 + $0x6c] sm:$0xf] }
 0x211   : > { %3610 = vmatmul.bf16.gmra.mxu1 %v3502_v12  ;;  %v6451_v12 = vld [vmem:[#allocation2 + $0x5c] sm:$0x1]  ;;  %v4204_v60 = vsel %vm6686_vm10, %v4199_v62, %v4203_v6  ;;  %v4700_v62 = vld [vmem:[#allocation2 + $0x54] sm:$0xe]  ;;  %v4221_v25 = vrot.slane %v4219_v30, 4  ;;  %v6150_v30 = vld [vmem:[#allocation2 + $0x60] sm:$0xff] }
 0x212   : > { %v2226_v40 = vpop.f32.mrf.mxu2  ;;  %v3383_v49 = vrot.slane %v6451_v12, 5  ;;  %v6001_v53 = vrot.slane %v4700_v62, 9 }
 0x213   : > { %4602 = vmatmul.bf16.gmra.mxu3 %v4498_v28  ;;  %v2269_v46 = vadd.f32 %v2226_v40, %v1846_v27  ;;  %v4796_v40 = vrot.slane %v7690_v26, 5 }
 0x214   : > { %v3217_v58 = vpop.f32.mrf.mxu0  ;;  %v3384_v28 = vsel %vm7193_vm13, %v3382_v13, %v3383_v49 }
 0x215   : > { %v7719_v51 = vadd.f32 %v3217_v58, %v2581_v32  ;;  %v3381_v32 = vsel %vm7193_vm13, %v5778_v4, %v3380_v44  ;;  %v4208_v58 = vrot.slane %v4206_v9, 4  ;;  %v7733_v4 = vld [vmem:[#allocation2 + $0x68] sm:$0x1]  ;;  %v4798_v18 = vrot.slane %v4796_v40, 4 }
 0x216   : > { %v2538_v15 = vpop.f32.mrf.mxu3  ;;  %v1850_v0 = vpop.f32.mrf.mxu1  ;;  %v3477_v27 = vunpack.c.l.b16 %v3381_v32  ;;  %v4225_v9 = vshll.u32 %v7733_v4, 16 }
 0x217   : > { %v2582_v50 = vadd.f32 %v2538_v15, %v2268_v5  ;;  %3925 = vmatmul.bf16.gmra.mxu2 %v6149_v7  ;;  %v3478_v5 = vunpack.c.l.b16 %v3384_v28  ;;  %v4473_v7 = vunpack.c.l.b16 %v4204_v60  ;;  %v4212_v49 = vor.u32 %v4211_v43, %v4208_v58 }
 0x218   : > { %v4222_v60 = vor.u32 %v4221_v25, %v4217_v1  ;;  %v1851_v33 = vadd.f32 %v1850_v0, %v7350_v57  ;;  %v4800_v32 = vsel %vm7193_vm13, %v4798_v18, %v4799_v52 }
 0x219   : > { %v3503_v15 = vpack.c.b16 %v3478_v5, %v3477_v27  ;;  %v4499_v12 = vpack.c.b16 %v4473_v7, %v4472_v35  ;;  %v4227_v5 = vrot.slane %v4225_v9, 5  ;;  %v4899_v0 = vunpack.c.l.b16 %v4800_v32  ;;  %v3279_v7 = vld [vmem:[#allocation2 + $0x60] sm:$0xe] }
 0x21a   : > { %v2229_v8 = vpop.f32.mrf.mxu2  ;;  %v4223_v27 = vrot.slane %v4222_v60, 4 }
 0x21b   : > { %v2270_v6 = vadd.f32 %v2229_v8, %v1849_v59  ;;  %v7744_v8 = vld [vmem:[#allocation2 + $0x70] sm:$0xf] }
 0x21c   : > { %v3220_v44 = vpop.f32.mrf.mxu0 }
 0x21d   : > { %v7735_v13 = vadd.f32 %v3220_v44, %v2582_v50  ;;  %v4797_v50 = vsel %vm7193_vm13, %v6001_v53, %v4796_v40  ;;  %v4230_v40 = vshrl.u32 %v4034_v24, 16  ;;  %v5779_v44 = vrot.slane %v3279_v7, 9 }
 0x21e   : > { %v2540_v10 = vpop.f32.mrf.mxu3  ;;  %v1853_v26 = vpop.f32.mrf.mxu1  ;;  %v4898_v57 = vunpack.c.l.b16 %v4797_v50  ;;  %v4233_v53 = vshll.u32 %v4034_v24, 16 }
 0x21f   : > { %5028 = vmatmul.bf16.gmra.mxu0 %v4924_v55  ;;  %v2583_v37 = vadd.f32 %v2540_v10, %v2269_v46  ;;  %v4213_v46 = vrot.slane %v4212_v49, 4  ;;  %v6452_v55 = vld [vmem:[#allocation2 + $0x64] sm:$0xf]  ;;  %v4243_v49 = vshrl.u32 %v7744_v8, 16 }
 0x220   : > { %v3387_v35 = vrot.slane %v6452_v55, 5  ;;  %v4701_v55 = vld [vmem:[#allocation2 + $0x60] sm:$0xe] }
 0x221   : > { %3615 = vmatmul.bf16.gmra.mxu1 %v3503_v15  ;;  %v6453_v15 = vld [vmem:[#allocation2 + $0x68] sm:$0x1]  ;;  %v4218_v52 = vsel %vm6686_vm10, %v4213_v46, %v4217_v1  ;;  %v4803_v1 = vrot.slane %v7717_v3, 5  ;;  %v4235_v46 = vrot.slane %v4233_v53, 5  ;;  %v4245_v7 = vrot.slane %v4243_v49, 4 }
 0x222   : > { %v2231_v28 = vpop.f32.mrf.mxu2  ;;  %v3389_v25 = vrot.slane %v3387_v35, 4  ;;  %v3390_v10 = vrot.slane %v6453_v15, 5  ;;  %v3388_v60 = vsel %vm7193_vm13, %v5779_v44, %v3387_v35 }
 0x223   : > { %4607 = vmatmul.bf16.gmra.mxu3 %v4499_v12  ;;  %v2271_v36 = vadd.f32 %v2231_v28, %v1851_v33  ;;  %v4239_v12 = vshll.u32 %v7744_v8, 16  ;;  %v4925_v33 = vpack.c.b16 %v4899_v0, %v4898_v57  ;;  %v3479_v50 = vunpack.c.l.b16 %v3388_v60 }
 0x224   : > { %v3222_v59 = vpop.f32.mrf.mxu0  ;;  %v3391_v9 = vsel %vm7193_vm13, %v3389_v25, %v3390_v10  ;;  %v4474_v28 = vunpack.c.l.b16 %v4218_v52  ;;  %v4805_v0 = vrot.slane %v4803_v1, 4  ;;  %v4806_v25 = vrot.slane %v7733_v4, 5 }
 0x225   : > { %v7746_v62 = vadd.f32 %v3222_v59, %v2583_v37  ;;  %v4228_v37 = vsel %vm6686_vm10, %v4223_v27, %v4227_v5  ;;  %v3480_v32 = vunpack.c.l.b16 %v3391_v9  ;;  %v4241_v5 = vrot.slane %v4239_v12, 5  ;;  %v6151_v9 = vld [vmem:[#allocation2 + $0x6c] sm:$0xff] }
 0x226   : > { %v2543_v58 = vpop.f32.mrf.mxu3  ;;  %v1855_v43 = vpop.f32.mrf.mxu1  ;;  %v4475_v59 = vunpack.c.l.b16 %v4228_v37  ;;  %v4807_v49 = vsel %vm7193_vm13, %v4805_v0, %v4806_v25 }
 0x227   : > { %v2584_v18 = vadd.f32 %v2543_v58, %v2270_v6  ;;  %3930 = vmatmul.bf16.gmra.mxu2 %v6150_v30  ;;  %v1854_v6 = vadd.f32 %v1853_v26, %v7365_v54  ;;  %v4232_v30 = vrot.slane %v4230_v40, 4  ;;  %v7760_v58 = vld [vmem:[#allocation2 + $0x74] sm:$0x1]  ;;  %v3504_v44 = vpack.c.b16 %v3480_v32, %v3479_v50  ;;  %v6454_v50 = vld [vmem:[#allocation2 + $0x70] sm:$0xf] }
 0x228   : > { %v6002_v26 = vrot.slane %v4701_v55, 9  ;;  %v4500_v10 = vpack.c.b16 %v4475_v59, %v4474_v28  ;;  %v4246_v53 = vor.u32 %v4245_v7, %v4241_v5  ;;  %v4249_v52 = vshll.u32 %v7760_v58, 16  ;;  %v4037_v28 = vld [vmem:[#allocation2 + $0x78] sm:$0xf] }
 0x229   : > { %v4236_v15 = vor.u32 %v4235_v46, %v4232_v30  ;;  %v1856_v12 = vadd.f32 %v1855_v43, %v7375_v29  ;;  %v3394_v32 = vrot.slane %v6454_v50, 5  ;;  %v4901_v29 = vunpack.c.l.b16 %v4807_v49  ;;  %v3280_v43 = vld [vmem:[#allocation2 + $0x6c] sm:$0xe]  ;;  %v7771_v30 = vld [vmem:[#allocation2 + $0x7c] sm:$0xf] }
 0x22a   : > { %v2234_v24 = vpop.f32.mrf.mxu2  ;;  %v5780_v7 = vrot.slane %v3280_v43, 9  ;;  %v4254_v25 = vshrl.u32 %v4037_v28, 16 }
 0x22b   : > { %v2272_v27 = vadd.f32 %v2234_v24, %v1854_v6  ;;  %v4237_v60 = vrot.slane %v4236_v15, 4  ;;  %v4257_v15 = vshll.u32 %v4037_v28, 16 }
 0x22c   : > { %v3225_v35 = vpop.f32.mrf.mxu0  ;;  %v4256_v50 = vrot.slane %v4254_v25, 4 }
 0x22d   : > { %v7762_v57 = vadd.f32 %v3225_v35, %v2584_v18  ;;  %v4804_v18 = vsel %vm7193_vm13, %v6002_v26, %v4803_v1  ;;  %v4242_v59 = vsel %vm6686_vm10, %v4237_v60, %v4241_v5  ;;  %v3396_v35 = vrot.slane %v3394_v32, 4 }
 0x22e   : > { %v2545_v54 = vpop.f32.mrf.mxu3  ;;  %v1858_v3 = vpop.f32.mrf.mxu1  ;;  %v4900_v24 = vunpack.c.l.b16 %v4804_v18  ;;  %v4263_v5 = vshll.u32 %v7771_v30, 16  ;;  %v4810_v18 = vrot.slane %v7744_v8, 5  ;;  %v4476_v60 = vunpack.c.l.b16 %v4242_v59 }
 0x22f   : > { %5033 = vmatmul.bf16.gmra.mxu0 %v4925_v33  ;;  %v2585_v40 = vadd.f32 %v2545_v54, %v2271_v36  ;;  %v4247_v33 = vrot.slane %v4246_v53, 4  ;;  %v4251_v36 = vrot.slane %v4249_v52, 5  ;;  %v4267_v53 = vshrl.u32 %v7771_v30, 16 }
 0x230   : > { %v1859_v52 = vadd.f32 %v1858_v3, %v7402_v31  ;;  %v4265_v28 = vrot.slane %v4263_v5, 5  ;;  %v4813_v8 = vrot.slane %v7760_v58, 5  ;;  %v4040_v58 = vld [vmem:[#allocation2 + $0x84] sm:$0xf] }
 0x231   : > { %3620 = vmatmul.bf16.gmra.mxu1 %v3504_v44  ;;  %v6455_v44 = vld [vmem:[#allocation2 + $0x74] sm:$0x1]  ;;  %v4252_v0 = vsel %vm6686_vm10, %v4247_v33, %v4251_v36  ;;  %v4702_v33 = vld [vmem:[#allocation2 + $0x6c] sm:$0xe]  ;;  %v4269_v43 = vrot.slane %v4267_v53, 4 }
 0x232   : > { %v2236_v37 = vpop.f32.mrf.mxu2  ;;  %v3397_v54 = vrot.slane %v6455_v44, 5  ;;  %v6003_v3 = vrot.slane %v4702_v33, 9  ;;  %v4812_v44 = vrot.slane %v4810_v18, 4 }
 0x233   : > { %4612 = vmatmul.bf16.gmra.mxu3 %v4500_v10  ;;  %v2273_v4 = vadd.f32 %v2236_v37, %v1856_v12  ;;  %v4926_v37 = vpack.c.b16 %v4901_v29, %v4900_v24 }
 0x234   : > { %v3227_v6 = vpop.f32.mrf.mxu0  ;;  %v3398_v10 = vsel %vm7193_vm13, %v3396_v35, %v3397_v54 }
 0x235   : > { %v7773_v1 = vadd.f32 %v3227_v6, %v2585_v40  ;;  %v3395_v40 = vsel %vm7193_vm13, %v5780_v7, %v3394_v32  ;;  %v4259_v32 = vrot.slane %v4257_v15, 5  ;;  %v7787_v7 = vld [vmem:[#allocation2 + $0x80] sm:$0x1]  ;;  %v8125_v15 = vld [vmem:[#allocation3_spill] sm:$0xff] }
 0x236   : > { %v2548_v46 = vpop.f32.mrf.mxu3  ;;  %v1860_v55 = vpop.f32.mrf.mxu1  ;;  %v3481_v12 = vunpack.c.l.b16 %v3395_v40  ;;  %v4273_v25 = vshll.u32 %v7787_v7, 16 }
 0x237   : > { %v2586_v26 = vadd.f32 %v2548_v46, %v2272_v27  ;;  %3935 = vmatmul.bf16.gmra.mxu2 %v6151_v9  ;;  %v3482_v27 = vunpack.c.l.b16 %v3398_v10  ;;  %v4477_v9 = vunpack.c.l.b16 %v4252_v0  ;;  %v4260_v54 = vor.u32 %v4259_v32, %v4256_v50 }
 0x238   : > { %v4270_v0 = vor.u32 %v4269_v43, %v4265_v28  ;;  %v1861_v40 = vadd.f32 %v1860_v55, %v8125_v15  ;;  %v4814_v10 = vsel %vm7193_vm13, %v4812_v44, %v4813_v8  ;;  %v4281_v8 = vshll.u32 %v4040_v58, 16 }
 0x239   : > { %v3505_v46 = vpack.c.b16 %v3482_v27, %v3481_v12  ;;  %v4501_v59 = vpack.c.b16 %v4477_v9, %v4476_v60  ;;  %v4261_v12 = vrot.slane %v4260_v54, 4  ;;  %v7800_v9 = vld [vmem:[#allocation2 + $0x88] sm:$0xf]  ;;  %v4903_v33 = vunpack.c.l.b16 %v4814_v10 }
 0x23a   : > { %v2239_v49 = vpop.f32.mrf.mxu2  ;;  %v4271_v27 = vrot.slane %v4270_v0, 4  ;;  %v4287_v54 = vshll.u32 %v7800_v9, 16  ;;  %v4291_v0 = vshrl.u32 %v7800_v9, 16 }
 0x23b   : > { %v2274_v36 = vadd.f32 %v2239_v49, %v1859_v52  ;;  %v6152_v52 = vld [vmem:[#allocation2 + $0x78] sm:$0xff]  ;;  %v4275_v49 = vrot.slane %v4273_v25, 5  ;;  %v4266_v25 = vsel %vm6686_vm10, %v4261_v12, %v4265_v28 }
 0x23c   : > { %v3230_v6 = vpop.f32.mrf.mxu0  ;;  %v4703_v12 = vld [vmem:[#allocation2 + $0x78] sm:$0xe] }
 0x23d   : > { %v7789_v35 = vadd.f32 %v3230_v6, %v2586_v26  ;;  %v4811_v26 = vsel %vm7193_vm13, %v6003_v3, %v4810_v18  ;;  %v3281_v6 = vld [vmem:[#allocation2 + $0x78] sm:$0xe]  ;;  %v4278_v18 = vshrl.u32 %v4040_v58, 16  ;;  %v6457_v3 = vld [vmem:[#allocation2 + $0x80] sm:$0x1] }
 0x23e   : > { %v2550_v31 = vpop.f32.mrf.mxu3  ;;  %v7792_v24 = vpop.f32.mrf.mxu1  ;;  %v4902_v55 = vunpack.c.l.b16 %v4811_v26  ;;  %v3404_v44 = vrot.slane %v6457_v3, 5 }
 0x23f   : > { %5038 = vmatmul.bf16.gmra.mxu0 %v4926_v37  ;;  %v2587_v29 = vadd.f32 %v2550_v31, %v2273_v4  ;;  %v6456_v37 = vld [vmem:[#allocation2 + $0x7c] sm:$0xf] }
 0x240   : > { %v3401_v60 = vrot.slane %v6456_v37, 5  ;;  %v4478_v37 = vunpack.c.l.b16 %v4266_v25  ;;  %v4043_v25 = vld [vmem:[#allocation2 + $0x90] sm:$0xf] }
 0x241   : > { %3625 = vmatmul.bf16.gmra.mxu1 %v3505_v46  ;;  %v5781_v46 = vrot.slane %v3281_v6, 9  ;;  %v7819_v6 = vrot.slane %v4287_v54, 5 }
 0x242   : > { %v2241_v5 = vpop.f32.mrf.mxu2  ;;  %v3403_v31 = vrot.slane %v3401_v60, 4 }
 0x243   : > { %4617 = vmatmul.bf16.gmra.mxu3 %v4501_v59  ;;  %v2275_v53 = vadd.f32 %v2241_v5, %v1861_v40  ;;  %v3402_v15 = vsel %vm7193_vm13, %v5781_v46, %v3401_v60  ;;  %v4817_v5 = vrot.slane %v7771_v30, 5  ;;  %v7821_v60 = vld [vmem:[#allocation2 + $0x8c] sm:$0x1]  ;;  %v4820_v30 = vrot.slane %v7787_v7, 5 }
 0x244   : > { %v3232_v4 = vpop.f32.mrf.mxu0  ;;  %v3405_v40 = vsel %vm7193_vm13, %v3403_v31, %v3404_v44  ;;  %v3483_v26 = vunpack.c.l.b16 %v3402_v15 }
 0x245   : > { %v7802_v50 = vadd.f32 %v3232_v4, %v2587_v29  ;;  %v4276_v29 = vsel %vm6686_vm10, %v4271_v27, %v4275_v49  ;;  %v3484_v10 = vunpack.c.l.b16 %v3405_v40  ;;  %v4283_v4 = vrot.slane %v4281_v8, 5 }
 0x246   : > { %v2553_v32 = vpop.f32.mrf.mxu3  ;;  %v7804_v43 = vpop.f32.mrf.mxu1  ;;  %v4479_v28 = vunpack.c.l.b16 %v4276_v29  ;;  %v4293_v27 = vrot.slane %v4291_v0, 4  ;;  %v4297_v0 = vshll.u32 %v7821_v60, 16  ;;  %v7830_v29 = vld [vmem:[#allocation2 + $0x94] sm:$0xf] }
 0x247   : > { %8126 = vst [vmem:[#allocation3_spill] sm:$0xff] %v7802_v50  ;;  %v2588_v59 = vadd.f32 %v2553_v32, %v2274_v36  ;;  %3940 = vmatmul.bf16.gmra.mxu2 %v6152_v52  ;;  %v4927_v36 = vpack.c.b16 %v4903_v33, %v4902_v55  ;;  %v4280_v52 = vrot.slane %v4278_v18, 4  ;;  %v3506_v32 = vpack.c.b16 %v3484_v10, %v3483_v26  ;;  %v6153_v26 = vld [vmem:[#allocation2 + $0x84] sm:$0xff] }
 0x248   : > { %v6004_v55 = vrot.slane %v4703_v12, 9  ;;  %v4819_v33 = vrot.slane %v4817_v5, 4  ;;  %v4502_v8 = vpack.c.b16 %v4479_v28, %v4478_v37  ;;  %v4294_v54 = vor.u32 %v4293_v27, %v7819_v6  ;;  %v6458_v37 = vld [vmem:[#allocation2 + $0x88] sm:$0xf] }
 0x249   : > { %v4284_v18 = vor.u32 %v4283_v4, %v4280_v52  ;;  %v4299_v10 = vrot.slane %v4297_v0, 5  ;;  %v4305_v52 = vshll.u32 %v4043_v25, 16  ;;  %v3408_v28 = vrot.slane %v6458_v37, 5  ;;  %v6459_v0 = vld [vmem:[#allocation2 + $0x8c] sm:$0x1] }
 0x24a   : > { %v7817_v58 = vpop.f32.mrf.mxu2  ;;  %v4821_v7 = vsel %vm7193_vm13, %v4819_v33, %v4820_v30  ;;  %v4311_v12 = vshll.u32 %v7830_v29, 16  ;;  %v4315_v27 = vshrl.u32 %v7830_v29, 16 }
 0x24b   : > { %v4285_v40 = vrot.slane %v4284_v18, 4 }
 0x24c   : > { %v3235_v49 = vpop.f32.mrf.mxu0  ;;  %v4317_v37 = vrot.slane %v4315_v27, 4 }
 0x24d   : > { %v7823_v46 = vadd.f32 %v3235_v49, %v2588_v59  ;;  %v4818_v59 = vsel %vm7193_vm13, %v6004_v55, %v4817_v5  ;;  %v3666_v5 = vadd.f32 %v7792_v24, %v7427_v19  ;;  %v4290_v30 = vsel %vm6686_vm10, %v4285_v40, %v7819_v6 }
 0x24e   : > { %v2555_v31 = vpop.f32.mrf.mxu3  ;;  %v7826_v3 = vpop.f32.mrf.mxu1  ;;  %v4904_v49 = vunpack.c.l.b16 %v4818_v59  ;;  %v4824_v24 = vrot.slane %v7800_v9, 5  ;;  %v7854_v40 = vrot.slane %v4311_v12, 5  ;;  %v3667_v9 = vadd.f32 %v7804_v43, %v7444_v42 }
 0x24f   : > { %8127 = vst [vmem:[#allocation8_spill] sm:$0xff] %v7823_v46  ;;  %5043 = vmatmul.bf16.gmra.mxu0 %v4927_v36  ;;  %v2589_v44 = vadd.f32 %v2555_v31, %v2275_v53  ;;  %v4295_v53 = vrot.slane %v4294_v54, 4  ;;  %v4302_v36 = vshrl.u32 %v4043_v25, 16  ;;  %v3282_v31 = vld [vmem:[#allocation2 + $0x84] sm:$0xe]  ;;  %v3410_v54 = vrot.slane %v3408_v28, 4 }
 0x250   : > { %v3411_v25 = vrot.slane %v6459_v0, 5  ;;  %v4827_v12 = vrot.slane %v7821_v60, 5  ;;  %v4318_v27 = vor.u32 %v4317_v37, %v7854_v40 }
 0x251   : > { %3630 = vmatmul.bf16.gmra.mxu1 %v3506_v32  ;;  %v4905_v32 = vunpack.c.l.b16 %v4821_v7  ;;  %v4300_v19 = vsel %vm6686_vm10, %v4295_v53, %v4299_v10  ;;  %v4304_v59 = vrot.slane %v4302_v36, 4  ;;  %v4704_v7 = vld [vmem:[#allocation2 + $0x84] sm:$0xe]  ;;  %v4480_v36 = vunpack.c.l.b16 %v4290_v30 }
 0x252   : > { %v3903_v15 = vpop.f32.mrf.mxu2  ;;  %v3412_v6 = vsel %vm7193_vm13, %v3410_v54, %v3411_v25  ;;  %v4826_v54 = vrot.slane %v4824_v24, 4 }
 0x253   : > { %4622 = vmatmul.bf16.gmra.mxu3 %v4502_v8  ;;  %v5782_v8 = vrot.slane %v3282_v31, 9  ;;  %v3981_v31 = vadd.f32 %v7817_v58, %v3666_v5  ;;  %v3486_v0 = vunpack.c.l.b16 %v3412_v6  ;;  %v4928_v53 = vpack.c.b16 %v4905_v32, %v4904_v49 }
 0x254   : > { %v3237_v4 = vpop.f32.mrf.mxu0  ;;  %v3982_v25 = vadd.f32 %v3903_v15, %v3667_v9  ;;  %v4828_v60 = vsel %vm7193_vm13, %v4826_v54, %v4827_v12  ;;  %v7870_v15 = vld [vmem:[#allocation2 + $0xa0] sm:$0xf] }
 0x255   : > { %v7840_v55 = vadd.f32 %v3237_v4, %v2589_v44  ;;  %v4307_v44 = vrot.slane %v4305_v52, 5  ;;  %v3409_v4 = vsel %vm7193_vm13, %v5782_v8, %v3408_v28  ;;  %v4481_v52 = vunpack.c.l.b16 %v4300_v19  ;;  %v4046_v19 = vld [vmem:[#allocation2 + $0x9c] sm:$0xf] }
 0x256   : > { %v4583_v33 = vpop.f32.mrf.mxu3  ;;  %v7845_v18 = vpop.f32.mrf.mxu1  ;;  %v6005_v28 = vrot.slane %v4704_v7, 9  ;;  %v4329_v9 = vshll.u32 %v4046_v19, 16  ;;  %v4339_v54 = vshrl.u32 %v7870_v15, 16 }
 0x257   : > { %8128 = vst [vmem:[#allocation9_spill] sm:$0xff] %v7840_v55  ;;  %3945 = vmatmul.bf16.gmra.mxu2 %v6153_v26  ;;  %v3485_v26 = vunpack.c.l.b16 %v3409_v4  ;;  %v7857_v55 = vld [vmem:[#allocation2 + $0x98] sm:$0x1]  ;;  %v4308_v8 = vor.u32 %v4307_v44, %v4304_v59  ;;  %v4663_v5 = vadd.f32 %v4583_v33, %v3981_v31  ;;  %v4503_v42 = vpack.c.b16 %v4481_v52, %v4480_v36  ;;  %v6460_v52 = vld [vmem:[#allocation2 + $0x94] sm:$0xf] }
 0x258   : > { %v4321_v58 = vshll.u32 %v7857_v55, 16  ;;  %v4825_v43 = vsel %vm7193_vm13, %v6005_v28, %v4824_v24  ;;  %v4319_v59 = vrot.slane %v4318_v27, 4  ;;  %v4326_v31 = vshrl.u32 %v4046_v19, 16 }
 0x259   : > { %v3507_v4 = vpack.c.b16 %v3486_v0, %v3485_v26  ;;  %v4309_v30 = vrot.slane %v4308_v8, 4  ;;  %v4906_v33 = vunpack.c.l.b16 %v4825_v43  ;;  %v3668_v26 = vadd.f32 %v7826_v3, %v7451_v56  ;;  %v6154_v0 = vld [vmem:[#allocation2 + $0x90] sm:$0xff] }
 0x25a   : > { %v3906_v10 = vpop.f32.mrf.mxu2  ;;  %v4323_v44 = vrot.slane %v4321_v58, 5  ;;  %v4907_v24 = vunpack.c.l.b16 %v4828_v60  ;;  %v3415_v28 = vrot.slane %v6460_v52, 5  ;;  %v4335_v8 = vshll.u32 %v7870_v15, 16  ;;  %v3283_v58 = vld [vmem:[#allocation2 + $0x90] sm:$0xe] }
 0x25b   : > { %v3983_v12 = vadd.f32 %v3906_v10, %v3668_v26  ;;  %v4831_v27 = vrot.slane %v7830_v29, 5  ;;  %v4328_v43 = vrot.slane %v4326_v31, 4  ;;  %v4331_v29 = vrot.slane %v4329_v9, 5  ;;  %v4705_v60 = vld [vmem:[#allocation2 + $0x90] sm:$0xe] }
 0x25c   : > { %v5009_v46 = vpop.f32.mrf.mxu0  ;;  %v4324_v36 = vsel %vm6686_vm10, %v4319_v59, %v4323_v44  ;;  %v4341_v26 = vrot.slane %v4339_v54, 4  ;;  %v7900_v9 = vld [vmem:[#allocation2 + $0xa4] sm:$0x1]  ;;  %v4834_v54 = vrot.slane %v7857_v55, 5 }
 0x25d   : > { %v5089_v7 = vadd.f32 %v5009_v46, %v4663_v5 }
 0x25e   : > { %v4585_v49 = vpop.f32.mrf.mxu3  ;;  %v7864_v32 = vpop.f32.mrf.mxu1 }
 0x25f   : > { %5048 = vmatmul.bf16.gmra.mxu0 %v4928_v53  ;;  %v4664_v6 = vadd.f32 %v4585_v49, %v3982_v25  ;;  %v4314_v53 = vsel %vm6686_vm10, %v4309_v30, %v7854_v40  ;;  %v5223_v56 = vmul.f32 %v5089_v7, %v5089_v7  ;;  %v5783_v25 = vrot.slane %v3283_v58, 9  ;;  %v6461_v49 = vld [vmem:[#allocation2 + $0x98] sm:$0x1] }
 0x261   : > { %3635 = vmatmul.bf16.gmra.mxu1 %v3507_v4  ;;  %v3417_v4 = vrot.slane %v3415_v28, 4  ;;  %v3416_v59 = vsel %vm7193_vm13, %v5783_v25, %v3415_v28  ;;  %v4483_v28 = vunpack.c.l.b16 %v4324_v36  ;;  %v6006_v25 = vrot.slane %v4705_v60, 9  ;;  %v4049_v36 = vld [vmem:[#allocation2 + $0xa8] sm:$0xf] }
 0x262   : > { %v3908_v37 = vpop.f32.mrf.mxu2  ;;  %v3487_v58 = vunpack.c.l.b16 %v3416_v59  ;;  %v7911_v59 = vld [vmem:[#allocation2 + $0xac] sm:$0xf] }
 0x263   : > { %4627 = vmatmul.bf16.gmra.mxu3 %v4503_v42  ;;  %v3418_v42 = vrot.slane %v6461_v49, 5  ;;  %v4482_v49 = vunpack.c.l.b16 %v4314_v53 }
 0x264   : > { %v5011_v46 = vpop.f32.mrf.mxu0 }
 0x265   : > { %v5090_v3 = vadd.f32 %v5011_v46, %v4664_v6  ;;  %v3419_v44 = vsel %vm7193_vm13, %v3417_v4, %v3418_v42  ;;  %v7895_v6 = vrot.slane %v4335_v8, 5  ;;  %v4833_v8 = vrot.slane %v4831_v27, 4 }
 0x266   : > { %v4588_v40 = vpop.f32.mrf.mxu3  ;;  %v7889_v5 = vpop.f32.mrf.mxu1  ;;  %v3488_v31 = vunpack.c.l.b16 %v3419_v44  ;;  %v4332_v42 = vor.u32 %v4331_v29, %v4328_v43  ;;  %v4504_v53 = vpack.c.b16 %v4483_v28, %v4482_v49  ;;  %v6462_v49 = vld [vmem:[#allocation2 + $0xa0] sm:$0xf] }
 0x267   : > { %v6251_v30 = vpack.c.bf16 %v5090_v3, %v5089_v7  ;;  %v5186_v10 = vadd.f32 %v5090_v3, %v5089_v7  ;;  %v5224_v19 = vmul.f32 %v5090_v3, %v5090_v3  ;;  %3950 = vmatmul.bf16.gmra.mxu2 %v6154_v0  ;;  %v4665_v52 = vadd.f32 %v4588_v40, %v3983_v12 }
 0x268   : > { %v3669_v7 = vadd.f32 %v7845_v18, %v7458_v48  ;;  %v4929_v3 = vpack.c.b16 %v4907_v24, %v4906_v33  ;;  %v3508_v12 = vpack.c.b16 %v3488_v31, %v3487_v58  ;;  %v4342_v40 = vor.u32 %v4341_v26, %v7895_v6 }
 0x269   : > { %6252 = vst [vmem:[%s7887_s6] sm:$0xff] %v6251_v30   ;;  %v5255_v46 = vadd.f32 %v5224_v19, %v5223_v56  ;;  %v4345_v30 = vshll.u32 %v7900_v9, 16  ;;  %v4835_v55 = vsel %vm7193_vm13, %v4833_v8, %v4834_v54  ;;  %v4350_v26 = vshrl.u32 %v4049_v36, 16 }
 0x26a   : > { %v3911_v0 = vpop.f32.mrf.mxu2  ;;  %v3984_v4 = vadd.f32 %v3908_v37, %v3669_v7  ;;  %v4832_v37 = vsel %vm7193_vm13, %v6006_v25, %v4831_v27  ;;  %v4343_v29 = vrot.slane %v4342_v40, 4  ;;  %v4909_v31 = vunpack.c.l.b16 %v4835_v55  ;;  %v6155_v27 = vld [vmem:[#allocation2 + $0x9c] sm:$0xff] }
 0x26b   : > { %v4347_v60 = vrot.slane %v4345_v30, 5  ;;  %v4908_v58 = vunpack.c.l.b16 %v4832_v37  ;;  %v4353_v7 = vshll.u32 %v4049_v36, 16  ;;  %v3422_v28 = vrot.slane %v6462_v49, 5 }
 0x26c   : > { %v5014_v50 = vpop.f32.mrf.mxu0  ;;  %v4359_v25 = vshll.u32 %v7911_v59, 16  ;;  %v4352_v36 = vrot.slane %v4350_v26, 4 }
 0x26d   : > { %v5091_v56 = vadd.f32 %v5014_v50, %v4665_v52  ;;  %v4333_v50 = vrot.slane %v4332_v42, 4  ;;  %v4838_v42 = vrot.slane %v7870_v15, 5 }
 0x26e   : > { %v4590_v48 = vpop.f32.mrf.mxu3  ;;  %v7905_v18 = vpop.f32.mrf.mxu1 }
 0x26f   : > { %5053 = vmatmul.bf16.gmra.mxu0 %v4929_v3  ;;  %v5187_v33 = vadd.f32 %v5186_v10, %v5091_v56  ;;  %v5225_v24 = vmul.f32 %v5091_v56, %v5091_v56  ;;  %v4666_v19 = vadd.f32 %v4590_v48, %v3984_v4  ;;  %v8129_v10 = vld [vmem:[#allocation4_spill] sm:$0xff]  ;;  %v4363_v4 = vshrl.u32 %v7911_v59, 16 }
 0x270   : > { %v3670_v52 = vadd.f32 %v7864_v32, %v8129_v10  ;;  %v4348_v32 = vsel %vm6686_vm10, %v4343_v29, %v4347_v60  ;;  %v7929_v60 = vrot.slane %v4359_v25, 5  ;;  %v4840_v25 = vrot.slane %v4838_v42, 4 }
 0x271   : > { %v5256_v43 = vadd.f32 %v5255_v46, %v5225_v24  ;;  %3640 = vmatmul.bf16.gmra.mxu1 %v3508_v12  ;;  %v4338_v46 = vsel %vm6686_vm10, %v4333_v50, %v7895_v6  ;;  %v3284_v12 = vld [vmem:[#allocation2 + $0x9c] sm:$0xe]  ;;  %v3424_v6 = vrot.slane %v3422_v28, 4  ;;  %v6463_v24 = vld [vmem:[#allocation2 + $0xa4] sm:$0x1]  ;;  %v4365_v10 = vrot.slane %v4363_v4, 4 }
 0x272   : > { %v3913_v44 = vpop.f32.mrf.mxu2  ;;  %v3985_v54 = vadd.f32 %v3911_v0, %v3670_v52  ;;  %v5784_v48 = vrot.slane %v3284_v12, 9  ;;  %v4355_v0 = vrot.slane %v4353_v7, 5  ;;  %v7934_v7 = vld [vmem:[#allocation2 + $0xb0] sm:$0x1]  ;;  %v4484_v12 = vunpack.c.l.b16 %v4338_v46 }
 0x273   : > { %4632 = vmatmul.bf16.gmra.mxu3 %v4504_v53  ;;  %v3425_v53 = vrot.slane %v6463_v24, 5  ;;  %v4841_v4 = vrot.slane %v7900_v9, 5 }
 0x274   : > { %v5016_v3 = vpop.f32.mrf.mxu0  ;;  %v3423_v29 = vsel %vm7193_vm13, %v5784_v48, %v3422_v28  ;;  %v4485_v28 = vunpack.c.l.b16 %v4348_v32  ;;  %v4052_v32 = vld [vmem:[#allocation2 + $0xb4] sm:$0xf] }
 0x275   : > { %v5092_v8 = vadd.f32 %v5016_v3, %v4666_v19  ;;  %v4706_v19 = vld [vmem:[#allocation2 + $0x9c] sm:$0xe]  ;;  %v3426_v15 = vsel %vm7193_vm13, %v3424_v6, %v3425_v53  ;;  %v3489_v49 = vunpack.c.l.b16 %v3423_v29  ;;  %v4356_v53 = vor.u32 %v4355_v0, %v4352_v36 }
 0x276   : > { %v4593_v40 = vpop.f32.mrf.mxu3  ;;  %v7923_v30 = vpop.f32.mrf.mxu1  ;;  %v3490_v26 = vunpack.c.l.b16 %v3426_v15  ;;  %v6007_v48 = vrot.slane %v4706_v19, 9  ;;  %v4505_v46 = vpack.c.b16 %v4485_v28, %v4484_v12  ;;  %v4842_v9 = vsel %vm7193_vm13, %v4840_v25, %v4841_v4  ;;  %v6464_v28 = vld [vmem:[#allocation2 + $0xac] sm:$0xf] }
 0x277   : > { %v6256_v37 = vpack.c.bf16 %v5092_v8, %v5091_v56  ;;  %v5188_v55 = vadd.f32 %v5187_v33, %v5092_v8  ;;  %v5226_v50 = vmul.f32 %v5092_v8, %v5092_v8  ;;  %3955 = vmatmul.bf16.gmra.mxu2 %v6155_v27  ;;  %v4667_v3 = vadd.f32 %v4593_v40, %v3985_v54  ;;  %v8130_v56 = vld [vmem:[#allocation5_spill] sm:$0xff] }
 0x278   : > { %v3671_v33 = vadd.f32 %v7889_v5, %v8130_v56  ;;  %v4930_v8 = vpack.c.b16 %v4909_v31, %v4908_v58  ;;  %v3509_v54 = vpack.c.b16 %v3490_v26, %v3489_v49  ;;  %v4366_v40 = vor.u32 %v4365_v10, %v7929_v60  ;;  %v7945_v10 = vld [vmem:[#allocation2 + $0xb8] sm:$0xf] }
 0x279   : > { %6343 = vst [vmem:[%s7887_s6 + $0x8] sm:$0xff] %v6256_v37   ;;  %v5257_v52 = vadd.f32 %v5256_v43, %v5226_v50  ;;  %v4369_v37 = vshll.u32 %v7934_v7, 16  ;;  %v4357_v36 = vrot.slane %v4356_v53, 4  ;;  %v4374_v49 = vshrl.u32 %v4052_v32, 16 }
 0x27a   : > { %v3916_v27 = vpop.f32.mrf.mxu2  ;;  %v3986_v6 = vadd.f32 %v3913_v44, %v3671_v33  ;;  %v4839_v44 = vsel %vm7193_vm13, %v6007_v48, %v4838_v42  ;;  %v4367_v29 = vrot.slane %v4366_v40, 4  ;;  %v4911_v33 = vunpack.c.l.b16 %v4842_v9  ;;  %v6156_v42 = vld [vmem:[#allocation2 + $0xa8] sm:$0xff] }
 0x27b   : > { %v4371_v15 = vrot.slane %v4369_v37, 5  ;;  %v4910_v56 = vunpack.c.l.b16 %v4839_v44  ;;  %v3429_v48 = vrot.slane %v6464_v28, 5  ;;  %v4845_v53 = vrot.slane %v7911_v59, 5 }
 0x27c   : > { %v5019_v24 = vpop.f32.mrf.mxu0 }
 0x27d   : > { %v5093_v43 = vadd.f32 %v5019_v24, %v4667_v3  ;;  %v4383_v24 = vshll.u32 %v7945_v10, 16 }
 0x27e   : > { %v4595_v5 = vpop.f32.mrf.mxu3  ;;  %v7939_v50 = vpop.f32.mrf.mxu1 }
 0x27f   : > { %5058 = vmatmul.bf16.gmra.mxu0 %v4930_v8  ;;  %v5189_v58 = vadd.f32 %v5188_v55, %v5093_v43  ;;  %v5227_v31 = vmul.f32 %v5093_v43, %v5093_v43  ;;  %v4668_v19 = vadd.f32 %v4595_v5, %v3986_v6  ;;  %v8131_v55 = vld [vmem:[#allocation6_spill] sm:$0xff]  ;;  %v4377_v8 = vshll.u32 %v4052_v32, 16 }
 0x280   : > { %v3672_v26 = vadd.f32 %v7905_v18, %v8131_v55  ;;  %v4387_v6 = vshrl.u32 %v7945_v10, 16  ;;  %v4372_v18 = vsel %vm6686_vm10, %v4367_v29, %v4371_v15  ;;  %v4376_v32 = vrot.slane %v4374_v49, 4 }
 0x281   : > { %v5258_v0 = vadd.f32 %v5257_v52, %v5227_v31  ;;  %3645 = vmatmul.bf16.gmra.mxu1 %v3509_v54  ;;  %v4362_v52 = vsel %vm6686_vm10, %v4357_v36, %v7929_v60  ;;  %v3285_v54 = vld [vmem:[#allocation2 + $0xa8] sm:$0xe]  ;;  %v3431_v60 = vrot.slane %v3429_v48, 4  ;;  %v6465_v31 = vld [vmem:[#allocation2 + $0xb0] sm:$0x1]  ;;  %v7963_v15 = vrot.slane %v4383_v24, 5 }
 0x282   : > { %v3918_v3 = vpop.f32.mrf.mxu2  ;;  %v3987_v4 = vadd.f32 %v3916_v27, %v3672_v26  ;;  %v5785_v5 = vrot.slane %v3285_v54, 9  ;;  %v4379_v27 = vrot.slane %v4377_v8, 5  ;;  %v4389_v55 = vrot.slane %v4387_v6, 4  ;;  %v7968_v8 = vld [vmem:[#allocation2 + $0xbc] sm:$0x1] }
 0x283   : > { %4637 = vmatmul.bf16.gmra.mxu3 %v4505_v46  ;;  %v3432_v46 = vrot.slane %v6465_v31, 5  ;;  %v4486_v54 = vunpack.c.l.b16 %v4362_v52  ;;  %v4847_v24 = vrot.slane %v4845_v53, 4  ;;  %v4848_v6 = vrot.slane %v7934_v7, 5 }
 0x284   : > { %v5021_v12 = vpop.f32.mrf.mxu0  ;;  %v3430_v29 = vsel %vm7193_vm13, %v5785_v5, %v3429_v48  ;;  %v4487_v48 = vunpack.c.l.b16 %v4372_v18  ;;  %v4055_v18 = vld [vmem:[#allocation2 + $0xc0] sm:$0xf] }
 0x285   : > { %v5094_v25 = vadd.f32 %v5021_v12, %v4668_v19  ;;  %v4707_v19 = vld [vmem:[#allocation2 + $0xa8] sm:$0xe]  ;;  %v3433_v59 = vsel %vm7193_vm13, %v3431_v60, %v3432_v46  ;;  %v3491_v28 = vunpack.c.l.b16 %v3430_v29  ;;  %v4380_v46 = vor.u32 %v4379_v27, %v4376_v32 }
 0x286   : > { %v4598_v40 = vpop.f32.mrf.mxu3  ;;  %v7957_v37 = vpop.f32.mrf.mxu1  ;;  %v3492_v49 = vunpack.c.l.b16 %v3433_v59  ;;  %v6008_v5 = vrot.slane %v4707_v19, 9  ;;  %v4506_v52 = vpack.c.b16 %v4487_v48, %v4486_v54  ;;  %v4849_v7 = vsel %vm7193_vm13, %v4847_v24, %v4848_v6  ;;  %v6466_v54 = vld [vmem:[#allocation2 + $0xb8] sm:$0xf]  ;;  %v3286_v6 = vld [vmem:[#allocation2 + $0xb4] sm:$0xe] }
 0x287   : > { %v6261_v44 = vpack.c.bf16 %v5094_v25, %v5093_v43  ;;  %v5190_v9 = vadd.f32 %v5189_v58, %v5094_v25  ;;  %v5228_v36 = vmul.f32 %v5094_v25, %v5094_v25  ;;  %3960 = vmatmul.bf16.gmra.mxu2 %v6156_v42  ;;  %v4669_v12 = vadd.f32 %v4598_v40, %v3987_v4  ;;  %v8132_v43 = vld [vmem:[#allocation7_spill] sm:$0xff] }
 0x288   : > { %v3673_v58 = vadd.f32 %v7923_v30, %v8132_v43  ;;  %v4931_v25 = vpack.c.b16 %v4911_v33, %v4910_v56  ;;  %v3510_v4 = vpack.c.b16 %v3492_v49, %v3491_v28  ;;  %v4390_v40 = vor.u32 %v4389_v55, %v7963_v15  ;;  %v7979_v55 = vld [vmem:[#allocation2 + $0xc4] sm:$0xf] }
 0x289   : > { %6344 = vst [vmem:[%s7887_s6 + $0x10] sm:$0xff] %v6261_v44   ;;  %v5259_v26 = vadd.f32 %v5258_v0, %v5228_v36  ;;  %v4393_v44 = vshll.u32 %v7968_v8, 16  ;;  %v4381_v32 = vrot.slane %v4380_v46, 4  ;;  %v4398_v28 = vshrl.u32 %v4055_v18, 16 }
 0x28a   : > { %v3921_v42 = vpop.f32.mrf.mxu2  ;;  %v3988_v60 = vadd.f32 %v3918_v3, %v3673_v58  ;;  %v4846_v3 = vsel %vm7193_vm13, %v6008_v5, %v4845_v53  ;;  %v4391_v29 = vrot.slane %v4390_v40, 4  ;;  %v4913_v43 = vunpack.c.l.b16 %v4849_v7  ;;  %v6157_v53 = vld [vmem:[#allocation2 + $0xb4] sm:$0xff] }
 0x28b   : > { %v4395_v59 = vrot.slane %v4393_v44, 5  ;;  %v4912_v49 = vunpack.c.l.b16 %v4846_v3  ;;  %v4401_v58 = vshll.u32 %v4055_v18, 16  ;;  %v3436_v48 = vrot.slane %v6466_v54, 5  ;;  %v6467_v44 = vld [vmem:[#allocation2 + $0xbc] sm:$0x1] }
 0x28c   : > { %v5024_v31 = vpop.f32.mrf.mxu0  ;;  %v4407_v5 = vshll.u32 %v7979_v55, 16  ;;  %v5786_v40 = vrot.slane %v3286_v6, 9  ;;  %v4708_v7 = vld [vmem:[#allocation2 + $0xb4] sm:$0xe] }
 0x28d   : > { %v5095_v0 = vadd.f32 %v5024_v31, %v4669_v12  ;;  %v4411_v31 = vshrl.u32 %v7979_v55, 16 }
 0x28e   : > { %v4600_v30 = vpop.f32.mrf.mxu3  ;;  %v7973_v36 = vpop.f32.mrf.mxu1 }
 0x28f   : > { %5063 = vmatmul.bf16.gmra.mxu0 %v4931_v25  ;;  %v5191_v56 = vadd.f32 %v5190_v9, %v5095_v0  ;;  %v5229_v33 = vmul.f32 %v5095_v0, %v5095_v0  ;;  %v4670_v19 = vadd.f32 %v4600_v30, %v3988_v60  ;;  %v3674_v9 = vadd.f32 %v7939_v50, %v7523_v17 }
 0x290   : > { %v4396_v17 = vsel %vm6686_vm10, %v4391_v29, %v4395_v59  ;;  %v4852_v50 = vrot.slane %v7945_v10, 5  ;;  %v3439_v30 = vrot.slane %v6467_v44, 5  ;;  %v4413_v29 = vrot.slane %v4411_v31, 4 }
 0x291   : > { %v5260_v27 = vadd.f32 %v5259_v26, %v5229_v33  ;;  %3650 = vmatmul.bf16.gmra.mxu1 %v3510_v4  ;;  %v4386_v26 = vsel %vm6686_vm10, %v4381_v32, %v7963_v15  ;;  %v3989_v24 = vadd.f32 %v3921_v42, %v3674_v9  ;;  %v3438_v15 = vrot.slane %v3436_v48, 4 }
 0x292   : > { %v3923_v12 = vpop.f32.mrf.mxu2  ;;  %v4400_v33 = vrot.slane %v4398_v28, 4  ;;  %v4403_v42 = vrot.slane %v4401_v58, 5  ;;  %v3437_v32 = vsel %vm7193_vm13, %v5786_v40, %v3436_v48  ;;  %v4932_v58 = vpack.c.b16 %v4913_v43, %v4912_v49 }
 0x293   : > { %4642 = vmatmul.bf16.gmra.mxu3 %v4506_v52  ;;  %v3440_v10 = vsel %vm7193_vm13, %v3438_v15, %v3439_v30  ;;  %v4488_v54 = vunpack.c.l.b16 %v4386_v26  ;;  %v4489_v48 = vunpack.c.l.b16 %v4396_v17  ;;  %v4855_v31 = vrot.slane %v7968_v8, 5 }
 0x294   : > { %v5026_v25 = vpop.f32.mrf.mxu0  ;;  %v3494_v28 = vunpack.c.l.b16 %v3440_v10  ;;  %v4404_v15 = vor.u32 %v4403_v42, %v4400_v33 }
 0x295   : > { %v5096_v60 = vadd.f32 %v5026_v25, %v4670_v19  ;;  %v7997_v19 = vrot.slane %v4407_v5, 5  ;;  %v3493_v25 = vunpack.c.l.b16 %v3437_v32  ;;  %v4854_v5 = vrot.slane %v4852_v50, 4  ;;  %v4058_v32 = vld [vmem:[#allocation2 + $0xcc] sm:$0xf] }
 0x296   : > { %v4603_v46 = vpop.f32.mrf.mxu3  ;;  %v7991_v4 = vpop.f32.mrf.mxu1  ;;  %v4507_v26 = vpack.c.b16 %v4489_v48, %v4488_v54  ;;  %v4405_v17 = vrot.slane %v4404_v15, 4  ;;  %v3287_v54 = vld [vmem:[#allocation2 + $0xc0] sm:$0xe]  ;;  %v8020_v48 = vld [vmem:[#allocation2 + $0xd0] sm:$0xf] }
 0x297   : > { %v6266_v52 = vpack.c.bf16 %v5096_v60, %v5095_v0  ;;  %v5192_v18 = vadd.f32 %v5191_v56, %v5096_v60  ;;  %v5230_v3 = vmul.f32 %v5096_v60, %v5096_v60  ;;  %3965 = vmatmul.bf16.gmra.mxu2 %v6157_v53  ;;  %v4671_v9 = vadd.f32 %v4603_v46, %v3989_v24  ;;  %v8002_v53 = vld [vmem:[#allocation2 + $0xc8] sm:$0x1] }
 0x298   : > { %v3675_v0 = vadd.f32 %v7957_v37, %v7546_v16  ;;  %v6009_v60 = vrot.slane %v4708_v7, 9  ;;  %v3511_v24 = vpack.c.b16 %v3494_v28, %v3493_v25  ;;  %v4414_v46 = vor.u32 %v4413_v29, %v7997_v19 }
 0x299   : > { %6345 = vst [vmem:[%s7887_s6 + $0x18] sm:$0xff] %v6266_v52   ;;  %v5261_v59 = vadd.f32 %v5260_v27, %v5230_v3  ;;  %v4417_v44 = vshll.u32 %v8002_v53, 16  ;;  %v4856_v8 = vsel %vm7193_vm13, %v4854_v5, %v4855_v31  ;;  %v3676_v7 = vadd.f32 %v7973_v36, %v7554_v14 }
 0x29a   : > { %v3926_v56 = vpop.f32.mrf.mxu2  ;;  %v3990_v40 = vadd.f32 %v3923_v12, %v3675_v0  ;;  %v4853_v12 = vsel %vm7193_vm13, %v6009_v60, %v4852_v50  ;;  %v4415_v52 = vrot.slane %v4414_v46, 4  ;;  %v6468_v50 = vld [vmem:[#allocation2 + $0xc4] sm:$0xf]  ;;  %v5787_v60 = vrot.slane %v3287_v54, 9 }
 0x29b   : > { %v4419_v3 = vrot.slane %v4417_v44, 5  ;;  %v4914_v29 = vunpack.c.l.b16 %v4853_v12  ;;  %v3443_v25 = vrot.slane %v6468_v50, 5  ;;  %v3991_v0 = vadd.f32 %v3926_v56, %v3676_v7  ;;  %v4709_v7 = vld [vmem:[#allocation2 + $0xc0] sm:$0xe] }
 0x29c   : > { %v5029_v6 = vpop.f32.mrf.mxu0  ;;  %v4422_v31 = vshrl.u32 %v4058_v32, 16 }
 0x29d   : > { %v5097_v27 = vadd.f32 %v5029_v6, %v4671_v9  ;;  %v4915_v9 = vunpack.c.l.b16 %v4856_v8  ;;  %v3445_v6 = vrot.slane %v3443_v25, 4  ;;  %v3444_v46 = vsel %vm7193_vm13, %v5787_v60, %v3443_v25 }
 0x29e   : > { %v4605_v16 = vpop.f32.mrf.mxu3  ;;  %v8007_v37 = vpop.f32.mrf.mxu1  ;;  %v3495_v8 = vunpack.c.l.b16 %v3444_v46 }
 0x29f   : > { %5068 = vmatmul.bf16.gmra.mxu0 %v4932_v58  ;;  %v5193_v49 = vadd.f32 %v5192_v18, %v5097_v27  ;;  %v5231_v43 = vmul.f32 %v5097_v27, %v5097_v27  ;;  %v4672_v33 = vadd.f32 %v4605_v16, %v3990_v40  ;;  %v6158_v18 = vld [vmem:[#allocation2 + $0xc0] sm:$0xff]  ;;  %v4420_v58 = vsel %vm6686_vm10, %v4415_v52, %v4419_v3  ;;  %v6469_v40 = vld [vmem:[#allocation2 + $0xc8] sm:$0x1] }
 0x2a0   : > { %v3446_v5 = vrot.slane %v6469_v40, 5  ;;  %v4431_v16 = vshll.u32 %v8020_v48, 16  ;;  %v4491_v3 = vunpack.c.l.b16 %v4420_v58  ;;  %v4862_v58 = vrot.slane %v8002_v53, 5 }
 0x2a1   : > { %v5262_v30 = vadd.f32 %v5261_v59, %v5231_v43  ;;  %3655 = vmatmul.bf16.gmra.mxu1 %v3511_v24  ;;  %v4410_v59 = vsel %vm6686_vm10, %v4405_v17, %v7997_v19  ;;  %v4425_v19 = vshll.u32 %v4058_v32, 16  ;;  %v4435_v43 = vshrl.u32 %v8020_v48, 16 }
 0x2a2   : > { %v3928_v42 = vpop.f32.mrf.mxu2  ;;  %v3447_v44 = vsel %vm7193_vm13, %v3445_v6, %v3446_v5  ;;  %v4490_v52 = vunpack.c.l.b16 %v4410_v59  ;;  %v4433_v25 = vrot.slane %v4431_v16, 5 }
 0x2a3   : > { %4647 = vmatmul.bf16.gmra.mxu3 %v4507_v26  ;;  %v3496_v17 = vunpack.c.l.b16 %v3447_v44  ;;  %v4427_v50 = vrot.slane %v4425_v19, 5  ;;  %v6159_v19 = vld [vmem:[#allocation2 + $0xcc] sm:$0xff] }
 0x2a4   : > { %v5031_v10 = vpop.f32.mrf.mxu0  ;;  %v4508_v59 = vpack.c.b16 %v4491_v3, %v4490_v52 }
 0x2a5   : > { %v5098_v28 = vadd.f32 %v5031_v10, %v4672_v33  ;;  %v3677_v33 = vadd.f32 %v7991_v4, %v7563_v22  ;;  %v4424_v10 = vrot.slane %v4422_v31, 4 }
 0x2a6   : > { %v4608_v14 = vpop.f32.mrf.mxu3  ;;  %v8022_v36 = vpop.f32.mrf.mxu1 }
 0x2a7   : > { %v6271_v56 = vpack.c.bf16 %v5098_v28, %v5097_v27  ;;  %v5194_v15 = vadd.f32 %v5193_v49, %v5098_v28  ;;  %v5232_v24 = vmul.f32 %v5098_v28, %v5098_v28  ;;  %3970 = vmatmul.bf16.gmra.mxu2 %v6158_v18  ;;  %v4673_v12 = vadd.f32 %v4608_v14, %v3991_v0  ;;  %v8034_v14 = vld [vmem:[#allocation2 + $0xd4] sm:$0x1] }
 0x2a8   : > { %v4933_v27 = vpack.c.b16 %v4915_v9, %v4914_v29  ;;  %v4859_v18 = vrot.slane %v7979_v55, 5  ;;  %v4437_v28 = vrot.slane %v4435_v43, 4  ;;  %v3512_v0 = vpack.c.b16 %v3496_v17, %v3495_v8 }
 0x2a9   : > { %6346 = vst [vmem:[%s7887_s6 + $0x20] sm:$0xff] %v6271_v56   ;;  %v5263_v26 = vadd.f32 %v5262_v30, %v5232_v24  ;;  %v3992_v30 = vadd.f32 %v3928_v42, %v3677_v33  ;;  %v6010_v9 = vrot.slane %v4709_v7, 9  ;;  %v4428_v6 = vor.u32 %v4427_v50, %v4424_v10 }
 0x2aa   : > { %v3931_v49 = vpop.f32.mrf.mxu2  ;;  %v4861_v55 = vrot.slane %v4859_v18, 4  ;;  %v4438_v40 = vor.u32 %v4437_v28, %v4433_v25  ;;  %v4441_v5 = vshll.u32 %v8034_v14, 16  ;;  %v3678_v24 = vadd.f32 %v8007_v37, %v7574_v63 }
 0x2ab   : > { %v4429_v44 = vrot.slane %v4428_v6, 4 }
 0x2ac   : > { %v5034_v32 = vpop.f32.mrf.mxu0  ;;  %v4863_v53 = vsel %vm7193_vm13, %v4861_v55, %v4862_v58  ;;  %v4439_v16 = vrot.slane %v4438_v40, 4  ;;  %v4443_v43 = vrot.slane %v4441_v5, 5  ;;  %v4869_v40 = vrot.slane %v8034_v14, 5 }
 0x2ad   : > { %v5099_v54 = vadd.f32 %v5034_v32, %v4673_v12  ;;  %v3993_v12 = vadd.f32 %v3931_v49, %v3678_v24  ;;  %v4917_v52 = vunpack.c.l.b16 %v4863_v53  ;;  %v4434_v3 = vsel %vm6686_vm10, %v4429_v44, %v4433_v25 }
 0x2ae   : > { %v4610_v29 = vpop.f32.mrf.mxu3  ;;  %v3621_v60 = vpop.f32.mrf.mxu1  ;;  %v4444_v7 = vsel %vm6686_vm10, %v4439_v16, %v4443_v43  ;;  %v3679_v49 = vadd.f32 %v8022_v36, %v7584_v11  ;;  %v4492_v28 = vunpack.c.l.b16 %v4434_v3 }
 0x2af   : > { %5073 = vmatmul.bf16.gmra.mxu0 %v4933_v27  ;;  %v5195_v22 = vadd.f32 %v5194_v15, %v5099_v54  ;;  %v5233_v4 = vmul.f32 %v5099_v54, %v5099_v54  ;;  %v4674_v56 = vadd.f32 %v4610_v29, %v3992_v30  ;;  %v4860_v15 = vsel %vm7193_vm13, %v6010_v9, %v4859_v18 }
 0x2b0   : > { %v4916_v8 = vunpack.c.l.b16 %v4860_v15  ;;  %v4866_v29 = vrot.slane %v8020_v48, 5 }
 0x2b1   : > { %v5264_v31 = vadd.f32 %v5263_v26, %v5233_v4  ;;  %3660 = vmatmul.bf16.gmra.mxu1 %v3512_v0  ;;  %v4710_v0 = vld [vmem:[#allocation2 + $0xcc] sm:$0xe] }
 0x2b2   : > { %v3933_v42 = vpop.f32.mrf.mxu2  ;;  %v4934_v50 = vpack.c.b16 %v4917_v52, %v4916_v8  ;;  %v6011_v55 = vrot.slane %v4710_v0, 9  ;;  %v4868_v6 = vrot.slane %v4866_v29, 4 }
 0x2b3   : > { %4652 = vmatmul.bf16.gmra.mxu3 %v4508_v59 }
 0x2b4   : > { %v5036_v46 = vpop.f32.mrf.mxu0  ;;  %v4867_v48 = vsel %vm7193_vm13, %v6011_v55, %v4866_v29 }
 0x2b5   : > { %v5100_v26 = vadd.f32 %v5036_v46, %v4674_v56 }
 0x2b6   : > { %v4613_v17 = vpop.f32.mrf.mxu3  ;;  %v3623_v27 = vpop.f32.mrf.mxu1 }
 0x2b7   : > { %v6276_v33 = vpack.c.bf16 %v5100_v26, %v5099_v54  ;;  %v5196_v63 = vadd.f32 %v5195_v22, %v5100_v26  ;;  %v5234_v37 = vmul.f32 %v5100_v26, %v5100_v26  ;;  %3975 = vmatmul.bf16.gmra.mxu2 %v6159_v19  ;;  %v4675_v32 = vadd.f32 %v4613_v17, %v3993_v12 }
 0x2b8   : > { %v4493_v54 = vunpack.c.l.b16 %v4444_v7  ;;  %v3994_v22 = vadd.f32 %v3933_v42, %v3679_v49  ;;  %v4870_v42 = vsel %vm7193_vm13, %v4868_v6, %v4869_v40  ;;  %v4918_v19 = vunpack.c.l.b16 %v4867_v48 }
 0x2b9   : > { %6347 = vst [vmem:[%s7887_s6 + $0x28] sm:$0xff] %v6276_v33   ;;  %v5265_v18 = vadd.f32 %v5264_v31, %v5234_v37  ;;  %v3680_v31 = vadd.f32 %v3621_v60, %v7600_v61  ;;  %v4919_v43 = vunpack.c.l.b16 %v4870_v42  ;;  %v3681_v8 = vadd.f32 %v3623_v27, %v7611_v21 }
 0x2ba   : > { %v3936_v10 = vpop.f32.mrf.mxu2  ;;  %v4509_v58 = vpack.c.b16 %v4493_v54, %v4492_v28 }
 0x2bb   : > { %v3995_v15 = vadd.f32 %v3936_v10, %v3680_v31  ;;  %v4935_v12 = vpack.c.b16 %v4919_v43, %v4918_v19 }
 0x2bc   : > { %v5039_v30 = vpop.f32.mrf.mxu0 }
 0x2bd   : > { %v5101_v9 = vadd.f32 %v5039_v30, %v4675_v32 }
 0x2be   : > { %v4615_v25 = vpop.f32.mrf.mxu3  ;;  %v3626_v4 = vpop.f32.mrf.mxu1 }
 0x2bf   : > { %5078 = vmatmul.bf16.gmra.mxu0 %v4934_v50  ;;  %v5197_v45 = vadd.f32 %v5196_v63, %v5101_v9  ;;  %v5235_v59 = vmul.f32 %v5101_v9, %v5101_v9  ;;  %v4676_v11 = vadd.f32 %v4615_v25, %v3994_v22  ;;  %v3682_v10 = vadd.f32 %v3626_v4, %v7627_v2 }
 0x2c1   : > { %v5266_v5 = vadd.f32 %v5265_v18, %v5235_v59 }
 0x2c2   : > { %v3938_v36 = vpop.f32.mrf.mxu2 }
 0x2c3   : > { %4657 = vmatmul.bf16.gmra.mxu3 %v4509_v58  ;;  %v3996_v47 = vadd.f32 %v3938_v36, %v3681_v8 }
 0x2c4   : > { %v5041_v56 = vpop.f32.mrf.mxu0 }
 0x2c5   : > { %v5102_v24 = vadd.f32 %v5041_v56, %v4676_v11 }
 0x2c6   : > { %v4618_v46 = vpop.f32.mrf.mxu3  ;;  %v3628_v53 = vpop.f32.mrf.mxu1 }
 0x2c7   : > { %v6281_v14 = vpack.c.bf16 %v5102_v24, %v5101_v9  ;;  %v5198_v44 = vadd.f32 %v5197_v45, %v5102_v24  ;;  %v5236_v16 = vmul.f32 %v5102_v24, %v5102_v24  ;;  %v4677_v61 = vadd.f32 %v4618_v46, %v3995_v15 }
 0x2c8   : > { %v3683_v25 = vadd.f32 %v3628_v53, %v7638_v41 }
 0x2c9   : > { %6348 = vst [vmem:[%s7887_s6 + $0x30] sm:$0xff] %v6281_v14   ;;  %v5267_v26 = vadd.f32 %v5266_v5, %v5236_v16 }
 0x2ca   : > { %v3941_v60 = vpop.f32.mrf.mxu2 }
 0x2cb   : > { %v3997_v28 = vadd.f32 %v3941_v60, %v3682_v10 }
 0x2cc   : > { %v5044_v17 = vpop.f32.mrf.mxu0 }
 0x2cd   : > { %v5103_v33 = vadd.f32 %v5044_v17, %v4677_v61 }
 0x2ce   : > { %v4620_v63 = vpop.f32.mrf.mxu3  ;;  %v3631_v37 = vpop.f32.mrf.mxu1 }
 0x2cf   : > { %5083 = vmatmul.bf16.gmra.mxu0 %v4935_v12  ;;  %v5199_v52 = vadd.f32 %v5198_v44, %v5103_v33  ;;  %v5237_v3 = vmul.f32 %v5103_v33, %v5103_v33  ;;  %v4678_v18 = vadd.f32 %v4620_v63, %v3996_v47  ;;  %v3684_v36 = vadd.f32 %v3631_v37, %v7654_v39 }
 0x2d1   : > { %v5268_v7 = vadd.f32 %v5267_v26, %v5237_v3 }
 0x2d2   : > { %v3943_v32 = vpop.f32.mrf.mxu2 }
 0x2d3   : > { %v3998_v58 = vadd.f32 %v3943_v32, %v3683_v25 }
 0x2d4   : > { %v5046_v50 = vpop.f32.mrf.mxu0 }
 0x2d5   : > { %v5104_v49 = vadd.f32 %v5046_v50, %v4678_v18 }
 0x2d6   : > { %v4623_v54 = vpop.f32.mrf.mxu3  ;;  %v3633_v30 = vpop.f32.mrf.mxu1 }
 0x2d7   : > { %v6286_v21 = vpack.c.bf16 %v5104_v49, %v5103_v33  ;;  %v5200_v27 = vadd.f32 %v5199_v52, %v5104_v49  ;;  %v5238_v0 = vmul.f32 %v5104_v49, %v5104_v49  ;;  %v4679_v9 = vadd.f32 %v4623_v54, %v3997_v28 }
 0x2d8   : > { %v3685_v44 = vadd.f32 %v3633_v30, %v7665_v38 }
 0x2d9   : > { %6349 = vst [vmem:[%s7887_s6 + $0x38] sm:$0xff] %v6286_v21   ;;  %v5269_v29 = vadd.f32 %v5268_v7, %v5238_v0 }
 0x2da   : > { %v3946_v22 = vpop.f32.mrf.mxu2 }
 0x2db   : > { %v3999_v56 = vadd.f32 %v3946_v22, %v3684_v36 }
 0x2dc   : > { %v5049_v45 = vpop.f32.mrf.mxu0 }
 0x2dd   : > { %v5105_v59 = vadd.f32 %v5049_v45, %v4679_v9 }
 0x2de   : > { %v4625_v55 = vpop.f32.mrf.mxu3  ;;  %v3636_v2 = vpop.f32.mrf.mxu1 }
 0x2df   : > { %v5201_v4 = vadd.f32 %v5200_v27, %v5105_v59  ;;  %v5239_v6 = vmul.f32 %v5105_v59, %v5105_v59  ;;  %v4680_v5 = vadd.f32 %v4625_v55, %v3998_v58  ;;  %v3686_v47 = vadd.f32 %v3636_v2, %v7681_v20 }
 0x2e1   : > { %v5270_v40 = vadd.f32 %v5269_v29, %v5239_v6 }
 0x2e2   : > { %v3948_v11 = vpop.f32.mrf.mxu2 }
 0x2e3   : > { %v4000_v26 = vadd.f32 %v3948_v11, %v3685_v44 }
 0x2e4   : > { %v5051_v31 = vpop.f32.mrf.mxu0 }
 0x2e5   : > { %v5106_v48 = vadd.f32 %v5051_v31, %v4680_v5 }
 0x2e6   : > { %v4628_v42 = vpop.f32.mrf.mxu3  ;;  %v3638_v24 = vpop.f32.mrf.mxu1 }
 0x2e7   : > { %v6291_v15 = vpack.c.bf16 %v5106_v48, %v5105_v59  ;;  %v5202_v41 = vadd.f32 %v5201_v4, %v5106_v48  ;;  %v5240_v19 = vmul.f32 %v5106_v48, %v5106_v48  ;;  %v4681_v53 = vadd.f32 %v4628_v42, %v3999_v56 }
 0x2e8   : > { %v3687_v28 = vadd.f32 %v3638_v24, %v7692_v34 }
 0x2e9   : > { %6350 = vst [vmem:[%s7887_s6 + $0x40] sm:$0xff] %v6291_v15   ;;  %v5271_v46 = vadd.f32 %v5270_v40, %v5240_v19 }
 0x2ea   : > { %v3951_v14 = vpop.f32.mrf.mxu2 }
 0x2eb   : > { %v4001_v52 = vadd.f32 %v3951_v14, %v3686_v47 }
 0x2ec   : > { %v5054_v16 = vpop.f32.mrf.mxu0 }
 0x2ed   : > { %v5107_v43 = vadd.f32 %v5054_v16, %v4681_v53 }
 0x2ee   : > { %v4630_v61 = vpop.f32.mrf.mxu3  ;;  %v3641_v39 = vpop.f32.mrf.mxu1 }
 0x2ef   : > { %v5203_v60 = vadd.f32 %v5202_v41, %v5107_v43  ;;  %v5241_v12 = vmul.f32 %v5107_v43, %v5107_v43  ;;  %v4682_v17 = vadd.f32 %v4630_v61, %v4000_v26  ;;  %v3688_v45 = vadd.f32 %v3641_v39, %v7708_v23 }
 0x2f1   : > { %v5272_v8 = vadd.f32 %v5271_v46, %v5241_v12 }
 0x2f2   : > { %v3953_v33 = vpop.f32.mrf.mxu2 }
 0x2f3   : > { %v4002_v21 = vadd.f32 %v3953_v33, %v3687_v28 }
 0x2f4   : > { %v5056_v63 = vpop.f32.mrf.mxu0 }
 0x2f5   : > { %v5108_v37 = vadd.f32 %v5056_v63, %v4682_v17 }
 0x2f6   : > { %v4633_v3 = vpop.f32.mrf.mxu3  ;;  %v3643_v32 = vpop.f32.mrf.mxu1 }
 0x2f7   : > { %v6296_v7 = vpack.c.bf16 %v5108_v37, %v5107_v43  ;;  %v5204_v18 = vadd.f32 %v5203_v60, %v5108_v37  ;;  %v5242_v38 = vmul.f32 %v5108_v37, %v5108_v37  ;;  %v4683_v50 = vadd.f32 %v4633_v3, %v4001_v52 }
 0x2f8   : > { %v3689_v36 = vadd.f32 %v3643_v32, %v7719_v51 }
 0x2f9   : > { %6351 = vst [vmem:[%s7887_s6 + $0x48] sm:$0xff] %v6296_v7   ;;  %v5273_v10 = vadd.f32 %v5272_v8, %v5242_v38 }
 0x2fa   : > { %v3956_v49 = vpop.f32.mrf.mxu2 }
 0x2fb   : > { %v4003_v55 = vadd.f32 %v3956_v49, %v3688_v45 }
 0x2fc   : > { %v5059_v54 = vpop.f32.mrf.mxu0 }
 0x2fd   : > { %v5109_v30 = vadd.f32 %v5059_v54, %v4683_v50 }
 0x2fe   : > { %v4635_v27 = vpop.f32.mrf.mxu3  ;;  %v3646_v25 = vpop.f32.mrf.mxu1 }
 0x2ff   : > { %v5205_v20 = vadd.f32 %v5204_v18, %v5109_v30  ;;  %v5243_v0 = vmul.f32 %v5109_v30, %v5109_v30  ;;  %v4684_v9 = vadd.f32 %v4635_v27, %v4002_v21  ;;  %v3690_v53 = vadd.f32 %v3646_v25, %v7735_v13 }
 0x301   : > { %v5274_v29 = vadd.f32 %v5273_v10, %v5243_v0 }
 0x302   : > { %v3958_v22 = vpop.f32.mrf.mxu2 }
 0x303   : > { %v4004_v42 = vadd.f32 %v3958_v22, %v3689_v36 }
 0x304   : > { %v5061_v59 = vpop.f32.mrf.mxu0 }
 0x305   : > { %v5110_v58 = vadd.f32 %v5061_v59, %v4684_v9 }
 0x306   : > { %v4638_v2 = vpop.f32.mrf.mxu3  ;;  %v3648_v48 = vpop.f32.mrf.mxu1 }
 0x307   : > { %v6301_v4 = vpack.c.bf16 %v5110_v58, %v5109_v30  ;;  %v5206_v6 = vadd.f32 %v5205_v20, %v5110_v58  ;;  %v5244_v34 = vmul.f32 %v5110_v58, %v5110_v58  ;;  %v4685_v5 = vadd.f32 %v4638_v2, %v4003_v55 }
 0x308   : > { %v3691_v17 = vadd.f32 %v3648_v48, %v7746_v62 }
 0x309   : > { %6352 = vst [vmem:[%s7887_s6 + $0x50] sm:$0xff] %v6301_v4   ;;  %v5275_v40 = vadd.f32 %v5274_v29, %v5244_v34 }
 0x30a   : > { %v3961_v11 = vpop.f32.mrf.mxu2 }
 0x30b   : > { %v4005_v16 = vadd.f32 %v3961_v11, %v3690_v53 }
 0x30c   : > { %v5064_v31 = vpop.f32.mrf.mxu0 }
 0x30d   : > { %v5111_v56 = vadd.f32 %v5064_v31, %v4685_v5 }
 0x30e   : > { %v4640_v24 = vpop.f32.mrf.mxu3  ;;  %v3651_v26 = vpop.f32.mrf.mxu1 }
 0x30f   : > { %v5207_v23 = vadd.f32 %v5206_v6, %v5111_v56  ;;  %v5245_v15 = vmul.f32 %v5111_v56, %v5111_v56  ;;  %v4686_v19 = vadd.f32 %v4640_v24, %v4004_v42  ;;  %v3692_v32 = vadd.f32 %v3651_v26, %v7762_v57  ;;  %v8133_v24 = vld [vmem:[#allocation3_spill] sm:$0xff]  ;;  %v8134_v26 = vld [vmem:[#allocation8_spill] sm:$0xff] }
 0x311   : > { %v5276_v41 = vadd.f32 %v5275_v40, %v5245_v15  ;;  %v6495_v40 = vmov 0.0  }
 0x312   : > { %v3963_v46 = vpop.f32.mrf.mxu2  ;;  %265 = vst [vmem:[%s8082_s9] sm:$0x3] %v6495_v40 }
 0x313   : > { %v4006_v63 = vadd.f32 %v3963_v46, %v3691_v17 }
 0x314   : > { %v5066_v14 = vpop.f32.mrf.mxu0 }
 0x315   : > { %v5112_v44 = vadd.f32 %v5066_v14, %v4686_v19 }
 0x316   : > { %v4643_v43 = vpop.f32.mrf.mxu3  ;;  %v3653_v3 = vpop.f32.mrf.mxu1 }
 0x317   : > { %v6306_v61 = vpack.c.bf16 %v5112_v44, %v5111_v56  ;;  %v5208_v51 = vadd.f32 %v5207_v23, %v5112_v44  ;;  %v5246_v39 = vmul.f32 %v5112_v44, %v5112_v44  ;;  %v4687_v12 = vadd.f32 %v4643_v43, %v4005_v16 }
 0x318   : > { %v3693_v0 = vadd.f32 %v3653_v3, %v7773_v1 }
 0x319   : > { %6353 = vst [vmem:[%s7887_s6 + $0x58] sm:$0xff] %v6306_v61   ;;  %v5277_v60 = vadd.f32 %v5276_v41, %v5246_v39 }
 0x31a   : > { %v3966_v8 = vpop.f32.mrf.mxu2 }
 0x31b   : > { %v4007_v49 = vadd.f32 %v3966_v8, %v3692_v32 }
 0x31c   : > { %v5069_v33 = vpop.f32.mrf.mxu0 }
 0x31d   : > { %v5113_v47 = vadd.f32 %v5069_v33, %v4687_v12 }
 0x31e   : > { %v4645_v37 = vpop.f32.mrf.mxu3  ;;  %v3656_v20 = vpop.f32.mrf.mxu1 }
 0x31f   : > { %v5209_v13 = vadd.f32 %v5208_v51, %v5113_v47  ;;  %v5247_v52 = vmul.f32 %v5113_v47, %v5113_v47  ;;  %v4688_v18 = vadd.f32 %v4645_v37, %v4006_v63  ;;  %v3694_v2 = vadd.f32 %v3656_v20, %v7789_v35 }
 0x321   : > { %v5278_v7 = vadd.f32 %v5277_v60, %v5247_v52  ;;  %v8135_v52 = vld [vmem:[#allocation9_spill] sm:$0xff] }
 0x322   : > { %v3968_v38 = vpop.f32.mrf.mxu2 }
 0x323   : > { %v4008_v25 = vadd.f32 %v3968_v38, %v3693_v0 }
 0x324   : > { %v5071_v10 = vpop.f32.mrf.mxu0 }
 0x325   : > { %v5114_v50 = vadd.f32 %v5071_v10, %v4688_v18 }
 0x326   : > { %v4648_v28 = vpop.f32.mrf.mxu3  ;;  %v3658_v4 = vpop.f32.mrf.mxu1 }
 0x327   : > { %v6311_v54 = vpack.c.bf16 %v5114_v50, %v5113_v47  ;;  %v5210_v62 = vadd.f32 %v5209_v13, %v5114_v50  ;;  %v5248_v30 = vmul.f32 %v5114_v50, %v5114_v50  ;;  %v4689_v27 = vadd.f32 %v4648_v28, %v4007_v49 }
 0x328   : > { %v3695_v23 = vadd.f32 %v3658_v4, %v8133_v24 }
 0x329   : > { %6354 = vst [vmem:[%s7887_s6 + $0x60] sm:$0xff] %v6311_v54   ;;  %v5279_v21 = vadd.f32 %v5278_v7, %v5248_v30 }
 0x32a   : > { %v3971_v9 = vpop.f32.mrf.mxu2 }
 0x32b   : > { %v4009_v34 = vadd.f32 %v3971_v9, %v3694_v2  ;;  %v5185_v2 = vld [vmem:[%s8082_s9] sm:$0x3] }
 0x32c   : > { %v5074_v29 = vpop.f32.mrf.mxu0 }
 0x32d   : > { %v5115_v22 = vadd.f32 %v5074_v29, %v4689_v27 }
 0x32e   : > { %v4650_v45 = vpop.f32.mrf.mxu3  ;;  %v3661_v46 = vpop.f32.mrf.mxu1 }
 0x32f   : > { %v5211_v57 = vadd.f32 %v5210_v62, %v5115_v22  ;;  %v5249_v59 = vmul.f32 %v5115_v22, %v5115_v22  ;;  %v4690_v55 = vadd.f32 %v4650_v45, %v4008_v25  ;;  %v3696_v61 = vadd.f32 %v3661_v46, %v8134_v26 }
 0x331   : > { %v5280_v58 = vadd.f32 %v5279_v21, %v5249_v59 }
 0x332   : > { %v3973_v11 = vpop.f32.mrf.mxu2 }
 0x333   : > { %v4010_v19 = vadd.f32 %v3973_v11, %v3695_v23 }
 0x334   : > { %v5076_v1 = vpop.f32.mrf.mxu0 }
 0x335   : > { %v5116_v6 = vadd.f32 %v5076_v1, %v4690_v55 }
 0x336   : > { %v4653_v5 = vpop.f32.mrf.mxu3  ;;  %v3663_v47 = vpop.f32.mrf.mxu1 }
 0x337   : > { %v6316_v36 = vpack.c.bf16 %v5116_v6, %v5115_v22  ;;  %v5212_v31 = vadd.f32 %v5211_v57, %v5116_v6  ;;  %v5250_v48 = vmul.f32 %v5116_v6, %v5116_v6  ;;  %v4691_v42 = vadd.f32 %v4653_v5, %v4009_v34 }
 0x338   : > { %v3697_v3 = vadd.f32 %v3663_v47, %v8135_v52 }
 0x339   : > { %6355 = vst [vmem:[%s7887_s6 + $0x68] sm:$0xff] %v6316_v36   ;;  %v5281_v56 = vadd.f32 %v5280_v58, %v5250_v48 }
 0x33a   : > { %v3976_v44 = vpop.f32.mrf.mxu2 }
 0x33b   : > { %v4011_v60 = vadd.f32 %v3976_v44, %v3696_v61 }
 0x33c   : > { %v5079_v15 = vpop.f32.mrf.mxu0 }
 0x33d   : > { %v5117_v41 = vadd.f32 %v5079_v15, %v4691_v42 }
 0x33e   : > { %v4655_v35 = vpop.f32.mrf.mxu3 }
 0x33f   : > { %v5213_v53 = vadd.f32 %v5212_v31, %v5117_v41  ;;  %v5251_v14 = vmul.f32 %v5117_v41, %v5117_v41  ;;  %v4692_v43 = vadd.f32 %v4655_v35, %v4010_v19 }
 0x341   : > { %v5282_v16 = vadd.f32 %v5281_v56, %v5251_v14 }
 0x342   : > { %v3978_v13 = vpop.f32.mrf.mxu2 }
 0x343   : > { %v4012_v38 = vadd.f32 %v3978_v13, %v3697_v3 }
 0x344   : > { %v5081_v51 = vpop.f32.mrf.mxu0 }
 0x345   : > { %v5118_v39 = vadd.f32 %v5081_v51, %v4692_v43 }
 0x346   : > { %v4658_v12 = vpop.f32.mrf.mxu3 }
 0x347   : > { %v6321_v8 = vpack.c.bf16 %v5118_v39, %v5117_v41  ;;  %v5214_v17 = vadd.f32 %v5213_v53, %v5118_v39  ;;  %v5252_v33 = vmul.f32 %v5118_v39, %v5118_v39  ;;  %v4693_v37 = vadd.f32 %v4658_v12, %v4011_v60 }
 0x349   : > { %6356 = vst [vmem:[%s7887_s6 + $0x70] sm:$0xff] %v6321_v8   ;;  %v5283_v63 = vadd.f32 %v5282_v16, %v5252_v33 }
 0x34c   : > { %v5084_v7 = vpop.f32.mrf.mxu0 }
 0x34d   : > { %v5119_v18 = vadd.f32 %v5084_v7, %v4693_v37 }
 0x34e   : > { %v4660_v50 = vpop.f32.mrf.mxu3 }
 0x34f   : > { %v5215_v32 = vadd.f32 %v5214_v17, %v5119_v18  ;;  %v5253_v10 = vmul.f32 %v5119_v18, %v5119_v18  ;;  %v4694_v28 = vadd.f32 %v4660_v50, %v4012_v38 }
 0x351   : > { %v5284_v49 = vadd.f32 %v5283_v63, %v5253_v10 }
 0x354   : > { %v5086_v54 = vpop.f32.mrf.mxu0 }
 0x355   : > { %v5120_v62 = vadd.f32 %v5086_v54, %v4694_v28 }
 0x357   : > { %v6326_v30 = vpack.c.bf16 %v5120_v62, %v5119_v18  ;;  %v5216_v21 = vadd.f32 %v5215_v32, %v5120_v62  ;;  %v5254_v27 = vmul.f32 %v5120_v62, %v5120_v62 }
 0x359   : > { %6357 = vst [vmem:[%s7887_s6 + $0x78] sm:$0xff] %v6326_v30   ;;  %v5217_v20 = vrot.slane %v5216_v21, 4  ;;  %v5285_v0 = vadd.f32 %v5284_v49, %v5254_v27 }
 0x35b   : > { %v5218_v29 = vadd.f32 %v5217_v20, %v5216_v21  ;;  %v5286_v9 = vrot.slane %v5285_v0, 4 }
 0x35d   : > { %v5219_v22 = vrot.slane %v5218_v29, 2  ;;  %v5287_v25 = vadd.f32 %v5286_v9, %v5285_v0 }
 0x35f   : > { %v5220_v45 = vadd.f32 %v5219_v22, %v5218_v29  ;;  %v5288_v57 = vrot.slane %v5287_v25, 2 }
 0x361   : > { %v5221_v59 = vrot.slane %v5220_v45, 1  ;;  %v5289_v58 = vadd.f32 %v5288_v57, %v5287_v25 }
 0x363   : > { %v5290_v55 = vrot.slane %v5289_v58, 1  ;;  %v5222_v1 = vadd.f32 %v5221_v59, %v5220_v45 }
 0x365   : > { %v5291_v4 = vadd.f32 %v5290_v55, %v5289_v58 }
 0x367   : > { %v5293_v6 = vsel %vm851_vm2, %v5222_v1, %v5291_v4 }
 0x368   : > { %v5294_v34 = vadd.f32 %v5293_v6, %v5185_v2 }
 0x36a   : > { %5295 = vst [vmem:[%s8082_s9] sm:$0x3] %v5294_v34 }
 0x36b PF: > { %s16_s20 = sadd.s32 1, %s6492_s20   ;;  %s8136_s18 = smov %s6488_s19 }
 0x36c   : > { %p13_p5 = scmp.ge.s32.totalorder %s16_s20, 4   ;;  %s8137_s19 = smov %s8139_s21 }
 0x36e   :  { %15 = sbr.rel (!%p13_p5) target bundleno = 2 (0x2), region = 92 }

</bundles_post_ra>
